<compile_context>
chip_gen: v7x
topology: tpu7x:2x2x1
jax: 0.10.0
libtpu: 0.0.40
codegen_flags: <defaults>
</compile_context>

<pallas_src>
import functools
import math

import jax
import jax.numpy as jnp
from jax.experimental import pallas as pl
from jax.experimental.pallas import tpu as pltpu


# Tile targets. v6e/v7x: feed the 2x256x256 MXU (tn=256, tk up to 512).
# On v5e (4x128x128 MXU, single vector-store slot) drop TN/TK targets to 128-256.
TM_TARGET = 256
TN_TARGET = 256
TK_TARGET = 512
LN_TM_TARGET = 512


def _round_up(x, m):
    return ((x + m - 1) // m) * m


def _pick_tile(dim, target, align):
    """Largest tile <= target that divides `dim` and is a multiple of `align`;
    falls back to the full dimension (always a legal block size)."""
    if dim <= target or dim % align != 0:
        return dim
    t = (target // align) * align
    while t >= align:
        if dim % t == 0:
            return t
        t -= align
    return dim


# ----------------------------------------------------------------------------
# Pallas kernels
# ----------------------------------------------------------------------------

def _make_matmul_kernel(has_bias, has_res):
    """Tiled matmul with f32 accumulator; optional bias and residual-add fused
    into the finalize step."""
    def kernel(*refs):
        if has_bias and has_res:
            x_ref, w_ref, b_ref, r_ref, o_ref, acc_ref = refs
        elif has_bias:
            x_ref, w_ref, b_ref, o_ref, acc_ref = refs
        elif has_res:
            x_ref, w_ref, r_ref, o_ref, acc_ref = refs
        else:
            x_ref, w_ref, o_ref, acc_ref = refs

        k = pl.program_id(2)

        @pl.when(k == 0)
        def _():
            acc_ref[...] = jnp.zeros_like(acc_ref)

        acc_ref[...] += jnp.dot(x_ref[...], w_ref[...],
                                preferred_element_type=jnp.float32)

        @pl.when(k == pl.num_programs(2) - 1)
        def _():
            out = acc_ref[...]
            if has_bias:
                out = out + b_ref[...]
            if has_res:
                out = out + r_ref[...]
            o_ref[...] = out.astype(o_ref.dtype)

    return kernel


def _layernorm_kernel(x_ref, g_ref, b_ref, o_ref, *, eps):
    x = x_ref[...].astype(jnp.float32)
    mu = jnp.mean(x, axis=-1, keepdims=True)
    var = jnp.mean(jnp.square(x - mu), axis=-1, keepdims=True)
    o_ref[...] = ((x - mu) * jax.lax.rsqrt(var + eps) * g_ref[...]
                  + b_ref[...]).astype(o_ref.dtype)


def _ln_matmul_kernel(x_ref, g_ref, be_ref, w_ref, b_ref, o_ref, *, eps):
    """Fused LayerNorm (full row) + matmul + bias (LN1 + QKV projection)."""
    x = x_ref[...].astype(jnp.float32)
    mu = jnp.mean(x, axis=-1, keepdims=True)
    var = jnp.mean(jnp.square(x - mu), axis=-1, keepdims=True)
    xn = (x - mu) * jax.lax.rsqrt(var + eps) * g_ref[...] + be_ref[...]
    o_ref[...] = (jnp.dot(xn.astype(jnp.bfloat16), w_ref[...],
                          preferred_element_type=jnp.float32)
                  + b_ref[...]).astype(o_ref.dtype)


def _ln_mlp_kernel(x_ref, g_ref, be_ref, w1_ref, b1_ref, w2_ref, b2_ref, o_ref,
                   *, eps):
    """Fused LN2 + c_fc + QuickGELU + c_proj + residual add."""
    x = x_ref[...].astype(jnp.float32)
    mu = jnp.mean(x, axis=-1, keepdims=True)
    var = jnp.mean(jnp.square(x - mu), axis=-1, keepdims=True)
    xn = (x - mu) * jax.lax.rsqrt(var + eps) * g_ref[...] + be_ref[...]
    h = jnp.dot(xn.astype(jnp.bfloat16), w1_ref[...],
                preferred_element_type=jnp.float32) + b1_ref[...]
    h = h * jax.nn.sigmoid(1.702 * h)                     # QuickGELU
    o_ref[...] = (x + jnp.dot(h.astype(jnp.bfloat16), w2_ref[...],
                              preferred_element_type=jnp.float32)
                  + b2_ref[...]).astype(o_ref.dtype)


def _flash_attn_kernel(q_ref, k_ref, v_ref, o_ref, m_sc, l_sc, acc_sc,
                       *, scale, kv_len, tk):
    """Online-softmax attention for one (batch*head, q-tile) across kv tiles."""
    kv = pl.program_id(2)

    @pl.when(kv == 0)
    def _():
        m_sc[...] = jnp.full_like(m_sc, -jnp.inf)
        l_sc[...] = jnp.zeros_like(l_sc)
        acc_sc[...] = jnp.zeros_like(acc_sc)

    q = q_ref[0]                                          # (tq, dh) bf16
    k = k_ref[0]                                          # (tk, dh) bf16
    s = jax.lax.dot_general(q, k, (((1,), (1,)), ((), ())),
                            preferred_element_type=jnp.float32) * scale
    # Mask keys past the true sequence length (kv padding).
    col = kv * tk + jax.lax.broadcasted_iota(jnp.int32, s.shape, 1)
    s = jnp.where(col < kv_len, s, -jnp.inf)

    m_prev = m_sc[...]
    m_new = jnp.maximum(m_prev, jnp.max(s, axis=-1, keepdims=True))
    alpha = jnp.exp(m_prev - m_new)
    p = jnp.exp(s - m_new)
    l_sc[...] = alpha * l_sc[...] + jnp.sum(p, axis=-1, keepdims=True)
    acc_sc[...] = alpha * acc_sc[...] + jnp.dot(p.astype(jnp.bfloat16), v_ref[0],
                                                preferred_element_type=jnp.float32)
    m_sc[...] = m_new

    @pl.when(kv == pl.num_programs(2) - 1)
    def _():
        o_ref[0] = (acc_sc[...] *
                    pl.reciprocal(l_sc[...], approx=True)).astype(o_ref.dtype)


# ----------------------------------------------------------------------------
# Pallas wrappers
# ----------------------------------------------------------------------------

def pallas_matmul(x, w, b=None, residual=None):
    """x:(M,K) @ w:(K,N) [+b] [+residual]; bf16 MXU inputs, f32 accumulation."""
    M, K = x.shape
    N = w.shape[1]
    xb = x.astype(jnp.bfloat16)
    wb = w.astype(jnp.bfloat16)

    tk = _pick_tile(K, TK_TARGET, 128)
    tn = _pick_tile(N, TN_TARGET, 128)
    tm = min(TM_TARGET, _round_up(M, 8))
    Mp = _round_up(M, tm)
    if Mp != M:
        xb = jnp.pad(xb, ((0, Mp - M), (0, 0)))
        if residual is not None:
            residual = jnp.pad(residual, ((0, Mp - M), (0, 0)))

    in_specs = [pl.BlockSpec((tm, tk), lambda i, j, k: (i, k)),
                pl.BlockSpec((tk, tn), lambda i, j, k: (k, j))]
    args = [xb, wb]
    if b is not None:
        in_specs.append(pl.BlockSpec((1, tn), lambda i, j, k: (0, j)))
        args.append(b.reshape(1, N).astype(jnp.float32))
    if residual is not None:
        in_specs.append(pl.BlockSpec((tm, tn), lambda i, j, k: (i, j)))
        args.append(residual.astype(jnp.float32))

    out = pl.pallas_call(
        _make_matmul_kernel(b is not None, residual is not None),
        grid=(Mp // tm, N // tn, K // tk),
        in_specs=in_specs,
        out_specs=pl.BlockSpec((tm, tn), lambda i, j, k: (i, j)),
        out_shape=jax.ShapeDtypeStruct((Mp, N), jnp.float32),
        scratch_shapes=[pltpu.VMEM((tm, tn), jnp.float32)],
        compiler_params=pltpu.CompilerParams(
            dimension_semantics=("parallel", "parallel", "arbitrary")),
    )(*args)
    return out[:M] if Mp != M else out


def pallas_layernorm(x, gamma, beta, eps=1e-5):
    """Row-tiled LayerNorm, stats in f32. x:(M,D)."""
    M, D = x.shape
    tm = min(LN_TM_TARGET, _round_up(M, 8))
    Mp = _round_up(M, tm)
    xp = jnp.pad(x, ((0, Mp - M), (0, 0))) if Mp != M else x
    out = pl.pallas_call(
        functools.partial(_layernorm_kernel, eps=eps),
        grid=(Mp // tm,),
        in_specs=[pl.BlockSpec((tm, D), lambda i: (i, 0)),
                  pl.BlockSpec((1, D), lambda i: (0, 0)),
                  pl.BlockSpec((1, D), lambda i: (0, 0))],
        out_specs=pl.BlockSpec((tm, D), lambda i: (i, 0)),
        out_shape=jax.ShapeDtypeStruct((Mp, D), jnp.float32),
        compiler_params=pltpu.CompilerParams(
            dimension_semantics=("parallel",)),
    )(xp, gamma.reshape(1, D), beta.reshape(1, D))
    return out[:M] if Mp != M else out


def pallas_ln_matmul(x, gamma, beta, w, b, eps=1e-5):
    """Fused LayerNorm + linear (LN1 + QKV projection). x:(M,K), w:(K,N)."""
    M, K = x.shape
    N = w.shape[1]
    tn = _pick_tile(N, TN_TARGET, 128)
    tm = min(TM_TARGET, _round_up(M, 8))
    Mp = _round_up(M, tm)
    xp = jnp.pad(x, ((0, Mp - M), (0, 0))) if Mp != M else x
    out = pl.pallas_call(
        functools.partial(_ln_matmul_kernel, eps=eps),
        grid=(Mp // tm, N // tn),
        in_specs=[pl.BlockSpec((tm, K), lambda i, j: (i, 0)),
                  pl.BlockSpec((1, K), lambda i, j: (0, 0)),
                  pl.BlockSpec((1, K), lambda i, j: (0, 0)),
                  pl.BlockSpec((K, tn), lambda i, j: (0, j)),
                  pl.BlockSpec((1, tn), lambda i, j: (0, j))],
        out_specs=pl.BlockSpec((tm, tn), lambda i, j: (i, j)),
        out_shape=jax.ShapeDtypeStruct((Mp, N), jnp.float32),
        compiler_params=pltpu.CompilerParams(
            dimension_semantics=("parallel", "parallel")),
    )(xp, gamma.reshape(1, K), beta.reshape(1, K),
      w.astype(jnp.bfloat16), b.reshape(1, N).astype(jnp.float32))
    return out[:M] if Mp != M else out


def pallas_ln_mlp(x, gamma, beta, w1, b1, w2, b2, eps=1e-5):
    """Fused LN2 + MLP + residual add. Weights stay VMEM-resident (bf16) across
    row tiles. x:(M,D), w1:(D,Dh), w2:(Dh,D)."""
    # TODO(synk): for very large D (>~1k) tile the hidden dim with an accumulator
    # and/or set vmem_limit_bytes explicitly to stay within v7x's 64 MiB VMEM.
    M, D = x.shape
    Dh = w1.shape[1]
    tm = min(TM_TARGET, _round_up(M, 8))
    Mp = _round_up(M, tm)
    xp = jnp.pad(x, ((0, Mp - M), (0, 0))) if Mp != M else x
    out = pl.pallas_call(
        functools.partial(_ln_mlp_kernel, eps=eps),
        grid=(Mp // tm,),
        in_specs=[pl.BlockSpec((tm, D), lambda i: (i, 0)),
                  pl.BlockSpec((1, D), lambda i: (0, 0)),
                  pl.BlockSpec((1, D), lambda i: (0, 0)),
                  pl.BlockSpec((D, Dh), lambda i: (0, 0)),
                  pl.BlockSpec((1, Dh), lambda i: (0, 0)),
                  pl.BlockSpec((Dh, D), lambda i: (0, 0)),
                  pl.BlockSpec((1, D), lambda i: (0, 0))],
        out_specs=pl.BlockSpec((tm, D), lambda i: (i, 0)),
        out_shape=jax.ShapeDtypeStruct((Mp, D), jnp.float32),
        compiler_params=pltpu.CompilerParams(
            dimension_semantics=("parallel",)),
    )(xp, gamma.reshape(1, D), beta.reshape(1, D),
      w1.astype(jnp.bfloat16), b1.reshape(1, Dh).astype(jnp.float32),
      w2.astype(jnp.bfloat16), b2.reshape(1, D).astype(jnp.float32))
    return out[:M] if Mp != M else out


def pallas_flash_attention(q, k, v, scale):
    """Flash (online-softmax) attention. q/k/v: (B*H, L, dh) -> (B*H, L, dh)."""
    # TODO(synk): a lane-dense variant (all heads per batch, (L, D)-wide output)
    # would avoid dh<128 masked stores and the head-split transposes.
    BH, L, dh = q.shape
    tq = min(128, _round_up(L, 8))
    tk = min(128, _round_up(L, 8))
    Lq = _round_up(L, tq)
    Lk = _round_up(L, tk)
    qb = q.astype(jnp.bfloat16)
    kb = k.astype(jnp.bfloat16)
    vb = v.astype(jnp.bfloat16)
    if Lq != L:
        qb = jnp.pad(qb, ((0, 0), (0, Lq - L), (0, 0)))
    if Lk != L:
        kb = jnp.pad(kb, ((0, 0), (0, Lk - L), (0, 0)))
        vb = jnp.pad(vb, ((0, 0), (0, Lk - L), (0, 0)))

    q_spec = pl.BlockSpec((1, tq, dh), lambda b, i, j: (b, i, 0))
    kv_spec = pl.BlockSpec((1, tk, dh), lambda b, i, j: (b, j, 0))
    out = pl.pallas_call(
        functools.partial(_flash_attn_kernel, scale=scale, kv_len=L, tk=tk),
        grid=(BH, Lq // tq, Lk // tk),
        in_specs=[q_spec, kv_spec, kv_spec],
        out_specs=pl.BlockSpec((1, tq, dh), lambda b, i, j: (b, i, 0)),
        out_shape=jax.ShapeDtypeStruct((BH, Lq, dh), jnp.float32),
        scratch_shapes=[pltpu.VMEM((tq, 1), jnp.float32),
                        pltpu.VMEM((tq, 1), jnp.float32),
                        pltpu.VMEM((tq, dh), jnp.float32)],
        compiler_params=pltpu.CompilerParams(
            dimension_semantics=("parallel", "parallel", "arbitrary")),
    )(qb, kb, vb)
    return out[:, :L] if Lq != L else out


# ----------------------------------------------------------------------------
# Model building blocks (plain-JAX glue around the Pallas kernels)
# ----------------------------------------------------------------------------

def residual_attention_block(x2, bp, heads, B, L, D):
    """x2: (B*L, D) flattened batch-first residual stream (math identical to the
    PyTorch seq-first layout — attention is per (batch, head))."""
    dh = D // heads

    # Fused LN1 + QKV projection.
    qkv = pallas_ln_matmul(x2, bp['ln1_g'], bp['ln1_b'],
                           bp['attn']['in_proj_w'], bp['attn']['in_proj_b'])
    q, k, v = jnp.split(qkv, 3, axis=-1)

    def to_heads(t):
        return (t.reshape(B, L, heads, dh)
                 .transpose(0, 2, 1, 3)
                 .reshape(B * heads, L, dh))

    o = pallas_flash_attention(to_heads(q), to_heads(k), to_heads(v),
                               1.0 / math.sqrt(dh))
    o = (o.reshape(B, heads, L, dh)
          .transpose(0, 2, 1, 3)
          .reshape(B * L, D))

    # Fused out-projection + residual add.
    x2 = pallas_matmul(o, bp['attn']['out_proj_w'], bp['attn']['out_proj_b'],
                       residual=x2)
    # Fused LN2 + MLP + residual add.
    x2 = pallas_ln_mlp(x2, bp['ln2_g'], bp['ln2_b'],
                       bp['mlp']['w1'], bp['mlp']['b1'],
                       bp['mlp']['w2'], bp['mlp']['b2'])
    return x2


def vit_for_clip_forward(x, params, *, patch_size, width, heads):
    """Reproduces ViTforCLIP.forward. x: (B, 3, H, W) NCHW float32."""
    B, C, H, W = x.shape
    skip_feat = []

    # embconv: Conv2d(3, width, k=patch, stride=patch, bias=False) as patchify+matmul.
    Hp, Wp = H // patch_size, W // patch_size
    patches = x.reshape(B, C, Hp, patch_size, Wp, patch_size)
    patches = patches.transpose(0, 2, 4, 1, 3, 5).reshape(
        B * Hp * Wp, C * patch_size * patch_size)
    feat = pallas_matmul(patches, params['embconv_w'])          # (B*Hp*Wp, width)
    feat = feat.reshape(B, Hp, Wp, width)                       # NHWC pipeline
    skip_feat.append(feat.transpose(0, 3, 1, 2))                # NCHW for output

    tok = None
    for s in range(3):
        # downX: 2x2 stride-2 max-pool, channels-last, plain JAX (lane-dense).
        Bc, Hc, Wc, Cc = feat.shape
        feat = feat.reshape(Bc, Hc // 2, 2, Wc // 2, 2, Cc).max(axis=(2, 4))
        Hc, Wc = Hc // 2, Wc // 2
        # convX: 1x1 conv == channels matmul (NHWC, no relayout).
        D = params[f'conv{s+1}_w'].shape[1]
        tok = pallas_matmul(feat.reshape(Bc * Hc * Wc, Cc),
                            params[f'conv{s+1}_w'], params[f'conv{s+1}_b'])
        tok = tok.reshape(Bc, Hc * Wc, D)                       # (B, N, D) tokens
        cls = jnp.broadcast_to(params[f'cls{s+1}'].reshape(1, 1, D), (Bc, 1, D))
        tok = jnp.concatenate([cls, tok], axis=1)               # (B, N+1, D)
        tok = tok + params[f'pos{s+1}'][None]
        L = tok.shape[1]

        x2 = pallas_layernorm(tok.reshape(Bc * L, D),
                              params[f'ln_pre{s+1}_g'], params[f'ln_pre{s+1}_b'])
        for bp in params[f'transformer{s+1}']:
            x2 = residual_attention_block(x2, bp, heads, Bc, L, D)
        x2 = pallas_matmul(x2, params[f'proj{s+1}'])            # projX (no bias)
        tok = x2.reshape(Bc, L, D)
        # original: self.ln_postX(x) -> result discarded (no-op), skipped.
        tok = tok[:, :-1, :]                                    # drop LAST token
        if s < 2:
            G = int((L - 1) ** 0.5)
            feat = tok.reshape(Bc, G, G, D)                     # NHWC map
            skip_feat.append(feat.transpose(0, 3, 1, 2))        # NCHW for output
    return tok, skip_feat


# ----------------------------------------------------------------------------
# Deterministic parameter init (PyTorch shapes, stored pre-transposed / bf16
# in the compute layout so no per-call weight relayout or cast is needed).
# ----------------------------------------------------------------------------

def init_params(key, *, width, layers, patch_size, input_resolution):
    scale = width ** (-0.5)
    keys = iter(jax.random.split(key, 4096))
    nk = lambda: next(keys)

    def rnd(shape, std=0.02):
        return std * jax.random.normal(nk(), shape, dtype=jnp.float32)

    bf = lambda a: a.astype(jnp.bfloat16)

    p = {}
    # PyTorch (width, 3, p, p) -> (3*p*p, width), bf16.
    p['embconv_w'] = bf(rnd((width, 3, patch_size, patch_size))
                        .reshape(width, -1).T)

    g1 = input_resolution // patch_size // 2
    grids = [g1, g1 // 2, g1 // 4]
    for s in range(3):
        d = width * (2 ** (s + 1))
        cin = width * (2 ** s)
        p[f'conv{s+1}_w'] = bf(rnd((d, cin)).T)                 # (Cin, Cout)
        p[f'conv{s+1}_b'] = rnd((d,))
        p[f'cls{s+1}'] = scale * jax.random.normal(nk(), (d,), dtype=jnp.float32)
        # NOTE: original hardcodes 56^2+1 / 28^2+1 / 14^2+1; sized to the actual
        # token counts of this input so the `x + pos` broadcast matches.
        p[f'pos{s+1}'] = scale * jax.random.normal(
            nk(), (grids[s] ** 2 + 1, d), dtype=jnp.float32)
        p[f'ln_pre{s+1}_g'] = jnp.ones((d,), jnp.float32)
        p[f'ln_pre{s+1}_b'] = jnp.zeros((d,), jnp.float32)
        p[f'proj{s+1}'] = bf(scale * jax.random.normal(nk(), (d, d),
                                                       dtype=jnp.float32))
        blocks = []
        for _ in range(layers):
            blocks.append(dict(
                ln1_g=jnp.ones((d,), jnp.float32),
                ln1_b=jnp.zeros((d,), jnp.float32),
                ln2_g=jnp.ones((d,), jnp.float32),
                ln2_b=jnp.zeros((d,), jnp.float32),
                attn=dict(in_proj_w=bf(rnd((3 * d, d)).T),      # (d, 3d)
                          in_proj_b=rnd((3 * d,)),
                          out_proj_w=bf(rnd((d, d)).T),         # (d, d)
                          out_proj_b=rnd((d,))),
                mlp=dict(w1=bf(rnd((4 * d, d)).T), b1=rnd((4 * d,)),   # (d, 4d)
                         w2=bf(rnd((d, 4 * d)).T), b2=rnd((d,))),      # (4d, d)
            ))
        p[f'transformer{s+1}'] = blocks
    return p


# ----------------------------------------------------------------------------
# Main
# ----------------------------------------------------------------------------

if __name__ == "__main__":
    INPUT_RES = 32
    PATCH = 2
    WIDTH = 8
    LAYERS = 2
    HEADS = 2
    BATCH = 2

    root = jax.random.PRNGKey(0)
    k_param, k_input = jax.random.split(root)
    params = init_params(k_param, width=WIDTH, layers=LAYERS,
                         patch_size=PATCH, input_resolution=INPUT_RES)
    x = jax.random.normal(k_input, (BATCH, 3, INPUT_RES, INPUT_RES),
                          dtype=jnp.float32)

    fwd = jax.jit(functools.partial(vit_for_clip_forward,
                                    patch_size=PATCH, width=WIDTH, heads=HEADS))
    out, skip_feat = fwd(x, params)

    jax.block_until_ready(out)
    for f in skip_feat:
        jax.block_until_ready(f)

    # Shape sanity (mirrors the PyTorch forward):
    assert out.shape == (BATCH, (INPUT_RES // PATCH // 8) ** 2, WIDTH * 8)
    assert skip_feat[0].shape == (BATCH, WIDTH, INPUT_RES // PATCH, INPUT_RES // PATCH)
    assert skip_feat[1].shape == (BATCH, WIDTH * 2, INPUT_RES // PATCH // 2,
                                  INPUT_RES // PATCH // 2)
    assert skip_feat[2].shape == (BATCH, WIDTH * 4, INPUT_RES // PATCH // 4,
                                  INPUT_RES // PATCH // 4)

    print("KERNEL_OK")
</pallas_src>

<mosaic_0001>
module attributes {stable_mosaic.version = 11 : i64} {
  func.func @kernel(%arg0: i32, %arg1: i32, %arg2: i32, %arg3: memref<256x12xbf16, #tpu.memory_space<vmem>>, %arg4: memref<12x8xbf16, #tpu.memory_space<vmem>>, %arg5: memref<256x8xf32, #tpu.memory_space<vmem>>, %arg6: memref<256x8xf32, #tpu.memory_space<vmem>>) attributes {dimension_semantics = [#tpu.dimension_semantics<parallel>, #tpu.dimension_semantics<parallel>, #tpu.dimension_semantics<arbitrary>], iteration_bounds = array<i64: 2, 1, 1>, scalar_prefetch = 0 : i64, scratch_operands = 1 : i64, tpu.core_type = #tpu.core_type<tc>, window_params = [{transform_indices = @transform_0, window_bounds = array<i64: 256, 12>}, {transform_indices = @transform_1, window_bounds = array<i64: 12, 8>}, {transform_indices = @transform_2, window_bounds = array<i64: 256, 8>}]} {
    %c0_i32 = arith.constant 0 : i32
    %0 = arith.cmpi eq, %arg2, %c0_i32 : i32
    %1 = arith.extui %0 : i1 to i32
    %c0_i32_0 = arith.constant 0 : i32
    %2 = arith.cmpi ne, %1, %c0_i32_0 : i32
    scf.if %2 {
      %cst_10 = arith.constant 0.000000e+00 : f32
      %12 = vector.broadcast %cst_10 : f32 to vector<256x8xf32>
      %c0_11 = arith.constant 0 : index
      %c0_12 = arith.constant 0 : index
      %13 = vector.load %arg6[%c0_11, %c0_12] : memref<256x8xf32, #tpu.memory_space<vmem>>, vector<256x8xf32>
      tpu.vector_store %arg6[%c0_11, %c0_12], %12 {strides = array<i32>} : memref<256x8xf32, #tpu.memory_space<vmem>>, vector<256x8xf32>,
    } else {
    }
    %c0 = arith.constant 0 : index
    %c0_1 = arith.constant 0 : index
    %3 = vector.load %arg6[%c0, %c0_1] : memref<256x8xf32, #tpu.memory_space<vmem>>, vector<256x8xf32>
    %c0_2 = arith.constant 0 : index
    %c0_3 = arith.constant 0 : index
    %4 = vector.load %arg3[%c0_2, %c0_3] : memref<256x12xbf16, #tpu.memory_space<vmem>>, vector<256x12xbf16>
    %c0_4 = arith.constant 0 : index
    %c0_5 = arith.constant 0 : index
    %5 = vector.load %arg4[%c0_4, %c0_5] : memref<12x8xbf16, #tpu.memory_space<vmem>>, vector<12x8xbf16>
    %cst = arith.constant dense<0.000000e+00> : vector<256x8xf32>
    %6 = tpu.matmul %4, %5, %cst {dimension_numbers = #tpu.dot_dimension_numbers<[1], [0], [0], [1], [0, 0, 1, 1], [], []>} : vector<256x12xbf16>, vector<12x8xbf16>, vector<256x8xf32> -> vector<256x8xf32>
    %7 = arith.addf %3, %6 : vector<256x8xf32>
    %c0_6 = arith.constant 0 : index
    %c0_7 = arith.constant 0 : index
    %8 = vector.load %arg6[%c0_6, %c0_7] : memref<256x8xf32, #tpu.memory_space<vmem>>, vector<256x8xf32>
    tpu.vector_store %arg6[%c0_6, %c0_7], %7 {strides = array<i32>} : memref<256x8xf32, #tpu.memory_space<vmem>>, vector<256x8xf32>,
    %c0_i32_8 = arith.constant 0 : i32
    %9 = arith.cmpi eq, %arg2, %c0_i32_8 : i32
    %10 = arith.extui %9 : i1 to i32
    %c0_i32_9 = arith.constant 0 : i32
    %11 = arith.cmpi ne, %10, %c0_i32_9 : i32
    scf.if %11 {
      %c0_10 = arith.constant 0 : index
      %c0_11 = arith.constant 0 : index
      %12 = vector.load %arg6[%c0_10, %c0_11] : memref<256x8xf32, #tpu.memory_space<vmem>>, vector<256x8xf32>
      %c0_12 = arith.constant 0 : index
      %c0_13 = arith.constant 0 : index
      %13 = vector.load %arg5[%c0_12, %c0_13] : memref<256x8xf32, #tpu.memory_space<vmem>>, vector<256x8xf32>
      tpu.vector_store %arg5[%c0_12, %c0_13], %12 {strides = array<i32>} : memref<256x8xf32, #tpu.memory_space<vmem>>, vector<256x8xf32>,
    } else {
    }
    return
  }
  func.func @transform_0(%arg0: i32, %arg1: i32, %arg2: i32) -> (i32, i32) {
    %c0_i32 = arith.constant 0 : i32
    return %arg0, %arg2 : i32, i32
  }
  func.func @transform_1(%arg0: i32, %arg1: i32, %arg2: i32) -> (i32, i32) {
    %c0_i32 = arith.constant 0 : i32
    return %arg2, %arg1 : i32, i32
  }
  func.func @transform_2(%arg0: i32, %arg1: i32, %arg2: i32) -> (i32, i32) {
    %c0_i32 = arith.constant 0 : i32
    return %arg0, %arg1 : i32, i32
  }
}

module attributes {stable_mosaic.version = 11 : i64} {
  func.func @kernel(%arg0: i32, %arg1: i32, %arg2: i32, %arg3: memref<128x8xbf16, #tpu.memory_space<vmem>>, %arg4: memref<8x16xbf16, #tpu.memory_space<vmem>>, %arg5: memref<1x16xf32, #tpu.memory_space<vmem>>, %arg6: memref<128x16xf32, #tpu.memory_space<vmem>>, %arg7: memref<128x16xf32, #tpu.memory_space<vmem>>) attributes {dimension_semantics = [#tpu.dimension_semantics<parallel>, #tpu.dimension_semantics<parallel>, #tpu.dimension_semantics<arbitrary>], iteration_bounds = array<i64: 1, 1, 1>, scalar_prefetch = 0 : i64, scratch_operands = 1 : i64, tpu.core_type = #tpu.core_type<tc>, window_params = [{transform_indices = @transform_0, window_bounds = array<i64: 128, 8>}, {transform_indices = @transform_1, window_bounds = array<i64: 8, 16>}, {transform_indices = @transform_2, window_bounds = array<i64: 1, 16>}, {transform_indices = @transform_3, window_bounds = array<i64: 128, 16>}]} {
    %c0_i32 = arith.constant 0 : i32
    %0 = arith.cmpi eq, %arg2, %c0_i32 : i32
    %1 = arith.extui %0 : i1 to i32
    %c0_i32_0 = arith.constant 0 : i32
    %2 = arith.cmpi ne, %1, %c0_i32_0 : i32
    scf.if %2 {
      %cst_10 = arith.constant 0.000000e+00 : f32
      %12 = vector.broadcast %cst_10 : f32 to vector<128x16xf32>
      %c0_11 = arith.constant 0 : index
      %c0_12 = arith.constant 0 : index
      %13 = vector.load %arg7[%c0_11, %c0_12] : memref<128x16xf32, #tpu.memory_space<vmem>>, vector<128x16xf32>
      tpu.vector_store %arg7[%c0_11, %c0_12], %12 {strides = array<i32>} : memref<128x16xf32, #tpu.memory_space<vmem>>, vector<128x16xf32>,
    } else {
    }
    %c0 = arith.constant 0 : index
    %c0_1 = arith.constant 0 : index
    %3 = vector.load %arg7[%c0, %c0_1] : memref<128x16xf32, #tpu.memory_space<vmem>>, vector<128x16xf32>
    %c0_2 = arith.constant 0 : index
    %c0_3 = arith.constant 0 : index
    %4 = vector.load %arg3[%c0_2, %c0_3] : memref<128x8xbf16, #tpu.memory_space<vmem>>, vector<128x8xbf16>
    %c0_4 = arith.constant 0 : index
    %c0_5 = arith.constant 0 : index
    %5 = vector.load %arg4[%c0_4, %c0_5] : memref<8x16xbf16, #tpu.memory_space<vmem>>, vector<8x16xbf16>
    %cst = arith.constant dense<0.000000e+00> : vector<128x16xf32>
    %6 = tpu.matmul %4, %5, %cst {dimension_numbers = #tpu.dot_dimension_numbers<[1], [0], [0], [1], [0, 0, 1, 1], [], []>} : vector<128x8xbf16>, vector<8x16xbf16>, vector<128x16xf32> -> vector<128x16xf32>
    %7 = arith.addf %3, %6 : vector<128x16xf32>
    %c0_6 = arith.constant 0 : index
    %c0_7 = arith.constant 0 : index
    %8 = vector.load %arg7[%c0_6, %c0_7] : memref<128x16xf32, #tpu.memory_space<vmem>>, vector<128x16xf32>
    tpu.vector_store %arg7[%c0_6, %c0_7], %7 {strides = array<i32>} : memref<128x16xf32, #tpu.memory_space<vmem>>, vector<128x16xf32>,
    %c0_i32_8 = arith.constant 0 : i32
    %9 = arith.cmpi eq, %arg2, %c0_i32_8 : i32
    %10 = arith.extui %9 : i1 to i32
    %c0_i32_9 = arith.constant 0 : i32
    %11 = arith.cmpi ne, %10, %c0_i32_9 : i32
    scf.if %11 {
      %c0_10 = arith.constant 0 : index
      %c0_11 = arith.constant 0 : index
      %12 = vector.load %arg7[%c0_10, %c0_11] : memref<128x16xf32, #tpu.memory_space<vmem>>, vector<128x16xf32>
      %c0_12 = arith.constant 0 : index
      %c0_13 = arith.constant 0 : index
      %13 = vector.load %arg5[%c0_12, %c0_13] : memref<1x16xf32, #tpu.memory_space<vmem>>, vector<1x16xf32>
      %14 = vector.broadcast %13 : vector<1x16xf32> to vector<128x16xf32>
      %15 = arith.addf %12, %14 : vector<128x16xf32>
      %c0_14 = arith.constant 0 : index
      %c0_15 = arith.constant 0 : index
      %16 = vector.load %arg6[%c0_14, %c0_15] : memref<128x16xf32, #tpu.memory_space<vmem>>, vector<128x16xf32>
      tpu.vector_store %arg6[%c0_14, %c0_15], %15 {strides = array<i32>} : memref<128x16xf32, #tpu.memory_space<vmem>>, vector<128x16xf32>,
    } else {
    }
    return
  }
  func.func @transform_0(%arg0: i32, %arg1: i32, %arg2: i32) -> (i32, i32) {
    %c0_i32 = arith.constant 0 : i32
    return %arg0, %arg2 : i32, i32
  }
  func.func @transform_1(%arg0: i32, %arg1: i32, %arg2: i32) -> (i32, i32) {
    %c0_i32 = arith.constant 0 : i32
    return %arg2, %arg1 : i32, i32
  }
  func.func @transform_2(%arg0: i32, %arg1: i32, %arg2: i32) -> (i32, i32) {
    %c0_i32 = arith.constant 0 : i32
    %c0_i32_0 = arith.constant 0 : i32
    return %c0_i32, %arg1 : i32, i32
  }
  func.func @transform_3(%arg0: i32, %arg1: i32, %arg2: i32) -> (i32, i32) {
    %c0_i32 = arith.constant 0 : i32
    return %arg0, %arg1 : i32, i32
  }
}

module attributes {stable_mosaic.version = 11 : i64} {
  func.func @_layernorm_kernel(%arg0: i32, %arg1: memref<136x16xf32, #tpu.memory_space<vmem>>, %arg2: memref<1x16xf32, #tpu.memory_space<vmem>>, %arg3: memref<1x16xf32, #tpu.memory_space<vmem>>, %arg4: memref<136x16xf32, #tpu.memory_space<vmem>>) attributes {dimension_semantics = [#tpu.dimension_semantics<parallel>], iteration_bounds = array<i64: 1>, scalar_prefetch = 0 : i64, scratch_operands = 0 : i64, tpu.core_type = #tpu.core_type<tc>, window_params = [{transform_indices = @transform_0, window_bounds = array<i64: 136, 16>}, {pipeline_mode = #tpu.pipeline_mode<synchronous>, transform_indices = @transform_1, window_bounds = array<i64: 1, 16>}, {pipeline_mode = #tpu.pipeline_mode<synchronous>, transform_indices = @transform_2, window_bounds = array<i64: 1, 16>}, {transform_indices = @transform_3, window_bounds = array<i64: 136, 16>}]} {
    %c0 = arith.constant 0 : index
    %c0_0 = arith.constant 0 : index
    %0 = vector.load %arg1[%c0, %c0_0] : memref<136x16xf32, #tpu.memory_space<vmem>>, vector<136x16xf32>
    %cst = arith.constant dense<0.000000e+00> : vector<136xf32>
    %1 = vector.multi_reduction <add>, %0, %cst [1] : vector<136x16xf32> to vector<136xf32>
    %2 = vector.shape_cast %1 : vector<136xf32> to vector<136x1xf32>
    %cst_1 = arith.constant 1.600000e+01 : f32
    %3 = vector.broadcast %cst_1 : f32 to vector<136x1xf32>
    %4 = arith.divf %2, %3 : vector<136x1xf32>
    %5 = vector.broadcast %4 : vector<136x1xf32> to vector<136x16xf32>
    %6 = arith.subf %0, %5 : vector<136x16xf32>
    %7 = arith.mulf %6, %6 : vector<136x16xf32>
    %cst_2 = arith.constant dense<0.000000e+00> : vector<136xf32>
    %8 = vector.multi_reduction <add>, %7, %cst_2 [1] : vector<136x16xf32> to vector<136xf32>
    %9 = vector.shape_cast %8 : vector<136xf32> to vector<136x1xf32>
    %cst_3 = arith.constant 1.600000e+01 : f32
    %10 = vector.broadcast %cst_3 : f32 to vector<136x1xf32>
    %11 = arith.divf %9, %10 : vector<136x1xf32>
    %12 = vector.broadcast %4 : vector<136x1xf32> to vector<136x16xf32>
    %13 = arith.subf %0, %12 : vector<136x16xf32>
    %cst_4 = arith.constant 9.99999974E-6 : f32
    %14 = vector.broadcast %cst_4 : f32 to vector<136x1xf32>
    %15 = arith.addf %11, %14 : vector<136x1xf32>
    %16 = math.rsqrt %15 : vector<136x1xf32>
    %17 = vector.broadcast %16 : vector<136x1xf32> to vector<136x16xf32>
    %18 = arith.mulf %13, %17 : vector<136x16xf32>
    %c0_5 = arith.constant 0 : index
    %c0_6 = arith.constant 0 : index
    %19 = vector.load %arg2[%c0_5, %c0_6] : memref<1x16xf32, #tpu.memory_space<vmem>>, vector<1x16xf32>
    %20 = vector.broadcast %19 : vector<1x16xf32> to vector<136x16xf32>
    %21 = arith.mulf %18, %20 : vector<136x16xf32>
    %c0_7 = arith.constant 0 : index
    %c0_8 = arith.constant 0 : index
    %22 = vector.load %arg3[%c0_7, %c0_8] : memref<1x16xf32, #tpu.memory_space<vmem>>, vector<1x16xf32>
    %23 = vector.broadcast %22 : vector<1x16xf32> to vector<136x16xf32>
    %24 = arith.addf %21, %23 : vector<136x16xf32>
    %c0_9 = arith.constant 0 : index
    %c0_10 = arith.constant 0 : index
    %25 = vector.load %arg4[%c0_9, %c0_10] : memref<136x16xf32, #tpu.memory_space<vmem>>, vector<136x16xf32>
    tpu.vector_store %arg4[%c0_9, %c0_10], %24 {strides = array<i32>} : memref<136x16xf32, #tpu.memory_space<vmem>>, vector<136x16xf32>,
    return
  }
  func.func @transform_0(%arg0: i32) -> (i32, i32) {
    %c0_i32 = arith.constant 0 : i32
    %c0_i32_0 = arith.constant 0 : i32
    return %arg0, %c0_i32 : i32, i32
  }
  func.func @transform_1(%arg0: i32) -> (i32, i32) {
    %c0_i32 = arith.constant 0 : i32
    %c0_i32_0 = arith.constant 0 : i32
    %c0_i32_1 = arith.constant 0 : i32
    return %c0_i32, %c0_i32_0 : i32, i32
  }
  func.func @transform_2(%arg0: i32) -> (i32, i32) {
    %c0_i32 = arith.constant 0 : i32
    %c0_i32_0 = arith.constant 0 : i32
    %c0_i32_1 = arith.constant 0 : i32
    return %c0_i32, %c0_i32_0 : i32, i32
  }
  func.func @transform_3(%arg0: i32) -> (i32, i32) {
    %c0_i32 = arith.constant 0 : i32
    %c0_i32_0 = arith.constant 0 : i32
    return %arg0, %c0_i32 : i32, i32
  }
}

module attributes {stable_mosaic.version = 11 : i64} {
  func.func @_ln_matmul_kernel(%arg0: i32, %arg1: i32, %arg2: memref<136x16xf32, #tpu.memory_space<vmem>>, %arg3: memref<1x16xf32, #tpu.memory_space<vmem>>, %arg4: memref<1x16xf32, #tpu.memory_space<vmem>>, %arg5: memref<16x48xbf16, #tpu.memory_space<vmem>>, %arg6: memref<1x48xf32, #tpu.memory_space<vmem>>, %arg7: memref<136x48xf32, #tpu.memory_space<vmem>>) attributes {dimension_semantics = [#tpu.dimension_semantics<parallel>, #tpu.dimension_semantics<parallel>], iteration_bounds = array<i64: 1, 1>, scalar_prefetch = 0 : i64, scratch_operands = 0 : i64, tpu.core_type = #tpu.core_type<tc>, window_params = [{transform_indices = @transform_0, window_bounds = array<i64: 136, 16>}, {pipeline_mode = #tpu.pipeline_mode<synchronous>, transform_indices = @transform_1, window_bounds = array<i64: 1, 16>}, {pipeline_mode = #tpu.pipeline_mode<synchronous>, transform_indices = @transform_2, window_bounds = array<i64: 1, 16>}, {transform_indices = @transform_3, window_bounds = array<i64: 16, 48>}, {transform_indices = @transform_4, window_bounds = array<i64: 1, 48>}, {transform_indices = @transform_5, window_bounds = array<i64: 136, 48>}]} {
    %c0 = arith.constant 0 : index
    %c0_0 = arith.constant 0 : index
    %0 = vector.load %arg2[%c0, %c0_0] : memref<136x16xf32, #tpu.memory_space<vmem>>, vector<136x16xf32>
    %cst = arith.constant dense<0.000000e+00> : vector<136xf32>
    %1 = vector.multi_reduction <add>, %0, %cst [1] : vector<136x16xf32> to vector<136xf32>
    %2 = vector.shape_cast %1 : vector<136xf32> to vector<136x1xf32>
    %cst_1 = arith.constant 1.600000e+01 : f32
    %3 = vector.broadcast %cst_1 : f32 to vector<136x1xf32>
    %4 = arith.divf %2, %3 : vector<136x1xf32>
    %5 = vector.broadcast %4 : vector<136x1xf32> to vector<136x16xf32>
    %6 = arith.subf %0, %5 : vector<136x16xf32>
    %7 = arith.mulf %6, %6 : vector<136x16xf32>
    %cst_2 = arith.constant dense<0.000000e+00> : vector<136xf32>
    %8 = vector.multi_reduction <add>, %7, %cst_2 [1] : vector<136x16xf32> to vector<136xf32>
    %9 = vector.shape_cast %8 : vector<136xf32> to vector<136x1xf32>
    %cst_3 = arith.constant 1.600000e+01 : f32
    %10 = vector.broadcast %cst_3 : f32 to vector<136x1xf32>
    %11 = arith.divf %9, %10 : vector<136x1xf32>
    %12 = vector.broadcast %4 : vector<136x1xf32> to vector<136x16xf32>
    %13 = arith.subf %0, %12 : vector<136x16xf32>
    %cst_4 = arith.constant 9.99999974E-6 : f32
    %14 = vector.broadcast %cst_4 : f32 to vector<136x1xf32>
    %15 = arith.addf %11, %14 : vector<136x1xf32>
    %16 = math.rsqrt %15 : vector<136x1xf32>
    %17 = vector.broadcast %16 : vector<136x1xf32> to vector<136x16xf32>
    %18 = arith.mulf %13, %17 : vector<136x16xf32>
    %c0_5 = arith.constant 0 : index
    %c0_6 = arith.constant 0 : index
    %19 = vector.load %arg3[%c0_5, %c0_6] : memref<1x16xf32, #tpu.memory_space<vmem>>, vector<1x16xf32>
    %20 = vector.broadcast %19 : vector<1x16xf32> to vector<136x16xf32>
    %21 = arith.mulf %18, %20 : vector<136x16xf32>
    %c0_7 = arith.constant 0 : index
    %c0_8 = arith.constant 0 : index
    %22 = vector.load %arg4[%c0_7, %c0_8] : memref<1x16xf32, #tpu.memory_space<vmem>>, vector<1x16xf32>
    %23 = vector.broadcast %22 : vector<1x16xf32> to vector<136x16xf32>
    %24 = arith.addf %21, %23 : vector<136x16xf32>
    %25 = arith.truncf %24 : vector<136x16xf32> to vector<136x16xbf16>
    %c0_9 = arith.constant 0 : index
    %c0_10 = arith.constant 0 : index
    %26 = vector.load %arg5[%c0_9, %c0_10] : memref<16x48xbf16, #tpu.memory_space<vmem>>, vector<16x48xbf16>
    %cst_11 = arith.constant dense<0.000000e+00> : vector<136x48xf32>
    %27 = tpu.matmul %25, %26, %cst_11 {dimension_numbers = #tpu.dot_dimension_numbers<[1], [0], [0], [1], [0, 0, 1, 1], [], []>} : vector<136x16xbf16>, vector<16x48xbf16>, vector<136x48xf32> -> vector<136x48xf32>
    %c0_12 = arith.constant 0 : index
    %c0_13 = arith.constant 0 : index
    %28 = vector.load %arg6[%c0_12, %c0_13] : memref<1x48xf32, #tpu.memory_space<vmem>>, vector<1x48xf32>
    %29 = vector.broadcast %28 : vector<1x48xf32> to vector<136x48xf32>
    %30 = arith.addf %27, %29 : vector<136x48xf32>
    %c0_14 = arith.constant 0 : index
    %c0_15 = arith.constant 0 : index
    %31 = vector.load %arg7[%c0_14, %c0_15] : memref<136x48xf32, #tpu.memory_space<vmem>>, vector<136x48xf32>
    tpu.vector_store %arg7[%c0_14, %c0_15], %30 {strides = array<i32>} : memref<136x48xf32, #tpu.memory_space<vmem>>, vector<136x48xf32>,
    return
  }
  func.func @transform_0(%arg0: i32, %arg1: i32) -> (i32, i32) {
    %c0_i32 = arith.constant 0 : i32
    %c0_i32_0 = arith.constant 0 : i32
    return %arg0, %c0_i32 : i32, i32
  }
  func.func @transform_1(%arg0: i32, %arg1: i32) -> (i32, i32) {
    %c0_i32 = arith.constant 0 : i32
    %c0_i32_0 = arith.constant 0 : i32
    %c0_i32_1 = arith.constant 0 : i32
    return %c0_i32, %c0_i32_0 : i32, i32
  }
  func.func @transform_2(%arg0: i32, %arg1: i32) -> (i32, i32) {
    %c0_i32 = arith.constant 0 : i32
    %c0_i32_0 = arith.constant 0 : i32
    %c0_i32_1 = arith.constant 0 : i32
    return %c0_i32, %c0_i32_0 : i32, i32
  }
  func.func @transform_3(%arg0: i32, %arg1: i32) -> (i32, i32) {
    %c0_i32 = arith.constant 0 : i32
    %c0_i32_0 = arith.constant 0 : i32
    return %c0_i32, %arg1 : i32, i32
  }
  func.func @transform_4(%arg0: i32, %arg1: i32) -> (i32, i32) {
    %c0_i32 = arith.constant 0 : i32
    %c0_i32_0 = arith.constant 0 : i32
    return %c0_i32, %arg1 : i32, i32
  }
  func.func @transform_5(%arg0: i32, %arg1: i32) -> (i32, i32) {
    %c0_i32 = arith.constant 0 : i32
    return %arg0, %arg1 : i32, i32
  }
}

module attributes {stable_mosaic.version = 11 : i64} {
  func.func @_flash_attn_kernel(%arg0: i32, %arg1: i32, %arg2: i32, %arg3: memref<1x72x8xbf16, #tpu.memory_space<vmem>>, %arg4: memref<1x72x8xbf16, #tpu.memory_space<vmem>>, %arg5: memref<1x72x8xbf16, #tpu.memory_space<vmem>>, %arg6: memref<1x72x8xf32, #tpu.memory_space<vmem>>, %arg7: memref<72x1xf32, #tpu.memory_space<vmem>>, %arg8: memref<72x1xf32, #tpu.memory_space<vmem>>, %arg9: memref<72x8xf32, #tpu.memory_space<vmem>>) attributes {dimension_semantics = [#tpu.dimension_semantics<parallel>, #tpu.dimension_semantics<parallel>, #tpu.dimension_semantics<arbitrary>], iteration_bounds = array<i64: 4, 1, 1>, scalar_prefetch = 0 : i64, scratch_operands = 3 : i64, tpu.core_type = #tpu.core_type<tc>, window_params = [{transform_indices = @transform_0, window_bounds = array<i64: 1, 72, 8>}, {transform_indices = @transform_1, window_bounds = array<i64: 1, 72, 8>}, {transform_indices = @transform_2, window_bounds = array<i64: 1, 72, 8>}, {transform_indices = @transform_3, window_bounds = array<i64: 1, 72, 8>}]} {
    %c0_i32 = arith.constant 0 : i32
    %0 = arith.cmpi eq, %arg2, %c0_i32 : i32
    %1 = arith.extui %0 : i1 to i32
    %c0_i32_0 = arith.constant 0 : i32
    %2 = arith.cmpi ne, %1, %c0_i32_0 : i32
    scf.if %2 {
      %cst_28 = arith.constant 0xFF800000 : f32
      %46 = vector.broadcast %cst_28 : f32 to vector<72x1xf32>
      %c0_29 = arith.constant 0 : index
      %c0_30 = arith.constant 0 : index
      %47 = vector.load %arg7[%c0_29, %c0_30] : memref<72x1xf32, #tpu.memory_space<vmem>>, vector<72x1xf32>
      tpu.vector_store %arg7[%c0_29, %c0_30], %46 {strides = array<i32>} : memref<72x1xf32, #tpu.memory_space<vmem>>, vector<72x1xf32>,
      %cst_31 = arith.constant 0.000000e+00 : f32
      %48 = vector.broadcast %cst_31 : f32 to vector<72x1xf32>
      %c0_32 = arith.constant 0 : index
      %c0_33 = arith.constant 0 : index
      %49 = vector.load %arg8[%c0_32, %c0_33] : memref<72x1xf32, #tpu.memory_space<vmem>>, vector<72x1xf32>
      tpu.vector_store %arg8[%c0_32, %c0_33], %48 {strides = array<i32>} : memref<72x1xf32, #tpu.memory_space<vmem>>, vector<72x1xf32>,
      %cst_34 = arith.constant 0.000000e+00 : f32
      %50 = vector.broadcast %cst_34 : f32 to vector<72x8xf32>
      %c0_35 = arith.constant 0 : index
      %c0_36 = arith.constant 0 : index
      %51 = vector.load %arg9[%c0_35, %c0_36] : memref<72x8xf32, #tpu.memory_space<vmem>>, vector<72x8xf32>
      tpu.vector_store %arg9[%c0_35, %c0_36], %50 {strides = array<i32>} : memref<72x8xf32, #tpu.memory_space<vmem>>, vector<72x8xf32>,
    } else {
    }
    %c0 = arith.constant 0 : index
    %c0_1 = arith.constant 0 : index
    %c0_2 = arith.constant 0 : index
    %3 = vector.load %arg3[%c0, %c0_1, %c0_2] : memref<1x72x8xbf16, #tpu.memory_space<vmem>>, vector<1x72x8xbf16>
    %4 = vector.shape_cast %3 : vector<1x72x8xbf16> to vector<72x8xbf16>
    %c0_3 = arith.constant 0 : index
    %c0_4 = arith.constant 0 : index
    %c0_5 = arith.constant 0 : index
    %5 = vector.load %arg4[%c0_3, %c0_4, %c0_5] : memref<1x72x8xbf16, #tpu.memory_space<vmem>>, vector<1x72x8xbf16>
    %6 = vector.shape_cast %5 : vector<1x72x8xbf16> to vector<72x8xbf16>
    %cst = arith.constant dense<0.000000e+00> : vector<72x72xf32>
    %7 = tpu.matmul %4, %6, %cst {dimension_numbers = #tpu.dot_dimension_numbers<[1], [1], [0], [0], [0, 0, 1, 0], [], []>} : vector<72x8xbf16>, vector<72x8xbf16>, vector<72x72xf32> -> vector<72x72xf32>
    %cst_6 = arith.constant 0.353553385 : f32
    %8 = vector.broadcast %cst_6 : f32 to vector<72x72xf32>
    %9 = arith.mulf %7, %8 : vector<72x72xf32>
    %c72_i32 = arith.constant 72 : i32
    %10 = arith.muli %arg2, %c72_i32 : i32
    %11 = tpu.iota {dimensions = array<i32: 1>} : vector<72x72xi32>
    %12 = vector.broadcast %10 : i32 to vector<72x72xi32>
    %13 = arith.addi %12, %11 : vector<72x72xi32>
    %c65_i32 = arith.constant 65 : i32
    %14 = vector.broadcast %c65_i32 : i32 to vector<72x72xi32>
    %15 = arith.cmpi slt, %13, %14 : vector<72x72xi32>
    %cst_7 = arith.constant 0xFF800000 : f32
    %16 = vector.broadcast %cst_7 : f32 to vector<72x72xf32>
    %17 = arith.select %15, %9, %16 : vector<72x72xi1>, vector<72x72xf32>
    %c0_8 = arith.constant 0 : index
    %c0_9 = arith.constant 0 : index
    %18 = vector.load %arg7[%c0_8, %c0_9] : memref<72x1xf32, #tpu.memory_space<vmem>>, vector<72x1xf32>
    %cst_10 = arith.constant dense<0xFF800000> : vector<72xf32>
    %19 = vector.multi_reduction <maximumf>, %17, %cst_10 [1] : vector<72x72xf32> to vector<72xf32>
    %20 = vector.shape_cast %19 : vector<72xf32> to vector<72x1xf32>
    %21 = arith.maximumf %18, %20 : vector<72x1xf32>
    %22 = arith.subf %18, %21 : vector<72x1xf32>
    %23 = math.exp %22 : vector<72x1xf32>
    %24 = vector.broadcast %21 : vector<72x1xf32> to vector<72x72xf32>
    %25 = arith.subf %17, %24 : vector<72x72xf32>
    %26 = math.exp %25 : vector<72x72xf32>
    %c0_11 = arith.constant 0 : index
    %c0_12 = arith.constant 0 : index
    %27 = vector.load %arg8[%c0_11, %c0_12] : memref<72x1xf32, #tpu.memory_space<vmem>>, vector<72x1xf32>
    %28 = arith.mulf %23, %27 : vector<72x1xf32>
    %cst_13 = arith.constant dense<0.000000e+00> : vector<72xf32>
    %29 = vector.multi_reduction <add>, %26, %cst_13 [1] : vector<72x72xf32> to vector<72xf32>
    %30 = vector.shape_cast %29 : vector<72xf32> to vector<72x1xf32>
    %31 = arith.addf %28, %30 : vector<72x1xf32>
    %c0_14 = arith.constant 0 : index
    %c0_15 = arith.constant 0 : index
    %32 = vector.load %arg8[%c0_14, %c0_15] : memref<72x1xf32, #tpu.memory_space<vmem>>, vector<72x1xf32>
    tpu.vector_store %arg8[%c0_14, %c0_15], %31 {strides = array<i32>} : memref<72x1xf32, #tpu.memory_space<vmem>>, vector<72x1xf32>,
    %c0_16 = arith.constant 0 : index
    %c0_17 = arith.constant 0 : index
    %33 = vector.load %arg9[%c0_16, %c0_17] : memref<72x8xf32, #tpu.memory_space<vmem>>, vector<72x8xf32>
    %34 = vector.broadcast %23 : vector<72x1xf32> to vector<72x8xf32>
    %35 = arith.mulf %34, %33 : vector<72x8xf32>
    %36 = arith.truncf %26 : vector<72x72xf32> to vector<72x72xbf16>
    %c0_18 = arith.constant 0 : index
    %c0_19 = arith.constant 0 : index
    %c0_20 = arith.constant 0 : index
    %37 = vector.load %arg5[%c0_18, %c0_19, %c0_20] : memref<1x72x8xbf16, #tpu.memory_space<vmem>>, vector<1x72x8xbf16>
    %38 = vector.shape_cast %37 : vector<1x72x8xbf16> to vector<72x8xbf16>
    %cst_21 = arith.constant dense<0.000000e+00> : vector<72x8xf32>
    %39 = tpu.matmul %36, %38, %cst_21 {dimension_numbers = #tpu.dot_dimension_numbers<[1], [0], [0], [1], [0, 0, 1, 1], [], []>} : vector<72x72xbf16>, vector<72x8xbf16>, vector<72x8xf32> -> vector<72x8xf32>
    %40 = arith.addf %35, %39 : vector<72x8xf32>
    %c0_22 = arith.constant 0 : index
    %c0_23 = arith.constant 0 : index
    %41 = vector.load %arg9[%c0_22, %c0_23] : memref<72x8xf32, #tpu.memory_space<vmem>>, vector<72x8xf32>
    tpu.vector_store %arg9[%c0_22, %c0_23], %40 {strides = array<i32>} : memref<72x8xf32, #tpu.memory_space<vmem>>, vector<72x8xf32>,
    %c0_24 = arith.constant 0 : index
    %c0_25 = arith.constant 0 : index
    %42 = vector.load %arg7[%c0_24, %c0_25] : memref<72x1xf32, #tpu.memory_space<vmem>>, vector<72x1xf32>
    tpu.vector_store %arg7[%c0_24, %c0_25], %21 {strides = array<i32>} : memref<72x1xf32, #tpu.memory_space<vmem>>, vector<72x1xf32>,
    %c0_i32_26 = arith.constant 0 : i32
    %43 = arith.cmpi eq, %arg2, %c0_i32_26 : i32
    %44 = arith.extui %43 : i1 to i32
    %c0_i32_27 = arith.constant 0 : i32
    %45 = arith.cmpi ne, %44, %c0_i32_27 : i32
    scf.if %45 {
      %c0_28 = arith.constant 0 : index
      %c0_29 = arith.constant 0 : index
      %46 = vector.load %arg9[%c0_28, %c0_29] : memref<72x8xf32, #tpu.memory_space<vmem>>, vector<72x8xf32>
      %c0_30 = arith.constant 0 : index
      %c0_31 = arith.constant 0 : index
      %47 = vector.load %arg8[%c0_30, %c0_31] : memref<72x1xf32, #tpu.memory_space<vmem>>, vector<72x1xf32>
      %48 = tpu.reciprocal %47 {approx = true} : vector<72x1xf32> -> vector<72x1xf32>
      %49 = vector.broadcast %48 : vector<72x1xf32> to vector<72x8xf32>
      %50 = arith.mulf %46, %49 : vector<72x8xf32>
      %c0_32 = arith.constant 0 : index
      %c0_33 = arith.constant 0 : index
      %c0_34 = arith.constant 0 : index
      %51 = vector.load %arg6[%c0_32, %c0_33, %c0_34] : memref<1x72x8xf32, #tpu.memory_space<vmem>>, vector<1x72x8xf32>
      %52 = vector.shape_cast %51 : vector<1x72x8xf32> to vector<72x8xf32>
      %53 = vector.shape_cast %50 : vector<72x8xf32> to vector<1x72x8xf32>
      tpu.vector_store %arg6[%c0_32, %c0_33, %c0_34], %53 {strides = array<i32>} : memref<1x72x8xf32, #tpu.memory_space<vmem>>, vector<1x72x8xf32>,
    } else {
    }
    return
  }
  func.func @transform_0(%arg0: i32, %arg1: i32, %arg2: i32) -> (i32, i32, i32) {
    %c0_i32 = arith.constant 0 : i32
    %c0_i32_0 = arith.constant 0 : i32
    return %arg0, %arg1, %c0_i32 : i32, i32, i32
  }
  func.func @transform_1(%arg0: i32, %arg1: i32, %arg2: i32) -> (i32, i32, i32) {
    %c0_i32 = arith.constant 0 : i32
    %c0_i32_0 = arith.constant 0 : i32
    return %arg0, %arg2, %c0_i32 : i32, i32, i32
  }
  func.func @transform_2(%arg0: i32, %arg1: i32, %arg2: i32) -> (i32, i32, i32) {
    %c0_i32 = arith.constant 0 : i32
    %c0_i32_0 = arith.constant 0 : i32
    return %arg0, %arg2, %c0_i32 : i32, i32, i32
  }
  func.func @transform_3(%arg0: i32, %arg1: i32, %arg2: i32) -> (i32, i32, i32) {
    %c0_i32 = arith.constant 0 : i32
    %c0_i32_0 = arith.constant 0 : i32
    return %arg0, %arg1, %c0_i32 : i32, i32, i32
  }
}

module attributes {stable_mosaic.version = 11 : i64} {
  func.func @_ln_mlp_kernel(%arg0: i32, %arg1: memref<136x16xf32, #tpu.memory_space<vmem>>, %arg2: memref<1x16xf32, #tpu.memory_space<vmem>>, %arg3: memref<1x16xf32, #tpu.memory_space<vmem>>, %arg4: memref<16x64xbf16, #tpu.memory_space<vmem>>, %arg5: memref<1x64xf32, #tpu.memory_space<vmem>>, %arg6: memref<64x16xbf16, #tpu.memory_space<vmem>>, %arg7: memref<1x16xf32, #tpu.memory_space<vmem>>, %arg8: memref<136x16xf32, #tpu.memory_space<vmem>>) attributes {dimension_semantics = [#tpu.dimension_semantics<parallel>], iteration_bounds = array<i64: 1>, scalar_prefetch = 0 : i64, scratch_operands = 0 : i64, tpu.core_type = #tpu.core_type<tc>, window_params = [{transform_indices = @transform_0, window_bounds = array<i64: 136, 16>}, {pipeline_mode = #tpu.pipeline_mode<synchronous>, transform_indices = @transform_1, window_bounds = array<i64: 1, 16>}, {pipeline_mode = #tpu.pipeline_mode<synchronous>, transform_indices = @transform_2, window_bounds = array<i64: 1, 16>}, {pipeline_mode = #tpu.pipeline_mode<synchronous>, transform_indices = @transform_3, window_bounds = array<i64: 16, 64>}, {pipeline_mode = #tpu.pipeline_mode<synchronous>, transform_indices = @transform_4, window_bounds = array<i64: 1, 64>}, {pipeline_mode = #tpu.pipeline_mode<synchronous>, transform_indices = @transform_5, window_bounds = array<i64: 64, 16>}, {pipeline_mode = #tpu.pipeline_mode<synchronous>, transform_indices = @transform_6, window_bounds = array<i64: 1, 16>}, {transform_indices = @transform_7, window_bounds = array<i64: 136, 16>}]} {
    %c0 = arith.constant 0 : index
    %c0_0 = arith.constant 0 : index
    %0 = vector.load %arg1[%c0, %c0_0] : memref<136x16xf32, #tpu.memory_space<vmem>>, vector<136x16xf32>
    %cst = arith.constant dense<0.000000e+00> : vector<136xf32>
    %1 = vector.multi_reduction <add>, %0, %cst [1] : vector<136x16xf32> to vector<136xf32>
    %2 = vector.shape_cast %1 : vector<136xf32> to vector<136x1xf32>
    %cst_1 = arith.constant 1.600000e+01 : f32
    %3 = vector.broadcast %cst_1 : f32 to vector<136x1xf32>
    %4 = arith.divf %2, %3 : vector<136x1xf32>
    %5 = vector.broadcast %4 : vector<136x1xf32> to vector<136x16xf32>
    %6 = arith.subf %0, %5 : vector<136x16xf32>
    %7 = arith.mulf %6, %6 : vector<136x16xf32>
    %cst_2 = arith.constant dense<0.000000e+00> : vector<136xf32>
    %8 = vector.multi_reduction <add>, %7, %cst_2 [1] : vector<136x16xf32> to vector<136xf32>
    %9 = vector.shape_cast %8 : vector<136xf32> to vector<136x1xf32>
    %cst_3 = arith.constant 1.600000e+01 : f32
    %10 = vector.broadcast %cst_3 : f32 to vector<136x1xf32>
    %11 = arith.divf %9, %10 : vector<136x1xf32>
    %12 = vector.broadcast %4 : vector<136x1xf32> to vector<136x16xf32>
    %13 = arith.subf %0, %12 : vector<136x16xf32>
    %cst_4 = arith.constant 9.99999974E-6 : f32
    %14 = vector.broadcast %cst_4 : f32 to vector<136x1xf32>
    %15 = arith.addf %11, %14 : vector<136x1xf32>
    %16 = math.rsqrt %15 : vector<136x1xf32>
    %17 = vector.broadcast %16 : vector<136x1xf32> to vector<136x16xf32>
    %18 = arith.mulf %13, %17 : vector<136x16xf32>
    %c0_5 = arith.constant 0 : index
    %c0_6 = arith.constant 0 : index
    %19 = vector.load %arg2[%c0_5, %c0_6] : memref<1x16xf32, #tpu.memory_space<vmem>>, vector<1x16xf32>
    %20 = vector.broadcast %19 : vector<1x16xf32> to vector<136x16xf32>
    %21 = arith.mulf %18, %20 : vector<136x16xf32>
    %c0_7 = arith.constant 0 : index
    %c0_8 = arith.constant 0 : index
    %22 = vector.load %arg3[%c0_7, %c0_8] : memref<1x16xf32, #tpu.memory_space<vmem>>, vector<1x16xf32>
    %23 = vector.broadcast %22 : vector<1x16xf32> to vector<136x16xf32>
    %24 = arith.addf %21, %23 : vector<136x16xf32>
    %25 = arith.truncf %24 : vector<136x16xf32> to vector<136x16xbf16>
    %c0_9 = arith.constant 0 : index
    %c0_10 = arith.constant 0 : index
    %26 = vector.load %arg4[%c0_9, %c0_10] : memref<16x64xbf16, #tpu.memory_space<vmem>>, vector<16x64xbf16>
    %cst_11 = arith.constant dense<0.000000e+00> : vector<136x64xf32>
    %27 = tpu.matmul %25, %26, %cst_11 {dimension_numbers = #tpu.dot_dimension_numbers<[1], [0], [0], [1], [0, 0, 1, 1], [], []>} : vector<136x16xbf16>, vector<16x64xbf16>, vector<136x64xf32> -> vector<136x64xf32>
    %c0_12 = arith.constant 0 : index
    %c0_13 = arith.constant 0 : index
    %28 = vector.load %arg5[%c0_12, %c0_13] : memref<1x64xf32, #tpu.memory_space<vmem>>, vector<1x64xf32>
    %29 = vector.broadcast %28 : vector<1x64xf32> to vector<136x64xf32>
    %30 = arith.addf %27, %29 : vector<136x64xf32>
    %cst_14 = arith.constant 1.702000e+00 : f32
    %31 = vector.broadcast %cst_14 : f32 to vector<136x64xf32>
    %32 = arith.mulf %31, %30 : vector<136x64xf32>
    %33 = arith.negf %32 : vector<136x64xf32>
    %34 = math.exp %33 : vector<136x64xf32>
    %cst_15 = arith.constant 1.000000e+00 : f32
    %35 = vector.broadcast %cst_15 : f32 to vector<136x64xf32>
    %36 = arith.addf %35, %34 : vector<136x64xf32>
    %37 = arith.divf %35, %36 : vector<136x64xf32>
    %38 = arith.mulf %30, %37 : vector<136x64xf32>
    %39 = arith.truncf %38 : vector<136x64xf32> to vector<136x64xbf16>
    %c0_16 = arith.constant 0 : index
    %c0_17 = arith.constant 0 : index
    %40 = vector.load %arg6[%c0_16, %c0_17] : memref<64x16xbf16, #tpu.memory_space<vmem>>, vector<64x16xbf16>
    %cst_18 = arith.constant dense<0.000000e+00> : vector<136x16xf32>
    %41 = tpu.matmul %39, %40, %cst_18 {dimension_numbers = #tpu.dot_dimension_numbers<[1], [0], [0], [1], [0, 0, 1, 1], [], []>} : vector<136x64xbf16>, vector<64x16xbf16>, vector<136x16xf32> -> vector<136x16xf32>
    %42 = arith.addf %0, %41 : vector<136x16xf32>
    %c0_19 = arith.constant 0 : index
    %c0_20 = arith.constant 0 : index
    %43 = vector.load %arg7[%c0_19, %c0_20] : memref<1x16xf32, #tpu.memory_space<vmem>>, vector<1x16xf32>
    %44 = vector.broadcast %43 : vector<1x16xf32> to vector<136x16xf32>
    %45 = arith.addf %42, %44 : vector<136x16xf32>
    %c0_21 = arith.constant 0 : index
    %c0_22 = arith.constant 0 : index
    %46 = vector.load %arg8[%c0_21, %c0_22] : memref<136x16xf32, #tpu.memory_space<vmem>>, vector<136x16xf32>
    tpu.vector_store %arg8[%c0_21, %c0_22], %45 {strides = array<i32>} : memref<136x16xf32, #tpu.memory_space<vmem>>, vector<136x16xf32>,
    return
  }
  func.func @transform_0(%arg0: i32) -> (i32, i32) {
    %c0_i32 = arith.constant 0 : i32
    %c0_i32_0 = arith.constant 0 : i32
    return %arg0, %c0_i32 : i32, i32
  }
  func.func @transform_1(%arg0: i32) -> (i32, i32) {
    %c0_i32 = arith.constant 0 : i32
    %c0_i32_0 = arith.constant 0 : i32
    %c0_i32_1 = arith.constant 0 : i32
    return %c0_i32, %c0_i32_0 : i32, i32
  }
  func.func @transform_2(%arg0: i32) -> (i32, i32) {
    %c0_i32 = arith.constant 0 : i32
    %c0_i32_0 = arith.constant 0 : i32
    %c0_i32_1 = arith.constant 0 : i32
    return %c0_i32, %c0_i32_0 : i32, i32
  }
  func.func @transform_3(%arg0: i32) -> (i32, i32) {
    %c0_i32 = arith.constant 0 : i32
    %c0_i32_0 = arith.constant 0 : i32
    %c0_i32_1 = arith.constant 0 : i32
    return %c0_i32, %c0_i32_0 : i32, i32
  }
  func.func @transform_4(%arg0: i32) -> (i32, i32) {
    %c0_i32 = arith.constant 0 : i32
    %c0_i32_0 = arith.constant 0 : i32
    %c0_i32_1 = arith.constant 0 : i32
    return %c0_i32, %c0_i32_0 : i32, i32
  }
  func.func @transform_5(%arg0: i32) -> (i32, i32) {
    %c0_i32 = arith.constant 0 : i32
    %c0_i32_0 = arith.constant 0 : i32
    %c0_i32_1 = arith.constant 0 : i32
    return %c0_i32, %c0_i32_0 : i32, i32
  }
  func.func @transform_6(%arg0: i32) -> (i32, i32) {
    %c0_i32 = arith.constant 0 : i32
    %c0_i32_0 = arith.constant 0 : i32
    %c0_i32_1 = arith.constant 0 : i32
    return %c0_i32, %c0_i32_0 : i32, i32
  }
  func.func @transform_7(%arg0: i32) -> (i32, i32) {
    %c0_i32 = arith.constant 0 : i32
    %c0_i32_0 = arith.constant 0 : i32
    return %arg0, %c0_i32 : i32, i32
  }
}

module attributes {stable_mosaic.version = 11 : i64} {
  func.func @kernel(%arg0: i32, %arg1: i32, %arg2: i32, %arg3: memref<136x16xbf16, #tpu.memory_space<vmem>>, %arg4: memref<16x16xbf16, #tpu.memory_space<vmem>>, %arg5: memref<1x16xf32, #tpu.memory_space<vmem>>, %arg6: memref<136x16xf32, #tpu.memory_space<vmem>>, %arg7: memref<136x16xf32, #tpu.memory_space<vmem>>, %arg8: memref<136x16xf32, #tpu.memory_space<vmem>>) attributes {dimension_semantics = [#tpu.dimension_semantics<parallel>, #tpu.dimension_semantics<parallel>, #tpu.dimension_semantics<arbitrary>], iteration_bounds = array<i64: 1, 1, 1>, scalar_prefetch = 0 : i64, scratch_operands = 1 : i64, tpu.core_type = #tpu.core_type<tc>, window_params = [{transform_indices = @transform_0, window_bounds = array<i64: 136, 16>}, {transform_indices = @transform_1, window_bounds = array<i64: 16, 16>}, {transform_indices = @transform_2, window_bounds = array<i64: 1, 16>}, {transform_indices = @transform_3, window_bounds = array<i64: 136, 16>}, {transform_indices = @transform_4, window_bounds = array<i64: 136, 16>}]} {
    %c0_i32 = arith.constant 0 : i32
    %0 = arith.cmpi eq, %arg2, %c0_i32 : i32
    %1 = arith.extui %0 : i1 to i32
    %c0_i32_0 = arith.constant 0 : i32
    %2 = arith.cmpi ne, %1, %c0_i32_0 : i32
    scf.if %2 {
      %cst_10 = arith.constant 0.000000e+00 : f32
      %12 = vector.broadcast %cst_10 : f32 to vector<136x16xf32>
      %c0_11 = arith.constant 0 : index
      %c0_12 = arith.constant 0 : index
      %13 = vector.load %arg8[%c0_11, %c0_12] : memref<136x16xf32, #tpu.memory_space<vmem>>, vector<136x16xf32>
      tpu.vector_store %arg8[%c0_11, %c0_12], %12 {strides = array<i32>} : memref<136x16xf32, #tpu.memory_space<vmem>>, vector<136x16xf32>,
    } else {
    }
    %c0 = arith.constant 0 : index
    %c0_1 = arith.constant 0 : index
    %3 = vector.load %arg8[%c0, %c0_1] : memref<136x16xf32, #tpu.memory_space<vmem>>, vector<136x16xf32>
    %c0_2 = arith.constant 0 : index
    %c0_3 = arith.constant 0 : index
    %4 = vector.load %arg3[%c0_2, %c0_3] : memref<136x16xbf16, #tpu.memory_space<vmem>>, vector<136x16xbf16>
    %c0_4 = arith.constant 0 : index
    %c0_5 = arith.constant 0 : index
    %5 = vector.load %arg4[%c0_4, %c0_5] : memref<16x16xbf16, #tpu.memory_space<vmem>>, vector<16x16xbf16>
    %cst = arith.constant dense<0.000000e+00> : vector<136x16xf32>
    %6 = tpu.matmul %4, %5, %cst {dimension_numbers = #tpu.dot_dimension_numbers<[1], [0], [0], [1], [0, 0, 1, 1], [], []>} : vector<136x16xbf16>, vector<16x16xbf16>, vector<136x16xf32> -> vector<136x16xf32>
    %7 = arith.addf %3, %6 : vector<136x16xf32>
    %c0_6 = arith.constant 0 : index
    %c0_7 = arith.constant 0 : index
    %8 = vector.load %arg8[%c0_6, %c0_7] : memref<136x16xf32, #tpu.memory_space<vmem>>, vector<136x16xf32>
    tpu.vector_store %arg8[%c0_6, %c0_7], %7 {strides = array<i32>} : memref<136x16xf32, #tpu.memory_space<vmem>>, vector<136x16xf32>,
    %c0_i32_8 = arith.constant 0 : i32
    %9 = arith.cmpi eq, %arg2, %c0_i32_8 : i32
    %10 = arith.extui %9 : i1 to i32
    %c0_i32_9 = arith.constant 0 : i32
    %11 = arith.cmpi ne, %10, %c0_i32_9 : i32
    scf.if %11 {
      %c0_10 = arith.constant 0 : index
      %c0_11 = arith.constant 0 : index
      %12 = vector.load %arg8[%c0_10, %c0_11] : memref<136x16xf32, #tpu.memory_space<vmem>>, vector<136x16xf32>
      %c0_12 = arith.constant 0 : index
      %c0_13 = arith.constant 0 : index
      %13 = vector.load %arg5[%c0_12, %c0_13] : memref<1x16xf32, #tpu.memory_space<vmem>>, vector<1x16xf32>
      %14 = vector.broadcast %13 : vector<1x16xf32> to vector<136x16xf32>
      %15 = arith.addf %12, %14 : vector<136x16xf32>
      %c0_14 = arith.constant 0 : index
      %c0_15 = arith.constant 0 : index
      %16 = vector.load %arg6[%c0_14, %c0_15] : memref<136x16xf32, #tpu.memory_space<vmem>>, vector<136x16xf32>
      %17 = arith.addf %15, %16 : vector<136x16xf32>
      %c0_16 = arith.constant 0 : index
      %c0_17 = arith.constant 0 : index
      %18 = vector.load %arg7[%c0_16, %c0_17] : memref<136x16xf32, #tpu.memory_space<vmem>>, vector<136x16xf32>
      tpu.vector_store %arg7[%c0_16, %c0_17], %17 {strides = array<i32>} : memref<136x16xf32, #tpu.memory_space<vmem>>, vector<136x16xf32>,
    } else {
    }
    return
  }
  func.func @transform_0(%arg0: i32, %arg1: i32, %arg2: i32) -> (i32, i32) {
    %c0_i32 = arith.constant 0 : i32
    return %arg0, %arg2 : i32, i32
  }
  func.func @transform_1(%arg0: i32, %arg1: i32, %arg2: i32) -> (i32, i32) {
    %c0_i32 = arith.constant 0 : i32
    return %arg2, %arg1 : i32, i32
  }
  func.func @transform_2(%arg0: i32, %arg1: i32, %arg2: i32) -> (i32, i32) {
    %c0_i32 = arith.constant 0 : i32
    %c0_i32_0 = arith.constant 0 : i32
    return %c0_i32, %arg1 : i32, i32
  }
  func.func @transform_3(%arg0: i32, %arg1: i32, %arg2: i32) -> (i32, i32) {
    %c0_i32 = arith.constant 0 : i32
    return %arg0, %arg1 : i32, i32
  }
  func.func @transform_4(%arg0: i32, %arg1: i32, %arg2: i32) -> (i32, i32) {
    %c0_i32 = arith.constant 0 : i32
    return %arg0, %arg1 : i32, i32
  }
}

module attributes {stable_mosaic.version = 11 : i64} {
  func.func @kernel(%arg0: i32, %arg1: i32, %arg2: i32, %arg3: memref<136x16xbf16, #tpu.memory_space<vmem>>, %arg4: memref<16x16xbf16, #tpu.memory_space<vmem>>, %arg5: memref<136x16xf32, #tpu.memory_space<vmem>>, %arg6: memref<136x16xf32, #tpu.memory_space<vmem>>) attributes {dimension_semantics = [#tpu.dimension_semantics<parallel>, #tpu.dimension_semantics<parallel>, #tpu.dimension_semantics<arbitrary>], iteration_bounds = array<i64: 1, 1, 1>, scalar_prefetch = 0 : i64, scratch_operands = 1 : i64, tpu.core_type = #tpu.core_type<tc>, window_params = [{transform_indices = @transform_0, window_bounds = array<i64: 136, 16>}, {transform_indices = @transform_1, window_bounds = array<i64: 16, 16>}, {transform_indices = @transform_2, window_bounds = array<i64: 136, 16>}]} {
    %c0_i32 = arith.constant 0 : i32
    %0 = arith.cmpi eq, %arg2, %c0_i32 : i32
    %1 = arith.extui %0 : i1 to i32
    %c0_i32_0 = arith.constant 0 : i32
    %2 = arith.cmpi ne, %1, %c0_i32_0 : i32
    scf.if %2 {
      %cst_10 = arith.constant 0.000000e+00 : f32
      %12 = vector.broadcast %cst_10 : f32 to vector<136x16xf32>
      %c0_11 = arith.constant 0 : index
      %c0_12 = arith.constant 0 : index
      %13 = vector.load %arg6[%c0_11, %c0_12] : memref<136x16xf32, #tpu.memory_space<vmem>>, vector<136x16xf32>
      tpu.vector_store %arg6[%c0_11, %c0_12], %12 {strides = array<i32>} : memref<136x16xf32, #tpu.memory_space<vmem>>, vector<136x16xf32>,
    } else {
    }
    %c0 = arith.constant 0 : index
    %c0_1 = arith.constant 0 : index
    %3 = vector.load %arg6[%c0, %c0_1] : memref<136x16xf32, #tpu.memory_space<vmem>>, vector<136x16xf32>
    %c0_2 = arith.constant 0 : index
    %c0_3 = arith.constant 0 : index
    %4 = vector.load %arg3[%c0_2, %c0_3] : memref<136x16xbf16, #tpu.memory_space<vmem>>, vector<136x16xbf16>
    %c0_4 = arith.constant 0 : index
    %c0_5 = arith.constant 0 : index
    %5 = vector.load %arg4[%c0_4, %c0_5] : memref<16x16xbf16, #tpu.memory_space<vmem>>, vector<16x16xbf16>
    %cst = arith.constant dense<0.000000e+00> : vector<136x16xf32>
    %6 = tpu.matmul %4, %5, %cst {dimension_numbers = #tpu.dot_dimension_numbers<[1], [0], [0], [1], [0, 0, 1, 1], [], []>} : vector<136x16xbf16>, vector<16x16xbf16>, vector<136x16xf32> -> vector<136x16xf32>
    %7 = arith.addf %3, %6 : vector<136x16xf32>
    %c0_6 = arith.constant 0 : index
    %c0_7 = arith.constant 0 : index
    %8 = vector.load %arg6[%c0_6, %c0_7] : memref<136x16xf32, #tpu.memory_space<vmem>>, vector<136x16xf32>
    tpu.vector_store %arg6[%c0_6, %c0_7], %7 {strides = array<i32>} : memref<136x16xf32, #tpu.memory_space<vmem>>, vector<136x16xf32>,
    %c0_i32_8 = arith.constant 0 : i32
    %9 = arith.cmpi eq, %arg2, %c0_i32_8 : i32
    %10 = arith.extui %9 : i1 to i32
    %c0_i32_9 = arith.constant 0 : i32
    %11 = arith.cmpi ne, %10, %c0_i32_9 : i32
    scf.if %11 {
      %c0_10 = arith.constant 0 : index
      %c0_11 = arith.constant 0 : index
      %12 = vector.load %arg6[%c0_10, %c0_11] : memref<136x16xf32, #tpu.memory_space<vmem>>, vector<136x16xf32>
      %c0_12 = arith.constant 0 : index
      %c0_13 = arith.constant 0 : index
      %13 = vector.load %arg5[%c0_12, %c0_13] : memref<136x16xf32, #tpu.memory_space<vmem>>, vector<136x16xf32>
      tpu.vector_store %arg5[%c0_12, %c0_13], %12 {strides = array<i32>} : memref<136x16xf32, #tpu.memory_space<vmem>>, vector<136x16xf32>,
    } else {
    }
    return
  }
  func.func @transform_0(%arg0: i32, %arg1: i32, %arg2: i32) -> (i32, i32) {
    %c0_i32 = arith.constant 0 : i32
    return %arg0, %arg2 : i32, i32
  }
  func.func @transform_1(%arg0: i32, %arg1: i32, %arg2: i32) -> (i32, i32) {
    %c0_i32 = arith.constant 0 : i32
    return %arg2, %arg1 : i32, i32
  }
  func.func @transform_2(%arg0: i32, %arg1: i32, %arg2: i32) -> (i32, i32) {
    %c0_i32 = arith.constant 0 : i32
    return %arg0, %arg1 : i32, i32
  }
}

module attributes {stable_mosaic.version = 11 : i64} {
  func.func @_layernorm_kernel(%arg0: i32, %arg1: memref<40x32xf32, #tpu.memory_space<vmem>>, %arg2: memref<1x32xf32, #tpu.memory_space<vmem>>, %arg3: memref<1x32xf32, #tpu.memory_space<vmem>>, %arg4: memref<40x32xf32, #tpu.memory_space<vmem>>) attributes {dimension_semantics = [#tpu.dimension_semantics<parallel>], iteration_bounds = array<i64: 1>, scalar_prefetch = 0 : i64, scratch_operands = 0 : i64, tpu.core_type = #tpu.core_type<tc>, window_params = [{transform_indices = @transform_0, window_bounds = array<i64: 40, 32>}, {pipeline_mode = #tpu.pipeline_mode<synchronous>, transform_indices = @transform_1, window_bounds = array<i64: 1, 32>}, {pipeline_mode = #tpu.pipeline_mode<synchronous>, transform_indices = @transform_2, window_bounds = array<i64: 1, 32>}, {transform_indices = @transform_3, window_bounds = array<i64: 40, 32>}]} {
    %c0 = arith.constant 0 : index
    %c0_0 = arith.constant 0 : index
    %0 = vector.load %arg1[%c0, %c0_0] : memref<40x32xf32, #tpu.memory_space<vmem>>, vector<40x32xf32>
    %cst = arith.constant dense<0.000000e+00> : vector<40xf32>
    %1 = vector.multi_reduction <add>, %0, %cst [1] : vector<40x32xf32> to vector<40xf32>
    %2 = vector.shape_cast %1 : vector<40xf32> to vector<40x1xf32>
    %cst_1 = arith.constant 3.200000e+01 : f32
    %3 = vector.broadcast %cst_1 : f32 to vector<40x1xf32>
    %4 = arith.divf %2, %3 : vector<40x1xf32>
    %5 = vector.broadcast %4 : vector<40x1xf32> to vector<40x32xf32>
    %6 = arith.subf %0, %5 : vector<40x32xf32>
    %7 = arith.mulf %6, %6 : vector<40x32xf32>
    %cst_2 = arith.constant dense<0.000000e+00> : vector<40xf32>
    %8 = vector.multi_reduction <add>, %7, %cst_2 [1] : vector<40x32xf32> to vector<40xf32>
    %9 = vector.shape_cast %8 : vector<40xf32> to vector<40x1xf32>
    %cst_3 = arith.constant 3.200000e+01 : f32
    %10 = vector.broadcast %cst_3 : f32 to vector<40x1xf32>
    %11 = arith.divf %9, %10 : vector<40x1xf32>
    %12 = vector.broadcast %4 : vector<40x1xf32> to vector<40x32xf32>
    %13 = arith.subf %0, %12 : vector<40x32xf32>
    %cst_4 = arith.constant 9.99999974E-6 : f32
    %14 = vector.broadcast %cst_4 : f32 to vector<40x1xf32>
    %15 = arith.addf %11, %14 : vector<40x1xf32>
    %16 = math.rsqrt %15 : vector<40x1xf32>
    %17 = vector.broadcast %16 : vector<40x1xf32> to vector<40x32xf32>
    %18 = arith.mulf %13, %17 : vector<40x32xf32>
    %c0_5 = arith.constant 0 : index
    %c0_6 = arith.constant 0 : index
    %19 = vector.load %arg2[%c0_5, %c0_6] : memref<1x32xf32, #tpu.memory_space<vmem>>, vector<1x32xf32>
    %20 = vector.broadcast %19 : vector<1x32xf32> to vector<40x32xf32>
    %21 = arith.mulf %18, %20 : vector<40x32xf32>
    %c0_7 = arith.constant 0 : index
    %c0_8 = arith.constant 0 : index
    %22 = vector.load %arg3[%c0_7, %c0_8] : memref<1x32xf32, #tpu.memory_space<vmem>>, vector<1x32xf32>
    %23 = vector.broadcast %22 : vector<1x32xf32> to vector<40x32xf32>
    %24 = arith.addf %21, %23 : vector<40x32xf32>
    %c0_9 = arith.constant 0 : index
    %c0_10 = arith.constant 0 : index
    %25 = vector.load %arg4[%c0_9, %c0_10] : memref<40x32xf32, #tpu.memory_space<vmem>>, vector<40x32xf32>
    tpu.vector_store %arg4[%c0_9, %c0_10], %24 {strides = array<i32>} : memref<40x32xf32, #tpu.memory_space<vmem>>, vector<40x32xf32>,
    return
  }
  func.func @transform_0(%arg0: i32) -> (i32, i32) {
    %c0_i32 = arith.constant 0 : i32
    %c0_i32_0 = arith.constant 0 : i32
    return %arg0, %c0_i32 : i32, i32
  }
  func.func @transform_1(%arg0: i32) -> (i32, i32) {
    %c0_i32 = arith.constant 0 : i32
    %c0_i32_0 = arith.constant 0 : i32
    %c0_i32_1 = arith.constant 0 : i32
    return %c0_i32, %c0_i32_0 : i32, i32
  }
  func.func @transform_2(%arg0: i32) -> (i32, i32) {
    %c0_i32 = arith.constant 0 : i32
    %c0_i32_0 = arith.constant 0 : i32
    %c0_i32_1 = arith.constant 0 : i32
    return %c0_i32, %c0_i32_0 : i32, i32
  }
  func.func @transform_3(%arg0: i32) -> (i32, i32) {
    %c0_i32 = arith.constant 0 : i32
    %c0_i32_0 = arith.constant 0 : i32
    return %arg0, %c0_i32 : i32, i32
  }
}

module attributes {stable_mosaic.version = 11 : i64} {
  func.func @_ln_matmul_kernel(%arg0: i32, %arg1: i32, %arg2: memref<40x32xf32, #tpu.memory_space<vmem>>, %arg3: memref<1x32xf32, #tpu.memory_space<vmem>>, %arg4: memref<1x32xf32, #tpu.memory_space<vmem>>, %arg5: memref<32x96xbf16, #tpu.memory_space<vmem>>, %arg6: memref<1x96xf32, #tpu.memory_space<vmem>>, %arg7: memref<40x96xf32, #tpu.memory_space<vmem>>) attributes {dimension_semantics = [#tpu.dimension_semantics<parallel>, #tpu.dimension_semantics<parallel>], iteration_bounds = array<i64: 1, 1>, scalar_prefetch = 0 : i64, scratch_operands = 0 : i64, tpu.core_type = #tpu.core_type<tc>, window_params = [{transform_indices = @transform_0, window_bounds = array<i64: 40, 32>}, {pipeline_mode = #tpu.pipeline_mode<synchronous>, transform_indices = @transform_1, window_bounds = array<i64: 1, 32>}, {pipeline_mode = #tpu.pipeline_mode<synchronous>, transform_indices = @transform_2, window_bounds = array<i64: 1, 32>}, {transform_indices = @transform_3, window_bounds = array<i64: 32, 96>}, {transform_indices = @transform_4, window_bounds = array<i64: 1, 96>}, {transform_indices = @transform_5, window_bounds = array<i64: 40, 96>}]} {
    %c0 = arith.constant 0 : index
    %c0_0 = arith.constant 0 : index
    %0 = vector.load %arg2[%c0, %c0_0] : memref<40x32xf32, #tpu.memory_space<vmem>>, vector<40x32xf32>
    %cst = arith.constant dense<0.000000e+00> : vector<40xf32>
    %1 = vector.multi_reduction <add>, %0, %cst [1] : vector<40x32xf32> to vector<40xf32>
    %2 = vector.shape_cast %1 : vector<40xf32> to vector<40x1xf32>
    %cst_1 = arith.constant 3.200000e+01 : f32
    %3 = vector.broadcast %cst_1 : f32 to vector<40x1xf32>
    %4 = arith.divf %2, %3 : vector<40x1xf32>
    %5 = vector.broadcast %4 : vector<40x1xf32> to vector<40x32xf32>
    %6 = arith.subf %0, %5 : vector<40x32xf32>
    %7 = arith.mulf %6, %6 : vector<40x32xf32>
    %cst_2 = arith.constant dense<0.000000e+00> : vector<40xf32>
    %8 = vector.multi_reduction <add>, %7, %cst_2 [1] : vector<40x32xf32> to vector<40xf32>
    %9 = vector.shape_cast %8 : vector<40xf32> to vector<40x1xf32>
    %cst_3 = arith.constant 3.200000e+01 : f32
    %10 = vector.broadcast %cst_3 : f32 to vector<40x1xf32>
    %11 = arith.divf %9, %10 : vector<40x1xf32>
    %12 = vector.broadcast %4 : vector<40x1xf32> to vector<40x32xf32>
    %13 = arith.subf %0, %12 : vector<40x32xf32>
    %cst_4 = arith.constant 9.99999974E-6 : f32
    %14 = vector.broadcast %cst_4 : f32 to vector<40x1xf32>
    %15 = arith.addf %11, %14 : vector<40x1xf32>
    %16 = math.rsqrt %15 : vector<40x1xf32>
    %17 = vector.broadcast %16 : vector<40x1xf32> to vector<40x32xf32>
    %18 = arith.mulf %13, %17 : vector<40x32xf32>
    %c0_5 = arith.constant 0 : index
    %c0_6 = arith.constant 0 : index
    %19 = vector.load %arg3[%c0_5, %c0_6] : memref<1x32xf32, #tpu.memory_space<vmem>>, vector<1x32xf32>
    %20 = vector.broadcast %19 : vector<1x32xf32> to vector<40x32xf32>
    %21 = arith.mulf %18, %20 : vector<40x32xf32>
    %c0_7 = arith.constant 0 : index
    %c0_8 = arith.constant 0 : index
    %22 = vector.load %arg4[%c0_7, %c0_8] : memref<1x32xf32, #tpu.memory_space<vmem>>, vector<1x32xf32>
    %23 = vector.broadcast %22 : vector<1x32xf32> to vector<40x32xf32>
    %24 = arith.addf %21, %23 : vector<40x32xf32>
    %25 = arith.truncf %24 : vector<40x32xf32> to vector<40x32xbf16>
    %c0_9 = arith.constant 0 : index
    %c0_10 = arith.constant 0 : index
    %26 = vector.load %arg5[%c0_9, %c0_10] : memref<32x96xbf16, #tpu.memory_space<vmem>>, vector<32x96xbf16>
    %cst_11 = arith.constant dense<0.000000e+00> : vector<40x96xf32>
    %27 = tpu.matmul %25, %26, %cst_11 {dimension_numbers = #tpu.dot_dimension_numbers<[1], [0], [0], [1], [0, 0, 1, 1], [], []>} : vector<40x32xbf16>, vector<32x96xbf16>, vector<40x96xf32> -> vector<40x96xf32>
    %c0_12 = arith.constant 0 : index
    %c0_13 = arith.constant 0 : index
    %28 = vector.load %arg6[%c0_12, %c0_13] : memref<1x96xf32, #tpu.memory_space<vmem>>, vector<1x96xf32>
    %29 = vector.broadcast %28 : vector<1x96xf32> to vector<40x96xf32>
    %30 = arith.addf %27, %29 : vector<40x96xf32>
    %c0_14 = arith.constant 0 : index
    %c0_15 = arith.constant 0 : index
    %31 = vector.load %arg7[%c0_14, %c0_15] : memref<40x96xf32, #tpu.memory_space<vmem>>, vector<40x96xf32>
    tpu.vector_store %arg7[%c0_14, %c0_15], %30 {strides = array<i32>} : memref<40x96xf32, #tpu.memory_space<vmem>>, vector<40x96xf32>,
    return
  }
  func.func @transform_0(%arg0: i32, %arg1: i32) -> (i32, i32) {
    %c0_i32 = arith.constant 0 : i32
    %c0_i32_0 = arith.constant 0 : i32
    return %arg0, %c0_i32 : i32, i32
  }
  func.func @transform_1(%arg0: i32, %arg1: i32) -> (i32, i32) {
    %c0_i32 = arith.constant 0 : i32
    %c0_i32_0 = arith.constant 0 : i32
    %c0_i32_1 = arith.constant 0 : i32
    return %c0_i32, %c0_i32_0 : i32, i32
  }
  func.func @transform_2(%arg0: i32, %arg1: i32) -> (i32, i32) {
    %c0_i32 = arith.constant 0 : i32
    %c0_i32_0 = arith.constant 0 : i32
    %c0_i32_1 = arith.constant 0 : i32
    return %c0_i32, %c0_i32_0 : i32, i32
  }
  func.func @transform_3(%arg0: i32, %arg1: i32) -> (i32, i32) {
    %c0_i32 = arith.constant 0 : i32
    %c0_i32_0 = arith.constant 0 : i32
    return %c0_i32, %arg1 : i32, i32
  }
  func.func @transform_4(%arg0: i32, %arg1: i32) -> (i32, i32) {
    %c0_i32 = arith.constant 0 : i32
    %c0_i32_0 = arith.constant 0 : i32
    return %c0_i32, %arg1 : i32, i32
  }
  func.func @transform_5(%arg0: i32, %arg1: i32) -> (i32, i32) {
    %c0_i32 = arith.constant 0 : i32
    return %arg0, %arg1 : i32, i32
  }
}

module attributes {stable_mosaic.version = 11 : i64} {
  func.func @kernel(%arg0: i32, %arg1: i32, %arg2: i32, %arg3: memref<32x16xbf16, #tpu.memory_space<vmem>>, %arg4: memref<16x32xbf16, #tpu.memory_space<vmem>>, %arg5: memref<1x32xf32, #tpu.memory_space<vmem>>, %arg6: memref<32x32xf32, #tpu.memory_space<vmem>>, %arg7: memref<32x32xf32, #tpu.memory_space<vmem>>) attributes {dimension_semantics = [#tpu.dimension_semantics<parallel>, #tpu.dimension_semantics<parallel>, #tpu.dimension_semantics<arbitrary>], iteration_bounds = array<i64: 1, 1, 1>, scalar_prefetch = 0 : i64, scratch_operands = 1 : i64, tpu.core_type = #tpu.core_type<tc>, window_params = [{transform_indices = @transform_0, window_bounds = array<i64: 32, 16>}, {transform_indices = @transform_1, window_bounds = array<i64: 16, 32>}, {transform_indices = @transform_2, window_bounds = array<i64: 1, 32>}, {transform_indices = @transform_3, window_bounds = array<i64: 32, 32>}]} {
    %c0_i32 = arith.constant 0 : i32
    %0 = arith.cmpi eq, %arg2, %c0_i32 : i32
    %1 = arith.extui %0 : i1 to i32
    %c0_i32_0 = arith.constant 0 : i32
    %2 = arith.cmpi ne, %1, %c0_i32_0 : i32
    scf.if %2 {
      %cst_10 = arith.constant 0.000000e+00 : f32
      %12 = vector.broadcast %cst_10 : f32 to vector<32x32xf32>
      %c0_11 = arith.constant 0 : index
      %c0_12 = arith.constant 0 : index
      %13 = vector.load %arg7[%c0_11, %c0_12] : memref<32x32xf32, #tpu.memory_space<vmem>>, vector<32x32xf32>
      tpu.vector_store %arg7[%c0_11, %c0_12], %12 {strides = array<i32>} : memref<32x32xf32, #tpu.memory_space<vmem>>, vector<32x32xf32>,
    } else {
    }
    %c0 = arith.constant 0 : index
    %c0_1 = arith.constant 0 : index
    %3 = vector.load %arg7[%c0, %c0_1] : memref<32x32xf32, #tpu.memory_space<vmem>>, vector<32x32xf32>
    %c0_2 = arith.constant 0 : index
    %c0_3 = arith.constant 0 : index
    %4 = vector.load %arg3[%c0_2, %c0_3] : memref<32x16xbf16, #tpu.memory_space<vmem>>, vector<32x16xbf16>
    %c0_4 = arith.constant 0 : index
    %c0_5 = arith.constant 0 : index
    %5 = vector.load %arg4[%c0_4, %c0_5] : memref<16x32xbf16, #tpu.memory_space<vmem>>, vector<16x32xbf16>
    %cst = arith.constant dense<0.000000e+00> : vector<32x32xf32>
    %6 = tpu.matmul %4, %5, %cst {dimension_numbers = #tpu.dot_dimension_numbers<[1], [0], [0], [1], [0, 0, 1, 1], [], []>} : vector<32x16xbf16>, vector<16x32xbf16>, vector<32x32xf32> -> vector<32x32xf32>
    %7 = arith.addf %3, %6 : vector<32x32xf32>
    %c0_6 = arith.constant 0 : index
    %c0_7 = arith.constant 0 : index
    %8 = vector.load %arg7[%c0_6, %c0_7] : memref<32x32xf32, #tpu.memory_space<vmem>>, vector<32x32xf32>
    tpu.vector_store %arg7[%c0_6, %c0_7], %7 {strides = array<i32>} : memref<32x32xf32, #tpu.memory_space<vmem>>, vector<32x32xf32>,
    %c0_i32_8 = arith.constant 0 : i32
    %9 = arith.cmpi eq, %arg2, %c0_i32_8 : i32
    %10 = arith.extui %9 : i1 to i32
    %c0_i32_9 = arith.constant 0 : i32
    %11 = arith.cmpi ne, %10, %c0_i32_9 : i32
    scf.if %11 {
      %c0_10 = arith.constant 0 : index
      %c0_11 = arith.constant 0 : index
      %12 = vector.load %arg7[%c0_10, %c0_11] : memref<32x32xf32, #tpu.memory_space<vmem>>, vector<32x32xf32>
      %c0_12 = arith.constant 0 : index
      %c0_13 = arith.constant 0 : index
      %13 = vector.load %arg5[%c0_12, %c0_13] : memref<1x32xf32, #tpu.memory_space<vmem>>, vector<1x32xf32>
      %14 = vector.broadcast %13 : vector<1x32xf32> to vector<32x32xf32>
      %15 = arith.addf %12, %14 : vector<32x32xf32>
      %c0_14 = arith.constant 0 : index
      %c0_15 = arith.constant 0 : index
      %16 = vector.load %arg6[%c0_14, %c0_15] : memref<32x32xf32, #tpu.memory_space<vmem>>, vector<32x32xf32>
      tpu.vector_store %arg6[%c0_14, %c0_15], %15 {strides = array<i32>} : memref<32x32xf32, #tpu.memory_space<vmem>>, vector<32x32xf32>,
    } else {
    }
    return
  }
  func.func @transform_0(%arg0: i32, %arg1: i32, %arg2: i32) -> (i32, i32) {
    %c0_i32 = arith.constant 0 : i32
    return %arg0, %arg2 : i32, i32
  }
  func.func @transform_1(%arg0: i32, %arg1: i32, %arg2: i32) -> (i32, i32) {
    %c0_i32 = arith.constant 0 : i32
    return %arg2, %arg1 : i32, i32
  }
  func.func @transform_2(%arg0: i32, %arg1: i32, %arg2: i32) -> (i32, i32) {
    %c0_i32 = arith.constant 0 : i32
    %c0_i32_0 = arith.constant 0 : i32
    return %c0_i32, %arg1 : i32, i32
  }
  func.func @transform_3(%arg0: i32, %arg1: i32, %arg2: i32) -> (i32, i32) {
    %c0_i32 = arith.constant 0 : i32
    return %arg0, %arg1 : i32, i32
  }
}

module attributes {stable_mosaic.version = 11 : i64} {
  func.func @_flash_attn_kernel(%arg0: i32, %arg1: i32, %arg2: i32, %arg3: memref<1x24x16xbf16, #tpu.memory_space<vmem>>, %arg4: memref<1x24x16xbf16, #tpu.memory_space<vmem>>, %arg5: memref<1x24x16xbf16, #tpu.memory_space<vmem>>, %arg6: memref<1x24x16xf32, #tpu.memory_space<vmem>>, %arg7: memref<24x1xf32, #tpu.memory_space<vmem>>, %arg8: memref<24x1xf32, #tpu.memory_space<vmem>>, %arg9: memref<24x16xf32, #tpu.memory_space<vmem>>) attributes {dimension_semantics = [#tpu.dimension_semantics<parallel>, #tpu.dimension_semantics<parallel>, #tpu.dimension_semantics<arbitrary>], iteration_bounds = array<i64: 4, 1, 1>, scalar_prefetch = 0 : i64, scratch_operands = 3 : i64, tpu.core_type = #tpu.core_type<tc>, window_params = [{transform_indices = @transform_0, window_bounds = array<i64: 1, 24, 16>}, {transform_indices = @transform_1, window_bounds = array<i64: 1, 24, 16>}, {transform_indices = @transform_2, window_bounds = array<i64: 1, 24, 16>}, {transform_indices = @transform_3, window_bounds = array<i64: 1, 24, 16>}]} {
    %c0_i32 = arith.constant 0 : i32
    %0 = arith.cmpi eq, %arg2, %c0_i32 : i32
    %1 = arith.extui %0 : i1 to i32
    %c0_i32_0 = arith.constant 0 : i32
    %2 = arith.cmpi ne, %1, %c0_i32_0 : i32
    scf.if %2 {
      %cst_28 = arith.constant 0xFF800000 : f32
      %46 = vector.broadcast %cst_28 : f32 to vector<24x1xf32>
      %c0_29 = arith.constant 0 : index
      %c0_30 = arith.constant 0 : index
      %47 = vector.load %arg7[%c0_29, %c0_30] : memref<24x1xf32, #tpu.memory_space<vmem>>, vector<24x1xf32>
      tpu.vector_store %arg7[%c0_29, %c0_30], %46 {strides = array<i32>} : memref<24x1xf32, #tpu.memory_space<vmem>>, vector<24x1xf32>,
      %cst_31 = arith.constant 0.000000e+00 : f32
      %48 = vector.broadcast %cst_31 : f32 to vector<24x1xf32>
      %c0_32 = arith.constant 0 : index
      %c0_33 = arith.constant 0 : index
      %49 = vector.load %arg8[%c0_32, %c0_33] : memref<24x1xf32, #tpu.memory_space<vmem>>, vector<24x1xf32>
      tpu.vector_store %arg8[%c0_32, %c0_33], %48 {strides = array<i32>} : memref<24x1xf32, #tpu.memory_space<vmem>>, vector<24x1xf32>,
      %cst_34 = arith.constant 0.000000e+00 : f32
      %50 = vector.broadcast %cst_34 : f32 to vector<24x16xf32>
      %c0_35 = arith.constant 0 : index
      %c0_36 = arith.constant 0 : index
      %51 = vector.load %arg9[%c0_35, %c0_36] : memref<24x16xf32, #tpu.memory_space<vmem>>, vector<24x16xf32>
      tpu.vector_store %arg9[%c0_35, %c0_36], %50 {strides = array<i32>} : memref<24x16xf32, #tpu.memory_space<vmem>>, vector<24x16xf32>,
    } else {
    }
    %c0 = arith.constant 0 : index
    %c0_1 = arith.constant 0 : index
    %c0_2 = arith.constant 0 : index
    %3 = vector.load %arg3[%c0, %c0_1, %c0_2] : memref<1x24x16xbf16, #tpu.memory_space<vmem>>, vector<1x24x16xbf16>
    %4 = vector.shape_cast %3 : vector<1x24x16xbf16> to vector<24x16xbf16>
    %c0_3 = arith.constant 0 : index
    %c0_4 = arith.constant 0 : index
    %c0_5 = arith.constant 0 : index
    %5 = vector.load %arg4[%c0_3, %c0_4, %c0_5] : memref<1x24x16xbf16, #tpu.memory_space<vmem>>, vector<1x24x16xbf16>
    %6 = vector.shape_cast %5 : vector<1x24x16xbf16> to vector<24x16xbf16>
    %cst = arith.constant dense<0.000000e+00> : vector<24x24xf32>
    %7 = tpu.matmul %4, %6, %cst {dimension_numbers = #tpu.dot_dimension_numbers<[1], [1], [0], [0], [0, 0, 1, 0], [], []>} : vector<24x16xbf16>, vector<24x16xbf16>, vector<24x24xf32> -> vector<24x24xf32>
    %cst_6 = arith.constant 2.500000e-01 : f32
    %8 = vector.broadcast %cst_6 : f32 to vector<24x24xf32>
    %9 = arith.mulf %7, %8 : vector<24x24xf32>
    %c24_i32 = arith.constant 24 : i32
    %10 = arith.muli %arg2, %c24_i32 : i32
    %11 = tpu.iota {dimensions = array<i32: 1>} : vector<24x24xi32>
    %12 = vector.broadcast %10 : i32 to vector<24x24xi32>
    %13 = arith.addi %12, %11 : vector<24x24xi32>
    %c17_i32 = arith.constant 17 : i32
    %14 = vector.broadcast %c17_i32 : i32 to vector<24x24xi32>
    %15 = arith.cmpi slt, %13, %14 : vector<24x24xi32>
    %cst_7 = arith.constant 0xFF800000 : f32
    %16 = vector.broadcast %cst_7 : f32 to vector<24x24xf32>
    %17 = arith.select %15, %9, %16 : vector<24x24xi1>, vector<24x24xf32>
    %c0_8 = arith.constant 0 : index
    %c0_9 = arith.constant 0 : index
    %18 = vector.load %arg7[%c0_8, %c0_9] : memref<24x1xf32, #tpu.memory_space<vmem>>, vector<24x1xf32>
    %cst_10 = arith.constant dense<0xFF800000> : vector<24xf32>
    %19 = vector.multi_reduction <maximumf>, %17, %cst_10 [1] : vector<24x24xf32> to vector<24xf32>
    %20 = vector.shape_cast %19 : vector<24xf32> to vector<24x1xf32>
    %21 = arith.maximumf %18, %20 : vector<24x1xf32>
    %22 = arith.subf %18, %21 : vector<24x1xf32>
    %23 = math.exp %22 : vector<24x1xf32>
    %24 = vector.broadcast %21 : vector<24x1xf32> to vector<24x24xf32>
    %25 = arith.subf %17, %24 : vector<24x24xf32>
    %26 = math.exp %25 : vector<24x24xf32>
    %c0_11 = arith.constant 0 : index
    %c0_12 = arith.constant 0 : index
    %27 = vector.load %arg8[%c0_11, %c0_12] : memref<24x1xf32, #tpu.memory_space<vmem>>, vector<24x1xf32>
    %28 = arith.mulf %23, %27 : vector<24x1xf32>
    %cst_13 = arith.constant dense<0.000000e+00> : vector<24xf32>
    %29 = vector.multi_reduction <add>, %26, %cst_13 [1] : vector<24x24xf32> to vector<24xf32>
    %30 = vector.shape_cast %29 : vector<24xf32> to vector<24x1xf32>
    %31 = arith.addf %28, %30 : vector<24x1xf32>
    %c0_14 = arith.constant 0 : index
    %c0_15 = arith.constant 0 : index
    %32 = vector.load %arg8[%c0_14, %c0_15] : memref<24x1xf32, #tpu.memory_space<vmem>>, vector<24x1xf32>
    tpu.vector_store %arg8[%c0_14, %c0_15], %31 {strides = array<i32>} : memref<24x1xf32, #tpu.memory_space<vmem>>, vector<24x1xf32>,
    %c0_16 = arith.constant 0 : index
    %c0_17 = arith.constant 0 : index
    %33 = vector.load %arg9[%c0_16, %c0_17] : memref<24x16xf32, #tpu.memory_space<vmem>>, vector<24x16xf32>
    %34 = vector.broadcast %23 : vector<24x1xf32> to vector<24x16xf32>
    %35 = arith.mulf %34, %33 : vector<24x16xf32>
    %36 = arith.truncf %26 : vector<24x24xf32> to vector<24x24xbf16>
    %c0_18 = arith.constant 0 : index
    %c0_19 = arith.constant 0 : index
    %c0_20 = arith.constant 0 : index
    %37 = vector.load %arg5[%c0_18, %c0_19, %c0_20] : memref<1x24x16xbf16, #tpu.memory_space<vmem>>, vector<1x24x16xbf16>
    %38 = vector.shape_cast %37 : vector<1x24x16xbf16> to vector<24x16xbf16>
    %cst_21 = arith.constant dense<0.000000e+00> : vector<24x16xf32>
    %39 = tpu.matmul %36, %38, %cst_21 {dimension_numbers = #tpu.dot_dimension_numbers<[1], [0], [0], [1], [0, 0, 1, 1], [], []>} : vector<24x24xbf16>, vector<24x16xbf16>, vector<24x16xf32> -> vector<24x16xf32>
    %40 = arith.addf %35, %39 : vector<24x16xf32>
    %c0_22 = arith.constant 0 : index
    %c0_23 = arith.constant 0 : index
    %41 = vector.load %arg9[%c0_22, %c0_23] : memref<24x16xf32, #tpu.memory_space<vmem>>, vector<24x16xf32>
    tpu.vector_store %arg9[%c0_22, %c0_23], %40 {strides = array<i32>} : memref<24x16xf32, #tpu.memory_space<vmem>>, vector<24x16xf32>,
    %c0_24 = arith.constant 0 : index
    %c0_25 = arith.constant 0 : index
    %42 = vector.load %arg7[%c0_24, %c0_25] : memref<24x1xf32, #tpu.memory_space<vmem>>, vector<24x1xf32>
    tpu.vector_store %arg7[%c0_24, %c0_25], %21 {strides = array<i32>} : memref<24x1xf32, #tpu.memory_space<vmem>>, vector<24x1xf32>,
    %c0_i32_26 = arith.constant 0 : i32
    %43 = arith.cmpi eq, %arg2, %c0_i32_26 : i32
    %44 = arith.extui %43 : i1 to i32
    %c0_i32_27 = arith.constant 0 : i32
    %45 = arith.cmpi ne, %44, %c0_i32_27 : i32
    scf.if %45 {
      %c0_28 = arith.constant 0 : index
      %c0_29 = arith.constant 0 : index
      %46 = vector.load %arg9[%c0_28, %c0_29] : memref<24x16xf32, #tpu.memory_space<vmem>>, vector<24x16xf32>
      %c0_30 = arith.constant 0 : index
      %c0_31 = arith.constant 0 : index
      %47 = vector.load %arg8[%c0_30, %c0_31] : memref<24x1xf32, #tpu.memory_space<vmem>>, vector<24x1xf32>
      %48 = tpu.reciprocal %47 {approx = true} : vector<24x1xf32> -> vector<24x1xf32>
      %49 = vector.broadcast %48 : vector<24x1xf32> to vector<24x16xf32>
      %50 = arith.mulf %46, %49 : vector<24x16xf32>
      %c0_32 = arith.constant 0 : index
      %c0_33 = arith.constant 0 : index
      %c0_34 = arith.constant 0 : index
      %51 = vector.load %arg6[%c0_32, %c0_33, %c0_34] : memref<1x24x16xf32, #tpu.memory_space<vmem>>, vector<1x24x16xf32>
      %52 = vector.shape_cast %51 : vector<1x24x16xf32> to vector<24x16xf32>
      %53 = vector.shape_cast %50 : vector<24x16xf32> to vector<1x24x16xf32>
      tpu.vector_store %arg6[%c0_32, %c0_33, %c0_34], %53 {strides = array<i32>} : memref<1x24x16xf32, #tpu.memory_space<vmem>>, vector<1x24x16xf32>,
    } else {
    }
    return
  }
  func.func @transform_0(%arg0: i32, %arg1: i32, %arg2: i32) -> (i32, i32, i32) {
    %c0_i32 = arith.constant 0 : i32
    %c0_i32_0 = arith.constant 0 : i32
    return %arg0, %arg1, %c0_i32 : i32, i32, i32
  }
  func.func @transform_1(%arg0: i32, %arg1: i32, %arg2: i32) -> (i32, i32, i32) {
    %c0_i32 = arith.constant 0 : i32
    %c0_i32_0 = arith.constant 0 : i32
    return %arg0, %arg2, %c0_i32 : i32, i32, i32
  }
  func.func @transform_2(%arg0: i32, %arg1: i32, %arg2: i32) -> (i32, i32, i32) {
    %c0_i32 = arith.constant 0 : i32
    %c0_i32_0 = arith.constant 0 : i32
    return %arg0, %arg2, %c0_i32 : i32, i32, i32
  }
  func.func @transform_3(%arg0: i32, %arg1: i32, %arg2: i32) -> (i32, i32, i32) {
    %c0_i32 = arith.constant 0 : i32
    %c0_i32_0 = arith.constant 0 : i32
    return %arg0, %arg1, %c0_i32 : i32, i32, i32
  }
}

module attributes {stable_mosaic.version = 11 : i64} {
  func.func @kernel(%arg0: i32, %arg1: i32, %arg2: i32, %arg3: memref<40x32xbf16, #tpu.memory_space<vmem>>, %arg4: memref<32x32xbf16, #tpu.memory_space<vmem>>, %arg5: memref<1x32xf32, #tpu.memory_space<vmem>>, %arg6: memref<40x32xf32, #tpu.memory_space<vmem>>, %arg7: memref<40x32xf32, #tpu.memory_space<vmem>>, %arg8: memref<40x32xf32, #tpu.memory_space<vmem>>) attributes {dimension_semantics = [#tpu.dimension_semantics<parallel>, #tpu.dimension_semantics<parallel>, #tpu.dimension_semantics<arbitrary>], iteration_bounds = array<i64: 1, 1, 1>, scalar_prefetch = 0 : i64, scratch_operands = 1 : i64, tpu.core_type = #tpu.core_type<tc>, window_params = [{transform_indices = @transform_0, window_bounds = array<i64: 40, 32>}, {transform_indices = @transform_1, window_bounds = array<i64: 32, 32>}, {transform_indices = @transform_2, window_bounds = array<i64: 1, 32>}, {transform_indices = @transform_3, window_bounds = array<i64: 40, 32>}, {transform_indices = @transform_4, window_bounds = array<i64: 40, 32>}]} {
    %c0_i32 = arith.constant 0 : i32
    %0 = arith.cmpi eq, %arg2, %c0_i32 : i32
    %1 = arith.extui %0 : i1 to i32
    %c0_i32_0 = arith.constant 0 : i32
    %2 = arith.cmpi ne, %1, %c0_i32_0 : i32
    scf.if %2 {
      %cst_10 = arith.constant 0.000000e+00 : f32
      %12 = vector.broadcast %cst_10 : f32 to vector<40x32xf32>
      %c0_11 = arith.constant 0 : index
      %c0_12 = arith.constant 0 : index
      %13 = vector.load %arg8[%c0_11, %c0_12] : memref<40x32xf32, #tpu.memory_space<vmem>>, vector<40x32xf32>
      tpu.vector_store %arg8[%c0_11, %c0_12], %12 {strides = array<i32>} : memref<40x32xf32, #tpu.memory_space<vmem>>, vector<40x32xf32>,
    } else {
    }
    %c0 = arith.constant 0 : index
    %c0_1 = arith.constant 0 : index
    %3 = vector.load %arg8[%c0, %c0_1] : memref<40x32xf32, #tpu.memory_space<vmem>>, vector<40x32xf32>
    %c0_2 = arith.constant 0 : index
    %c0_3 = arith.constant 0 : index
    %4 = vector.load %arg3[%c0_2, %c0_3] : memref<40x32xbf16, #tpu.memory_space<vmem>>, vector<40x32xbf16>
    %c0_4 = arith.constant 0 : index
    %c0_5 = arith.constant 0 : index
    %5 = vector.load %arg4[%c0_4, %c0_5] : memref<32x32xbf16, #tpu.memory_space<vmem>>, vector<32x32xbf16>
    %cst = arith.constant dense<0.000000e+00> : vector<40x32xf32>
    %6 = tpu.matmul %4, %5, %cst {dimension_numbers = #tpu.dot_dimension_numbers<[1], [0], [0], [1], [0, 0, 1, 1], [], []>} : vector<40x32xbf16>, vector<32x32xbf16>, vector<40x32xf32> -> vector<40x32xf32>
    %7 = arith.addf %3, %6 : vector<40x32xf32>
    %c0_6 = arith.constant 0 : index
    %c0_7 = arith.constant 0 : index
    %8 = vector.load %arg8[%c0_6, %c0_7] : memref<40x32xf32, #tpu.memory_space<vmem>>, vector<40x32xf32>
    tpu.vector_store %arg8[%c0_6, %c0_7], %7 {strides = array<i32>} : memref<40x32xf32, #tpu.memory_space<vmem>>, vector<40x32xf32>,
    %c0_i32_8 = arith.constant 0 : i32
    %9 = arith.cmpi eq, %arg2, %c0_i32_8 : i32
    %10 = arith.extui %9 : i1 to i32
    %c0_i32_9 = arith.constant 0 : i32
    %11 = arith.cmpi ne, %10, %c0_i32_9 : i32
    scf.if %11 {
      %c0_10 = arith.constant 0 : index
      %c0_11 = arith.constant 0 : index
      %12 = vector.load %arg8[%c0_10, %c0_11] : memref<40x32xf32, #tpu.memory_space<vmem>>, vector<40x32xf32>
      %c0_12 = arith.constant 0 : index
      %c0_13 = arith.constant 0 : index
      %13 = vector.load %arg5[%c0_12, %c0_13] : memref<1x32xf32, #tpu.memory_space<vmem>>, vector<1x32xf32>
      %14 = vector.broadcast %13 : vector<1x32xf32> to vector<40x32xf32>
      %15 = arith.addf %12, %14 : vector<40x32xf32>
      %c0_14 = arith.constant 0 : index
      %c0_15 = arith.constant 0 : index
      %16 = vector.load %arg6[%c0_14, %c0_15] : memref<40x32xf32, #tpu.memory_space<vmem>>, vector<40x32xf32>
      %17 = arith.addf %15, %16 : vector<40x32xf32>
      %c0_16 = arith.constant 0 : index
      %c0_17 = arith.constant 0 : index
      %18 = vector.load %arg7[%c0_16, %c0_17] : memref<40x32xf32, #tpu.memory_space<vmem>>, vector<40x32xf32>
      tpu.vector_store %arg7[%c0_16, %c0_17], %17 {strides = array<i32>} : memref<40x32xf32, #tpu.memory_space<vmem>>, vector<40x32xf32>,
    } else {
    }
    return
  }
  func.func @transform_0(%arg0: i32, %arg1: i32, %arg2: i32) -> (i32, i32) {
    %c0_i32 = arith.constant 0 : i32
    return %arg0, %arg2 : i32, i32
  }
  func.func @transform_1(%arg0: i32, %arg1: i32, %arg2: i32) -> (i32, i32) {
    %c0_i32 = arith.constant 0 : i32
    return %arg2, %arg1 : i32, i32
  }
  func.func @transform_2(%arg0: i32, %arg1: i32, %arg2: i32) -> (i32, i32) {
    %c0_i32 = arith.constant 0 : i32
    %c0_i32_0 = arith.constant 0 : i32
    return %c0_i32, %arg1 : i32, i32
  }
  func.func @transform_3(%arg0: i32, %arg1: i32, %arg2: i32) -> (i32, i32) {
    %c0_i32 = arith.constant 0 : i32
    return %arg0, %arg1 : i32, i32
  }
  func.func @transform_4(%arg0: i32, %arg1: i32, %arg2: i32) -> (i32, i32) {
    %c0_i32 = arith.constant 0 : i32
    return %arg0, %arg1 : i32, i32
  }
}

module attributes {stable_mosaic.version = 11 : i64} {
  func.func @_ln_mlp_kernel(%arg0: i32, %arg1: memref<40x32xf32, #tpu.memory_space<vmem>>, %arg2: memref<1x32xf32, #tpu.memory_space<vmem>>, %arg3: memref<1x32xf32, #tpu.memory_space<vmem>>, %arg4: memref<32x128xbf16, #tpu.memory_space<vmem>>, %arg5: memref<1x128xf32, #tpu.memory_space<vmem>>, %arg6: memref<128x32xbf16, #tpu.memory_space<vmem>>, %arg7: memref<1x32xf32, #tpu.memory_space<vmem>>, %arg8: memref<40x32xf32, #tpu.memory_space<vmem>>) attributes {dimension_semantics = [#tpu.dimension_semantics<parallel>], iteration_bounds = array<i64: 1>, scalar_prefetch = 0 : i64, scratch_operands = 0 : i64, tpu.core_type = #tpu.core_type<tc>, window_params = [{transform_indices = @transform_0, window_bounds = array<i64: 40, 32>}, {pipeline_mode = #tpu.pipeline_mode<synchronous>, transform_indices = @transform_1, window_bounds = array<i64: 1, 32>}, {pipeline_mode = #tpu.pipeline_mode<synchronous>, transform_indices = @transform_2, window_bounds = array<i64: 1, 32>}, {pipeline_mode = #tpu.pipeline_mode<synchronous>, transform_indices = @transform_3, window_bounds = array<i64: 32, 128>}, {pipeline_mode = #tpu.pipeline_mode<synchronous>, transform_indices = @transform_4, window_bounds = array<i64: 1, 128>}, {pipeline_mode = #tpu.pipeline_mode<synchronous>, transform_indices = @transform_5, window_bounds = array<i64: 128, 32>}, {pipeline_mode = #tpu.pipeline_mode<synchronous>, transform_indices = @transform_6, window_bounds = array<i64: 1, 32>}, {transform_indices = @transform_7, window_bounds = array<i64: 40, 32>}]} {
    %c0 = arith.constant 0 : index
    %c0_0 = arith.constant 0 : index
    %0 = vector.load %arg1[%c0, %c0_0] : memref<40x32xf32, #tpu.memory_space<vmem>>, vector<40x32xf32>
    %cst = arith.constant dense<0.000000e+00> : vector<40xf32>
    %1 = vector.multi_reduction <add>, %0, %cst [1] : vector<40x32xf32> to vector<40xf32>
    %2 = vector.shape_cast %1 : vector<40xf32> to vector<40x1xf32>
    %cst_1 = arith.constant 3.200000e+01 : f32
    %3 = vector.broadcast %cst_1 : f32 to vector<40x1xf32>
    %4 = arith.divf %2, %3 : vector<40x1xf32>
    %5 = vector.broadcast %4 : vector<40x1xf32> to vector<40x32xf32>
    %6 = arith.subf %0, %5 : vector<40x32xf32>
    %7 = arith.mulf %6, %6 : vector<40x32xf32>
    %cst_2 = arith.constant dense<0.000000e+00> : vector<40xf32>
    %8 = vector.multi_reduction <add>, %7, %cst_2 [1] : vector<40x32xf32> to vector<40xf32>
    %9 = vector.shape_cast %8 : vector<40xf32> to vector<40x1xf32>
    %cst_3 = arith.constant 3.200000e+01 : f32
    %10 = vector.broadcast %cst_3 : f32 to vector<40x1xf32>
    %11 = arith.divf %9, %10 : vector<40x1xf32>
    %12 = vector.broadcast %4 : vector<40x1xf32> to vector<40x32xf32>
    %13 = arith.subf %0, %12 : vector<40x32xf32>
    %cst_4 = arith.constant 9.99999974E-6 : f32
    %14 = vector.broadcast %cst_4 : f32 to vector<40x1xf32>
    %15 = arith.addf %11, %14 : vector<40x1xf32>
    %16 = math.rsqrt %15 : vector<40x1xf32>
    %17 = vector.broadcast %16 : vector<40x1xf32> to vector<40x32xf32>
    %18 = arith.mulf %13, %17 : vector<40x32xf32>
    %c0_5 = arith.constant 0 : index
    %c0_6 = arith.constant 0 : index
    %19 = vector.load %arg2[%c0_5, %c0_6] : memref<1x32xf32, #tpu.memory_space<vmem>>, vector<1x32xf32>
    %20 = vector.broadcast %19 : vector<1x32xf32> to vector<40x32xf32>
    %21 = arith.mulf %18, %20 : vector<40x32xf32>
    %c0_7 = arith.constant 0 : index
    %c0_8 = arith.constant 0 : index
    %22 = vector.load %arg3[%c0_7, %c0_8] : memref<1x32xf32, #tpu.memory_space<vmem>>, vector<1x32xf32>
    %23 = vector.broadcast %22 : vector<1x32xf32> to vector<40x32xf32>
    %24 = arith.addf %21, %23 : vector<40x32xf32>
    %25 = arith.truncf %24 : vector<40x32xf32> to vector<40x32xbf16>
    %c0_9 = arith.constant 0 : index
    %c0_10 = arith.constant 0 : index
    %26 = vector.load %arg4[%c0_9, %c0_10] : memref<32x128xbf16, #tpu.memory_space<vmem>>, vector<32x128xbf16>
    %cst_11 = arith.constant dense<0.000000e+00> : vector<40x128xf32>
    %27 = tpu.matmul %25, %26, %cst_11 {dimension_numbers = #tpu.dot_dimension_numbers<[1], [0], [0], [1], [0, 0, 1, 1], [], []>} : vector<40x32xbf16>, vector<32x128xbf16>, vector<40x128xf32> -> vector<40x128xf32>
    %c0_12 = arith.constant 0 : index
    %c0_13 = arith.constant 0 : index
    %28 = vector.load %arg5[%c0_12, %c0_13] : memref<1x128xf32, #tpu.memory_space<vmem>>, vector<1x128xf32>
    %29 = vector.broadcast %28 : vector<1x128xf32> to vector<40x128xf32>
    %30 = arith.addf %27, %29 : vector<40x128xf32>
    %cst_14 = arith.constant 1.702000e+00 : f32
    %31 = vector.broadcast %cst_14 : f32 to vector<40x128xf32>
    %32 = arith.mulf %31, %30 : vector<40x128xf32>
    %33 = arith.negf %32 : vector<40x128xf32>
    %34 = math.exp %33 : vector<40x128xf32>
    %cst_15 = arith.constant 1.000000e+00 : f32
    %35 = vector.broadcast %cst_15 : f32 to vector<40x128xf32>
    %36 = arith.addf %35, %34 : vector<40x128xf32>
    %37 = arith.divf %35, %36 : vector<40x128xf32>
    %38 = arith.mulf %30, %37 : vector<40x128xf32>
    %39 = arith.truncf %38 : vector<40x128xf32> to vector<40x128xbf16>
    %c0_16 = arith.constant 0 : index
    %c0_17 = arith.constant 0 : index
    %40 = vector.load %arg6[%c0_16, %c0_17] : memref<128x32xbf16, #tpu.memory_space<vmem>>, vector<128x32xbf16>
    %cst_18 = arith.constant dense<0.000000e+00> : vector<40x32xf32>
    %41 = tpu.matmul %39, %40, %cst_18 {dimension_numbers = #tpu.dot_dimension_numbers<[1], [0], [0], [1], [0, 0, 1, 1], [], []>} : vector<40x128xbf16>, vector<128x32xbf16>, vector<40x32xf32> -> vector<40x32xf32>
    %42 = arith.addf %0, %41 : vector<40x32xf32>
    %c0_19 = arith.constant 0 : index
    %c0_20 = arith.constant 0 : index
    %43 = vector.load %arg7[%c0_19, %c0_20] : memref<1x32xf32, #tpu.memory_space<vmem>>, vector<1x32xf32>
    %44 = vector.broadcast %43 : vector<1x32xf32> to vector<40x32xf32>
    %45 = arith.addf %42, %44 : vector<40x32xf32>
    %c0_21 = arith.constant 0 : index
    %c0_22 = arith.constant 0 : index
    %46 = vector.load %arg8[%c0_21, %c0_22] : memref<40x32xf32, #tpu.memory_space<vmem>>, vector<40x32xf32>
    tpu.vector_store %arg8[%c0_21, %c0_22], %45 {strides = array<i32>} : memref<40x32xf32, #tpu.memory_space<vmem>>, vector<40x32xf32>,
    return
  }
  func.func @transform_0(%arg0: i32) -> (i32, i32) {
    %c0_i32 = arith.constant 0 : i32
    %c0_i32_0 = arith.constant 0 : i32
    return %arg0, %c0_i32 : i32, i32
  }
  func.func @transform_1(%arg0: i32) -> (i32, i32) {
    %c0_i32 = arith.constant 0 : i32
    %c0_i32_0 = arith.constant 0 : i32
    %c0_i32_1 = arith.constant 0 : i32
    return %c0_i32, %c0_i32_0 : i32, i32
  }
  func.func @transform_2(%arg0: i32) -> (i32, i32) {
    %c0_i32 = arith.constant 0 : i32
    %c0_i32_0 = arith.constant 0 : i32
    %c0_i32_1 = arith.constant 0 : i32
    return %c0_i32, %c0_i32_0 : i32, i32
  }
  func.func @transform_3(%arg0: i32) -> (i32, i32) {
    %c0_i32 = arith.constant 0 : i32
    %c0_i32_0 = arith.constant 0 : i32
    %c0_i32_1 = arith.constant 0 : i32
    return %c0_i32, %c0_i32_0 : i32, i32
  }
  func.func @transform_4(%arg0: i32) -> (i32, i32) {
    %c0_i32 = arith.constant 0 : i32
    %c0_i32_0 = arith.constant 0 : i32
    %c0_i32_1 = arith.constant 0 : i32
    return %c0_i32, %c0_i32_0 : i32, i32
  }
  func.func @transform_5(%arg0: i32) -> (i32, i32) {
    %c0_i32 = arith.constant 0 : i32
    %c0_i32_0 = arith.constant 0 : i32
    %c0_i32_1 = arith.constant 0 : i32
    return %c0_i32, %c0_i32_0 : i32, i32
  }
  func.func @transform_6(%arg0: i32) -> (i32, i32) {
    %c0_i32 = arith.constant 0 : i32
    %c0_i32_0 = arith.constant 0 : i32
    %c0_i32_1 = arith.constant 0 : i32
    return %c0_i32, %c0_i32_0 : i32, i32
  }
  func.func @transform_7(%arg0: i32) -> (i32, i32) {
    %c0_i32 = arith.constant 0 : i32
    %c0_i32_0 = arith.constant 0 : i32
    return %arg0, %c0_i32 : i32, i32
  }
}

module attributes {stable_mosaic.version = 11 : i64} {
  func.func @kernel(%arg0: i32, %arg1: i32, %arg2: i32, %arg3: memref<40x32xbf16, #tpu.memory_space<vmem>>, %arg4: memref<32x32xbf16, #tpu.memory_space<vmem>>, %arg5: memref<40x32xf32, #tpu.memory_space<vmem>>, %arg6: memref<40x32xf32, #tpu.memory_space<vmem>>) attributes {dimension_semantics = [#tpu.dimension_semantics<parallel>, #tpu.dimension_semantics<parallel>, #tpu.dimension_semantics<arbitrary>], iteration_bounds = array<i64: 1, 1, 1>, scalar_prefetch = 0 : i64, scratch_operands = 1 : i64, tpu.core_type = #tpu.core_type<tc>, window_params = [{transform_indices = @transform_0, window_bounds = array<i64: 40, 32>}, {transform_indices = @transform_1, window_bounds = array<i64: 32, 32>}, {transform_indices = @transform_2, window_bounds = array<i64: 40, 32>}]} {
    %c0_i32 = arith.constant 0 : i32
    %0 = arith.cmpi eq, %arg2, %c0_i32 : i32
    %1 = arith.extui %0 : i1 to i32
    %c0_i32_0 = arith.constant 0 : i32
    %2 = arith.cmpi ne, %1, %c0_i32_0 : i32
    scf.if %2 {
      %cst_10 = arith.constant 0.000000e+00 : f32
      %12 = vector.broadcast %cst_10 : f32 to vector<40x32xf32>
      %c0_11 = arith.constant 0 : index
      %c0_12 = arith.constant 0 : index
      %13 = vector.load %arg6[%c0_11, %c0_12] : memref<40x32xf32, #tpu.memory_space<vmem>>, vector<40x32xf32>
      tpu.vector_store %arg6[%c0_11, %c0_12], %12 {strides = array<i32>} : memref<40x32xf32, #tpu.memory_space<vmem>>, vector<40x32xf32>,
    } else {
    }
    %c0 = arith.constant 0 : index
    %c0_1 = arith.constant 0 : index
    %3 = vector.load %arg6[%c0, %c0_1] : memref<40x32xf32, #tpu.memory_space<vmem>>, vector<40x32xf32>
    %c0_2 = arith.constant 0 : index
    %c0_3 = arith.constant 0 : index
    %4 = vector.load %arg3[%c0_2, %c0_3] : memref<40x32xbf16, #tpu.memory_space<vmem>>, vector<40x32xbf16>
    %c0_4 = arith.constant 0 : index
    %c0_5 = arith.constant 0 : index
    %5 = vector.load %arg4[%c0_4, %c0_5] : memref<32x32xbf16, #tpu.memory_space<vmem>>, vector<32x32xbf16>
    %cst = arith.constant dense<0.000000e+00> : vector<40x32xf32>
    %6 = tpu.matmul %4, %5, %cst {dimension_numbers = #tpu.dot_dimension_numbers<[1], [0], [0], [1], [0, 0, 1, 1], [], []>} : vector<40x32xbf16>, vector<32x32xbf16>, vector<40x32xf32> -> vector<40x32xf32>
    %7 = arith.addf %3, %6 : vector<40x32xf32>
    %c0_6 = arith.constant 0 : index
    %c0_7 = arith.constant 0 : index
    %8 = vector.load %arg6[%c0_6, %c0_7] : memref<40x32xf32, #tpu.memory_space<vmem>>, vector<40x32xf32>
    tpu.vector_store %arg6[%c0_6, %c0_7], %7 {strides = array<i32>} : memref<40x32xf32, #tpu.memory_space<vmem>>, vector<40x32xf32>,
    %c0_i32_8 = arith.constant 0 : i32
    %9 = arith.cmpi eq, %arg2, %c0_i32_8 : i32
    %10 = arith.extui %9 : i1 to i32
    %c0_i32_9 = arith.constant 0 : i32
    %11 = arith.cmpi ne, %10, %c0_i32_9 : i32
    scf.if %11 {
      %c0_10 = arith.constant 0 : index
      %c0_11 = arith.constant 0 : index
      %12 = vector.load %arg6[%c0_10, %c0_11] : memref<40x32xf32, #tpu.memory_space<vmem>>, vector<40x32xf32>
      %c0_12 = arith.constant 0 : index
      %c0_13 = arith.constant 0 : index
      %13 = vector.load %arg5[%c0_12, %c0_13] : memref<40x32xf32, #tpu.memory_space<vmem>>, vector<40x32xf32>
      tpu.vector_store %arg5[%c0_12, %c0_13], %12 {strides = array<i32>} : memref<40x32xf32, #tpu.memory_space<vmem>>, vector<40x32xf32>,
    } else {
    }
    return
  }
  func.func @transform_0(%arg0: i32, %arg1: i32, %arg2: i32) -> (i32, i32) {
    %c0_i32 = arith.constant 0 : i32
    return %arg0, %arg2 : i32, i32
  }
  func.func @transform_1(%arg0: i32, %arg1: i32, %arg2: i32) -> (i32, i32) {
    %c0_i32 = arith.constant 0 : i32
    return %arg2, %arg1 : i32, i32
  }
  func.func @transform_2(%arg0: i32, %arg1: i32, %arg2: i32) -> (i32, i32) {
    %c0_i32 = arith.constant 0 : i32
    return %arg0, %arg1 : i32, i32
  }
}

module attributes {stable_mosaic.version = 11 : i64} {
  func.func @kernel(%arg0: i32, %arg1: i32, %arg2: i32, %arg3: memref<8x32xbf16, #tpu.memory_space<vmem>>, %arg4: memref<32x64xbf16, #tpu.memory_space<vmem>>, %arg5: memref<1x64xf32, #tpu.memory_space<vmem>>, %arg6: memref<8x64xf32, #tpu.memory_space<vmem>>, %arg7: memref<8x64xf32, #tpu.memory_space<vmem>>) attributes {dimension_semantics = [#tpu.dimension_semantics<parallel>, #tpu.dimension_semantics<parallel>, #tpu.dimension_semantics<arbitrary>], iteration_bounds = array<i64: 1, 1, 1>, scalar_prefetch = 0 : i64, scratch_operands = 1 : i64, tpu.core_type = #tpu.core_type<tc>, window_params = [{transform_indices = @transform_0, window_bounds = array<i64: 8, 32>}, {transform_indices = @transform_1, window_bounds = array<i64: 32, 64>}, {transform_indices = @transform_2, window_bounds = array<i64: 1, 64>}, {transform_indices = @transform_3, window_bounds = array<i64: 8, 64>}]} {
    %c0_i32 = arith.constant 0 : i32
    %0 = arith.cmpi eq, %arg2, %c0_i32 : i32
    %1 = arith.extui %0 : i1 to i32
    %c0_i32_0 = arith.constant 0 : i32
    %2 = arith.cmpi ne, %1, %c0_i32_0 : i32
    scf.if %2 {
      %cst_10 = arith.constant 0.000000e+00 : f32
      %12 = vector.broadcast %cst_10 : f32 to vector<8x64xf32>
      %c0_11 = arith.constant 0 : index
      %c0_12 = arith.constant 0 : index
      %13 = vector.load %arg7[%c0_11, %c0_12] : memref<8x64xf32, #tpu.memory_space<vmem>>, vector<8x64xf32>
      tpu.vector_store %arg7[%c0_11, %c0_12], %12 {strides = array<i32>} : memref<8x64xf32, #tpu.memory_space<vmem>>, vector<8x64xf32>,
    } else {
    }
    %c0 = arith.constant 0 : index
    %c0_1 = arith.constant 0 : index
    %3 = vector.load %arg7[%c0, %c0_1] : memref<8x64xf32, #tpu.memory_space<vmem>>, vector<8x64xf32>
    %c0_2 = arith.constant 0 : index
    %c0_3 = arith.constant 0 : index
    %4 = vector.load %arg3[%c0_2, %c0_3] : memref<8x32xbf16, #tpu.memory_space<vmem>>, vector<8x32xbf16>
    %c0_4 = arith.constant 0 : index
    %c0_5 = arith.constant 0 : index
    %5 = vector.load %arg4[%c0_4, %c0_5] : memref<32x64xbf16, #tpu.memory_space<vmem>>, vector<32x64xbf16>
    %cst = arith.constant dense<0.000000e+00> : vector<8x64xf32>
    %6 = tpu.matmul %4, %5, %cst {dimension_numbers = #tpu.dot_dimension_numbers<[1], [0], [0], [1], [0, 0, 1, 1], [], []>} : vector<8x32xbf16>, vector<32x64xbf16>, vector<8x64xf32> -> vector<8x64xf32>
    %7 = arith.addf %3, %6 : vector<8x64xf32>
    %c0_6 = arith.constant 0 : index
    %c0_7 = arith.constant 0 : index
    %8 = vector.load %arg7[%c0_6, %c0_7] : memref<8x64xf32, #tpu.memory_space<vmem>>, vector<8x64xf32>
    tpu.vector_store %arg7[%c0_6, %c0_7], %7 {strides = array<i32>} : memref<8x64xf32, #tpu.memory_space<vmem>>, vector<8x64xf32>,
    %c0_i32_8 = arith.constant 0 : i32
    %9 = arith.cmpi eq, %arg2, %c0_i32_8 : i32
    %10 = arith.extui %9 : i1 to i32
    %c0_i32_9 = arith.constant 0 : i32
    %11 = arith.cmpi ne, %10, %c0_i32_9 : i32
    scf.if %11 {
      %c0_10 = arith.constant 0 : index
      %c0_11 = arith.constant 0 : index
      %12 = vector.load %arg7[%c0_10, %c0_11] : memref<8x64xf32, #tpu.memory_space<vmem>>, vector<8x64xf32>
      %c0_12 = arith.constant 0 : index
      %c0_13 = arith.constant 0 : index
      %13 = vector.load %arg5[%c0_12, %c0_13] : memref<1x64xf32, #tpu.memory_space<vmem>>, vector<1x64xf32>
      %14 = vector.broadcast %13 : vector<1x64xf32> to vector<8x64xf32>
      %15 = arith.addf %12, %14 : vector<8x64xf32>
      %c0_14 = arith.constant 0 : index
      %c0_15 = arith.constant 0 : index
      %16 = vector.load %arg6[%c0_14, %c0_15] : memref<8x64xf32, #tpu.memory_space<vmem>>, vector<8x64xf32>
      tpu.vector_store %arg6[%c0_14, %c0_15], %15 {strides = array<i32>} : memref<8x64xf32, #tpu.memory_space<vmem>>, vector<8x64xf32>,
    } else {
    }
    return
  }
  func.func @transform_0(%arg0: i32, %arg1: i32, %arg2: i32) -> (i32, i32) {
    %c0_i32 = arith.constant 0 : i32
    return %arg0, %arg2 : i32, i32
  }
  func.func @transform_1(%arg0: i32, %arg1: i32, %arg2: i32) -> (i32, i32) {
    %c0_i32 = arith.constant 0 : i32
    return %arg2, %arg1 : i32, i32
  }
  func.func @transform_2(%arg0: i32, %arg1: i32, %arg2: i32) -> (i32, i32) {
    %c0_i32 = arith.constant 0 : i32
    %c0_i32_0 = arith.constant 0 : i32
    return %c0_i32, %arg1 : i32, i32
  }
  func.func @transform_3(%arg0: i32, %arg1: i32, %arg2: i32) -> (i32, i32) {
    %c0_i32 = arith.constant 0 : i32
    return %arg0, %arg1 : i32, i32
  }
}

module attributes {stable_mosaic.version = 11 : i64} {
  func.func @_layernorm_kernel(%arg0: i32, %arg1: memref<16x64xf32, #tpu.memory_space<vmem>>, %arg2: memref<1x64xf32, #tpu.memory_space<vmem>>, %arg3: memref<1x64xf32, #tpu.memory_space<vmem>>, %arg4: memref<16x64xf32, #tpu.memory_space<vmem>>) attributes {dimension_semantics = [#tpu.dimension_semantics<parallel>], iteration_bounds = array<i64: 1>, scalar_prefetch = 0 : i64, scratch_operands = 0 : i64, tpu.core_type = #tpu.core_type<tc>, window_params = [{transform_indices = @transform_0, window_bounds = array<i64: 16, 64>}, {pipeline_mode = #tpu.pipeline_mode<synchronous>, transform_indices = @transform_1, window_bounds = array<i64: 1, 64>}, {pipeline_mode = #tpu.pipeline_mode<synchronous>, transform_indices = @transform_2, window_bounds = array<i64: 1, 64>}, {transform_indices = @transform_3, window_bounds = array<i64: 16, 64>}]} {
    %c0 = arith.constant 0 : index
    %c0_0 = arith.constant 0 : index
    %0 = vector.load %arg1[%c0, %c0_0] : memref<16x64xf32, #tpu.memory_space<vmem>>, vector<16x64xf32>
    %cst = arith.constant dense<0.000000e+00> : vector<16xf32>
    %1 = vector.multi_reduction <add>, %0, %cst [1] : vector<16x64xf32> to vector<16xf32>
    %2 = vector.shape_cast %1 : vector<16xf32> to vector<16x1xf32>
    %cst_1 = arith.constant 6.400000e+01 : f32
    %3 = vector.broadcast %cst_1 : f32 to vector<16x1xf32>
    %4 = arith.divf %2, %3 : vector<16x1xf32>
    %5 = vector.broadcast %4 : vector<16x1xf32> to vector<16x64xf32>
    %6 = arith.subf %0, %5 : vector<16x64xf32>
    %7 = arith.mulf %6, %6 : vector<16x64xf32>
    %cst_2 = arith.constant dense<0.000000e+00> : vector<16xf32>
    %8 = vector.multi_reduction <add>, %7, %cst_2 [1] : vector<16x64xf32> to vector<16xf32>
    %9 = vector.shape_cast %8 : vector<16xf32> to vector<16x1xf32>
    %cst_3 = arith.constant 6.400000e+01 : f32
    %10 = vector.broadcast %cst_3 : f32 to vector<16x1xf32>
    %11 = arith.divf %9, %10 : vector<16x1xf32>
    %12 = vector.broadcast %4 : vector<16x1xf32> to vector<16x64xf32>
    %13 = arith.subf %0, %12 : vector<16x64xf32>
    %cst_4 = arith.constant 9.99999974E-6 : f32
    %14 = vector.broadcast %cst_4 : f32 to vector<16x1xf32>
    %15 = arith.addf %11, %14 : vector<16x1xf32>
    %16 = math.rsqrt %15 : vector<16x1xf32>
    %17 = vector.broadcast %16 : vector<16x1xf32> to vector<16x64xf32>
    %18 = arith.mulf %13, %17 : vector<16x64xf32>
    %c0_5 = arith.constant 0 : index
    %c0_6 = arith.constant 0 : index
    %19 = vector.load %arg2[%c0_5, %c0_6] : memref<1x64xf32, #tpu.memory_space<vmem>>, vector<1x64xf32>
    %20 = vector.broadcast %19 : vector<1x64xf32> to vector<16x64xf32>
    %21 = arith.mulf %18, %20 : vector<16x64xf32>
    %c0_7 = arith.constant 0 : index
    %c0_8 = arith.constant 0 : index
    %22 = vector.load %arg3[%c0_7, %c0_8] : memref<1x64xf32, #tpu.memory_space<vmem>>, vector<1x64xf32>
    %23 = vector.broadcast %22 : vector<1x64xf32> to vector<16x64xf32>
    %24 = arith.addf %21, %23 : vector<16x64xf32>
    %c0_9 = arith.constant 0 : index
    %c0_10 = arith.constant 0 : index
    %25 = vector.load %arg4[%c0_9, %c0_10] : memref<16x64xf32, #tpu.memory_space<vmem>>, vector<16x64xf32>
    tpu.vector_store %arg4[%c0_9, %c0_10], %24 {strides = array<i32>} : memref<16x64xf32, #tpu.memory_space<vmem>>, vector<16x64xf32>,
    return
  }
  func.func @transform_0(%arg0: i32) -> (i32, i32) {
    %c0_i32 = arith.constant 0 : i32
    %c0_i32_0 = arith.constant 0 : i32
    return %arg0, %c0_i32 : i32, i32
  }
  func.func @transform_1(%arg0: i32) -> (i32, i32) {
    %c0_i32 = arith.constant 0 : i32
    %c0_i32_0 = arith.constant 0 : i32
    %c0_i32_1 = arith.constant 0 : i32
    return %c0_i32, %c0_i32_0 : i32, i32
  }
  func.func @transform_2(%arg0: i32) -> (i32, i32) {
    %c0_i32 = arith.constant 0 : i32
    %c0_i32_0 = arith.constant 0 : i32
    %c0_i32_1 = arith.constant 0 : i32
    return %c0_i32, %c0_i32_0 : i32, i32
  }
  func.func @transform_3(%arg0: i32) -> (i32, i32) {
    %c0_i32 = arith.constant 0 : i32
    %c0_i32_0 = arith.constant 0 : i32
    return %arg0, %c0_i32 : i32, i32
  }
}

module attributes {stable_mosaic.version = 11 : i64} {
  func.func @_ln_matmul_kernel(%arg0: i32, %arg1: i32, %arg2: memref<16x64xf32, #tpu.memory_space<vmem>>, %arg3: memref<1x64xf32, #tpu.memory_space<vmem>>, %arg4: memref<1x64xf32, #tpu.memory_space<vmem>>, %arg5: memref<64x192xbf16, #tpu.memory_space<vmem>>, %arg6: memref<1x192xf32, #tpu.memory_space<vmem>>, %arg7: memref<16x192xf32, #tpu.memory_space<vmem>>) attributes {dimension_semantics = [#tpu.dimension_semantics<parallel>, #tpu.dimension_semantics<parallel>], iteration_bounds = array<i64: 1, 1>, scalar_prefetch = 0 : i64, scratch_operands = 0 : i64, tpu.core_type = #tpu.core_type<tc>, window_params = [{transform_indices = @transform_0, window_bounds = array<i64: 16, 64>}, {pipeline_mode = #tpu.pipeline_mode<synchronous>, transform_indices = @transform_1, window_bounds = array<i64: 1, 64>}, {pipeline_mode = #tpu.pipeline_mode<synchronous>, transform_indices = @transform_2, window_bounds = array<i64: 1, 64>}, {transform_indices = @transform_3, window_bounds = array<i64: 64, 192>}, {transform_indices = @transform_4, window_bounds = array<i64: 1, 192>}, {transform_indices = @transform_5, window_bounds = array<i64: 16, 192>}]} {
    %c0 = arith.constant 0 : index
    %c0_0 = arith.constant 0 : index
    %0 = vector.load %arg2[%c0, %c0_0] : memref<16x64xf32, #tpu.memory_space<vmem>>, vector<16x64xf32>
    %cst = arith.constant dense<0.000000e+00> : vector<16xf32>
    %1 = vector.multi_reduction <add>, %0, %cst [1] : vector<16x64xf32> to vector<16xf32>
    %2 = vector.shape_cast %1 : vector<16xf32> to vector<16x1xf32>
    %cst_1 = arith.constant 6.400000e+01 : f32
    %3 = vector.broadcast %cst_1 : f32 to vector<16x1xf32>
    %4 = arith.divf %2, %3 : vector<16x1xf32>
    %5 = vector.broadcast %4 : vector<16x1xf32> to vector<16x64xf32>
    %6 = arith.subf %0, %5 : vector<16x64xf32>
    %7 = arith.mulf %6, %6 : vector<16x64xf32>
    %cst_2 = arith.constant dense<0.000000e+00> : vector<16xf32>
    %8 = vector.multi_reduction <add>, %7, %cst_2 [1] : vector<16x64xf32> to vector<16xf32>
    %9 = vector.shape_cast %8 : vector<16xf32> to vector<16x1xf32>
    %cst_3 = arith.constant 6.400000e+01 : f32
    %10 = vector.broadcast %cst_3 : f32 to vector<16x1xf32>
    %11 = arith.divf %9, %10 : vector<16x1xf32>
    %12 = vector.broadcast %4 : vector<16x1xf32> to vector<16x64xf32>
    %13 = arith.subf %0, %12 : vector<16x64xf32>
    %cst_4 = arith.constant 9.99999974E-6 : f32
    %14 = vector.broadcast %cst_4 : f32 to vector<16x1xf32>
    %15 = arith.addf %11, %14 : vector<16x1xf32>
    %16 = math.rsqrt %15 : vector<16x1xf32>
    %17 = vector.broadcast %16 : vector<16x1xf32> to vector<16x64xf32>
    %18 = arith.mulf %13, %17 : vector<16x64xf32>
    %c0_5 = arith.constant 0 : index
    %c0_6 = arith.constant 0 : index
    %19 = vector.load %arg3[%c0_5, %c0_6] : memref<1x64xf32, #tpu.memory_space<vmem>>, vector<1x64xf32>
    %20 = vector.broadcast %19 : vector<1x64xf32> to vector<16x64xf32>
    %21 = arith.mulf %18, %20 : vector<16x64xf32>
    %c0_7 = arith.constant 0 : index
    %c0_8 = arith.constant 0 : index
    %22 = vector.load %arg4[%c0_7, %c0_8] : memref<1x64xf32, #tpu.memory_space<vmem>>, vector<1x64xf32>
    %23 = vector.broadcast %22 : vector<1x64xf32> to vector<16x64xf32>
    %24 = arith.addf %21, %23 : vector<16x64xf32>
    %25 = arith.truncf %24 : vector<16x64xf32> to vector<16x64xbf16>
    %c0_9 = arith.constant 0 : index
    %c0_10 = arith.constant 0 : index
    %26 = vector.load %arg5[%c0_9, %c0_10] : memref<64x192xbf16, #tpu.memory_space<vmem>>, vector<64x192xbf16>
    %cst_11 = arith.constant dense<0.000000e+00> : vector<16x192xf32>
    %27 = tpu.matmul %25, %26, %cst_11 {dimension_numbers = #tpu.dot_dimension_numbers<[1], [0], [0], [1], [0, 0, 1, 1], [], []>} : vector<16x64xbf16>, vector<64x192xbf16>, vector<16x192xf32> -> vector<16x192xf32>
    %c0_12 = arith.constant 0 : index
    %c0_13 = arith.constant 0 : index
    %28 = vector.load %arg6[%c0_12, %c0_13] : memref<1x192xf32, #tpu.memory_space<vmem>>, vector<1x192xf32>
    %29 = vector.broadcast %28 : vector<1x192xf32> to vector<16x192xf32>
    %30 = arith.addf %27, %29 : vector<16x192xf32>
    %c0_14 = arith.constant 0 : index
    %c0_15 = arith.constant 0 : index
    %31 = vector.load %arg7[%c0_14, %c0_15] : memref<16x192xf32, #tpu.memory_space<vmem>>, vector<16x192xf32>
    tpu.vector_store %arg7[%c0_14, %c0_15], %30 {strides = array<i32>} : memref<16x192xf32, #tpu.memory_space<vmem>>, vector<16x192xf32>,
    return
  }
  func.func @transform_0(%arg0: i32, %arg1: i32) -> (i32, i32) {
    %c0_i32 = arith.constant 0 : i32
    %c0_i32_0 = arith.constant 0 : i32
    return %arg0, %c0_i32 : i32, i32
  }
  func.func @transform_1(%arg0: i32, %arg1: i32) -> (i32, i32) {
    %c0_i32 = arith.constant 0 : i32
    %c0_i32_0 = arith.constant 0 : i32
    %c0_i32_1 = arith.constant 0 : i32
    return %c0_i32, %c0_i32_0 : i32, i32
  }
  func.func @transform_2(%arg0: i32, %arg1: i32) -> (i32, i32) {
    %c0_i32 = arith.constant 0 : i32
    %c0_i32_0 = arith.constant 0 : i32
    %c0_i32_1 = arith.constant 0 : i32
    return %c0_i32, %c0_i32_0 : i32, i32
  }
  func.func @transform_3(%arg0: i32, %arg1: i32) -> (i32, i32) {
    %c0_i32 = arith.constant 0 : i32
    %c0_i32_0 = arith.constant 0 : i32
    return %c0_i32, %arg1 : i32, i32
  }
  func.func @transform_4(%arg0: i32, %arg1: i32) -> (i32, i32) {
    %c0_i32 = arith.constant 0 : i32
    %c0_i32_0 = arith.constant 0 : i32
    return %c0_i32, %arg1 : i32, i32
  }
  func.func @transform_5(%arg0: i32, %arg1: i32) -> (i32, i32) {
    %c0_i32 = arith.constant 0 : i32
    return %arg0, %arg1 : i32, i32
  }
}

module attributes {stable_mosaic.version = 11 : i64} {
  func.func @_flash_attn_kernel(%arg0: i32, %arg1: i32, %arg2: i32, %arg3: memref<1x8x32xbf16, #tpu.memory_space<vmem>>, %arg4: memref<1x8x32xbf16, #tpu.memory_space<vmem>>, %arg5: memref<1x8x32xbf16, #tpu.memory_space<vmem>>, %arg6: memref<1x8x32xf32, #tpu.memory_space<vmem>>, %arg7: memref<8x1xf32, #tpu.memory_space<vmem>>, %arg8: memref<8x1xf32, #tpu.memory_space<vmem>>, %arg9: memref<8x32xf32, #tpu.memory_space<vmem>>) attributes {dimension_semantics = [#tpu.dimension_semantics<parallel>, #tpu.dimension_semantics<parallel>, #tpu.dimension_semantics<arbitrary>], iteration_bounds = array<i64: 4, 1, 1>, scalar_prefetch = 0 : i64, scratch_operands = 3 : i64, tpu.core_type = #tpu.core_type<tc>, window_params = [{transform_indices = @transform_0, window_bounds = array<i64: 1, 8, 32>}, {transform_indices = @transform_1, window_bounds = array<i64: 1, 8, 32>}, {transform_indices = @transform_2, window_bounds = array<i64: 1, 8, 32>}, {transform_indices = @transform_3, window_bounds = array<i64: 1, 8, 32>}]} {
    %c0_i32 = arith.constant 0 : i32
    %0 = arith.cmpi eq, %arg2, %c0_i32 : i32
    %1 = arith.extui %0 : i1 to i32
    %c0_i32_0 = arith.constant 0 : i32
    %2 = arith.cmpi ne, %1, %c0_i32_0 : i32
    scf.if %2 {
      %cst_28 = arith.constant 0xFF800000 : f32
      %46 = vector.broadcast %cst_28 : f32 to vector<8x1xf32>
      %c0_29 = arith.constant 0 : index
      %c0_30 = arith.constant 0 : index
      %47 = vector.load %arg7[%c0_29, %c0_30] : memref<8x1xf32, #tpu.memory_space<vmem>>, vector<8x1xf32>
      tpu.vector_store %arg7[%c0_29, %c0_30], %46 {strides = array<i32>} : memref<8x1xf32, #tpu.memory_space<vmem>>, vector<8x1xf32>,
      %cst_31 = arith.constant 0.000000e+00 : f32
      %48 = vector.broadcast %cst_31 : f32 to vector<8x1xf32>
      %c0_32 = arith.constant 0 : index
      %c0_33 = arith.constant 0 : index
      %49 = vector.load %arg8[%c0_32, %c0_33] : memref<8x1xf32, #tpu.memory_space<vmem>>, vector<8x1xf32>
      tpu.vector_store %arg8[%c0_32, %c0_33], %48 {strides = array<i32>} : memref<8x1xf32, #tpu.memory_space<vmem>>, vector<8x1xf32>,
      %cst_34 = arith.constant 0.000000e+00 : f32
      %50 = vector.broadcast %cst_34 : f32 to vector<8x32xf32>
      %c0_35 = arith.constant 0 : index
      %c0_36 = arith.constant 0 : index
      %51 = vector.load %arg9[%c0_35, %c0_36] : memref<8x32xf32, #tpu.memory_space<vmem>>, vector<8x32xf32>
      tpu.vector_store %arg9[%c0_35, %c0_36], %50 {strides = array<i32>} : memref<8x32xf32, #tpu.memory_space<vmem>>, vector<8x32xf32>,
    } else {
    }
    %c0 = arith.constant 0 : index
    %c0_1 = arith.constant 0 : index
    %c0_2 = arith.constant 0 : index
    %3 = vector.load %arg3[%c0, %c0_1, %c0_2] : memref<1x8x32xbf16, #tpu.memory_space<vmem>>, vector<1x8x32xbf16>
    %4 = vector.shape_cast %3 : vector<1x8x32xbf16> to vector<8x32xbf16>
    %c0_3 = arith.constant 0 : index
    %c0_4 = arith.constant 0 : index
    %c0_5 = arith.constant 0 : index
    %5 = vector.load %arg4[%c0_3, %c0_4, %c0_5] : memref<1x8x32xbf16, #tpu.memory_space<vmem>>, vector<1x8x32xbf16>
    %6 = vector.shape_cast %5 : vector<1x8x32xbf16> to vector<8x32xbf16>
    %cst = arith.constant dense<0.000000e+00> : vector<8x8xf32>
    %7 = tpu.matmul %4, %6, %cst {dimension_numbers = #tpu.dot_dimension_numbers<[1], [1], [0], [0], [0, 0, 1, 0], [], []>} : vector<8x32xbf16>, vector<8x32xbf16>, vector<8x8xf32> -> vector<8x8xf32>
    %cst_6 = arith.constant 0.176776692 : f32
    %8 = vector.broadcast %cst_6 : f32 to vector<8x8xf32>
    %9 = arith.mulf %7, %8 : vector<8x8xf32>
    %c8_i32 = arith.constant 8 : i32
    %10 = arith.muli %arg2, %c8_i32 : i32
    %11 = tpu.iota {dimensions = array<i32: 1>} : vector<8x8xi32>
    %12 = vector.broadcast %10 : i32 to vector<8x8xi32>
    %13 = arith.addi %12, %11 : vector<8x8xi32>
    %c5_i32 = arith.constant 5 : i32
    %14 = vector.broadcast %c5_i32 : i32 to vector<8x8xi32>
    %15 = arith.cmpi slt, %13, %14 : vector<8x8xi32>
    %cst_7 = arith.constant 0xFF800000 : f32
    %16 = vector.broadcast %cst_7 : f32 to vector<8x8xf32>
    %17 = arith.select %15, %9, %16 : vector<8x8xi1>, vector<8x8xf32>
    %c0_8 = arith.constant 0 : index
    %c0_9 = arith.constant 0 : index
    %18 = vector.load %arg7[%c0_8, %c0_9] : memref<8x1xf32, #tpu.memory_space<vmem>>, vector<8x1xf32>
    %cst_10 = arith.constant dense<0xFF800000> : vector<8xf32>
    %19 = vector.multi_reduction <maximumf>, %17, %cst_10 [1] : vector<8x8xf32> to vector<8xf32>
    %20 = vector.shape_cast %19 : vector<8xf32> to vector<8x1xf32>
    %21 = arith.maximumf %18, %20 : vector<8x1xf32>
    %22 = arith.subf %18, %21 : vector<8x1xf32>
    %23 = math.exp %22 : vector<8x1xf32>
    %24 = vector.broadcast %21 : vector<8x1xf32> to vector<8x8xf32>
    %25 = arith.subf %17, %24 : vector<8x8xf32>
    %26 = math.exp %25 : vector<8x8xf32>
    %c0_11 = arith.constant 0 : index
    %c0_12 = arith.constant 0 : index
    %27 = vector.load %arg8[%c0_11, %c0_12] : memref<8x1xf32, #tpu.memory_space<vmem>>, vector<8x1xf32>
    %28 = arith.mulf %23, %27 : vector<8x1xf32>
    %cst_13 = arith.constant dense<0.000000e+00> : vector<8xf32>
    %29 = vector.multi_reduction <add>, %26, %cst_13 [1] : vector<8x8xf32> to vector<8xf32>
    %30 = vector.shape_cast %29 : vector<8xf32> to vector<8x1xf32>
    %31 = arith.addf %28, %30 : vector<8x1xf32>
    %c0_14 = arith.constant 0 : index
    %c0_15 = arith.constant 0 : index
    %32 = vector.load %arg8[%c0_14, %c0_15] : memref<8x1xf32, #tpu.memory_space<vmem>>, vector<8x1xf32>
    tpu.vector_store %arg8[%c0_14, %c0_15], %31 {strides = array<i32>} : memref<8x1xf32, #tpu.memory_space<vmem>>, vector<8x1xf32>,
    %c0_16 = arith.constant 0 : index
    %c0_17 = arith.constant 0 : index
    %33 = vector.load %arg9[%c0_16, %c0_17] : memref<8x32xf32, #tpu.memory_space<vmem>>, vector<8x32xf32>
    %34 = vector.broadcast %23 : vector<8x1xf32> to vector<8x32xf32>
    %35 = arith.mulf %34, %33 : vector<8x32xf32>
    %36 = arith.truncf %26 : vector<8x8xf32> to vector<8x8xbf16>
    %c0_18 = arith.constant 0 : index
    %c0_19 = arith.constant 0 : index
    %c0_20 = arith.constant 0 : index
    %37 = vector.load %arg5[%c0_18, %c0_19, %c0_20] : memref<1x8x32xbf16, #tpu.memory_space<vmem>>, vector<1x8x32xbf16>
    %38 = vector.shape_cast %37 : vector<1x8x32xbf16> to vector<8x32xbf16>
    %cst_21 = arith.constant dense<0.000000e+00> : vector<8x32xf32>
    %39 = tpu.matmul %36, %38, %cst_21 {dimension_numbers = #tpu.dot_dimension_numbers<[1], [0], [0], [1], [0, 0, 1, 1], [], []>} : vector<8x8xbf16>, vector<8x32xbf16>, vector<8x32xf32> -> vector<8x32xf32>
    %40 = arith.addf %35, %39 : vector<8x32xf32>
    %c0_22 = arith.constant 0 : index
    %c0_23 = arith.constant 0 : index
    %41 = vector.load %arg9[%c0_22, %c0_23] : memref<8x32xf32, #tpu.memory_space<vmem>>, vector<8x32xf32>
    tpu.vector_store %arg9[%c0_22, %c0_23], %40 {strides = array<i32>} : memref<8x32xf32, #tpu.memory_space<vmem>>, vector<8x32xf32>,
    %c0_24 = arith.constant 0 : index
    %c0_25 = arith.constant 0 : index
    %42 = vector.load %arg7[%c0_24, %c0_25] : memref<8x1xf32, #tpu.memory_space<vmem>>, vector<8x1xf32>
    tpu.vector_store %arg7[%c0_24, %c0_25], %21 {strides = array<i32>} : memref<8x1xf32, #tpu.memory_space<vmem>>, vector<8x1xf32>,
    %c0_i32_26 = arith.constant 0 : i32
    %43 = arith.cmpi eq, %arg2, %c0_i32_26 : i32
    %44 = arith.extui %43 : i1 to i32
    %c0_i32_27 = arith.constant 0 : i32
    %45 = arith.cmpi ne, %44, %c0_i32_27 : i32
    scf.if %45 {
      %c0_28 = arith.constant 0 : index
      %c0_29 = arith.constant 0 : index
      %46 = vector.load %arg9[%c0_28, %c0_29] : memref<8x32xf32, #tpu.memory_space<vmem>>, vector<8x32xf32>
      %c0_30 = arith.constant 0 : index
      %c0_31 = arith.constant 0 : index
      %47 = vector.load %arg8[%c0_30, %c0_31] : memref<8x1xf32, #tpu.memory_space<vmem>>, vector<8x1xf32>
      %48 = tpu.reciprocal %47 {approx = true} : vector<8x1xf32> -> vector<8x1xf32>
      %49 = vector.broadcast %48 : vector<8x1xf32> to vector<8x32xf32>
      %50 = arith.mulf %46, %49 : vector<8x32xf32>
      %c0_32 = arith.constant 0 : index
      %c0_33 = arith.constant 0 : index
      %c0_34 = arith.constant 0 : index
      %51 = vector.load %arg6[%c0_32, %c0_33, %c0_34] : memref<1x8x32xf32, #tpu.memory_space<vmem>>, vector<1x8x32xf32>
      %52 = vector.shape_cast %51 : vector<1x8x32xf32> to vector<8x32xf32>
      %53 = vector.shape_cast %50 : vector<8x32xf32> to vector<1x8x32xf32>
      tpu.vector_store %arg6[%c0_32, %c0_33, %c0_34], %53 {strides = array<i32>} : memref<1x8x32xf32, #tpu.memory_space<vmem>>, vector<1x8x32xf32>,
    } else {
    }
    return
  }
  func.func @transform_0(%arg0: i32, %arg1: i32, %arg2: i32) -> (i32, i32, i32) {
    %c0_i32 = arith.constant 0 : i32
    %c0_i32_0 = arith.constant 0 : i32
    return %arg0, %arg1, %c0_i32 : i32, i32, i32
  }
  func.func @transform_1(%arg0: i32, %arg1: i32, %arg2: i32) -> (i32, i32, i32) {
    %c0_i32 = arith.constant 0 : i32
    %c0_i32_0 = arith.constant 0 : i32
    return %arg0, %arg2, %c0_i32 : i32, i32, i32
  }
  func.func @transform_2(%arg0: i32, %arg1: i32, %arg2: i32) -> (i32, i32, i32) {
    %c0_i32 = arith.constant 0 : i32
    %c0_i32_0 = arith.constant 0 : i32
    return %arg0, %arg2, %c0_i32 : i32, i32, i32
  }
  func.func @transform_3(%arg0: i32, %arg1: i32, %arg2: i32) -> (i32, i32, i32) {
    %c0_i32 = arith.constant 0 : i32
    %c0_i32_0 = arith.constant 0 : i32
    return %arg0, %arg1, %c0_i32 : i32, i32, i32
  }
}

module attributes {stable_mosaic.version = 11 : i64} {
  func.func @kernel(%arg0: i32, %arg1: i32, %arg2: i32, %arg3: memref<16x64xbf16, #tpu.memory_space<vmem>>, %arg4: memref<64x64xbf16, #tpu.memory_space<vmem>>, %arg5: memref<1x64xf32, #tpu.memory_space<vmem>>, %arg6: memref<16x64xf32, #tpu.memory_space<vmem>>, %arg7: memref<16x64xf32, #tpu.memory_space<vmem>>, %arg8: memref<16x64xf32, #tpu.memory_space<vmem>>) attributes {dimension_semantics = [#tpu.dimension_semantics<parallel>, #tpu.dimension_semantics<parallel>, #tpu.dimension_semantics<arbitrary>], iteration_bounds = array<i64: 1, 1, 1>, scalar_prefetch = 0 : i64, scratch_operands = 1 : i64, tpu.core_type = #tpu.core_type<tc>, window_params = [{transform_indices = @transform_0, window_bounds = array<i64: 16, 64>}, {transform_indices = @transform_1, window_bounds = array<i64: 64, 64>}, {transform_indices = @transform_2, window_bounds = array<i64: 1, 64>}, {transform_indices = @transform_3, window_bounds = array<i64: 16, 64>}, {transform_indices = @transform_4, window_bounds = array<i64: 16, 64>}]} {
    %c0_i32 = arith.constant 0 : i32
    %0 = arith.cmpi eq, %arg2, %c0_i32 : i32
    %1 = arith.extui %0 : i1 to i32
    %c0_i32_0 = arith.constant 0 : i32
    %2 = arith.cmpi ne, %1, %c0_i32_0 : i32
    scf.if %2 {
      %cst_10 = arith.constant 0.000000e+00 : f32
      %12 = vector.broadcast %cst_10 : f32 to vector<16x64xf32>
      %c0_11 = arith.constant 0 : index
      %c0_12 = arith.constant 0 : index
      %13 = vector.load %arg8[%c0_11, %c0_12] : memref<16x64xf32, #tpu.memory_space<vmem>>, vector<16x64xf32>
      tpu.vector_store %arg8[%c0_11, %c0_12], %12 {strides = array<i32>} : memref<16x64xf32, #tpu.memory_space<vmem>>, vector<16x64xf32>,
    } else {
    }
    %c0 = arith.constant 0 : index
    %c0_1 = arith.constant 0 : index
    %3 = vector.load %arg8[%c0, %c0_1] : memref<16x64xf32, #tpu.memory_space<vmem>>, vector<16x64xf32>
    %c0_2 = arith.constant 0 : index
    %c0_3 = arith.constant 0 : index
    %4 = vector.load %arg3[%c0_2, %c0_3] : memref<16x64xbf16, #tpu.memory_space<vmem>>, vector<16x64xbf16>
    %c0_4 = arith.constant 0 : index
    %c0_5 = arith.constant 0 : index
    %5 = vector.load %arg4[%c0_4, %c0_5] : memref<64x64xbf16, #tpu.memory_space<vmem>>, vector<64x64xbf16>
    %cst = arith.constant dense<0.000000e+00> : vector<16x64xf32>
    %6 = tpu.matmul %4, %5, %cst {dimension_numbers = #tpu.dot_dimension_numbers<[1], [0], [0], [1], [0, 0, 1, 1], [], []>} : vector<16x64xbf16>, vector<64x64xbf16>, vector<16x64xf32> -> vector<16x64xf32>
    %7 = arith.addf %3, %6 : vector<16x64xf32>
    %c0_6 = arith.constant 0 : index
    %c0_7 = arith.constant 0 : index
    %8 = vector.load %arg8[%c0_6, %c0_7] : memref<16x64xf32, #tpu.memory_space<vmem>>, vector<16x64xf32>
    tpu.vector_store %arg8[%c0_6, %c0_7], %7 {strides = array<i32>} : memref<16x64xf32, #tpu.memory_space<vmem>>, vector<16x64xf32>,
    %c0_i32_8 = arith.constant 0 : i32
    %9 = arith.cmpi eq, %arg2, %c0_i32_8 : i32
    %10 = arith.extui %9 : i1 to i32
    %c0_i32_9 = arith.constant 0 : i32
    %11 = arith.cmpi ne, %10, %c0_i32_9 : i32
    scf.if %11 {
      %c0_10 = arith.constant 0 : index
      %c0_11 = arith.constant 0 : index
      %12 = vector.load %arg8[%c0_10, %c0_11] : memref<16x64xf32, #tpu.memory_space<vmem>>, vector<16x64xf32>
      %c0_12 = arith.constant 0 : index
      %c0_13 = arith.constant 0 : index
      %13 = vector.load %arg5[%c0_12, %c0_13] : memref<1x64xf32, #tpu.memory_space<vmem>>, vector<1x64xf32>
      %14 = vector.broadcast %13 : vector<1x64xf32> to vector<16x64xf32>
      %15 = arith.addf %12, %14 : vector<16x64xf32>
      %c0_14 = arith.constant 0 : index
      %c0_15 = arith.constant 0 : index
      %16 = vector.load %arg6[%c0_14, %c0_15] : memref<16x64xf32, #tpu.memory_space<vmem>>, vector<16x64xf32>
      %17 = arith.addf %15, %16 : vector<16x64xf32>
      %c0_16 = arith.constant 0 : index
      %c0_17 = arith.constant 0 : index
      %18 = vector.load %arg7[%c0_16, %c0_17] : memref<16x64xf32, #tpu.memory_space<vmem>>, vector<16x64xf32>
      tpu.vector_store %arg7[%c0_16, %c0_17], %17 {strides = array<i32>} : memref<16x64xf32, #tpu.memory_space<vmem>>, vector<16x64xf32>,
    } else {
    }
    return
  }
  func.func @transform_0(%arg0: i32, %arg1: i32, %arg2: i32) -> (i32, i32) {
    %c0_i32 = arith.constant 0 : i32
    return %arg0, %arg2 : i32, i32
  }
  func.func @transform_1(%arg0: i32, %arg1: i32, %arg2: i32) -> (i32, i32) {
    %c0_i32 = arith.constant 0 : i32
    return %arg2, %arg1 : i32, i32
  }
  func.func @transform_2(%arg0: i32, %arg1: i32, %arg2: i32) -> (i32, i32) {
    %c0_i32 = arith.constant 0 : i32
    %c0_i32_0 = arith.constant 0 : i32
    return %c0_i32, %arg1 : i32, i32
  }
  func.func @transform_3(%arg0: i32, %arg1: i32, %arg2: i32) -> (i32, i32) {
    %c0_i32 = arith.constant 0 : i32
    return %arg0, %arg1 : i32, i32
  }
  func.func @transform_4(%arg0: i32, %arg1: i32, %arg2: i32) -> (i32, i32) {
    %c0_i32 = arith.constant 0 : i32
    return %arg0, %arg1 : i32, i32
  }
}

module attributes {stable_mosaic.version = 11 : i64} {
  func.func @kernel(%arg0: i32, %arg1: i32, %arg2: i32, %arg3: memref<16x64xbf16, #tpu.memory_space<vmem>>, %arg4: memref<64x64xbf16, #tpu.memory_space<vmem>>, %arg5: memref<16x64xf32, #tpu.memory_space<vmem>>, %arg6: memref<16x64xf32, #tpu.memory_space<vmem>>) attributes {dimension_semantics = [#tpu.dimension_semantics<parallel>, #tpu.dimension_semantics<parallel>, #tpu.dimension_semantics<arbitrary>], iteration_bounds = array<i64: 1, 1, 1>, scalar_prefetch = 0 : i64, scratch_operands = 1 : i64, tpu.core_type = #tpu.core_type<tc>, window_params = [{transform_indices = @transform_0, window_bounds = array<i64: 16, 64>}, {transform_indices = @transform_1, window_bounds = array<i64: 64, 64>}, {transform_indices = @transform_2, window_bounds = array<i64: 16, 64>}]} {
    %c0_i32 = arith.constant 0 : i32
    %0 = arith.cmpi eq, %arg2, %c0_i32 : i32
    %1 = arith.extui %0 : i1 to i32
    %c0_i32_0 = arith.constant 0 : i32
    %2 = arith.cmpi ne, %1, %c0_i32_0 : i32
    scf.if %2 {
      %cst_10 = arith.constant 0.000000e+00 : f32
      %12 = vector.broadcast %cst_10 : f32 to vector<16x64xf32>
      %c0_11 = arith.constant 0 : index
      %c0_12 = arith.constant 0 : index
      %13 = vector.load %arg6[%c0_11, %c0_12] : memref<16x64xf32, #tpu.memory_space<vmem>>, vector<16x64xf32>
      tpu.vector_store %arg6[%c0_11, %c0_12], %12 {strides = array<i32>} : memref<16x64xf32, #tpu.memory_space<vmem>>, vector<16x64xf32>,
    } else {
    }
    %c0 = arith.constant 0 : index
    %c0_1 = arith.constant 0 : index
    %3 = vector.load %arg6[%c0, %c0_1] : memref<16x64xf32, #tpu.memory_space<vmem>>, vector<16x64xf32>
    %c0_2 = arith.constant 0 : index
    %c0_3 = arith.constant 0 : index
    %4 = vector.load %arg3[%c0_2, %c0_3] : memref<16x64xbf16, #tpu.memory_space<vmem>>, vector<16x64xbf16>
    %c0_4 = arith.constant 0 : index
    %c0_5 = arith.constant 0 : index
    %5 = vector.load %arg4[%c0_4, %c0_5] : memref<64x64xbf16, #tpu.memory_space<vmem>>, vector<64x64xbf16>
    %cst = arith.constant dense<0.000000e+00> : vector<16x64xf32>
    %6 = tpu.matmul %4, %5, %cst {dimension_numbers = #tpu.dot_dimension_numbers<[1], [0], [0], [1], [0, 0, 1, 1], [], []>} : vector<16x64xbf16>, vector<64x64xbf16>, vector<16x64xf32> -> vector<16x64xf32>
    %7 = arith.addf %3, %6 : vector<16x64xf32>
    %c0_6 = arith.constant 0 : index
    %c0_7 = arith.constant 0 : index
    %8 = vector.load %arg6[%c0_6, %c0_7] : memref<16x64xf32, #tpu.memory_space<vmem>>, vector<16x64xf32>
    tpu.vector_store %arg6[%c0_6, %c0_7], %7 {strides = array<i32>} : memref<16x64xf32, #tpu.memory_space<vmem>>, vector<16x64xf32>,
    %c0_i32_8 = arith.constant 0 : i32
    %9 = arith.cmpi eq, %arg2, %c0_i32_8 : i32
    %10 = arith.extui %9 : i1 to i32
    %c0_i32_9 = arith.constant 0 : i32
    %11 = arith.cmpi ne, %10, %c0_i32_9 : i32
    scf.if %11 {
      %c0_10 = arith.constant 0 : index
      %c0_11 = arith.constant 0 : index
      %12 = vector.load %arg6[%c0_10, %c0_11] : memref<16x64xf32, #tpu.memory_space<vmem>>, vector<16x64xf32>
      %c0_12 = arith.constant 0 : index
      %c0_13 = arith.constant 0 : index
      %13 = vector.load %arg5[%c0_12, %c0_13] : memref<16x64xf32, #tpu.memory_space<vmem>>, vector<16x64xf32>
      tpu.vector_store %arg5[%c0_12, %c0_13], %12 {strides = array<i32>} : memref<16x64xf32, #tpu.memory_space<vmem>>, vector<16x64xf32>,
    } else {
    }
    return
  }
  func.func @transform_0(%arg0: i32, %arg1: i32, %arg2: i32) -> (i32, i32) {
    %c0_i32 = arith.constant 0 : i32
    return %arg0, %arg2 : i32, i32
  }
  func.func @transform_1(%arg0: i32, %arg1: i32, %arg2: i32) -> (i32, i32) {
    %c0_i32 = arith.constant 0 : i32
    return %arg2, %arg1 : i32, i32
  }
  func.func @transform_2(%arg0: i32, %arg1: i32, %arg2: i32) -> (i32, i32) {
    %c0_i32 = arith.constant 0 : i32
    return %arg0, %arg1 : i32, i32
  }
}

module attributes {stable_mosaic.version = 11 : i64} {
  func.func @_ln_mlp_kernel(%arg0: i32, %arg1: memref<16x64xf32, #tpu.memory_space<vmem>>, %arg2: memref<1x64xf32, #tpu.memory_space<vmem>>, %arg3: memref<1x64xf32, #tpu.memory_space<vmem>>, %arg4: memref<64x256xbf16, #tpu.memory_space<vmem>>, %arg5: memref<1x256xf32, #tpu.memory_space<vmem>>, %arg6: memref<256x64xbf16, #tpu.memory_space<vmem>>, %arg7: memref<1x64xf32, #tpu.memory_space<vmem>>, %arg8: memref<16x64xf32, #tpu.memory_space<vmem>>) attributes {dimension_semantics = [#tpu.dimension_semantics<parallel>], iteration_bounds = array<i64: 1>, scalar_prefetch = 0 : i64, scratch_operands = 0 : i64, tpu.core_type = #tpu.core_type<tc>, window_params = [{transform_indices = @transform_0, window_bounds = array<i64: 16, 64>}, {pipeline_mode = #tpu.pipeline_mode<synchronous>, transform_indices = @transform_1, window_bounds = array<i64: 1, 64>}, {pipeline_mode = #tpu.pipeline_mode<synchronous>, transform_indices = @transform_2, window_bounds = array<i64: 1, 64>}, {pipeline_mode = #tpu.pipeline_mode<synchronous>, transform_indices = @transform_3, window_bounds = array<i64: 64, 256>}, {pipeline_mode = #tpu.pipeline_mode<synchronous>, transform_indices = @transform_4, window_bounds = array<i64: 1, 256>}, {pipeline_mode = #tpu.pipeline_mode<synchronous>, transform_indices = @transform_5, window_bounds = array<i64: 256, 64>}, {pipeline_mode = #tpu.pipeline_mode<synchronous>, transform_indices = @transform_6, window_bounds = array<i64: 1, 64>}, {transform_indices = @transform_7, window_bounds = array<i64: 16, 64>}]} {
    %c0 = arith.constant 0 : index
    %c0_0 = arith.constant 0 : index
    %0 = vector.load %arg1[%c0, %c0_0] : memref<16x64xf32, #tpu.memory_space<vmem>>, vector<16x64xf32>
    %cst = arith.constant dense<0.000000e+00> : vector<16xf32>
    %1 = vector.multi_reduction <add>, %0, %cst [1] : vector<16x64xf32> to vector<16xf32>
    %2 = vector.shape_cast %1 : vector<16xf32> to vector<16x1xf32>
    %cst_1 = arith.constant 6.400000e+01 : f32
    %3 = vector.broadcast %cst_1 : f32 to vector<16x1xf32>
    %4 = arith.divf %2, %3 : vector<16x1xf32>
    %5 = vector.broadcast %4 : vector<16x1xf32> to vector<16x64xf32>
    %6 = arith.subf %0, %5 : vector<16x64xf32>
    %7 = arith.mulf %6, %6 : vector<16x64xf32>
    %cst_2 = arith.constant dense<0.000000e+00> : vector<16xf32>
    %8 = vector.multi_reduction <add>, %7, %cst_2 [1] : vector<16x64xf32> to vector<16xf32>
    %9 = vector.shape_cast %8 : vector<16xf32> to vector<16x1xf32>
    %cst_3 = arith.constant 6.400000e+01 : f32
    %10 = vector.broadcast %cst_3 : f32 to vector<16x1xf32>
    %11 = arith.divf %9, %10 : vector<16x1xf32>
    %12 = vector.broadcast %4 : vector<16x1xf32> to vector<16x64xf32>
    %13 = arith.subf %0, %12 : vector<16x64xf32>
    %cst_4 = arith.constant 9.99999974E-6 : f32
    %14 = vector.broadcast %cst_4 : f32 to vector<16x1xf32>
    %15 = arith.addf %11, %14 : vector<16x1xf32>
    %16 = math.rsqrt %15 : vector<16x1xf32>
    %17 = vector.broadcast %16 : vector<16x1xf32> to vector<16x64xf32>
    %18 = arith.mulf %13, %17 : vector<16x64xf32>
    %c0_5 = arith.constant 0 : index
    %c0_6 = arith.constant 0 : index
    %19 = vector.load %arg2[%c0_5, %c0_6] : memref<1x64xf32, #tpu.memory_space<vmem>>, vector<1x64xf32>
    %20 = vector.broadcast %19 : vector<1x64xf32> to vector<16x64xf32>
    %21 = arith.mulf %18, %20 : vector<16x64xf32>
    %c0_7 = arith.constant 0 : index
    %c0_8 = arith.constant 0 : index
    %22 = vector.load %arg3[%c0_7, %c0_8] : memref<1x64xf32, #tpu.memory_space<vmem>>, vector<1x64xf32>
    %23 = vector.broadcast %22 : vector<1x64xf32> to vector<16x64xf32>
    %24 = arith.addf %21, %23 : vector<16x64xf32>
    %25 = arith.truncf %24 : vector<16x64xf32> to vector<16x64xbf16>
    %c0_9 = arith.constant 0 : index
    %c0_10 = arith.constant 0 : index
    %26 = vector.load %arg4[%c0_9, %c0_10] : memref<64x256xbf16, #tpu.memory_space<vmem>>, vector<64x256xbf16>
    %cst_11 = arith.constant dense<0.000000e+00> : vector<16x256xf32>
    %27 = tpu.matmul %25, %26, %cst_11 {dimension_numbers = #tpu.dot_dimension_numbers<[1], [0], [0], [1], [0, 0, 1, 1], [], []>} : vector<16x64xbf16>, vector<64x256xbf16>, vector<16x256xf32> -> vector<16x256xf32>
    %c0_12 = arith.constant 0 : index
    %c0_13 = arith.constant 0 : index
    %28 = vector.load %arg5[%c0_12, %c0_13] : memref<1x256xf32, #tpu.memory_space<vmem>>, vector<1x256xf32>
    %29 = vector.broadcast %28 : vector<1x256xf32> to vector<16x256xf32>
    %30 = arith.addf %27, %29 : vector<16x256xf32>
    %cst_14 = arith.constant 1.702000e+00 : f32
    %31 = vector.broadcast %cst_14 : f32 to vector<16x256xf32>
    %32 = arith.mulf %31, %30 : vector<16x256xf32>
    %33 = arith.negf %32 : vector<16x256xf32>
    %34 = math.exp %33 : vector<16x256xf32>
    %cst_15 = arith.constant 1.000000e+00 : f32
    %35 = vector.broadcast %cst_15 : f32 to vector<16x256xf32>
    %36 = arith.addf %35, %34 : vector<16x256xf32>
    %37 = arith.divf %35, %36 : vector<16x256xf32>
    %38 = arith.mulf %30, %37 : vector<16x256xf32>
    %39 = arith.truncf %38 : vector<16x256xf32> to vector<16x256xbf16>
    %c0_16 = arith.constant 0 : index
    %c0_17 = arith.constant 0 : index
    %40 = vector.load %arg6[%c0_16, %c0_17] : memref<256x64xbf16, #tpu.memory_space<vmem>>, vector<256x64xbf16>
    %cst_18 = arith.constant dense<0.000000e+00> : vector<16x64xf32>
    %41 = tpu.matmul %39, %40, %cst_18 {dimension_numbers = #tpu.dot_dimension_numbers<[1], [0], [0], [1], [0, 0, 1, 1], [], []>} : vector<16x256xbf16>, vector<256x64xbf16>, vector<16x64xf32> -> vector<16x64xf32>
    %42 = arith.addf %0, %41 : vector<16x64xf32>
    %c0_19 = arith.constant 0 : index
    %c0_20 = arith.constant 0 : index
    %43 = vector.load %arg7[%c0_19, %c0_20] : memref<1x64xf32, #tpu.memory_space<vmem>>, vector<1x64xf32>
    %44 = vector.broadcast %43 : vector<1x64xf32> to vector<16x64xf32>
    %45 = arith.addf %42, %44 : vector<16x64xf32>
    %c0_21 = arith.constant 0 : index
    %c0_22 = arith.constant 0 : index
    %46 = vector.load %arg8[%c0_21, %c0_22] : memref<16x64xf32, #tpu.memory_space<vmem>>, vector<16x64xf32>
    tpu.vector_store %arg8[%c0_21, %c0_22], %45 {strides = array<i32>} : memref<16x64xf32, #tpu.memory_space<vmem>>, vector<16x64xf32>,
    return
  }
  func.func @transform_0(%arg0: i32) -> (i32, i32) {
    %c0_i32 = arith.constant 0 : i32
    %c0_i32_0 = arith.constant 0 : i32
    return %arg0, %c0_i32 : i32, i32
  }
  func.func @transform_1(%arg0: i32) -> (i32, i32) {
    %c0_i32 = arith.constant 0 : i32
    %c0_i32_0 = arith.constant 0 : i32
    %c0_i32_1 = arith.constant 0 : i32
    return %c0_i32, %c0_i32_0 : i32, i32
  }
  func.func @transform_2(%arg0: i32) -> (i32, i32) {
    %c0_i32 = arith.constant 0 : i32
    %c0_i32_0 = arith.constant 0 : i32
    %c0_i32_1 = arith.constant 0 : i32
    return %c0_i32, %c0_i32_0 : i32, i32
  }
  func.func @transform_3(%arg0: i32) -> (i32, i32) {
    %c0_i32 = arith.constant 0 : i32
    %c0_i32_0 = arith.constant 0 : i32
    %c0_i32_1 = arith.constant 0 : i32
    return %c0_i32, %c0_i32_0 : i32, i32
  }
  func.func @transform_4(%arg0: i32) -> (i32, i32) {
    %c0_i32 = arith.constant 0 : i32
    %c0_i32_0 = arith.constant 0 : i32
    %c0_i32_1 = arith.constant 0 : i32
    return %c0_i32, %c0_i32_0 : i32, i32
  }
  func.func @transform_5(%arg0: i32) -> (i32, i32) {
    %c0_i32 = arith.constant 0 : i32
    %c0_i32_0 = arith.constant 0 : i32
    %c0_i32_1 = arith.constant 0 : i32
    return %c0_i32, %c0_i32_0 : i32, i32
  }
  func.func @transform_6(%arg0: i32) -> (i32, i32) {
    %c0_i32 = arith.constant 0 : i32
    %c0_i32_0 = arith.constant 0 : i32
    %c0_i32_1 = arith.constant 0 : i32
    return %c0_i32, %c0_i32_0 : i32, i32
  }
  func.func @transform_7(%arg0: i32) -> (i32, i32) {
    %c0_i32 = arith.constant 0 : i32
    %c0_i32_0 = arith.constant 0 : i32
    return %arg0, %c0_i32 : i32, i32
  }
}

</mosaic_0001>

<bundles_post_ra>
// kernel: vit_for_clip_forward.34
= control target key start
LH: loop header
LB: loop body
LE: loop exit
PB: predicated region body
PF: predicated region fallthrough
CT: control target
= control target key end

     0   :  { %s1034_s9 = smov 0   ;;  %s1036_s10 = smov 0   ;;  %s1251_s0 = inlined_call_operand.vmem [shape: bf16[512,12], index: 0, kind: input, shape index: {}]   ;;  %s1252_s1 = inlined_call_operand.vmem [shape: bf16[12,8], index: 1, kind: input, shape index: {}]   ;;  %s1253_s2 = inlined_call_operand.vmem [shape: f32[512,8], index: 2, kind: output, shape index: {}]  }
   0x1   :  { %s1038_s11 = smov 0  }
   0x2 LB: > { %s31_s12 = sadd.s32 1, %s1012_s10  ;;  %p857_p0 = scmp.ge.s32.totalorder %s1016_s11, 1  ;;  %s1016_s11 = sphi %s1038_s11, %s12_s11   ;;  %s1012_s10 = sphi %s1036_s10, %s1256_s10   ;;  %s1008_s9 = sphi %s1034_s9, %s1255_s9  }
   0x3   : > { %p33_p1 = scmp.ge.s32.totalorder %s31_s12, 2  ;;  %p155_p2 = scmp.lt.s32.totalorder %s1016_s11, 3 }
   0x5   : > { %s1258_s12 = smov (%p33_p1, %s31_s12), 0  ;;  %p156_p3 = pnand %p857_p0, %p155_p2 }
   0x6   : > { %v977_v0 = vld [vmem:[%s1252_s1] sm:$0x3f] (!%p156_p3)   ;;  %vm456_vm0 = vcmask (!%p156_p3), 1045504   ;;  %s858_s15 = sshll.u32 (!%p156_p3), %s1008_s9, 5  ;;  %vm223_vm1 = vcmask (!%p156_p3), 64512   ;;  %v1018_v2 = vmov (!%p156_p3), 0.0  }
   0x7   : > { %159 = sbr.rel (%p156_p3) target bundleno = 273 (0x111), region = 28  ;;  %950 = vmatprep.subr.msk.bf16.mxu0 (!%p156_p3), %vm456_vm0, %v977_v0  ;;  %951 = vmatprep.subr.msk.bf16.mxu1 (!%p156_p3), %vm456_vm0, %v977_v0  ;;  %v458_v1 = vsel (!%p156_p3), %vm456_vm0, %v977_v0, 0  ;;  %p1060_p4 = scmp.lt.s32.totalorder (!%p156_p3), %s858_s15, 63  ;;  %226 = vst.msk [vmem:[#allocation2 + $0x10] sm:$0xff] (!%p156_p3), %vm223_vm1, %v1018_v2  ;;  %224 = vst.msk [vmem:[#allocation2] sm:$0xff] (!%p156_p3), %vm223_vm1, %v1018_v2  ;;  %vm407_vm2 = vcmask (!%p156_p3), 97280  }
   0x8   : > { %225 = vst.msk [vmem:[#allocation2 + $0x8] sm:$0xff] (!%p156_p3), %vm223_vm1, %v1018_v2  ;;  %227 = vst.msk [vmem:[#allocation2 + $0x18] sm:$0xff] (!%p156_p3), %vm223_vm1, %v1018_v2  ;;  %915 = vmatpush3.bf16.msra.mxu0 (!%p156_p3), %v458_v1  ;;  %949 = vmatpush3.bf16.msra.mxu1 (!%p156_p3), %v458_v1 }
   0x9   : > { %228 = vst.msk [vmem:[#allocation2 + $0x20] sm:$0xff] (!%p156_p3), %vm223_vm1, %v1018_v2  ;;  %229 = vst.msk [vmem:[#allocation2 + $0x28] sm:$0xff] (!%p156_p3), %vm223_vm1, %v1018_v2 }
   0xa   : > { %230 = vst.msk [vmem:[#allocation2 + $0x30] sm:$0xff] (!%p156_p3), %vm223_vm1, %v1018_v2  ;;  %231 = vst.msk [vmem:[#allocation2 + $0x38] sm:$0xff] (!%p156_p3), %vm223_vm1, %v1018_v2 }
   0xb   : > { %232 = vst.msk [vmem:[#allocation2 + $0x40] sm:$0xff] (!%p156_p3), %vm223_vm1, %v1018_v2  ;;  %233 = vst.msk [vmem:[#allocation2 + $0x48] sm:$0xff] (!%p156_p3), %vm223_vm1, %v1018_v2 }
   0xc   : > { %234 = vst.msk [vmem:[#allocation2 + $0x50] sm:$0xff] (!%p156_p3), %vm223_vm1, %v1018_v2  ;;  %235 = vst.msk [vmem:[#allocation2 + $0x58] sm:$0xff] (!%p156_p3), %vm223_vm1, %v1018_v2 }
   0xd   : > { %236 = vst.msk [vmem:[#allocation2 + $0x60] sm:$0xff] (!%p156_p3), %vm223_vm1, %v1018_v2  ;;  %237 = vst.msk [vmem:[#allocation2 + $0x68] sm:$0xff] (!%p156_p3), %vm223_vm1, %v1018_v2 }
   0xe   : > { %238 = vst.msk [vmem:[#allocation2 + $0x70] sm:$0xff] %vm223_vm1, %v1018_v2  ;;  %239 = vst.msk [vmem:[#allocation2 + $0x78] sm:$0xff] %vm223_vm1, %v1018_v2  ;;  %s1260_s15 = smov (!%p1060_p4, %s858_s15), 63  ;;  %v258_v19 = vld [vmem:[#allocation2 + $0x10] sm:$0xff]  ;;  %v256_v21 = vld [vmem:[#allocation2] sm:$0xff] }
   0xf   : > { %240 = vst.msk [vmem:[#allocation2 + $0x80] sm:$0xff] %vm223_vm1, %v1018_v2  ;;  %241 = vst.msk [vmem:[#allocation2 + $0x88] sm:$0xff] %vm223_vm1, %v1018_v2  ;;  %s859_s17 = sshll.u32 %s1260_s15, 2  ;;  %v259_v24 = vld [vmem:[#allocation2 + $0x18] sm:$0xff]  ;;  %v257_v29 = vld [vmem:[#allocation2 + $0x8] sm:$0xff]  ;;  %s861_s21 = sshll.u32 %s1260_s15, 3 }
  0x10   : > { %242 = vst.msk [vmem:[#allocation2 + $0x90] sm:$0xff] %vm223_vm1, %v1018_v2  ;;  %243 = vst.msk [vmem:[#allocation2 + $0x98] sm:$0xff] %vm223_vm1, %v1018_v2  ;;  %s1106_s20 = scalar_lea.vmem %s1251_s0, %s859_s17  ;;  %v260_v45 = vld [vmem:[#allocation2 + $0x20] sm:$0xff]  ;;  %s1152_s24 = scalar_lea.vmem %s1253_s2, %s861_s21  ;;  %v261_v53 = vld [vmem:[#allocation2 + $0x28] sm:$0xff] }
  0x11   : > { %244 = vst.msk [vmem:[#allocation2 + $0xa0] sm:$0xff] %vm223_vm1, %v1018_v2  ;;  %245 = vst.msk [vmem:[#allocation2 + $0xa8] sm:$0xff] %vm223_vm1, %v1018_v2  ;;  %v978_v3 = vld [vmem:[%s1106_s20] sm:$0xff]   ;;  %v980_v5 = vld [vmem:[%s1106_s20 + $0x8] sm:$0xff]  }
  0x12   : > { %246 = vst.msk [vmem:[#allocation2 + $0xb0] sm:$0xff] %vm223_vm1, %v1018_v2  ;;  %247 = vst.msk [vmem:[#allocation2 + $0xb8] sm:$0xff] %vm223_vm1, %v1018_v2  ;;  %v979_v4 = vld [vmem:[%s1106_s20 + $0x40] sm:$0xff]   ;;  %916 = vmatprep.mubr.msk.bf16.mxu0 %vm407_vm2, %v978_v3  ;;  %v981_v6 = vld [vmem:[%s1106_s20 + $0x48] sm:$0xff]  }
  0x13   : > { %248 = vst.msk [vmem:[#allocation2 + $0xc0] sm:$0xff] %vm223_vm1, %v1018_v2  ;;  %249 = vst.msk [vmem:[#allocation2 + $0xc8] sm:$0xff] %vm223_vm1, %v1018_v2  ;;  %932 = vmatprep.mubr.msk.bf16.mxu1 %vm407_vm2, %v979_v4  ;;  %917 = vmatmul.mubr.msk.bf16.vlgmr.msra.gmra.mrb[0].mxu0 %vm407_vm2, %v980_v5  ;;  %v982_v7 = vld [vmem:[%s1106_s20 + $0x10] sm:$0xff]   ;;  %v984_v9 = vld [vmem:[%s1106_s20 + $0x18] sm:$0xff]  }
  0x14   : > { %250 = vst.msk [vmem:[#allocation2 + $0xd0] sm:$0xff] %vm223_vm1, %v1018_v2  ;;  %251 = vst.msk [vmem:[#allocation2 + $0xd8] sm:$0xff] %vm223_vm1, %v1018_v2  ;;  %933 = vmatmul.mubr.msk.bf16.vlgmr.msra.gmra.mrb[0].mxu1 %vm407_vm2, %v981_v6  ;;  %v983_v8 = vld [vmem:[%s1106_s20 + $0x50] sm:$0xff]   ;;  %920 = vmatprep.mubr.msk.bf16.mxu0 %vm407_vm2, %v982_v7  ;;  %v985_v10 = vld [vmem:[%s1106_s20 + $0x58] sm:$0xff]  }
  0x15   : > { %252 = vst.msk [vmem:[#allocation2 + $0xe0] sm:$0xff] %vm223_vm1, %v1018_v2  ;;  %253 = vst.msk [vmem:[#allocation2 + $0xe8] sm:$0xff] %vm223_vm1, %v1018_v2  ;;  %936 = vmatprep.mubr.msk.bf16.mxu1 %vm407_vm2, %v983_v8  ;;  %v986_v11 = vld [vmem:[%s1106_s20 + $0x20] sm:$0xff]   ;;  %v988_v13 = vld [vmem:[%s1106_s20 + $0x28] sm:$0xff]  }
  0x16   : > { %254 = vst.msk [vmem:[#allocation2 + $0xf0] sm:$0xff] %vm223_vm1, %v1018_v2  ;;  %255 = vst.msk [vmem:[#allocation2 + $0xf8] sm:$0xff] %vm223_vm1, %v1018_v2  ;;  %v987_v12 = vld [vmem:[%s1106_s20 + $0x60] sm:$0xff]   ;;  %v989_v14 = vld [vmem:[%s1106_s20 + $0x68] sm:$0xff]  }
  0x17   : > { %v990_v15 = vld [vmem:[%s1106_s20 + $0x30] sm:$0xff]   ;;  %v992_v17 = vld [vmem:[%s1106_s20 + $0x38] sm:$0xff]   ;;  %v272_v23 = vld [vmem:[#allocation2 + $0x80] sm:$0xff] }
  0x18   : > { %v991_v16 = vld [vmem:[%s1106_s20 + $0x70] sm:$0xff]   ;;  %v993_v18 = vld [vmem:[%s1106_s20 + $0x78] sm:$0xff]   ;;  %v273_v34 = vld [vmem:[#allocation2 + $0x88] sm:$0xff] }
  0x19   : > { %v274_v20 = vld [vmem:[#allocation2 + $0x90] sm:$0xff]  ;;  %v275_v28 = vld [vmem:[#allocation2 + $0x98] sm:$0xff]  ;;  %v276_v47 = vld [vmem:[#allocation2 + $0xa0] sm:$0xff] }
  0x1a   : > { %v262_v43 = vld [vmem:[#allocation2 + $0x30] sm:$0xff]  ;;  %v263_v48 = vld [vmem:[#allocation2 + $0x38] sm:$0xff]  ;;  %v277_v59 = vld [vmem:[#allocation2 + $0xa8] sm:$0xff] }
  0x1b   : > { %921 = vmatmul.mubr.msk.bf16.gmra.mrb[4].mxu0 %vm407_vm2, %v984_v9  ;;  %v278_v44 = vld [vmem:[#allocation2 + $0xb0] sm:$0xff]  ;;  %v279_v52 = vld [vmem:[#allocation2 + $0xb8] sm:$0xff] }
  0x1c   : > { %937 = vmatmul.mubr.msk.bf16.gmra.mrb[4].mxu1 %vm407_vm2, %v985_v10  ;;  %924 = vmatprep.mubr.msk.bf16.mxu0 %vm407_vm2, %v986_v11  ;;  %v266_v11 = vld [vmem:[#allocation2 + $0x50] sm:$0xff] }
  0x1d   : > { %940 = vmatprep.mubr.msk.bf16.mxu1 %vm407_vm2, %v987_v12  ;;  %v282_v12 = vld [vmem:[#allocation2 + $0xd0] sm:$0xff] }
  0x23   : > { %925 = vmatmul.mubr.msk.bf16.gmra.mrb[8].mxu0 %vm407_vm2, %v988_v13  ;;  %v264_v13 = vld [vmem:[#allocation2 + $0x40] sm:$0xff] }
  0x24   : > { %941 = vmatmul.mubr.msk.bf16.gmra.mrb[8].mxu1 %vm407_vm2, %v989_v14  ;;  %928 = vmatprep.mubr.msk.bf16.mxu0 %vm407_vm2, %v990_v15  ;;  %v280_v15 = vld [vmem:[#allocation2 + $0xc0] sm:$0xff] }
  0x25   : > { %944 = vmatprep.mubr.msk.bf16.mxu1 %vm407_vm2, %v991_v16  ;;  %v267_v16 = vld [vmem:[#allocation2 + $0x58] sm:$0xff] }
  0x2b   : > { %929 = vmatmul.mubr.msk.bf16.gmra.mrb[12].mxu0 %vm407_vm2, %v992_v17 }
  0x2c   : > { %945 = vmatmul.mubr.msk.bf16.gmra.mrb[12].mxu1 %vm407_vm2, %v993_v18 }
  0xe6   : > { %v918_v22 = vpop.f32.mrb[0].mxu0 }
  0xe7   : > { %v623_v25 = vadd.f32 %v918_v22, %v258_v19  ;;  %v934_v26 = vpop.f32.mrb[0].mxu1  ;;  %v494_v27 = vpop.f32.mrb[1].mxu0 }
  0xe8   : > { %v639_v30 = vadd.f32 %v934_v26, %v274_v20  ;;  %v621_v31 = vadd.f32 %v494_v27, %v256_v21  ;;  %v558_v32 = vpop.f32.mrb[1].mxu1  ;;  %v919_v33 = vpop.f32.mrb[2].mxu0  ;;  %v283_v20 = vld [vmem:[#allocation2 + $0xd8] sm:$0xff]  ;;  %v265_v21 = vld [vmem:[#allocation2 + $0x48] sm:$0xff] }
  0xe9   : > { %656 = vst.msk [vmem:[#allocation2 + $0x10] sm:$0xff] %vm223_vm1, %v623_v25  ;;  %v637_v35 = vadd.f32 %v558_v32, %v272_v23  ;;  %v624_v36 = vadd.f32 %v919_v33, %v259_v24  ;;  %v935_v37 = vpop.f32.mrb[2].mxu1  ;;  %v497_v38 = vpop.f32.mrb[3].mxu0  ;;  %v281_v27 = vld [vmem:[#allocation2 + $0xc8] sm:$0xff] }
  0xea   : > { %672 = vst.msk [vmem:[#allocation2 + $0x90] sm:$0xff] %vm223_vm1, %v639_v30  ;;  %654 = vst.msk [vmem:[#allocation2] sm:$0xff] %vm223_vm1, %v621_v31  ;;  %v640_v39 = vadd.f32 %v935_v37, %v275_v28  ;;  %v622_v40 = vadd.f32 %v497_v38, %v257_v29  ;;  %v561_v41 = vpop.f32.mrb[3].mxu1 }
  0xeb   : > { %670 = vst.msk [vmem:[#allocation2 + $0x80] sm:$0xff] %vm223_vm1, %v637_v35  ;;  %657 = vst.msk [vmem:[#allocation2 + $0x18] sm:$0xff] %vm223_vm1, %v624_v36  ;;  %v638_v42 = vadd.f32 %v561_v41, %v273_v34 }
  0xec   : > { %673 = vst.msk [vmem:[#allocation2 + $0x98] sm:$0xff] %vm223_vm1, %v640_v39  ;;  %655 = vst.msk [vmem:[#allocation2 + $0x8] sm:$0xff] %vm223_vm1, %v622_v40 }
  0xed   : > { %671 = vst.msk [vmem:[#allocation2 + $0x88] sm:$0xff] %vm223_vm1, %v638_v42 }
  0xee   : > { %v922_v46 = vpop.f32.mrb[4].mxu0 }
  0xef   : > { %v627_v49 = vadd.f32 %v922_v46, %v262_v43  ;;  %v938_v50 = vpop.f32.mrb[4].mxu1  ;;  %v510_v51 = vpop.f32.mrb[5].mxu0  ;;  %v270_v43 = vld [vmem:[#allocation2 + $0x70] sm:$0xff] }
  0xf0   : > { %v691_v54 = vld [vmem:[#allocation2 + $0x10] sm:$0xff]  ;;  %v643_v55 = vadd.f32 %v938_v50, %v278_v44  ;;  %v625_v56 = vadd.f32 %v510_v51, %v260_v45  ;;  %v574_v57 = vpop.f32.mrb[5].mxu1  ;;  %v923_v58 = vpop.f32.mrb[6].mxu0  ;;  %v268_v45 = vld [vmem:[#allocation2 + $0x60] sm:$0xff] }
  0xf1   : > { %723 = vst.msk [vmem:[%s1152_s24 + $0x10] sm:$0xff] %vm223_vm1, %v691_v54  ;;  %v707_v60 = vld [vmem:[#allocation2 + $0x90] sm:$0xff]  ;;  %v689_v61 = vld [vmem:[#allocation2] sm:$0xff]  ;;  %660 = vst.msk [vmem:[#allocation2 + $0x30] sm:$0xff] %vm223_vm1, %v627_v49  ;;  %v641_v62 = vadd.f32 %v574_v57, %v276_v47  ;;  %v628_v63 = vadd.f32 %v923_v58, %v263_v48  ;;  %v939_v0 = vpop.f32.mrb[6].mxu1  ;;  %v513_v1 = vpop.f32.mrb[7].mxu0 }
  0xf2   : > { %739 = vst.msk [vmem:[%s1152_s24 + $0x90] sm:$0xff] %vm223_vm1, %v707_v60  ;;  %721 = vst.msk [vmem:[%s1152_s24] sm:$0xff] %vm223_vm1, %v689_v61  ;;  %v705_v2 = vld [vmem:[#allocation2 + $0x80] sm:$0xff]  ;;  %v692_v3 = vld [vmem:[#allocation2 + $0x18] sm:$0xff]  ;;  %v644_v4 = vadd.f32 %v939_v0, %v279_v52  ;;  %v626_v5 = vadd.f32 %v513_v1, %v261_v53  ;;  %v577_v6 = vpop.f32.mrb[7].mxu1 }
  0xf3   : > { %676 = vst.msk [vmem:[#allocation2 + $0xb0] sm:$0xff] %vm223_vm1, %v643_v55  ;;  %658 = vst.msk [vmem:[#allocation2 + $0x20] sm:$0xff] %vm223_vm1, %v625_v56  ;;  %v708_v7 = vld [vmem:[#allocation2 + $0x98] sm:$0xff]  ;;  %v690_v8 = vld [vmem:[#allocation2 + $0x8] sm:$0xff]  ;;  %v642_v9 = vadd.f32 %v577_v6, %v277_v59 }
  0xf4   : > { %737 = vst.msk [vmem:[%s1152_s24 + $0x80] sm:$0xff] %vm223_vm1, %v705_v2  ;;  %724 = vst.msk [vmem:[%s1152_s24 + $0x18] sm:$0xff] %vm223_vm1, %v692_v3  ;;  %v706_v10 = vld [vmem:[#allocation2 + $0x88] sm:$0xff]  ;;  %v286_v44 = vld [vmem:[#allocation2 + $0xf0] sm:$0xff] }
  0xf5   : > { %674 = vst.msk [vmem:[#allocation2 + $0xa0] sm:$0xff] %vm223_vm1, %v641_v62  ;;  %661 = vst.msk [vmem:[#allocation2 + $0x38] sm:$0xff] %vm223_vm1, %v628_v63  ;;  %v284_v47 = vld [vmem:[#allocation2 + $0xe0] sm:$0xff]  ;;  %v271_v48 = vld [vmem:[#allocation2 + $0x78] sm:$0xff] }
  0xf6   : > { %740 = vst.msk [vmem:[%s1152_s24 + $0x98] sm:$0xff] %vm223_vm1, %v708_v7  ;;  %722 = vst.msk [vmem:[%s1152_s24 + $0x8] sm:$0xff] %vm223_vm1, %v690_v8  ;;  %v926_v14 = vpop.f32.mrb[8].mxu0  ;;  %v287_v52 = vld [vmem:[#allocation2 + $0xf8] sm:$0xff]  ;;  %v269_v53 = vld [vmem:[#allocation2 + $0x68] sm:$0xff] }
  0xf7   : > { %677 = vst.msk [vmem:[#allocation2 + $0xb8] sm:$0xff] %vm223_vm1, %v644_v4  ;;  %659 = vst.msk [vmem:[#allocation2 + $0x28] sm:$0xff] %vm223_vm1, %v626_v5  ;;  %v631_v17 = vadd.f32 %v926_v14, %v266_v11  ;;  %v942_v18 = vpop.f32.mrb[8].mxu1  ;;  %v526_v19 = vpop.f32.mrb[9].mxu0  ;;  %v285_v59 = vld [vmem:[#allocation2 + $0xe8] sm:$0xff] }
  0xf8   : > { %738 = vst.msk [vmem:[%s1152_s24 + $0x88] sm:$0xff] %vm223_vm1, %v706_v10  ;;  %675 = vst.msk [vmem:[#allocation2 + $0xa8] sm:$0xff] %vm223_vm1, %v642_v9  ;;  %v695_v22 = vld [vmem:[#allocation2 + $0x30] sm:$0xff]  ;;  %v647_v23 = vadd.f32 %v942_v18, %v282_v12  ;;  %v629_v24 = vadd.f32 %v526_v19, %v264_v13  ;;  %v590_v25 = vpop.f32.mrb[9].mxu1  ;;  %v927_v26 = vpop.f32.mrb[10].mxu0 }
  0xf9   : > { %727 = vst.msk [vmem:[%s1152_s24 + $0x30] sm:$0xff] %vm223_vm1, %v695_v22  ;;  %664 = vst.msk [vmem:[#allocation2 + $0x50] sm:$0xff] %vm223_vm1, %v631_v17  ;;  %v645_v30 = vadd.f32 %v590_v25, %v280_v15  ;;  %v632_v31 = vadd.f32 %v927_v26, %v267_v16  ;;  %v943_v32 = vpop.f32.mrb[10].mxu1  ;;  %v529_v33 = vpop.f32.mrb[11].mxu0 }
  0xfa   : > { %v711_v28 = vld [vmem:[#allocation2 + $0xb0] sm:$0xff]  ;;  %v693_v29 = vld [vmem:[#allocation2 + $0x20] sm:$0xff]  ;;  %680 = vst.msk [vmem:[#allocation2 + $0xd0] sm:$0xff] %vm223_vm1, %v647_v23  ;;  %662 = vst.msk [vmem:[#allocation2 + $0x40] sm:$0xff] %vm223_vm1, %v629_v24  ;;  %v648_v36 = vadd.f32 %v943_v32, %v283_v20  ;;  %v630_v37 = vadd.f32 %v529_v33, %v265_v21  ;;  %v593_v38 = vpop.f32.mrb[11].mxu1 }
  0xfb   : > { %743 = vst.msk [vmem:[%s1152_s24 + $0xb0] sm:$0xff] %vm223_vm1, %v711_v28  ;;  %725 = vst.msk [vmem:[%s1152_s24 + $0x20] sm:$0xff] %vm223_vm1, %v693_v29  ;;  %v646_v41 = vadd.f32 %v593_v38, %v281_v27 }
  0xfc   : > { %v709_v34 = vld [vmem:[#allocation2 + $0xa0] sm:$0xff]  ;;  %v696_v35 = vld [vmem:[#allocation2 + $0x38] sm:$0xff]  ;;  %678 = vst.msk [vmem:[#allocation2 + $0xc0] sm:$0xff] %vm223_vm1, %v645_v30  ;;  %665 = vst.msk [vmem:[#allocation2 + $0x58] sm:$0xff] %vm223_vm1, %v632_v31 }
  0xfd   : > { %741 = vst.msk [vmem:[%s1152_s24 + $0xa0] sm:$0xff] %vm223_vm1, %v709_v34  ;;  %728 = vst.msk [vmem:[%s1152_s24 + $0x38] sm:$0xff] %vm223_vm1, %v696_v35 }
  0xfe   : > { %v712_v39 = vld [vmem:[#allocation2 + $0xb8] sm:$0xff]  ;;  %v694_v40 = vld [vmem:[#allocation2 + $0x28] sm:$0xff]  ;;  %681 = vst.msk [vmem:[#allocation2 + $0xd8] sm:$0xff] %vm223_vm1, %v648_v36  ;;  %663 = vst.msk [vmem:[#allocation2 + $0x48] sm:$0xff] %vm223_vm1, %v630_v37  ;;  %v930_v46 = vpop.f32.mrb[12].mxu0 }
  0xff   : > { %744 = vst.msk [vmem:[%s1152_s24 + $0xb8] sm:$0xff] %vm223_vm1, %v712_v39  ;;  %726 = vst.msk [vmem:[%s1152_s24 + $0x28] sm:$0xff] %vm223_vm1, %v694_v40  ;;  %v710_v42 = vld [vmem:[#allocation2 + $0xa8] sm:$0xff]  ;;  %v635_v49 = vadd.f32 %v930_v46, %v270_v43  ;;  %v946_v50 = vpop.f32.mrb[12].mxu1  ;;  %v542_v51 = vpop.f32.mrb[13].mxu0 }
 0x100   : > { %742 = vst.msk [vmem:[%s1152_s24 + $0xa8] sm:$0xff] %vm223_vm1, %v710_v42  ;;  %679 = vst.msk [vmem:[#allocation2 + $0xc8] sm:$0xff] %vm223_vm1, %v646_v41  ;;  %v699_v54 = vld [vmem:[#allocation2 + $0x50] sm:$0xff]  ;;  %v651_v55 = vadd.f32 %v946_v50, %v286_v44  ;;  %v633_v56 = vadd.f32 %v542_v51, %v268_v45  ;;  %v606_v57 = vpop.f32.mrb[13].mxu1  ;;  %v931_v58 = vpop.f32.mrb[14].mxu0 }
 0x101   : > { %731 = vst.msk [vmem:[%s1152_s24 + $0x50] sm:$0xff] %vm223_vm1, %v699_v54  ;;  %v715_v60 = vld [vmem:[#allocation2 + $0xd0] sm:$0xff]  ;;  %v697_v61 = vld [vmem:[#allocation2 + $0x40] sm:$0xff]  ;;  %668 = vst.msk [vmem:[#allocation2 + $0x70] sm:$0xff] %vm223_vm1, %v635_v49  ;;  %v649_v62 = vadd.f32 %v606_v57, %v284_v47  ;;  %v636_v63 = vadd.f32 %v931_v58, %v271_v48  ;;  %v947_v0 = vpop.f32.mrb[14].mxu1  ;;  %v545_v1 = vpop.f32.mrb[15].mxu0 }
 0x102   : > { %747 = vst.msk [vmem:[%s1152_s24 + $0xd0] sm:$0xff] %vm223_vm1, %v715_v60  ;;  %729 = vst.msk [vmem:[%s1152_s24 + $0x40] sm:$0xff] %vm223_vm1, %v697_v61  ;;  %v652_v4 = vadd.f32 %v947_v0, %v287_v52  ;;  %v634_v5 = vadd.f32 %v545_v1, %v269_v53  ;;  %v609_v6 = vpop.f32.mrb[15].mxu1 }
 0x103   : > { %v713_v2 = vld [vmem:[#allocation2 + $0xc0] sm:$0xff]  ;;  %v700_v3 = vld [vmem:[#allocation2 + $0x58] sm:$0xff]  ;;  %684 = vst.msk [vmem:[#allocation2 + $0xf0] sm:$0xff] %vm223_vm1, %v651_v55  ;;  %666 = vst.msk [vmem:[#allocation2 + $0x60] sm:$0xff] %vm223_vm1, %v633_v56  ;;  %v650_v9 = vadd.f32 %v609_v6, %v285_v59 }
 0x104   : > { %745 = vst.msk [vmem:[%s1152_s24 + $0xc0] sm:$0xff] %vm223_vm1, %v713_v2  ;;  %732 = vst.msk [vmem:[%s1152_s24 + $0x58] sm:$0xff] %vm223_vm1, %v700_v3 }
 0x105   : > { %v716_v7 = vld [vmem:[#allocation2 + $0xd8] sm:$0xff]  ;;  %v698_v8 = vld [vmem:[#allocation2 + $0x48] sm:$0xff]  ;;  %682 = vst.msk [vmem:[#allocation2 + $0xe0] sm:$0xff] %vm223_vm1, %v649_v62  ;;  %669 = vst.msk [vmem:[#allocation2 + $0x78] sm:$0xff] %vm223_vm1, %v636_v63 }
 0x106   : > { %748 = vst.msk [vmem:[%s1152_s24 + $0xd8] sm:$0xff] %vm223_vm1, %v716_v7  ;;  %730 = vst.msk [vmem:[%s1152_s24 + $0x48] sm:$0xff] %vm223_vm1, %v698_v8 }
 0x107   : > { %v714_v10 = vld [vmem:[#allocation2 + $0xc8] sm:$0xff]  ;;  %685 = vst.msk [vmem:[#allocation2 + $0xf8] sm:$0xff] %vm223_vm1, %v652_v4  ;;  %667 = vst.msk [vmem:[#allocation2 + $0x68] sm:$0xff] %vm223_vm1, %v634_v5 }
 0x108   : > { %746 = vst.msk [vmem:[%s1152_s24 + $0xc8] sm:$0xff] %vm223_vm1, %v714_v10  ;;  %683 = vst.msk [vmem:[#allocation2 + $0xe8] sm:$0xff] %vm223_vm1, %v650_v9  ;;  %v703_v11 = vld [vmem:[#allocation2 + $0x70] sm:$0xff] }
 0x109   : > { %735 = vst.msk [vmem:[%s1152_s24 + $0x70] sm:$0xff] %vm223_vm1, %v703_v11 }
 0x10a   : > { %v719_v12 = vld [vmem:[#allocation2 + $0xf0] sm:$0xff]  ;;  %v701_v13 = vld [vmem:[#allocation2 + $0x60] sm:$0xff] }
 0x10b   : > { %751 = vst.msk [vmem:[%s1152_s24 + $0xf0] sm:$0xff] %vm223_vm1, %v719_v12  ;;  %733 = vst.msk [vmem:[%s1152_s24 + $0x60] sm:$0xff] %vm223_vm1, %v701_v13 }
 0x10c   : > { %v717_v14 = vld [vmem:[#allocation2 + $0xe0] sm:$0xff]  ;;  %v704_v15 = vld [vmem:[#allocation2 + $0x78] sm:$0xff] }
 0x10d   : > { %749 = vst.msk [vmem:[%s1152_s24 + $0xe0] sm:$0xff] %vm223_vm1, %v717_v14  ;;  %736 = vst.msk [vmem:[%s1152_s24 + $0x78] sm:$0xff] %vm223_vm1, %v704_v15 }
 0x10e   : > { %v720_v16 = vld [vmem:[#allocation2 + $0xf8] sm:$0xff]  ;;  %v702_v17 = vld [vmem:[#allocation2 + $0x68] sm:$0xff] }
 0x10f   : > { %752 = vst.msk [vmem:[%s1152_s24 + $0xf8] sm:$0xff] %vm223_vm1, %v720_v16  ;;  %734 = vst.msk [vmem:[%s1152_s24 + $0x68] sm:$0xff] %vm223_vm1, %v702_v17  ;;  %v718_v18 = vld [vmem:[#allocation2 + $0xe8] sm:$0xff] }
 0x110   : > { %750 = vst.msk [vmem:[%s1152_s24 + $0xe8] sm:$0xff] %vm223_vm1, %v718_v18 }
 0x111 PF: > { %s12_s11 = sadd.s32 1, %s1016_s11   ;;  %s1255_s9 = smov %s1012_s10 }
 0x112   : > { %p9_p5 = scmp.ge.s32.totalorder %s12_s11, 4   ;;  %s1256_s10 = smov %s1258_s12 }
 0x114   :  { %11 = sbr.rel (!%p9_p5) target bundleno = 2 (0x2), region = 69 }

// kernel: vit_for_clip_forward.35
= control target key start
LH: loop header
LB: loop body
LE: loop exit
PB: predicated region body
PF: predicated region fallthrough
CT: control target
= control target key end

     0   :  { %vm134_vm0 = vcmask 1043456   ;;  %vm109_vm1 = vcmask 64512   ;;  %vm19_vm2 = vcmask 130048   ;;  %v387_v1 = vmov 0.0   ;;  %s563_s1 = inlined_call_operand.vmem [shape: bf16[8,16], index: 1, kind: input, shape index: {}]   ;;  %s564_s0 = inlined_call_operand.vmem [shape: bf16[128,8], index: 0, kind: input, shape index: {}]   ;;  %s565_s2 = inlined_call_operand.vmem [shape: f32[1,16], index: 2, kind: input, shape index: {}]   ;;  %s566_s3 = inlined_call_operand.vmem [shape: f32[128,16], index: 3, kind: output, shape index: {}]  }
   0x1   :  { %v68_v0 = vld [vmem:[%s563_s1] sm:$0xf]  ;;  %22 = vst.msk [vmem:[#allocation2 + $0x10] sm:$0xff] %vm19_vm2, %v387_v1  ;;  %20 = vst.msk [vmem:[#allocation2] sm:$0xff] %vm19_vm2, %v387_v1  ;;  %v381_v5 = vld [vmem:[%s564_s0 + $0x8] sm:$0xff]  }
   0x2   :  { %21 = vst.msk [vmem:[#allocation2 + $0x8] sm:$0xff] %vm19_vm2, %v387_v1  ;;  %23 = vst.msk [vmem:[#allocation2 + $0x18] sm:$0xff] %vm19_vm2, %v387_v1  ;;  %376 = vmatprep.subr.msk.bf16.mxu0 %vm134_vm0, %v68_v0  ;;  %377 = vmatprep.subr.msk.bf16.mxu1 %vm134_vm0, %v68_v0  ;;  %v136_v2 = vsel %vm134_vm0, %v68_v0, 0  ;;  %v379_v3 = vld [vmem:[%s564_s0] sm:$0xff]   ;;  %v382_v6 = vld [vmem:[%s564_s0 + $0x28] sm:$0xff]  }
   0x3   :  { %24 = vst.msk [vmem:[#allocation2 + $0x20] sm:$0xff] %vm19_vm2, %v387_v1  ;;  %25 = vst.msk [vmem:[#allocation2 + $0x28] sm:$0xff] %vm19_vm2, %v387_v1  ;;  %357 = vmatpush3.bf16.msra.mxu0 %v136_v2  ;;  %375 = vmatpush3.bf16.msra.mxu1 %v136_v2  ;;  %v380_v4 = vld [vmem:[%s564_s0 + $0x20] sm:$0xff]   ;;  %v383_v7 = vld [vmem:[%s564_s0 + $0x10] sm:$0xff]  }
   0x4   :  { %26 = vst.msk [vmem:[#allocation2 + $0x30] sm:$0xff] %vm19_vm2, %v387_v1  ;;  %27 = vst.msk [vmem:[#allocation2 + $0x38] sm:$0xff] %vm19_vm2, %v387_v1  ;;  %358 = vmatprep.mubr.msk.bf16.mxu0 %vm109_vm1, %v379_v3  ;;  %366 = vmatprep.mubr.msk.bf16.mxu1 %vm109_vm1, %v380_v4  ;;  %v384_v8 = vld [vmem:[%s564_s0 + $0x30] sm:$0xff]   ;;  %v385_v9 = vld [vmem:[%s564_s0 + $0x18] sm:$0xff]  }
   0x5   :  { %28 = vst.msk [vmem:[#allocation2 + $0x40] sm:$0xff] %vm19_vm2, %v387_v1  ;;  %29 = vst.msk [vmem:[#allocation2 + $0x48] sm:$0xff] %vm19_vm2, %v387_v1  ;;  %v386_v10 = vld [vmem:[%s564_s0 + $0x38] sm:$0xff]   ;;  %v473_v38 = vld [vmem:[%s565_s2] ss:$0 sm:$0xff] }
   0x6   :  { %30 = vst.msk [vmem:[#allocation2 + $0x50] sm:$0xff] %vm19_vm2, %v387_v1  ;;  %31 = vst.msk [vmem:[#allocation2 + $0x58] sm:$0xff] %vm19_vm2, %v387_v1  ;;  %359 = vmatmul.mubr.msk.bf16.vlgmr.msra.gmra.mrb[0].mxu0 %vm109_vm1, %v381_v5  ;;  %367 = vmatmul.mubr.msk.bf16.vlgmr.msra.gmra.mrb[0].mxu1 %vm109_vm1, %v382_v6 }
   0x7   :  { %32 = vst.msk [vmem:[#allocation2 + $0x60] sm:$0xff] %vm19_vm2, %v387_v1  ;;  %33 = vst.msk [vmem:[#allocation2 + $0x68] sm:$0xff] %vm19_vm2, %v387_v1  ;;  %362 = vmatprep.mubr.msk.bf16.mxu0 %vm109_vm1, %v383_v7  ;;  %370 = vmatprep.mubr.msk.bf16.mxu1 %vm109_vm1, %v384_v8 }
   0x8   :  { %34 = vst.msk [vmem:[#allocation2 + $0x70] sm:$0xff] %vm19_vm2, %v387_v1  ;;  %35 = vst.msk [vmem:[#allocation2 + $0x78] sm:$0xff] %vm19_vm2, %v387_v1  ;;  %v38_v11 = vld [vmem:[#allocation2 + $0x10] sm:$0xff]  ;;  %v36_v13 = vld [vmem:[#allocation2] sm:$0xff] }
   0x9   :  { %v39_v16 = vld [vmem:[#allocation2 + $0x18] sm:$0xff]  ;;  %v37_v21 = vld [vmem:[#allocation2 + $0x8] sm:$0xff] }
   0xa   :  { %v40_v37 = vld [vmem:[#allocation2 + $0x20] sm:$0xff]  ;;  %v41_v46 = vld [vmem:[#allocation2 + $0x28] sm:$0xff] }
   0xb   :  { %v42_v35 = vld [vmem:[#allocation2 + $0x30] sm:$0xff]  ;;  %v43_v41 = vld [vmem:[#allocation2 + $0x38] sm:$0xff] }
   0xc   :  { %v44_v15 = vld [vmem:[#allocation2 + $0x40] sm:$0xff]  ;;  %v45_v26 = vld [vmem:[#allocation2 + $0x48] sm:$0xff] }
   0xd   :  { %v46_v12 = vld [vmem:[#allocation2 + $0x50] sm:$0xff]  ;;  %v47_v20 = vld [vmem:[#allocation2 + $0x58] sm:$0xff] }
   0xe   :  { %363 = vmatmul.mubr.msk.bf16.gmra.mrb[4].mxu0 %vm109_vm1, %v385_v9  ;;  %371 = vmatmul.mubr.msk.bf16.gmra.mrb[4].mxu1 %vm109_vm1, %v386_v10  ;;  %v48_v40 = vld [vmem:[#allocation2 + $0x60] sm:$0xff]  ;;  %v49_v52 = vld [vmem:[#allocation2 + $0x68] sm:$0xff] }
   0xf   :  { %v50_v36 = vld [vmem:[#allocation2 + $0x70] sm:$0xff]  ;;  %v51_v45 = vld [vmem:[#allocation2 + $0x78] sm:$0xff] }
  0xd9   :  { %v360_v14 = vpop.f32.mrb[0].mxu0  ;;  %v368_v18 = vpop.f32.mrb[0].mxu1 }
  0xda   :  { %v237_v17 = vadd.f32 %v360_v14, %v38_v11  ;;  %v172_v19 = vpop.f32.mrb[1].mxu0  ;;  %v245_v22 = vadd.f32 %v368_v18, %v46_v12  ;;  %v204_v24 = vpop.f32.mrb[1].mxu1 }
  0xdb   :  { %v235_v23 = vadd.f32 %v172_v19, %v36_v13  ;;  %v361_v25 = vpop.f32.mrb[2].mxu0  ;;  %v243_v27 = vadd.f32 %v204_v24, %v44_v15  ;;  %v369_v29 = vpop.f32.mrb[2].mxu1 }
  0xdc   :  { %254 = vst.msk [vmem:[#allocation2 + $0x10] sm:$0xff] %vm19_vm2, %v237_v17  ;;  %v238_v28 = vadd.f32 %v361_v25, %v39_v16  ;;  %v175_v30 = vpop.f32.mrb[3].mxu0  ;;  %262 = vst.msk [vmem:[#allocation2 + $0x50] sm:$0xff] %vm19_vm2, %v245_v22  ;;  %v246_v31 = vadd.f32 %v369_v29, %v47_v20  ;;  %v207_v33 = vpop.f32.mrb[3].mxu1 }
  0xdd   :  { %252 = vst.msk [vmem:[#allocation2] sm:$0xff] %vm19_vm2, %v235_v23  ;;  %v236_v32 = vadd.f32 %v175_v30, %v37_v21  ;;  %260 = vst.msk [vmem:[#allocation2 + $0x40] sm:$0xff] %vm19_vm2, %v243_v27  ;;  %v244_v34 = vadd.f32 %v207_v33, %v45_v26 }
  0xde   :  { %255 = vst.msk [vmem:[#allocation2 + $0x18] sm:$0xff] %vm19_vm2, %v238_v28  ;;  %263 = vst.msk [vmem:[#allocation2 + $0x58] sm:$0xff] %vm19_vm2, %v246_v31 }
  0xdf   :  { %253 = vst.msk [vmem:[#allocation2 + $0x8] sm:$0xff] %vm19_vm2, %v236_v32  ;;  %261 = vst.msk [vmem:[#allocation2 + $0x48] sm:$0xff] %vm19_vm2, %v244_v34 }
  0xe1   :  { %v364_v39 = vpop.f32.mrb[4].mxu0  ;;  %v372_v43 = vpop.f32.mrb[4].mxu1 }
  0xe2   :  { %v241_v42 = vadd.f32 %v364_v39, %v42_v35  ;;  %v188_v44 = vpop.f32.mrb[5].mxu0  ;;  %v249_v48 = vadd.f32 %v372_v43, %v50_v36  ;;  %v220_v50 = vpop.f32.mrb[5].mxu1 }
  0xe3   :  { %v273_v47 = vld [vmem:[#allocation2 + $0x10] sm:$0xff]  ;;  %v239_v49 = vadd.f32 %v188_v44, %v40_v37  ;;  %v365_v51 = vpop.f32.mrb[6].mxu0  ;;  %v247_v56 = vadd.f32 %v220_v50, %v48_v40  ;;  %v373_v58 = vpop.f32.mrb[6].mxu1 }
  0xe4   :  { %v296_v53 = vadd.f32 %v473_v38, %v273_v47  ;;  %v281_v54 = vld [vmem:[#allocation2 + $0x50] sm:$0xff]  ;;  %v271_v55 = vld [vmem:[#allocation2] sm:$0xff]  ;;  %258 = vst.msk [vmem:[#allocation2 + $0x30] sm:$0xff] %vm19_vm2, %v241_v42  ;;  %v242_v57 = vadd.f32 %v365_v51, %v43_v41  ;;  %v191_v59 = vpop.f32.mrb[7].mxu0  ;;  %266 = vst.msk [vmem:[#allocation2 + $0x70] sm:$0xff] %vm19_vm2, %v249_v48  ;;  %v250_v0 = vadd.f32 %v373_v58, %v51_v45  ;;  %v223_v2 = vpop.f32.mrb[7].mxu1 }
  0xe5   :  { %v304_v60 = vadd.f32 %v473_v38, %v281_v54  ;;  %v294_v61 = vadd.f32 %v473_v38, %v271_v55  ;;  %v279_v62 = vld [vmem:[#allocation2 + $0x40] sm:$0xff]  ;;  %v274_v63 = vld [vmem:[#allocation2 + $0x18] sm:$0xff]  ;;  %256 = vst.msk [vmem:[#allocation2 + $0x20] sm:$0xff] %vm19_vm2, %v239_v49  ;;  %v240_v1 = vadd.f32 %v191_v59, %v41_v46  ;;  %264 = vst.msk [vmem:[#allocation2 + $0x60] sm:$0xff] %vm19_vm2, %v247_v56 }
  0xe6   :  { %312 = vst.msk [vmem:[%s566_s3 + $0x10] sm:$0xff] %vm19_vm2, %v296_v53  ;;  %v302_v3 = vadd.f32 %v473_v38, %v279_v62  ;;  %v297_v4 = vadd.f32 %v473_v38, %v274_v63  ;;  %v282_v5 = vld [vmem:[#allocation2 + $0x58] sm:$0xff]  ;;  %v272_v6 = vld [vmem:[#allocation2 + $0x8] sm:$0xff]  ;;  %259 = vst.msk [vmem:[#allocation2 + $0x38] sm:$0xff] %vm19_vm2, %v242_v57  ;;  %v248_v7 = vadd.f32 %v223_v2, %v49_v52 }
  0xe7   :  { %320 = vst.msk [vmem:[%s566_s3 + $0x50] sm:$0xff] %vm19_vm2, %v304_v60  ;;  %310 = vst.msk [vmem:[%s566_s3] sm:$0xff] %vm19_vm2, %v294_v61  ;;  %v305_v8 = vadd.f32 %v473_v38, %v282_v5  ;;  %v295_v9 = vadd.f32 %v473_v38, %v272_v6  ;;  %v280_v10 = vld [vmem:[#allocation2 + $0x48] sm:$0xff] }
  0xe8   :  { %267 = vst.msk [vmem:[#allocation2 + $0x78] sm:$0xff] %vm19_vm2, %v250_v0  ;;  %257 = vst.msk [vmem:[#allocation2 + $0x28] sm:$0xff] %vm19_vm2, %v240_v1  ;;  %v303_v11 = vadd.f32 %v473_v38, %v280_v10 }
  0xe9   :  { %318 = vst.msk [vmem:[%s566_s3 + $0x40] sm:$0xff] %vm19_vm2, %v302_v3  ;;  %313 = vst.msk [vmem:[%s566_s3 + $0x18] sm:$0xff] %vm19_vm2, %v297_v4 }
  0xea   :  { %265 = vst.msk [vmem:[#allocation2 + $0x68] sm:$0xff] %vm19_vm2, %v248_v7  ;;  %321 = vst.msk [vmem:[%s566_s3 + $0x58] sm:$0xff] %vm19_vm2, %v305_v8 }
  0xeb   :  { %311 = vst.msk [vmem:[%s566_s3 + $0x8] sm:$0xff] %vm19_vm2, %v295_v9  ;;  %319 = vst.msk [vmem:[%s566_s3 + $0x48] sm:$0xff] %vm19_vm2, %v303_v11  ;;  %v277_v12 = vld [vmem:[#allocation2 + $0x30] sm:$0xff] }
  0xec   :  { %v300_v13 = vadd.f32 %v473_v38, %v277_v12  ;;  %v285_v14 = vld [vmem:[#allocation2 + $0x70] sm:$0xff]  ;;  %v275_v15 = vld [vmem:[#allocation2 + $0x20] sm:$0xff] }
  0xed   :  { %v308_v16 = vadd.f32 %v473_v38, %v285_v14  ;;  %v298_v17 = vadd.f32 %v473_v38, %v275_v15  ;;  %v283_v18 = vld [vmem:[#allocation2 + $0x60] sm:$0xff]  ;;  %v278_v19 = vld [vmem:[#allocation2 + $0x38] sm:$0xff] }
  0xee   :  { %316 = vst.msk [vmem:[%s566_s3 + $0x30] sm:$0xff] %vm19_vm2, %v300_v13  ;;  %v306_v20 = vadd.f32 %v473_v38, %v283_v18  ;;  %v301_v21 = vadd.f32 %v473_v38, %v278_v19 }
  0xef   :  { %v286_v22 = vld [vmem:[#allocation2 + $0x78] sm:$0xff]  ;;  %v276_v23 = vld [vmem:[#allocation2 + $0x28] sm:$0xff]  ;;  %324 = vst.msk [vmem:[%s566_s3 + $0x70] sm:$0xff] %vm19_vm2, %v308_v16  ;;  %314 = vst.msk [vmem:[%s566_s3 + $0x20] sm:$0xff] %vm19_vm2, %v298_v17 }
  0xf0   :  { %v309_v24 = vadd.f32 %v473_v38, %v286_v22  ;;  %v299_v25 = vadd.f32 %v473_v38, %v276_v23  ;;  %322 = vst.msk [vmem:[%s566_s3 + $0x60] sm:$0xff] %vm19_vm2, %v306_v20  ;;  %317 = vst.msk [vmem:[%s566_s3 + $0x38] sm:$0xff] %vm19_vm2, %v301_v21 }
  0xf1   :  { %v284_v26 = vld [vmem:[#allocation2 + $0x68] sm:$0xff] }
  0xf2   :  { %v307_v27 = vadd.f32 %v473_v38, %v284_v26  ;;  %325 = vst.msk [vmem:[%s566_s3 + $0x78] sm:$0xff] %vm19_vm2, %v309_v24  ;;  %315 = vst.msk [vmem:[%s566_s3 + $0x28] sm:$0xff] %vm19_vm2, %v299_v25 }
  0xf4   :  { %323 = vst.msk [vmem:[%s566_s3 + $0x68] sm:$0xff] %vm19_vm2, %v307_v27 }

// kernel: vit_for_clip_forward.36
= control target key start
LH: loop header
LB: loop body
LE: loop exit
PB: predicated region body
PF: predicated region fallthrough
CT: control target
= control target key end

     0   :  { %vm31_vm0 = vcmask 130048   ;;  %s713_s0 = inlined_call_operand.vmem [shape: f32[136,16], index: 0, kind: input, shape index: {}]   ;;  %s714_s1 = inlined_call_operand.vmem [shape: f32[1,16], index: 1, kind: input, shape index: {}]   ;;  %s715_s2 = inlined_call_operand.vmem [shape: f32[1,16], index: 2, kind: input, shape index: {}]   ;;  %s716_s3 = inlined_call_operand.vmem [shape: f32[136,16], index: 3, kind: output, shape index: {}]  }
   0x1   :  { %v14_v0 = vld [vmem:[%s713_s0] sm:$0xff]  ;;  %v16_v1 = vld [vmem:[%s713_s0 + $0x10] sm:$0xff]  ;;  %v15_v2 = vld [vmem:[%s713_s0 + $0x8] sm:$0xff] }
   0x2   :  { %v32_v3 = vsel %vm31_vm0, %v14_v0, 0.0  ;;  %v38_v4 = vsel %vm31_vm0, %v16_v1, 0.0  ;;  %v17_v5 = vld [vmem:[%s713_s0 + $0x18] sm:$0xff]  ;;  %v35_v6 = vsel %vm31_vm0, %v15_v2, 0.0  ;;  %v398_v8 = vld [vmem:[%s713_s0 + $0x20] sm:$0xff]  ;;  %v403_v9 = vld [vmem:[%s713_s0 + $0x28] sm:$0xff] }
   0x3   :  { %33 = vadd.xlane.f32.xlu0 %v32_v3  ;;  %39 = vadd.xlane.f32.xlu1 %v38_v4  ;;  %v41_v7 = vsel %vm31_vm0, %v17_v5, 0.0  ;;  %v44_v10 = vsel %vm31_vm0, %v398_v8, 0.0  ;;  %v47_v11 = vsel %vm31_vm0, %v403_v9, 0.0  ;;  %v412_v12 = vld [vmem:[%s713_s0 + $0x30] sm:$0xff]  ;;  %v417_v13 = vld [vmem:[%s713_s0 + $0x38] sm:$0xff]  ;;  %v426_v16 = vld [vmem:[%s713_s0 + $0x40] sm:$0xff] }
   0x4   :  { %v50_v14 = vsel %vm31_vm0, %v412_v12, 0.0  ;;  %v53_v15 = vsel %vm31_vm0, %v417_v13, 0.0  ;;  %v431_v17 = vld [vmem:[%s713_s0 + $0x48] sm:$0xff]  ;;  %v56_v18 = vsel %vm31_vm0, %v426_v16, 0.0  ;;  %v440_v20 = vld [vmem:[%s713_s0 + $0x50] sm:$0xff]  ;;  %v445_v21 = vld [vmem:[%s713_s0 + $0x58] sm:$0xff] }
   0x5   :  { %v59_v19 = vsel %vm31_vm0, %v431_v17, 0.0  ;;  %v62_v22 = vsel %vm31_vm0, %v440_v20, 0.0  ;;  %v65_v23 = vsel %vm31_vm0, %v445_v21, 0.0  ;;  %v454_v24 = vld [vmem:[%s713_s0 + $0x60] sm:$0xff]  ;;  %v459_v25 = vld [vmem:[%s713_s0 + $0x68] sm:$0xff]  ;;  %v468_v28 = vld [vmem:[%s713_s0 + $0x70] sm:$0xff] }
   0x6   :  { %v68_v26 = vsel %vm31_vm0, %v454_v24, 0.0  ;;  %v71_v27 = vsel %vm31_vm0, %v459_v25, 0.0  ;;  %v473_v29 = vld [vmem:[%s713_s0 + $0x78] sm:$0xff]  ;;  %v74_v30 = vsel %vm31_vm0, %v468_v28, 0.0  ;;  %v482_v32 = vld [vmem:[%s713_s0 + $0x80] sm:$0xff] }
   0x7   :  { %36 = vadd.xlane.f32.xlu0 %v35_v6  ;;  %42 = vadd.xlane.f32.xlu1 %v41_v7  ;;  %v77_v31 = vsel %vm31_vm0, %v473_v29, 0.0  ;;  %v80_v33 = vsel %vm31_vm0, %v482_v32, 0.0 }
   0xb   :  { %45 = vadd.xlane.f32.xlu0 %v44_v10  ;;  %48 = vadd.xlane.f32.xlu1 %v47_v11 }
   0xf   :  { %51 = vadd.xlane.f32.xlu0 %v50_v14  ;;  %54 = vadd.xlane.f32.xlu1 %v53_v15 }
  0x13   :  { %57 = vadd.xlane.f32.xlu0 %v56_v18  ;;  %60 = vadd.xlane.f32.xlu1 %v59_v19 }
  0x17   :  { %63 = vadd.xlane.f32.xlu0 %v62_v22  ;;  %66 = vadd.xlane.f32.xlu1 %v65_v23 }
  0x1b   :  { %69 = vadd.xlane.f32.xlu0 %v68_v26  ;;  %72 = vadd.xlane.f32.xlu1 %v71_v27 }
  0x1f   :  { %75 = vadd.xlane.f32.xlu0 %v74_v30  ;;  %78 = vadd.xlane.f32.xlu1 %v77_v31 }
  0x23   :  { %81 = vadd.xlane.f32.xlu0 %v80_v33 }
  0x90   :  { %v34_v34 = vpop.xlane.xlu0 %33  ;;  %v40_v35 = vpop.xlane.xlu1 %39 }
  0x91   :  { %v84_v36 = vmul.f32 0.0625, %v34_v34  ;;  %v86_v37 = vmul.f32 0.0625, %v40_v35 }
  0x93   :  { %v486_v38 = vsub.f32 %v14_v0, %v84_v36  ;;  %v488_v39 = vsub.f32 %v16_v1, %v86_v37 }
  0x94   :  { %v37_v40 = vpop.xlane.xlu0 %36  ;;  %v43_v41 = vpop.xlane.xlu1 %42 }
  0x95   :  { %v85_v42 = vmul.f32 0.0625, %v37_v40  ;;  %v87_v43 = vmul.f32 0.0625, %v43_v41  ;;  %v118_v44 = vmul.f32 %v486_v38, %v486_v38  ;;  %v120_v45 = vmul.f32 %v488_v39, %v488_v39 }
  0x97   :  { %v494_v46 = vsub.f32 %v15_v2, %v85_v42  ;;  %v496_v47 = vsub.f32 %v17_v5, %v87_v43  ;;  %v135_v48 = vsel %vm31_vm0, %v118_v44, 0.0  ;;  %v141_v51 = vsel %vm31_vm0, %v120_v45, 0.0 }
  0x98   :  { %136 = vadd.xlane.f32.xlu1 %v135_v48  ;;  %v46_v49 = vpop.xlane.xlu0 %45  ;;  %v49_v50 = vpop.xlane.xlu1 %48 }
  0x99   :  { %v88_v52 = vmul.f32 0.0625, %v46_v49  ;;  %v89_v53 = vmul.f32 0.0625, %v49_v50  ;;  %v119_v54 = vmul.f32 %v494_v46, %v494_v46  ;;  %v121_v55 = vmul.f32 %v496_v47, %v496_v47 }
  0x9b   :  { %v505_v56 = vsub.f32 %v398_v8, %v88_v52  ;;  %v508_v57 = vsub.f32 %v403_v9, %v89_v53  ;;  %v138_v58 = vsel %vm31_vm0, %v119_v54, 0.0  ;;  %v144_v61 = vsel %vm31_vm0, %v121_v55, 0.0 }
  0x9c   :  { %142 = vadd.xlane.f32.xlu1 %v141_v51  ;;  %139 = vadd.xlane.f32.xlu0 %v138_v58  ;;  %v52_v59 = vpop.xlane.xlu0 %51  ;;  %v55_v60 = vpop.xlane.xlu1 %54 }
  0x9d   :  { %v90_v62 = vmul.f32 0.0625, %v52_v59  ;;  %v91_v63 = vmul.f32 0.0625, %v55_v60  ;;  %v122_v0 = vmul.f32 %v505_v56, %v505_v56  ;;  %v123_v1 = vmul.f32 %v508_v57, %v508_v57 }
  0x9f   :  { %v517_v2 = vsub.f32 %v412_v12, %v90_v62  ;;  %v520_v3 = vsub.f32 %v417_v13, %v91_v63  ;;  %v147_v4 = vsel %vm31_vm0, %v122_v0, 0.0  ;;  %v150_v7 = vsel %vm31_vm0, %v123_v1, 0.0 }
  0xa0   :  { %145 = vadd.xlane.f32.xlu0 %v144_v61  ;;  %148 = vadd.xlane.f32.xlu1 %v147_v4  ;;  %v58_v5 = vpop.xlane.xlu0 %57  ;;  %v61_v6 = vpop.xlane.xlu1 %60 }
  0xa1   :  { %v92_v8 = vmul.f32 0.0625, %v58_v5  ;;  %v93_v9 = vmul.f32 0.0625, %v61_v6  ;;  %v124_v10 = vmul.f32 %v517_v2, %v517_v2  ;;  %v125_v11 = vmul.f32 %v520_v3, %v520_v3 }
  0xa3   :  { %v529_v12 = vsub.f32 %v426_v16, %v92_v8  ;;  %v532_v13 = vsub.f32 %v431_v17, %v93_v9  ;;  %v153_v14 = vsel %vm31_vm0, %v124_v10, 0.0  ;;  %v156_v19 = vsel %vm31_vm0, %v125_v11, 0.0 }
  0xa4   :  { %151 = vadd.xlane.f32.xlu0 %v150_v7  ;;  %154 = vadd.xlane.f32.xlu1 %v153_v14  ;;  %v64_v15 = vpop.xlane.xlu0 %63  ;;  %v67_v18 = vpop.xlane.xlu1 %66 }
  0xa5   :  { %v94_v22 = vmul.f32 0.0625, %v64_v15  ;;  %v95_v23 = vmul.f32 0.0625, %v67_v18  ;;  %v126_v26 = vmul.f32 %v529_v12, %v529_v12  ;;  %v127_v16 = vmul.f32 %v532_v13, %v532_v13 }
  0xa7   :  { %v541_v27 = vsub.f32 %v440_v20, %v94_v22  ;;  %v544_v17 = vsub.f32 %v445_v21, %v95_v23  ;;  %v159_v30 = vsel %vm31_vm0, %v126_v26, 0.0  ;;  %v162_v34 = vsel %vm31_vm0, %v127_v16, 0.0  ;;  %v587_v16 = vld [vmem:[%s714_s1] ss:$0 sm:$0xff] }
  0xa8   :  { %157 = vadd.xlane.f32.xlu0 %v156_v19  ;;  %160 = vadd.xlane.f32.xlu1 %v159_v30  ;;  %v70_v31 = vpop.xlane.xlu0 %69  ;;  %v73_v33 = vpop.xlane.xlu1 %72 }
  0xa9   :  { %v96_v35 = vmul.f32 0.0625, %v70_v31  ;;  %v97_v36 = vmul.f32 0.0625, %v73_v33  ;;  %v128_v37 = vmul.f32 %v541_v27, %v541_v27  ;;  %v129_v20 = vmul.f32 %v544_v17, %v544_v17 }
  0xab   :  { %v553_v40 = vsub.f32 %v454_v24, %v96_v35  ;;  %v556_v21 = vsub.f32 %v459_v25, %v97_v36  ;;  %v165_v41 = vsel %vm31_vm0, %v128_v37, 0.0  ;;  %v168_v44 = vsel %vm31_vm0, %v129_v20, 0.0  ;;  %v593_v36 = vld [vmem:[%s715_s2] ss:$0 sm:$0xff] }
  0xac   :  { %163 = vadd.xlane.f32.xlu0 %v162_v34  ;;  %166 = vadd.xlane.f32.xlu1 %v165_v41  ;;  %v76_v42 = vpop.xlane.xlu0 %75  ;;  %v79_v43 = vpop.xlane.xlu1 %78 }
  0xad   :  { %v98_v45 = vmul.f32 0.0625, %v76_v42  ;;  %v99_v48 = vmul.f32 0.0625, %v79_v43  ;;  %v130_v49 = vmul.f32 %v553_v40, %v553_v40  ;;  %v131_v24 = vmul.f32 %v556_v21, %v556_v21 }
  0xaf   :  { %v565_v50 = vsub.f32 %v468_v28, %v98_v45  ;;  %v568_v25 = vsub.f32 %v473_v29, %v99_v48  ;;  %v171_v51 = vsel %vm31_vm0, %v130_v49, 0.0  ;;  %v174_v54 = vsel %vm31_vm0, %v131_v24, 0.0 }
  0xb0   :  { %169 = vadd.xlane.f32.xlu0 %v168_v44  ;;  %172 = vadd.xlane.f32.xlu1 %v171_v51  ;;  %v82_v52 = vpop.xlane.xlu0 %81 }
  0xb1   :  { %v100_v53 = vmul.f32 0.0625, %v82_v52  ;;  %v132_v55 = vmul.f32 %v565_v50, %v565_v50  ;;  %v133_v58 = vmul.f32 %v568_v25, %v568_v25 }
  0xb3   :  { %v577_v28 = vsub.f32 %v482_v32, %v100_v53  ;;  %v177_v29 = vsel %vm31_vm0, %v132_v55, 0.0  ;;  %v180_v59 = vsel %vm31_vm0, %v133_v58, 0.0 }
  0xb4   :  { %175 = vadd.xlane.f32.xlu0 %v174_v54  ;;  %178 = vadd.xlane.f32.xlu1 %v177_v29 }
  0xb5   :  { %v134_v60 = vmul.f32 %v577_v28, %v577_v28 }
  0xb7   :  { %v183_v61 = vsel %vm31_vm0, %v134_v60, 0.0 }
  0xb8   :  { %181 = vadd.xlane.f32.xlu0 %v180_v59  ;;  %184 = vadd.xlane.f32.xlu1 %v183_v61 }
 0x125   :  { %v137_v62 = vpop.xlane.xlu1 %136 }
 0x126   :  { %v186_v63 = vmul.f32 0.0625, %v137_v62 }
 0x128   :  { %v203_v0 = vadd.f32 1e-05, %v186_v63 }
 0x129   :  { %v143_v1 = vpop.xlane.xlu1 %142  ;;  %v140_v4 = vpop.xlane.xlu0 %139 }
 0x12a   :  { %325 = vrsqrt.f32 %v203_v0  ;;  %v188_v32 = vmul.f32 0.0625, %v143_v1  ;;  %v187_v5 = vmul.f32 0.0625, %v140_v4 }
 0x12c   :  { %v205_v6 = vadd.f32 1e-05, %v188_v32  ;;  %v204_v7 = vadd.f32 1e-05, %v187_v5 }
 0x12d   :  { %v149_v8 = vpop.xlane.xlu1 %148  ;;  %v146_v9 = vpop.xlane.xlu0 %145 }
 0x12e   :  { %327 = vrsqrt.f32 %v205_v6  ;;  %v190_v10 = vmul.f32 0.0625, %v149_v8  ;;  %v189_v11 = vmul.f32 0.0625, %v146_v9 }
 0x12f   :  { %329 = vrsqrt.f32 %v204_v7 }
 0x130   :  { %v207_v14 = vadd.f32 1e-05, %v190_v10  ;;  %v206_v15 = vadd.f32 1e-05, %v189_v11 }
 0x131   :  { %v155_v18 = vpop.xlane.xlu1 %154  ;;  %v152_v19 = vpop.xlane.xlu0 %151 }
 0x132   :  { %331 = vrsqrt.f32 %v207_v14  ;;  %v192_v22 = vmul.f32 0.0625, %v155_v18  ;;  %v191_v23 = vmul.f32 0.0625, %v152_v19 }
 0x133   :  { %333 = vrsqrt.f32 %v206_v15 }
 0x134   :  { %v326_v26 = vpop.eup %325  ;;  %v209_v30 = vadd.f32 1e-05, %v192_v22  ;;  %v208_v31 = vadd.f32 1e-05, %v191_v23 }
 0x135   :  { %v237_v33 = vmul.f32 %v326_v26, %v486_v38  ;;  %v161_v34 = vpop.xlane.xlu1 %160  ;;  %v158_v35 = vpop.xlane.xlu0 %157 }
 0x136   :  { %335 = vrsqrt.f32 %v209_v30  ;;  %v194_v37 = vmul.f32 0.0625, %v161_v34  ;;  %v193_v20 = vmul.f32 0.0625, %v158_v35 }
 0x137   :  { %v261_v41 = vmul.f32 %v587_v16, %v237_v33  ;;  %337 = vrsqrt.f32 %v208_v31 }
 0x138   :  { %v328_v42 = vpop.eup %327  ;;  %v211_v43 = vadd.f32 1e-05, %v194_v37  ;;  %v210_v44 = vadd.f32 1e-05, %v193_v20 }
 0x139   :  { %v330_v45 = vpop.eup %329  ;;  %v285_v48 = vadd.f32 %v593_v36, %v261_v41  ;;  %v239_v38 = vmul.f32 %v328_v42, %v488_v39  ;;  %v167_v49 = vpop.xlane.xlu1 %166 }
 0x13a   :  { %v164_v24 = vpop.xlane.xlu0 %163  ;;  %v238_v51 = vmul.f32 %v330_v45, %v494_v46  ;;  %339 = vrsqrt.f32 %v211_v43  ;;  %v196_v52 = vmul.f32 0.0625, %v167_v49 }
 0x13b   :  { %v195_v53 = vmul.f32 0.0625, %v164_v24  ;;  %302 = vst.msk [vmem:[%s716_s3] sm:$0xff] %vm31_vm0, %v285_v48  ;;  %v263_v54 = vmul.f32 %v587_v16, %v239_v38  ;;  %341 = vrsqrt.f32 %v210_v44 }
 0x13c   :  { %v332_v55 = vpop.eup %331  ;;  %v262_v58 = vmul.f32 %v587_v16, %v238_v51  ;;  %v213_v29 = vadd.f32 1e-05, %v196_v52 }
 0x13d   :  { %v212_v39 = vadd.f32 1e-05, %v195_v53  ;;  %v334_v59 = vpop.eup %333  ;;  %v287_v60 = vadd.f32 %v593_v36, %v263_v54  ;;  %v241_v46 = vmul.f32 %v332_v55, %v505_v56  ;;  %v173_v61 = vpop.xlane.xlu1 %172 }
 0x13e   :  { %v170_v62 = vpop.xlane.xlu0 %169  ;;  %v286_v63 = vadd.f32 %v593_v36, %v262_v58  ;;  %v240_v0 = vmul.f32 %v334_v59, %v496_v47  ;;  %343 = vrsqrt.f32 %v213_v29  ;;  %v198_v1 = vmul.f32 0.0625, %v173_v61 }
 0x13f   :  { %304 = vst.msk [vmem:[%s716_s3 + $0x10] sm:$0xff] %vm31_vm0, %v287_v60  ;;  %v265_v4 = vmul.f32 %v587_v16, %v241_v46  ;;  %345 = vrsqrt.f32 %v212_v39  ;;  %v197_v32 = vmul.f32 0.0625, %v170_v62 }
 0x140   :  { %v336_v5 = vpop.eup %335  ;;  %303 = vst.msk [vmem:[%s716_s3 + $0x8] sm:$0xff] %vm31_vm0, %v286_v63  ;;  %v264_v56 = vmul.f32 %v587_v16, %v240_v0  ;;  %v215_v47 = vadd.f32 1e-05, %v198_v1 }
 0x141   :  { %v338_v6 = vpop.eup %337  ;;  %v289_v7 = vadd.f32 %v593_v36, %v265_v4  ;;  %v243_v8 = vmul.f32 %v336_v5, %v517_v2  ;;  %v214_v9 = vadd.f32 1e-05, %v197_v32  ;;  %v179_v10 = vpop.xlane.xlu1 %178 }
 0x142   :  { %v176_v11 = vpop.xlane.xlu0 %175  ;;  %v288_v14 = vadd.f32 %v593_v36, %v264_v56  ;;  %v242_v15 = vmul.f32 %v338_v6, %v508_v57  ;;  %347 = vrsqrt.f32 %v215_v47  ;;  %v200_v18 = vmul.f32 0.0625, %v179_v10 }
 0x143   :  { %306 = vst.msk [vmem:[%s716_s3 + $0x20] sm:$0xff] %vm31_vm0, %v289_v7  ;;  %v267_v19 = vmul.f32 %v587_v16, %v243_v8  ;;  %349 = vrsqrt.f32 %v214_v9  ;;  %v199_v22 = vmul.f32 0.0625, %v176_v11 }
 0x144   :  { %v340_v23 = vpop.eup %339  ;;  %305 = vst.msk [vmem:[%s716_s3 + $0x18] sm:$0xff] %vm31_vm0, %v288_v14  ;;  %v266_v2 = vmul.f32 %v587_v16, %v242_v15  ;;  %v217_v57 = vadd.f32 1e-05, %v200_v18 }
 0x145   :  { %v342_v26 = vpop.eup %341  ;;  %v291_v30 = vadd.f32 %v593_v36, %v267_v19  ;;  %v245_v31 = vmul.f32 %v340_v23, %v529_v12  ;;  %v216_v33 = vadd.f32 1e-05, %v199_v22  ;;  %v185_v34 = vpop.xlane.xlu1 %184 }
 0x146   :  { %v182_v35 = vpop.xlane.xlu0 %181  ;;  %v290_v37 = vadd.f32 %v593_v36, %v266_v2  ;;  %v244_v20 = vmul.f32 %v342_v26, %v520_v3  ;;  %351 = vrsqrt.f32 %v217_v57  ;;  %v202_v41 = vmul.f32 0.0625, %v185_v34 }
 0x147   :  { %308 = vst.msk [vmem:[%s716_s3 + $0x30] sm:$0xff] %vm31_vm0, %v291_v30  ;;  %v269_v42 = vmul.f32 %v587_v16, %v245_v31  ;;  %353 = vrsqrt.f32 %v216_v33  ;;  %v201_v43 = vmul.f32 0.0625, %v182_v35 }
 0x148   :  { %v344_v44 = vpop.eup %343  ;;  %307 = vst.msk [vmem:[%s716_s3 + $0x28] sm:$0xff] %vm31_vm0, %v290_v37  ;;  %v268_v12 = vmul.f32 %v587_v16, %v244_v20  ;;  %v219_v3 = vadd.f32 1e-05, %v202_v41 }
 0x149   :  { %v346_v45 = vpop.eup %345  ;;  %v293_v48 = vadd.f32 %v593_v36, %v269_v42  ;;  %v247_v38 = vmul.f32 %v344_v44, %v541_v27  ;;  %v218_v49 = vadd.f32 1e-05, %v201_v43 }
 0x14a   :  { %v292_v24 = vadd.f32 %v593_v36, %v268_v12  ;;  %v246_v51 = vmul.f32 %v346_v45, %v532_v13  ;;  %355 = vrsqrt.f32 %v219_v3 }
 0x14b   :  { %310 = vst.msk [vmem:[%s716_s3 + $0x40] sm:$0xff] %vm31_vm0, %v293_v48  ;;  %v271_v52 = vmul.f32 %v587_v16, %v247_v38  ;;  %357 = vrsqrt.f32 %v218_v49 }
 0x14c   :  { %v348_v53 = vpop.eup %347  ;;  %309 = vst.msk [vmem:[%s716_s3 + $0x38] sm:$0xff] %vm31_vm0, %v292_v24  ;;  %v270_v27 = vmul.f32 %v587_v16, %v246_v51 }
 0x14d   :  { %v350_v54 = vpop.eup %349  ;;  %v295_v13 = vadd.f32 %v593_v36, %v271_v52  ;;  %v249_v55 = vmul.f32 %v348_v53, %v553_v40 }
 0x14e   :  { %v294_v58 = vadd.f32 %v593_v36, %v270_v27  ;;  %v248_v29 = vmul.f32 %v350_v54, %v544_v17 }
 0x14f   :  { %312 = vst.msk [vmem:[%s716_s3 + $0x50] sm:$0xff] %vm31_vm0, %v295_v13  ;;  %v273_v39 = vmul.f32 %v587_v16, %v249_v55 }
 0x150   :  { %v352_v59 = vpop.eup %351  ;;  %311 = vst.msk [vmem:[%s716_s3 + $0x48] sm:$0xff] %vm31_vm0, %v294_v58  ;;  %v272_v60 = vmul.f32 %v587_v16, %v248_v29 }
 0x151   :  { %v354_v40 = vpop.eup %353  ;;  %v297_v46 = vadd.f32 %v593_v36, %v273_v39  ;;  %v251_v17 = vmul.f32 %v352_v59, %v565_v50 }
 0x152   :  { %v296_v61 = vadd.f32 %v593_v36, %v272_v60  ;;  %v250_v62 = vmul.f32 %v354_v40, %v556_v21 }
 0x153   :  { %314 = vst.msk [vmem:[%s716_s3 + $0x60] sm:$0xff] %vm31_vm0, %v297_v46  ;;  %v275_v63 = vmul.f32 %v587_v16, %v251_v17 }
 0x154   :  { %v356_v0 = vpop.eup %355  ;;  %313 = vst.msk [vmem:[%s716_s3 + $0x58] sm:$0xff] %vm31_vm0, %v296_v61  ;;  %v274_v1 = vmul.f32 %v587_v16, %v250_v62 }
 0x155   :  { %v358_v50 = vpop.eup %357  ;;  %v299_v4 = vadd.f32 %v593_v36, %v275_v63  ;;  %v253_v21 = vmul.f32 %v356_v0, %v577_v28 }
 0x156   :  { %v298_v32 = vadd.f32 %v593_v36, %v274_v1  ;;  %v252_v5 = vmul.f32 %v358_v50, %v568_v25 }
 0x157   :  { %316 = vst.msk [vmem:[%s716_s3 + $0x70] sm:$0xff] %vm31_vm0, %v299_v4  ;;  %v277_v56 = vmul.f32 %v587_v16, %v253_v21 }
 0x158   :  { %315 = vst.msk [vmem:[%s716_s3 + $0x68] sm:$0xff] %vm31_vm0, %v298_v32  ;;  %v276_v47 = vmul.f32 %v587_v16, %v252_v5 }
 0x159   :  { %v301_v28 = vadd.f32 %v593_v36, %v277_v56 }
 0x15a   :  { %v300_v6 = vadd.f32 %v593_v36, %v276_v47 }
 0x15b   :  { %318 = vst.msk [vmem:[%s716_s3 + $0x80] sm:$0xff] %vm31_vm0, %v301_v28 }
 0x15c   :  { %317 = vst.msk [vmem:[%s716_s3 + $0x78] sm:$0xff] %vm31_vm0, %v300_v6 }

// kernel: vit_for_clip_forward.37
= control target key start
LH: loop header
LB: loop body
LE: loop exit
PB: predicated region body
PF: predicated region fallthrough
CT: control target
= control target key end

     0   :  { %vm38_vm0 = vcmask 130048   ;;  %vm587_vm1 = vmmov 0   ;;  %vm464_vm2 = vcmask 392192   ;;  %s1006_s0 = inlined_call_operand.vmem [shape: f32[136,16], index: 0, kind: input, shape index: {}]   ;;  %s1007_s3 = inlined_call_operand.vmem [shape: bf16[16,48], index: 3, kind: input, shape index: {}]   ;;  %s1008_s1 = inlined_call_operand.vmem [shape: f32[1,16], index: 1, kind: input, shape index: {}]   ;;  %s1009_s2 = inlined_call_operand.vmem [shape: f32[1,16], index: 2, kind: input, shape index: {}]   ;;  %s1010_s4 = inlined_call_operand.vmem [shape: f32[1,48], index: 4, kind: input, shape index: {}]   ;;  %s1011_s5 = inlined_call_operand.vmem [shape: f32[136,48], index: 5, kind: output, shape index: {}]  }
   0x1   :  { %v21_v0 = vld [vmem:[%s1006_s0] sm:$0xff]  ;;  %v23_v1 = vld [vmem:[%s1006_s0 + $0x10] sm:$0xff]  ;;  %v22_v2 = vld [vmem:[%s1006_s0 + $0x8] sm:$0xff] }
   0x2   :  { %v39_v3 = vsel %vm38_vm0, %v21_v0, 0.0  ;;  %v45_v4 = vsel %vm38_vm0, %v23_v1, 0.0  ;;  %v24_v5 = vld [vmem:[%s1006_s0 + $0x18] sm:$0xff]  ;;  %v42_v6 = vsel %vm38_vm0, %v22_v2, 0.0  ;;  %v637_v8 = vld [vmem:[%s1006_s0 + $0x50] sm:$0xff]  ;;  %v651_v12 = vld [vmem:[%s1006_s0 + $0x20] sm:$0xff] }
   0x3   :  { %40 = vadd.xlane.f32.xlu0 %v39_v3  ;;  %46 = vadd.xlane.f32.xlu1 %v45_v4  ;;  %v48_v7 = vsel %vm38_vm0, %v24_v5, 0.0  ;;  %v642_v9 = vld [vmem:[%s1006_s0 + $0x58] sm:$0xff]  ;;  %v69_v10 = vsel %vm38_vm0, %v637_v8, 0.0  ;;  %v656_v13 = vld [vmem:[%s1006_s0 + $0x28] sm:$0xff]  ;;  %v51_v14 = vsel %vm38_vm0, %v651_v12, 0.0  ;;  %v665_v16 = vld [vmem:[%s1006_s0 + $0x60] sm:$0xff] }
   0x4   :  { %v72_v11 = vsel %vm38_vm0, %v642_v9, 0.0  ;;  %v54_v15 = vsel %vm38_vm0, %v656_v13, 0.0  ;;  %v670_v17 = vld [vmem:[%s1006_s0 + $0x68] sm:$0xff]  ;;  %v75_v18 = vsel %vm38_vm0, %v665_v16, 0.0  ;;  %v679_v20 = vld [vmem:[%s1006_s0 + $0x30] sm:$0xff]  ;;  %v684_v21 = vld [vmem:[%s1006_s0 + $0x38] sm:$0xff] }
   0x5   :  { %v78_v19 = vsel %vm38_vm0, %v670_v17, 0.0  ;;  %v57_v22 = vsel %vm38_vm0, %v679_v20, 0.0  ;;  %v60_v23 = vsel %vm38_vm0, %v684_v21, 0.0  ;;  %v693_v24 = vld [vmem:[%s1006_s0 + $0x70] sm:$0xff]  ;;  %v698_v25 = vld [vmem:[%s1006_s0 + $0x78] sm:$0xff]  ;;  %v707_v28 = vld [vmem:[%s1006_s0 + $0x40] sm:$0xff] }
   0x6   :  { %v81_v26 = vsel %vm38_vm0, %v693_v24, 0.0  ;;  %v84_v27 = vsel %vm38_vm0, %v698_v25, 0.0  ;;  %v712_v29 = vld [vmem:[%s1006_s0 + $0x48] sm:$0xff]  ;;  %v63_v30 = vsel %vm38_vm0, %v707_v28, 0.0  ;;  %v721_v32 = vld [vmem:[%s1006_s0 + $0x80] sm:$0xff] }
   0x7   :  { %43 = vadd.xlane.f32.xlu0 %v42_v6  ;;  %49 = vadd.xlane.f32.xlu1 %v48_v7  ;;  %v66_v31 = vsel %vm38_vm0, %v712_v29, 0.0  ;;  %v87_v33 = vsel %vm38_vm0, %v721_v32, 0.0 }
   0xb   :  { %70 = vadd.xlane.f32.xlu0 %v69_v10  ;;  %73 = vadd.xlane.f32.xlu1 %v72_v11 }
   0xf   :  { %52 = vadd.xlane.f32.xlu0 %v51_v14  ;;  %55 = vadd.xlane.f32.xlu1 %v54_v15 }
  0x13   :  { %76 = vadd.xlane.f32.xlu0 %v75_v18  ;;  %79 = vadd.xlane.f32.xlu1 %v78_v19 }
  0x17   :  { %58 = vadd.xlane.f32.xlu0 %v57_v22  ;;  %61 = vadd.xlane.f32.xlu1 %v60_v23 }
  0x1b   :  { %82 = vadd.xlane.f32.xlu0 %v81_v26  ;;  %85 = vadd.xlane.f32.xlu1 %v84_v27 }
  0x1f   :  { %64 = vadd.xlane.f32.xlu0 %v63_v30  ;;  %67 = vadd.xlane.f32.xlu1 %v66_v31 }
  0x23   :  { %88 = vadd.xlane.f32.xlu0 %v87_v33 }
  0x90   :  { %v41_v34 = vpop.xlane.xlu0 %40  ;;  %v47_v35 = vpop.xlane.xlu1 %46 }
  0x91   :  { %v91_v36 = vmul.f32 0.0625, %v41_v34  ;;  %v93_v37 = vmul.f32 0.0625, %v47_v35 }
  0x93   :  { %v725_v38 = vsub.f32 %v21_v0, %v91_v36  ;;  %v727_v39 = vsub.f32 %v23_v1, %v93_v37 }
  0x94   :  { %v44_v40 = vpop.xlane.xlu0 %43  ;;  %v50_v41 = vpop.xlane.xlu1 %49 }
  0x95   :  { %v92_v42 = vmul.f32 0.0625, %v44_v40  ;;  %v94_v43 = vmul.f32 0.0625, %v50_v41  ;;  %v125_v44 = vmul.f32 %v725_v38, %v725_v38  ;;  %v127_v45 = vmul.f32 %v727_v39, %v727_v39 }
  0x97   :  { %v733_v46 = vsub.f32 %v22_v2, %v92_v42  ;;  %v735_v47 = vsub.f32 %v24_v5, %v94_v43  ;;  %v142_v48 = vsel %vm38_vm0, %v125_v44, 0.0  ;;  %v148_v51 = vsel %vm38_vm0, %v127_v45, 0.0 }
  0x98   :  { %143 = vadd.xlane.f32.xlu1 %v142_v48  ;;  %v71_v49 = vpop.xlane.xlu0 %70  ;;  %v74_v50 = vpop.xlane.xlu1 %73 }
  0x99   :  { %v101_v52 = vmul.f32 0.0625, %v71_v49  ;;  %v102_v53 = vmul.f32 0.0625, %v74_v50  ;;  %v126_v54 = vmul.f32 %v733_v46, %v733_v46  ;;  %v128_v55 = vmul.f32 %v735_v47, %v735_v47 }
  0x9b   :  { %v744_v56 = vsub.f32 %v637_v8, %v101_v52  ;;  %v747_v57 = vsub.f32 %v642_v9, %v102_v53  ;;  %v145_v58 = vsel %vm38_vm0, %v126_v54, 0.0  ;;  %v151_v61 = vsel %vm38_vm0, %v128_v55, 0.0 }
  0x9c   :  { %149 = vadd.xlane.f32.xlu1 %v148_v51  ;;  %146 = vadd.xlane.f32.xlu0 %v145_v58  ;;  %v53_v59 = vpop.xlane.xlu0 %52  ;;  %v56_v60 = vpop.xlane.xlu1 %55 }
  0x9d   :  { %v95_v62 = vmul.f32 0.0625, %v53_v59  ;;  %v96_v63 = vmul.f32 0.0625, %v56_v60  ;;  %v135_v0 = vmul.f32 %v744_v56, %v744_v56  ;;  %v136_v1 = vmul.f32 %v747_v57, %v747_v57 }
  0x9f   :  { %v756_v2 = vsub.f32 %v651_v12, %v95_v62  ;;  %v759_v3 = vsub.f32 %v656_v13, %v96_v63  ;;  %v172_v4 = vsel %vm38_vm0, %v135_v0, 0.0  ;;  %v175_v7 = vsel %vm38_vm0, %v136_v1, 0.0  ;;  %v551_v62 = vld [vmem:[%s1007_s3] sm:$0xff]  }
  0xa0   :  { %152 = vadd.xlane.f32.xlu0 %v151_v61  ;;  %173 = vadd.xlane.f32.xlu1 %v172_v4  ;;  %v77_v5 = vpop.xlane.xlu0 %76  ;;  %v80_v6 = vpop.xlane.xlu1 %79  ;;  %v586_v63 = vmov 0.0  }
  0xa1   :  { %v103_v8 = vmul.f32 0.0625, %v77_v5  ;;  %v104_v9 = vmul.f32 0.0625, %v80_v6  ;;  %v129_v10 = vmul.f32 %v756_v2, %v756_v2  ;;  %v130_v11 = vmul.f32 %v759_v3, %v759_v3  ;;  %509 = vmatprep.subr.bf16.mxu0 %v586_v63  ;;  %547 = vmatprep.subr.bf16.mxu1 %v586_v63 }
  0xa2   :  { %510 = vmatpush3.bf16.msra.mxu0 %v551_v62  ;;  %548 = vmatpush3.bf16.msra.mxu1 %v551_v62 }
  0xa3   :  { %v768_v12 = vsub.f32 %v665_v16, %v103_v8  ;;  %v771_v13 = vsub.f32 %v670_v17, %v104_v9  ;;  %v154_v14 = vsel %vm38_vm0, %v129_v10, 0.0  ;;  %v157_v19 = vsel %vm38_vm0, %v130_v11, 0.0  ;;  %511 = vmatprep.mubr.msk.bf16.mxu0 %vm587_vm1, %v586_v63  ;;  %531 = vmatprep.mubr.msk.bf16.mxu1 %vm587_vm1, %v586_v63 }
  0xa4   :  { %176 = vadd.xlane.f32.xlu0 %v175_v7  ;;  %155 = vadd.xlane.f32.xlu1 %v154_v14  ;;  %v59_v15 = vpop.xlane.xlu0 %58  ;;  %v62_v18 = vpop.xlane.xlu1 %61 }
  0xa5   :  { %v97_v22 = vmul.f32 0.0625, %v59_v15  ;;  %v98_v23 = vmul.f32 0.0625, %v62_v18  ;;  %v137_v26 = vmul.f32 %v768_v12, %v768_v12  ;;  %v138_v16 = vmul.f32 %v771_v13, %v771_v13 }
  0xa7   :  { %v780_v27 = vsub.f32 %v679_v20, %v97_v22  ;;  %v783_v17 = vsub.f32 %v684_v21, %v98_v23  ;;  %v178_v30 = vsel %vm38_vm0, %v137_v26, 0.0  ;;  %v181_v34 = vsel %vm38_vm0, %v138_v16, 0.0 }
  0xa8   :  { %158 = vadd.xlane.f32.xlu0 %v157_v19  ;;  %179 = vadd.xlane.f32.xlu1 %v178_v30  ;;  %v83_v31 = vpop.xlane.xlu0 %82  ;;  %v86_v33 = vpop.xlane.xlu1 %85 }
  0xa9   :  { %v105_v35 = vmul.f32 0.0625, %v83_v31  ;;  %v106_v36 = vmul.f32 0.0625, %v86_v33  ;;  %v131_v37 = vmul.f32 %v780_v27, %v780_v27  ;;  %v132_v20 = vmul.f32 %v783_v17, %v783_v17 }
  0xab   :  { %v792_v40 = vsub.f32 %v693_v24, %v105_v35  ;;  %v795_v21 = vsub.f32 %v698_v25, %v106_v36  ;;  %v160_v41 = vsel %vm38_vm0, %v131_v37, 0.0  ;;  %v163_v44 = vsel %vm38_vm0, %v132_v20, 0.0 }
  0xac   :  { %182 = vadd.xlane.f32.xlu0 %v181_v34  ;;  %161 = vadd.xlane.f32.xlu1 %v160_v41  ;;  %v65_v42 = vpop.xlane.xlu0 %64  ;;  %v68_v43 = vpop.xlane.xlu1 %67 }
  0xad   :  { %v99_v45 = vmul.f32 0.0625, %v65_v42  ;;  %v100_v48 = vmul.f32 0.0625, %v68_v43  ;;  %v139_v49 = vmul.f32 %v792_v40, %v792_v40  ;;  %v140_v24 = vmul.f32 %v795_v21, %v795_v21  ;;  %v836_v43 = vld [vmem:[%s1008_s1] ss:$0 sm:$0xff] }
  0xaf   :  { %v804_v50 = vsub.f32 %v707_v28, %v99_v45  ;;  %v807_v25 = vsub.f32 %v712_v29, %v100_v48  ;;  %v184_v51 = vsel %vm38_vm0, %v139_v49, 0.0  ;;  %v187_v54 = vsel %vm38_vm0, %v140_v24, 0.0 }
  0xb0   :  { %164 = vadd.xlane.f32.xlu0 %v163_v44  ;;  %185 = vadd.xlane.f32.xlu1 %v184_v51  ;;  %v89_v52 = vpop.xlane.xlu0 %88 }
  0xb1   :  { %v107_v53 = vmul.f32 0.0625, %v89_v52  ;;  %v133_v55 = vmul.f32 %v804_v50, %v804_v50  ;;  %v134_v58 = vmul.f32 %v807_v25, %v807_v25 }
  0xb3   :  { %v816_v28 = vsub.f32 %v721_v32, %v107_v53  ;;  %v166_v29 = vsel %vm38_vm0, %v133_v55, 0.0  ;;  %v169_v59 = vsel %vm38_vm0, %v134_v58, 0.0  ;;  %v844_v58 = vld [vmem:[%s1009_s2] ss:$0 sm:$0xff] }
  0xb4   :  { %188 = vadd.xlane.f32.xlu0 %v187_v54  ;;  %167 = vadd.xlane.f32.xlu1 %v166_v29 }
  0xb5   :  { %v141_v60 = vmul.f32 %v816_v28, %v816_v28 }
  0xb7   :  { %v190_v61 = vsel %vm38_vm0, %v141_v60, 0.0 }
  0xb8   :  { %170 = vadd.xlane.f32.xlu0 %v169_v59  ;;  %191 = vadd.xlane.f32.xlu1 %v190_v61 }
 0x125   :  { %v144_v32 = vpop.xlane.xlu1 %143 }
 0x126   :  { %v193_v0 = vmul.f32 0.0625, %v144_v32 }
 0x128   :  { %v210_v1 = vadd.f32 1e-05, %v193_v0 }
 0x129   :  { %v150_v4 = vpop.xlane.xlu1 %149  ;;  %v147_v5 = vpop.xlane.xlu0 %146 }
 0x12a   :  { %552 = vrsqrt.f32 %v210_v1  ;;  %v195_v6 = vmul.f32 0.0625, %v150_v4  ;;  %v194_v7 = vmul.f32 0.0625, %v147_v5 }
 0x12c   :  { %v212_v8 = vadd.f32 1e-05, %v195_v6  ;;  %v211_v9 = vadd.f32 1e-05, %v194_v7 }
 0x12d   :  { %v174_v10 = vpop.xlane.xlu1 %173  ;;  %v153_v11 = vpop.xlane.xlu0 %152 }
 0x12e   :  { %v203_v14 = vmul.f32 0.0625, %v174_v10  ;;  %v196_v15 = vmul.f32 0.0625, %v153_v11  ;;  %554 = vrsqrt.f32 %v211_v9 }
 0x12f   :  { %556 = vrsqrt.f32 %v212_v8 }
 0x130   :  { %v220_v18 = vadd.f32 1e-05, %v203_v14  ;;  %v213_v19 = vadd.f32 1e-05, %v196_v15 }
 0x131   :  { %v156_v22 = vpop.xlane.xlu1 %155  ;;  %v177_v23 = vpop.xlane.xlu0 %176 }
 0x132   :  { %558 = vrsqrt.f32 %v220_v18  ;;  %v197_v26 = vmul.f32 0.0625, %v156_v22  ;;  %v204_v16 = vmul.f32 0.0625, %v177_v23 }
 0x133   :  { %560 = vrsqrt.f32 %v213_v19 }
 0x134   :  { %v553_v30 = vpop.eup %552  ;;  %v221_v31 = vadd.f32 1e-05, %v204_v16  ;;  %v214_v33 = vadd.f32 1e-05, %v197_v26 }
 0x135   :  { %v180_v34 = vpop.xlane.xlu1 %179  ;;  %v159_v35 = vpop.xlane.xlu0 %158  ;;  %v244_v20 = vmul.f32 %v553_v30, %v725_v38 }
 0x136   :  { %v205_v36 = vmul.f32 0.0625, %v180_v34  ;;  %v198_v37 = vmul.f32 0.0625, %v159_v35  ;;  %562 = vrsqrt.f32 %v221_v31 }
 0x137   :  { %564 = vrsqrt.f32 %v214_v33  ;;  %v268_v38 = vmul.f32 %v836_v43, %v244_v20 }
 0x138   :  { %v222_v41 = vadd.f32 1e-05, %v205_v36  ;;  %v215_v42 = vadd.f32 1e-05, %v198_v37  ;;  %v555_v44 = vpop.eup %554 }
 0x139   :  { %v162_v45 = vpop.xlane.xlu1 %161  ;;  %v183_v48 = vpop.xlane.xlu0 %182  ;;  %v245_v24 = vmul.f32 %v555_v44, %v733_v46  ;;  %v292_v4 = vadd.f32 %v844_v58, %v268_v38 }
 0x13a   :  { %v557_v49 = vpop.eup %556  ;;  %566 = vrsqrt.f32 %v222_v41  ;;  %v199_v51 = vmul.f32 0.0625, %v162_v45  ;;  %v206_v52 = vmul.f32 0.0625, %v183_v48 }
 0x13b   :  { %568 = vrsqrt.f32 %v215_v42  ;;  %v269_v55 = vmul.f32 %v836_v43, %v245_v24  ;;  %v246_v59 = vmul.f32 %v557_v49, %v727_v39 }
 0x13c   :  { %v559_v53 = vpop.eup %558  ;;  %v223_v54 = vadd.f32 1e-05, %v206_v52  ;;  %v216_v60 = vadd.f32 1e-05, %v199_v51 }
 0x13d   :  { %v561_v29 = vpop.eup %560  ;;  %v186_v46 = vpop.xlane.xlu1 %185  ;;  %v254_v1 = vmul.f32 %v559_v53, %v744_v56  ;;  %v293_v5 = vadd.f32 %v844_v58, %v269_v55  ;;  %v270_v11 = vmul.f32 %v836_v43, %v246_v59 }
 0x13e   :  { %v165_v61 = vpop.xlane.xlu0 %164  ;;  %v247_v62 = vmul.f32 %v561_v29, %v735_v47  ;;  %v207_v32 = vmul.f32 0.0625, %v186_v46  ;;  %570 = vrsqrt.f32 %v223_v54 }
 0x13f   :  { %v200_v0 = vmul.f32 0.0625, %v165_v61  ;;  %572 = vrsqrt.f32 %v216_v60  ;;  %v309_v39 = vpack.c.bf16 %v293_v5, %v292_v4  ;;  %v278_v19 = vmul.f32 %v836_v43, %v254_v1 }
 0x140   :  { %v224_v6 = vadd.f32 1e-05, %v207_v32  ;;  %v563_v8 = vpop.eup %562  ;;  %v271_v47 = vmul.f32 %v836_v43, %v247_v62  ;;  %v294_v33 = vadd.f32 %v844_v58, %v270_v11 }
 0x141   :  { %v217_v7 = vadd.f32 1e-05, %v200_v0  ;;  %v168_v9 = vpop.xlane.xlu1 %167  ;;  %v255_v14 = vmul.f32 %v563_v8, %v747_v57  ;;  %v565_v18 = vpop.eup %564  ;;  %512 = vmatmul.mubr.msk.bf16.vlgmr.msra.gmra.mrb[0].mxu0 %vm38_vm0, %v309_v39  ;;  %v302_v42 = vadd.f32 %v844_v58, %v278_v19 }
 0x142   :  { %v189_v10 = vpop.xlane.xlu0 %188  ;;  %574 = vrsqrt.f32 %v224_v6  ;;  %v201_v56 = vmul.f32 0.0625, %v168_v9  ;;  %515 = vmatprep.mubr.msk.bf16.mxu0 %vm587_vm1, %v586_v63  ;;  %v295_v34 = vadd.f32 %v844_v58, %v271_v47  ;;  %v248_v41 = vmul.f32 %v565_v18, %v756_v2 }
 0x143   :  { %v208_v15 = vmul.f32 0.0625, %v189_v10  ;;  %576 = vrsqrt.f32 %v217_v7  ;;  %v279_v26 = vmul.f32 %v836_v43, %v255_v14 }
 0x144   :  { %v567_v22 = vpop.eup %566  ;;  %v218_v30 = vadd.f32 1e-05, %v201_v56  ;;  %v310_v24 = vpack.c.bf16 %v295_v34, %v294_v33  ;;  %v272_v2 = vmul.f32 %v836_v43, %v248_v41 }
 0x145   :  { %v225_v23 = vadd.f32 1e-05, %v208_v15  ;;  %v569_v16 = vpop.eup %568  ;;  %v192_v31 = vpop.xlane.xlu1 %191  ;;  %v256_v35 = vmul.f32 %v567_v22, %v768_v12  ;;  %v303_v44 = vadd.f32 %v844_v58, %v279_v26 }
 0x146   :  { %v171_v57 = vpop.xlane.xlu0 %170  ;;  %v249_v36 = vmul.f32 %v569_v16, %v759_v3  ;;  %v209_v37 = vmul.f32 0.0625, %v192_v31  ;;  %v296_v62 = vadd.f32 %v844_v58, %v272_v2 }
 0x147   :  { %v202_v20 = vmul.f32 0.0625, %v171_v57  ;;  %578 = vrsqrt.f32 %v225_v23  ;;  %v314_v51 = vpack.c.bf16 %v303_v44, %v302_v42  ;;  %v280_v3 = vmul.f32 %v836_v43, %v256_v35 }
 0x148   :  { %v226_v45 = vadd.f32 1e-05, %v209_v37  ;;  %v571_v49 = vpop.eup %570  ;;  %580 = vrsqrt.f32 %v218_v30  ;;  %v273_v52 = vmul.f32 %v836_v43, %v249_v36 }
 0x149   :  { %v219_v48 = vadd.f32 1e-05, %v202_v20  ;;  %v257_v12 = vmul.f32 %v571_v49, %v771_v13  ;;  %v573_v38 = vpop.eup %572  ;;  %516 = vmatmul.mubr.msk.bf16.gmra.mrb[4].mxu0 %vm38_vm0, %v310_v24  ;;  %532 = vmatmul.mubr.msk.bf16.vlgmr.msra.gmra.mrb[0].mxu1 %vm38_vm0, %v314_v51  ;;  %v304_v60 = vadd.f32 %v844_v58, %v280_v3 }
 0x14a   :  { %582 = vrsqrt.f32 %v226_v45  ;;  %519 = vmatprep.mubr.msk.bf16.mxu0 %vm587_vm1, %v586_v63  ;;  %535 = vmatprep.mubr.msk.bf16.mxu1 %vm587_vm1, %v586_v63  ;;  %v297_v55 = vadd.f32 %v844_v58, %v273_v52  ;;  %v250_v61 = vmul.f32 %v573_v38, %v780_v27 }
 0x14b   :  { %584 = vrsqrt.f32 %v219_v48  ;;  %v281_v13 = vmul.f32 %v836_v43, %v257_v12 }
 0x14c   :  { %v575_v53 = vpop.eup %574  ;;  %v311_v1 = vpack.c.bf16 %v297_v55, %v296_v62 }
 0x14d   :  { %v577_v54 = vpop.eup %576  ;;  %v258_v29 = vmul.f32 %v575_v53, %v792_v40  ;;  %v305_v46 = vadd.f32 %v844_v58, %v281_v13 }
 0x14e   :  { %v251_v59 = vmul.f32 %v577_v54, %v783_v17  ;;  %v274_v17 = vmul.f32 %v836_v43, %v250_v61 }
 0x14f   :  { %v315_v32 = vpack.c.bf16 %v305_v46, %v304_v60  ;;  %v282_v6 = vmul.f32 %v836_v43, %v258_v29 }
 0x150   :  { %v275_v4 = vmul.f32 %v836_v43, %v251_v59  ;;  %v298_v14 = vadd.f32 %v844_v58, %v274_v17 }
 0x151   :  { %v579_v0 = vpop.eup %578  ;;  %520 = vmatmul.mubr.msk.bf16.gmra.mrb[8].mxu0 %vm38_vm0, %v311_v1  ;;  %536 = vmatmul.mubr.msk.bf16.gmra.mrb[4].mxu1 %vm38_vm0, %v315_v32  ;;  %v306_v10 = vadd.f32 %v844_v58, %v282_v6 }
 0x152   :  { %v259_v5 = vmul.f32 %v579_v0, %v795_v21  ;;  %v581_v40 = vpop.eup %580  ;;  %523 = vmatprep.mubr.msk.bf16.mxu0 %vm587_vm1, %v586_v63  ;;  %539 = vmatprep.mubr.msk.bf16.mxu1 %vm587_vm1, %v586_v63  ;;  %v299_v9 = vadd.f32 %v844_v58, %v275_v4 }
 0x153   :  { %v252_v47 = vmul.f32 %v581_v40, %v804_v50 }
 0x154   :  { %v583_v7 = vpop.eup %582  ;;  %v283_v27 = vmul.f32 %v836_v43, %v259_v5  ;;  %v312_v15 = vpack.c.bf16 %v299_v9, %v298_v14 }
 0x155   :  { %v585_v8 = vpop.eup %584  ;;  %v260_v21 = vmul.f32 %v583_v7, %v816_v28 }
 0x156   :  { %v253_v39 = vmul.f32 %v585_v8, %v807_v25  ;;  %v307_v11 = vadd.f32 %v844_v58, %v283_v27  ;;  %v276_v25 = vmul.f32 %v836_v43, %v252_v47 }
 0x157   :  { %v284_v19 = vmul.f32 %v836_v43, %v260_v21 }
 0x158   :  { %v316_v56 = vpack.c.bf16 %v307_v11, %v306_v10  ;;  %v277_v18 = vmul.f32 %v836_v43, %v253_v39  ;;  %v300_v22 = vadd.f32 %v844_v58, %v276_v25  ;;  %v919_v43 = vld [vmem:[%s1010_s4] ss:$0 sm:$0xff] }
 0x159   :  { %524 = vmatmul.mubr.msk.bf16.gmra.mrb[12].mxu0 %vm38_vm0, %v312_v15  ;;  %v308_v28 = vadd.f32 %v844_v58, %v284_v19 }
 0x15a   :  { %540 = vmatmul.mubr.msk.bf16.gmra.mrb[8].mxu1 %vm38_vm0, %v316_v56  ;;  %527 = vmatprep.mubr.msk.bf16.mxu0 %vm587_vm1, %v586_v63  ;;  %v301_v50 = vadd.f32 %v844_v58, %v277_v18 }
 0x15b   :  { %543 = vmatprep.mubr.msk.bf16.mxu1 %vm587_vm1, %v586_v63  ;;  %v317_v26 = vpack.c.bf16 %v308_v28, %v308_v28 }
 0x15c   :  { %v313_v23 = vpack.c.bf16 %v301_v50, %v300_v22 }
 0x161   :  { %528 = vmatmul.mubr.msk.bf16.gmra.mrb[16].mxu0 %vm38_vm0, %v313_v23 }
 0x162   :  { %544 = vmatmul.mubr.msk.bf16.gmra.mrb[12].mxu1 %vm38_vm0, %v317_v26 }
 0x214   :  { %v394_v16 = vpop.f32.mrb[0].mxu0 }
 0x215   :  { %v395_v63 = vadd.f32 %v919_v43, %v394_v16  ;;  %v513_v30 = vpop.f32.mrb[1].mxu0 }
 0x216   :  { %v397_v31 = vpop.f32.mrb[2].mxu0 }
 0x217   :  { %465 = vst.msk [vmem:[%s1011_s5] sm:$0xff] %vm464_vm2, %v395_v63  ;;  %v398_v58 = vadd.f32 %v919_v43, %v397_v31  ;;  %v514_v57 = vpop.f32.mrb[3].mxu0 }
 0x219   :  { %466 = vst.msk [vmem:[%s1011_s5 + $0x8] sm:$0xff] %vm464_vm2, %v398_v58 }
 0x21c   :  { %v402_v33 = vpop.f32.mrb[4].mxu0  ;;  %v434_v34 = vpop.f32.mrb[0].mxu1 }
 0x21d   :  { %v403_v35 = vadd.f32 %v919_v43, %v402_v33  ;;  %v435_v36 = vadd.f32 %v919_v43, %v434_v34  ;;  %v517_v37 = vpop.f32.mrb[5].mxu0  ;;  %v533_v20 = vpop.f32.mrb[1].mxu1 }
 0x21e   :  { %v405_v41 = vpop.f32.mrb[6].mxu0  ;;  %v437_v42 = vpop.f32.mrb[2].mxu1 }
 0x21f   :  { %467 = vst.msk [vmem:[%s1011_s5 + $0x10] sm:$0xff] %vm464_vm2, %v403_v35  ;;  %475 = vst.msk [vmem:[%s1011_s5 + $0x50] sm:$0xff] %vm464_vm2, %v435_v36  ;;  %v406_v44 = vadd.f32 %v919_v43, %v405_v41  ;;  %v438_v45 = vadd.f32 %v919_v43, %v437_v42  ;;  %v518_v48 = vpop.f32.mrb[7].mxu0  ;;  %v534_v49 = vpop.f32.mrb[3].mxu1 }
 0x221   :  { %468 = vst.msk [vmem:[%s1011_s5 + $0x18] sm:$0xff] %vm464_vm2, %v406_v44  ;;  %476 = vst.msk [vmem:[%s1011_s5 + $0x58] sm:$0xff] %vm464_vm2, %v438_v45 }
 0x224   :  { %v410_v24 = vpop.f32.mrb[8].mxu0  ;;  %v442_v51 = vpop.f32.mrb[4].mxu1 }
 0x225   :  { %v411_v52 = vadd.f32 %v919_v43, %v410_v24  ;;  %v443_v12 = vadd.f32 %v919_v43, %v442_v51  ;;  %v521_v3 = vpop.f32.mrb[9].mxu0  ;;  %v537_v38 = vpop.f32.mrb[5].mxu1 }
 0x226   :  { %v413_v2 = vpop.f32.mrb[10].mxu0  ;;  %v445_v53 = vpop.f32.mrb[6].mxu1 }
 0x227   :  { %469 = vst.msk [vmem:[%s1011_s5 + $0x20] sm:$0xff] %vm464_vm2, %v411_v52  ;;  %477 = vst.msk [vmem:[%s1011_s5 + $0x60] sm:$0xff] %vm464_vm2, %v443_v12  ;;  %v414_v13 = vadd.f32 %v919_v43, %v413_v2  ;;  %v446_v54 = vadd.f32 %v919_v43, %v445_v53  ;;  %v522_v55 = vpop.f32.mrb[11].mxu0  ;;  %v538_v29 = vpop.f32.mrb[7].mxu1 }
 0x229   :  { %470 = vst.msk [vmem:[%s1011_s5 + $0x28] sm:$0xff] %vm464_vm2, %v414_v13  ;;  %478 = vst.msk [vmem:[%s1011_s5 + $0x68] sm:$0xff] %vm464_vm2, %v446_v54 }
 0x22c   :  { %v418_v59 = vpop.f32.mrb[12].mxu0 }
 0x22d   :  { %v450_v60 = vpop.f32.mrb[8].mxu1  ;;  %v419_v46 = vadd.f32 %v919_v43, %v418_v59  ;;  %v525_v62 = vpop.f32.mrb[13].mxu0 }
 0x22e   :  { %v451_v61 = vadd.f32 %v919_v43, %v450_v60  ;;  %v541_v32 = vpop.f32.mrb[9].mxu1  ;;  %v421_v0 = vpop.f32.mrb[14].mxu0 }
 0x22f   :  { %v453_v1 = vpop.f32.mrb[10].mxu1  ;;  %471 = vst.msk [vmem:[%s1011_s5 + $0x30] sm:$0xff] %vm464_vm2, %v419_v46  ;;  %v422_v4 = vadd.f32 %v919_v43, %v421_v0  ;;  %v526_v6 = vpop.f32.mrb[15].mxu0 }
 0x230   :  { %479 = vst.msk [vmem:[%s1011_s5 + $0x70] sm:$0xff] %vm464_vm2, %v451_v61  ;;  %v454_v5 = vadd.f32 %v919_v43, %v453_v1  ;;  %v542_v40 = vpop.f32.mrb[11].mxu1 }
 0x231   :  { %472 = vst.msk [vmem:[%s1011_s5 + $0x38] sm:$0xff] %vm464_vm2, %v422_v4 }
 0x232   :  { %480 = vst.msk [vmem:[%s1011_s5 + $0x78] sm:$0xff] %vm464_vm2, %v454_v5 }
 0x234   :  { %v426_v17 = vpop.f32.mrb[16].mxu0 }
 0x235   :  { %v458_v7 = vpop.f32.mrb[12].mxu1  ;;  %v427_v27 = vadd.f32 %v919_v43, %v426_v17  ;;  %v529_v21 = vpop.f32.mrb[17].mxu0 }
 0x236   :  { %v459_v8 = vadd.f32 %v919_v43, %v458_v7  ;;  %v545_v9 = vpop.f32.mrb[13].mxu1  ;;  %v429_v39 = vpop.f32.mrb[18].mxu0 }
 0x237   :  { %v461_v10 = vpop.f32.mrb[14].mxu1  ;;  %473 = vst.msk [vmem:[%s1011_s5 + $0x40] sm:$0xff] %vm464_vm2, %v427_v27  ;;  %v430_v11 = vadd.f32 %v919_v43, %v429_v39  ;;  %v530_v47 = vpop.f32.mrb[19].mxu0 }
 0x238   :  { %481 = vst.msk [vmem:[%s1011_s5 + $0x80] sm:$0xff] %vm464_vm2, %v459_v8  ;;  %v546_v14 = vpop.f32.mrb[15].mxu1 }
 0x239   :  { %474 = vst.msk [vmem:[%s1011_s5 + $0x48] sm:$0xff] %vm464_vm2, %v430_v11 }

// kernel: vit_for_clip_forward.38
= control target key start
LH: loop header
LB: loop body
LE: loop exit
PB: predicated region body
PF: predicated region fallthrough
CT: control target
= control target key end

     0   :  { %s1429_s12 = smov 0   ;;  %s1431_s13 = smov 0   ;;  %s1793_s0 = inlined_call_operand.vmem [shape: bf16[4,72,8], index: 0, kind: input, shape index: {}]   ;;  %s1794_s1 = inlined_call_operand.vmem [shape: bf16[4,72,8], index: 1, kind: input, shape index: {}]   ;;  %s1795_s2 = inlined_call_operand.vmem [shape: bf16[4,72,8], index: 2, kind: input, shape index: {}]   ;;  %s1796_s3 = inlined_call_operand.vmem [shape: f32[4,72,8], index: 3, kind: output, shape index: {}]  }
   0x1   :  { %s1433_s14 = smov 0  }
   0x2 LB: > { %s32_s15 = sadd.s32 1, %s1399_s13  ;;  %p1168_p0 = scmp.ge.s32.totalorder %s1403_s14, 1  ;;  %s1403_s14 = sphi %s1433_s14, %s13_s14   ;;  %s1399_s13 = sphi %s1431_s13, %s1798_s13   ;;  %s1395_s12 = sphi %s1429_s12, %s1797_s12  }
   0x3   : > { %p34_p1 = scmp.ge.s32.totalorder %s32_s15, 4  ;;  %p199_p2 = scmp.lt.s32.totalorder %s1403_s14, 5 }
   0x5   : > { %s1800_s15 = smov (%p34_p1, %s32_s15), 0  ;;  %p200_p3 = pnand %p1168_p0, %p199_p2 }
   0x6   : > { %p250_p4 = scmp.lt.s32.totalorder (!%p200_p3), %s1395_s12, 3  ;;  %vm313_vm0 = vcmask (!%p200_p3), 64512   ;;  %v1405_v0 = vmov (!%p200_p3), 0.0   ;;  %vm1406_vm1 = vmmov (!%p200_p3), 0   ;;  %vm294_vm2 = vcmask (!%p200_p3), 7168  }
   0x7   : > { %203 = sbr.rel (%p200_p3) target bundleno = 889 (0x379), region = 32  ;;  %1220 = vmatprep.subr.bf16.mxu0 (!%p200_p3), %v1405_v0  ;;  %314 = vst.msk [vmem:[#allocation4] sm:$0xff] (!%p200_p3), %vm313_vm0, %v1405_v0  ;;  %315 = vst.msk [vmem:[#allocation4 + $0x8] sm:$0xff] (!%p200_p3), %vm313_vm0, %v1405_v0  ;;  %1230 = vmatprep.mubr.msk.bf16.mxu0 (!%p200_p3), %vm1406_vm1, %v1405_v0  ;;  %v1407_v16 = vmov (!%p200_p3), -inf   ;;  %v500_v17 = vlaneseq (!%p200_p3)  ;;  %vm523_vm4 = vcmask (!%p200_p3), 588800   ;;  %v1408_v47 = vmov (!%p200_p3), 0  }
   0x8   : > { %316 = vst.msk [vmem:[#allocation4 + $0x10] sm:$0xff] (!%p200_p3), %vm313_vm0, %v1405_v0  ;;  %317 = vst.msk [vmem:[#allocation4 + $0x18] sm:$0xff] (!%p200_p3), %vm313_vm0, %v1405_v0  ;;  %1250 = vmatprep.subr.bf16.mxu1 (!%p200_p3), %v1405_v0  ;;  %1260 = vmatprep.mubr.msk.bf16.mxu1 (!%p200_p3), %vm1406_vm1, %v1405_v0  ;;  %vm842_vm5 = vcmask (!%p200_p3), 1043456  }
   0x9   : > { %318 = vst.msk [vmem:[#allocation4 + $0x20] sm:$0xff] (!%p200_p3), %vm313_vm0, %v1405_v0  ;;  %319 = vst.msk [vmem:[#allocation4 + $0x28] sm:$0xff] (!%p200_p3), %vm313_vm0, %v1405_v0  ;;  %v501_v18 = vand.u32 (!%p200_p3), 127, %v500_v17  ;;  %1310 = vset.pattern.permute.xlu1 (!%p200_p3), %v1408_v47  ;;  %1311 = vset.pattern.permute.xlu0 (!%p200_p3), %v1408_v47 }
   0xa   : > { %320 = vst.msk [vmem:[#allocation4 + $0x30] sm:$0xff] (!%p200_p3), %vm313_vm0, %v1405_v0  ;;  %321 = vst.msk [vmem:[#allocation4 + $0x38] sm:$0xff] (!%p200_p3), %vm313_vm0, %v1405_v0 }
   0xb   : > { %322 = vst.msk [vmem:[#allocation4 + $0x40] sm:$0xff] (!%p200_p3), %vm313_vm0, %v1405_v0  ;;  %vm504_vm3 = vcmp.lt.s32.totalorder (!%p200_p3), %v501_v18, 65 }
   0xc   : > { %295 = vst.msk [vmem:[#allocation2] sm:$0xff] (!%p200_p3), %vm294_vm2, %v1407_v16  ;;  %296 = vst.msk [vmem:[#allocation2 + $0x8] sm:$0xff] (!%p200_p3), %vm294_vm2, %v1407_v16 }
   0xd   : > { %297 = vst.msk [vmem:[#allocation2 + $0x10] sm:$0xff] (!%p200_p3), %vm294_vm2, %v1407_v16  ;;  %298 = vst.msk [vmem:[#allocation2 + $0x18] sm:$0xff] (!%p200_p3), %vm294_vm2, %v1407_v16 }
   0xe   : > { %s1802_s12 = smov (!%p250_p4, %s1395_s12), 3  ;;  %299 = vst.msk [vmem:[#allocation2 + $0x20] sm:$0xff] %vm294_vm2, %v1407_v16  ;;  %300 = vst.msk [vmem:[#allocation2 + $0x28] sm:$0xff] %vm294_vm2, %v1407_v16 }
   0xf   : > { %s1475_s16 = smul.u32 36, %s1802_s12  ;;  %301 = vst.msk [vmem:[#allocation2 + $0x30] sm:$0xff] %vm294_vm2, %v1407_v16  ;;  %302 = vst.msk [vmem:[#allocation2 + $0x38] sm:$0xff] %vm294_vm2, %v1407_v16 }
  0x10   : > { %303 = vst.msk [vmem:[#allocation2 + $0x40] sm:$0xff] %vm294_vm2, %v1407_v16  ;;  %304 = vst.msk [vmem:[#allocation3] sm:$0xff] %vm294_vm2, %v1405_v0  ;;  %s1281_s26 = smul.u32 72, %s1802_s12 }
  0x11   : > { %s267_s19 = scalar_lea.vmem %s1794_s1, %s1475_s16  ;;  %s257_s22 = scalar_lea.vmem %s1793_s0, %s1475_s16  ;;  %305 = vst.msk [vmem:[#allocation3 + $0x8] sm:$0xff] %vm294_vm2, %v1405_v0  ;;  %306 = vst.msk [vmem:[#allocation3 + $0x10] sm:$0xff] %vm294_vm2, %v1405_v0 }
  0x12   : > { %v1312_v1 = vld [vmem:[%s267_s19] sm:$0xff]   ;;  %v1313_v3 = vld [vmem:[%s267_s19 + $0x8] sm:$0xff]   ;;  %v1314_v5 = vld [vmem:[%s267_s19 + $0x10] sm:$0xff]   ;;  %307 = vst.msk [vmem:[#allocation3 + $0x18] sm:$0xff] %vm294_vm2, %v1405_v0  ;;  %s1590_s25 = scalar_lea.vmem %s1795_s2, %s1475_s16  ;;  %s1764_s29 = scalar_lea.vmem %s1796_s3, %s1281_s26 }
  0x13   : > { %v404_v2 = vsel %vm313_vm0, %v1312_v1, 0  ;;  %v407_v4 = vsel %vm313_vm0, %v1313_v3, 0  ;;  %v410_v6 = vsel %vm313_vm0, %v1314_v5, 0  ;;  %v1315_v7 = vld [vmem:[%s267_s19 + $0x18] sm:$0xff]   ;;  %v1316_v9 = vld [vmem:[%s267_s19 + $0x20] ss:$0 sps:$4 sm:$0xff]  }
  0x14   : > { %1221 = vmatpush3.bf16.xpose.msra.mxu0 %v404_v2  ;;  %v413_v8 = vsel %vm313_vm0, %v1315_v7, 0  ;;  %v416_v10 = vsel %vm313_vm0, %v1316_v9, 0  ;;  %v1317_v11 = vld [vmem:[%s257_s22] sm:$0xff]   ;;  %v1318_v12 = vld [vmem:[%s257_s22 + $0x8] sm:$0xff]   ;;  %v1319_v13 = vld [vmem:[%s257_s22 + $0x10] sm:$0xff]   ;;  %308 = vst.msk [vmem:[#allocation3 + $0x20] sm:$0xff] %vm294_vm2, %v1405_v0 }
  0x15   : > { %1222 = vmatprep.subr.bf16.mxu0 %v1405_v0  ;;  %v1320_v14 = vld [vmem:[%s257_s22 + $0x18] sm:$0xff]   ;;  %v1321_v15 = vld [vmem:[%s257_s22 + $0x20] ss:$0 sps:$4 sm:$0xff]   ;;  %309 = vst.msk [vmem:[#allocation3 + $0x28] sm:$0xff] %vm294_vm2, %v1405_v0  ;;  %310 = vst.msk [vmem:[#allocation3 + $0x30] sm:$0xff] %vm294_vm2, %v1405_v0 }
  0x16   : > { %311 = vst.msk [vmem:[#allocation3 + $0x38] sm:$0xff] %vm294_vm2, %v1405_v0  ;;  %312 = vst.msk [vmem:[#allocation3 + $0x40] sm:$0xff] %vm294_vm2, %v1405_v0  ;;  %v1584_v7 = vld [vmem:[#allocation2 + $0x8] sm:$0xff]  ;;  %v1322_v9 = vld [vmem:[%s1590_s25] sm:$0xff]  }
  0x17   : > { %1251 = vmatpush3.bf16.msra.mxu1 %v1322_v9  ;;  %v1613_v17 = vld [vmem:[#allocation2 + $0x18] sm:$0xff]  ;;  %v1673_v47 = vld [vmem:[#allocation2 + $0x40] sm:$0xff] }
  0x18   : > { %1252 = vmatprep.subr.bf16.mxu1 %v1405_v0 }
  0x1c   : > { %1223 = vmatpush3.bf16.xpose.msra.mxu0 %v407_v4  ;;  %v1579_v4 = vld [vmem:[#allocation2] sm:$0xff] }
  0x1d   : > { %1224 = vmatprep.subr.bf16.mxu0 %v1405_v0 }
  0x24   : > { %1225 = vmatpush3.bf16.xpose.msra.mxu0 %v410_v6 }
  0x25   : > { %1226 = vmatprep.subr.bf16.mxu0 %v1405_v0 }
  0x2c   : > { %1227 = vmatpush3.bf16.xpose.msra.mxu0 %v413_v8 }
  0x2d   : > { %1228 = vmatprep.subr.bf16.mxu0 %v1405_v0 }
  0x34   : > { %1229 = vmatpush3.bf16.xpose.msra.mxu0 %v416_v10 }
  0x3b   : > { %1231 = vmatmul.mubr.msk.bf16.vlgmr.msra.gmra.mrb[0].mxu0 %vm313_vm0, %v1317_v11 }
  0x3c   : > { %1234 = vmatprep.mubr.msk.bf16.mxu0 %vm1406_vm1, %v1405_v0 }
  0x43   : > { %1235 = vmatmul.mubr.msk.bf16.gmra.mrb[4].mxu0 %vm313_vm0, %v1318_v12  ;;  %v1601_v12 = vld [vmem:[#allocation2 + $0x10] sm:$0xff] }
  0x44   : > { %1238 = vmatprep.mubr.msk.bf16.mxu0 %vm1406_vm1, %v1405_v0 }
  0x4b   : > { %1239 = vmatmul.mubr.msk.bf16.gmra.mrb[8].mxu0 %vm313_vm0, %v1319_v13 }
  0x4c   : > { %1242 = vmatprep.mubr.msk.bf16.mxu0 %vm1406_vm1, %v1405_v0 }
  0x53   : > { %1243 = vmatmul.mubr.msk.bf16.gmra.mrb[12].mxu0 %vm313_vm0, %v1320_v14  ;;  %v1323_v14 = vld [vmem:[%s1590_s25 + $0x8] sm:$0xff]  }
  0x54   : > { %1246 = vmatprep.mubr.msk.bf16.mxu0 %vm1406_vm1, %v1405_v0  ;;  %1253 = vmatpush3.bf16.msra.mxu1 %v1323_v14 }
  0x55   : > { %1254 = vmatprep.subr.bf16.mxu1 %v1405_v0 }
  0x5b   : > { %1247 = vmatmul.mubr.msk.bf16.gmra.mrb[16].mxu0 %vm313_vm0, %v1321_v15 }
 0x10e   : > { %v452_v19 = vpop.f32.mrb[0].mxu0 }
 0x10f   : > { %v490_v20 = vmul.f32 0.35355338, %v452_v19  ;;  %v1232_v21 = vpop.f32.mrb[1].mxu0  ;;  %v1324_v19 = vld [vmem:[%s1590_s25 + $0x10] sm:$0xff]  }
 0x110   : > { %v455_v22 = vpop.f32.mrb[2].mxu0  ;;  %1255 = vmatpush3.bf16.msra.mxu1 %v1324_v19 }
 0x111   : > { %v491_v23 = vmul.f32 0.35355338, %v455_v22  ;;  %v1233_v24 = vpop.f32.mrb[3].mxu0  ;;  %v1535_v25 = vsel %vm504_vm3, %v490_v20, -inf  ;;  %v1625_v22 = vld [vmem:[#allocation2 + $0x20] sm:$0xff]  ;;  %1256 = vmatprep.subr.bf16.mxu1 %v1405_v0 }
 0x112   : > { %v524_v26 = vsel %vm523_vm4, %v1535_v25, -inf  ;;  %v1325_v24 = vld [vmem:[%s1590_s25 + $0x18] sm:$0xff]  }
 0x113   : > { %525 = vmax.xlane.f32.xlu0 %v524_v26  ;;  %v1540_v27 = vsel %vm504_vm3, %v491_v23, -inf }
 0x114   : > { %v527_v29 = vsel %vm523_vm4, %v1540_v27, -inf  ;;  %1257 = vmatpush3.bf16.msra.mxu1 %v1325_v24 }
 0x115   : > { %1258 = vmatprep.subr.bf16.mxu1 %v1405_v0 }
 0x116   : > { %v460_v28 = vpop.f32.mrb[4].mxu0 }
 0x117   : > { %v492_v30 = vmul.f32 0.35355338, %v460_v28  ;;  %528 = vmax.xlane.f32.xlu0 %v527_v29  ;;  %v1236_v31 = vpop.f32.mrb[5].mxu0  ;;  %v1634_v28 = vld [vmem:[#allocation2 + $0x28] sm:$0xff] }
 0x118   : > { %v463_v32 = vpop.f32.mrb[6].mxu0  ;;  %v1326_v31 = vld [vmem:[%s1590_s25 + $0x20] ss:$0 sps:$4 sm:$0xff]  }
 0x119   : > { %v493_v33 = vmul.f32 0.35355338, %v463_v32  ;;  %v1237_v34 = vpop.f32.mrb[7].mxu0  ;;  %v1545_v35 = vsel %vm504_vm3, %v492_v30, -inf }
 0x11a   : > { %v530_v36 = vsel %vm523_vm4, %v1545_v35, -inf  ;;  %v844_v34 = vsel %vm842_vm5, %v1326_v31, 0 }
 0x11b   : > { %531 = vmax.xlane.f32.xlu1 %v530_v36  ;;  %v1550_v37 = vsel %vm504_vm3, %v493_v33, -inf  ;;  %1259 = vmatpush3.bf16.msra.mxu1 %v844_v34 }
 0x11c   : > { %v533_v39 = vsel %vm523_vm4, %v1550_v37, -inf }
 0x11e   : > { %v468_v38 = vpop.f32.mrb[8].mxu0 }
 0x11f   : > { %v494_v40 = vmul.f32 0.35355338, %v468_v38  ;;  %534 = vmax.xlane.f32.xlu1 %v533_v39  ;;  %v1240_v41 = vpop.f32.mrb[9].mxu0  ;;  %v1653_v38 = vld [vmem:[#allocation2 + $0x30] sm:$0xff] }
 0x120   : > { %v471_v42 = vpop.f32.mrb[10].mxu0 }
 0x121   : > { %v495_v43 = vmul.f32 0.35355338, %v471_v42  ;;  %v1241_v44 = vpop.f32.mrb[11].mxu0  ;;  %v1555_v45 = vsel %vm504_vm3, %v494_v40, -inf  ;;  %v1656_v40 = vld [vmem:[#allocation2 + $0x38] sm:$0xff] }
 0x122   : > { %v536_v46 = vsel %vm523_vm4, %v1555_v45, -inf }
 0x123   : > { %537 = vmax.xlane.f32.xlu0 %v536_v46  ;;  %v1560_v48 = vsel %vm504_vm3, %v495_v43, -inf }
 0x124   : > { %v539_v49 = vsel %vm523_vm4, %v1560_v48, -inf }
 0x125   : > { %540 = vmax.xlane.f32.xlu1 %v539_v49 }
 0x126   : > { %v476_v50 = vpop.f32.mrb[12].mxu0 }
 0x127   : > { %v496_v51 = vmul.f32 0.35355338, %v476_v50  ;;  %v1244_v52 = vpop.f32.mrb[13].mxu0 }
 0x128   : > { %v479_v53 = vpop.f32.mrb[14].mxu0 }
 0x129   : > { %v497_v54 = vmul.f32 0.35355338, %v479_v53  ;;  %v1245_v55 = vpop.f32.mrb[15].mxu0  ;;  %v1565_v56 = vsel %vm504_vm3, %v496_v51, -inf }
 0x12a   : > { %v542_v57 = vsel %vm523_vm4, %v1565_v56, -inf }
 0x12b   : > { %543 = vmax.xlane.f32.xlu0 %v542_v57  ;;  %v1570_v58 = vsel %vm504_vm3, %v497_v54, -inf }
 0x12c   : > { %v545_v59 = vsel %vm523_vm4, %v1570_v58, -inf }
 0x12d   : > { %546 = vmax.xlane.f32.xlu1 %v545_v59 }
 0x12e   : > { %v484_v60 = vpop.f32.mrb[16].mxu0 }
 0x12f   : > { %v498_v61 = vmul.f32 0.35355338, %v484_v60  ;;  %v1248_v62 = vpop.f32.mrb[17].mxu0 }
 0x130   : > { %v487_v63 = vpop.f32.mrb[18].mxu0 }
 0x131   : > { %v1249_v1 = vpop.f32.mrb[19].mxu0  ;;  %v1575_v2 = vsel %vm504_vm3, %v498_v61, -inf }
 0x132   : > { %v548_v3 = vsel %vm523_vm4, %v1575_v2, -inf }
 0x133   : > { %549 = vmax.xlane.f32.xlu0 %v548_v3 }
 0x1a0   : > { %v526_v5 = vpop.xlane.xlu0 %525 }
 0x1a1   : > { %v1582_v6 = vmax.f32 %v1579_v4, %v526_v5 }
 0x1a3   : > { %v560_v8 = vsub.f32 %v1579_v4, %v1582_v6  ;;  %936 = vst.msk [vmem:[#allocation2] sm:$0xff] %vm294_vm2, %v1582_v6  ;;  %589 = vperm.xlu1 %1310, %v1582_v6  }
 0x1a4   : > { %v529_v10 = vpop.xlane.xlu0 %528 }
 0x1a5   : > { %v1599_v11 = vmax.f32 %v1584_v7, %v529_v10 }
 0x1a7   : > { %v561_v13 = vsub.f32 %v1584_v7, %v1599_v11  ;;  %937 = vst.msk [vmem:[#allocation2 + $0x8] sm:$0xff] %vm294_vm2, %v1599_v11  ;;  %594 = vperm.xlu0 %1311, %v1599_v11  }
 0x1a8   : > { %v532_v15 = vpop.xlane.xlu1 %531 }
 0x1a9   : > { %v1611_v16 = vmax.f32 %v1601_v12, %v532_v15 }
 0x1ab   : > { %v562_v18 = vsub.f32 %v1601_v12, %v1611_v16  ;;  %938 = vst.msk [vmem:[#allocation2 + $0x10] sm:$0xff] %vm294_vm2, %v1611_v16  ;;  %599 = vperm.xlu1 %1310, %v1611_v16  }
 0x1ac   : > { %v535_v20 = vpop.xlane.xlu1 %534 }
 0x1ad   : > { %v1623_v21 = vmax.f32 %v1613_v17, %v535_v20 }
 0x1af   : > { %v563_v23 = vsub.f32 %v1613_v17, %v1623_v21  ;;  %939 = vst.msk [vmem:[#allocation2 + $0x18] sm:$0xff] %vm294_vm2, %v1623_v21  ;;  %604 = vperm.xlu1 %1310, %v1623_v21  }
 0x1b0   : > { %v538_v26 = vpop.xlane.xlu0 %537 }
 0x1b1   : > { %v1637_v29 = vmax.f32 %v1625_v22, %v538_v26  ;;  %v575_v4 = vmul.f32 1.442695, %v563_v23 }
 0x1b2   : > { %v541_v30 = vpop.xlane.xlu1 %540 }
 0x1b3   : > { %v564_v32 = vsub.f32 %v1625_v22, %v1637_v29  ;;  %940 = vst.msk [vmem:[#allocation2 + $0x20] sm:$0xff] %vm294_vm2, %v1637_v29  ;;  %v1646_v33 = vmax.f32 %v1634_v28, %v541_v30  ;;  %609 = vperm.xlu1 %1310, %v1637_v29  }
 0x1b5   : > { %v565_v36 = vsub.f32 %v1634_v28, %v1646_v33  ;;  %941 = vst.msk [vmem:[#allocation2 + $0x28] sm:$0xff] %vm294_vm2, %v1646_v33 }
 0x1b7   : > { %614 = vperm.xlu1 %1310, %v1646_v33   ;;  %v579_v6 = vmul.f32 1.442695, %v565_v36 }
 0x1b8   : > { %v544_v39 = vpop.xlane.xlu0 %543 }
 0x1b9   : > { %v1659_v41 = vmax.f32 %v1653_v38, %v544_v39 }
 0x1ba   : > { %v547_v42 = vpop.xlane.xlu1 %546 }
 0x1bb   : > { %v566_v43 = vsub.f32 %v1653_v38, %v1659_v41  ;;  %942 = vst.msk [vmem:[#allocation2 + $0x30] sm:$0xff] %vm294_vm2, %v1659_v41  ;;  %v1666_v44 = vmax.f32 %v1656_v40, %v547_v42  ;;  %619 = vperm.xlu1 %1310, %v1659_v41   ;;  %v660_v38 = vld [vmem:[#allocation3 + $0x8] sm:$0xff] }
 0x1bd   : > { %v567_v46 = vsub.f32 %v1656_v40, %v1666_v44  ;;  %943 = vst.msk [vmem:[#allocation2 + $0x38] sm:$0xff] %vm294_vm2, %v1666_v44  ;;  %v581_v7 = vmul.f32 1.442695, %v566_v43 }
 0x1bf   : > { %624 = vperm.xlu1 %1310, %v1666_v44   ;;  %v583_v16 = vmul.f32 1.442695, %v567_v46  ;;  %v661_v44 = vld [vmem:[#allocation3 + $0x10] sm:$0xff] }
 0x1c0   : > { %v550_v49 = vpop.xlane.xlu0 %549 }
 0x1c1   : > { %v1677_v50 = vmax.f32 %v1673_v47, %v550_v49 }
 0x1c3   : > { %v568_v51 = vsub.f32 %v1673_v47, %v1677_v50  ;;  %944 = vst.msk [vmem:[#allocation2 + $0x40] sm:$0xff] %vm294_vm2, %v1677_v50  ;;  %629 = vperm.xlu1 %1310, %v1677_v50  }
 0x222   : > { %v590_v52 = vpop.permute.xlu1 %589 }
 0x223   : > { %v632_v53 = vsub.f32 %v1535_v25, %v590_v52 }
 0x225   : > { %v641_v54 = vmul.f32 1.442695, %v632_v53 }
 0x226   : > { %v595_v55 = vpop.permute.xlu0 %594 }
 0x227   : > { %1327 = vpow2.f32 %v641_v54  ;;  %v633_v57 = vsub.f32 %v1540_v27, %v595_v55 }
 0x229   : > { %v643_v59 = vmul.f32 1.442695, %v633_v57 }
 0x22a   : > { %v600_v60 = vpop.permute.xlu1 %599 }
 0x22b   : > { %1329 = vpow2.f32 %v643_v59  ;;  %v634_v61 = vsub.f32 %v1545_v35, %v600_v60 }
 0x22d   : > { %v645_v62 = vmul.f32 1.442695, %v634_v61 }
 0x22e   : > { %v605_v63 = vpop.permute.xlu1 %604 }
 0x22f   : > { %1331 = vpow2.f32 %v645_v62  ;;  %v635_v1 = vsub.f32 %v1550_v37, %v605_v63 }
 0x231   : > { %v1328_v3 = vpop.eup %1327  ;;  %v647_v5 = vmul.f32 1.442695, %v635_v1 }
 0x232   : > { %v610_v9 = vpop.permute.xlu1 %609  ;;  %v677_v25 = vsel %vm523_vm4, %v1328_v3, 0.0 }
 0x233   : > { %1333 = vpow2.f32 %v647_v5  ;;  %v636_v10 = vsub.f32 %v1555_v45, %v610_v9  ;;  %678 = vadd.xlane.f32.xlu1 %v677_v25  ;;  %v569_v5 = vmul.f32 1.442695, %v560_v8  ;;  %v573_v25 = vmul.f32 1.442695, %v562_v18 }
 0x234   : > { %v577_v8 = vmul.f32 1.442695, %v564_v32  ;;  %v659_v32 = vld [vmem:[#allocation3] sm:$0xff] }
 0x235   : > { %v1330_v27 = vpop.eup %1329  ;;  %v649_v14 = vmul.f32 1.442695, %v636_v10 }
 0x236   : > { %v615_v15 = vpop.permute.xlu1 %614  ;;  %v680_v19 = vsel %vm523_vm4, %v1330_v27, 0.0  ;;  %v786_v35 = vpack.c.bf16 %v1330_v27, %v1328_v3 }
 0x237   : > { %1335 = vpow2.f32 %v649_v14  ;;  %v637_v20 = vsub.f32 %v1560_v48, %v615_v15  ;;  %681 = vadd.xlane.f32.xlu0 %v680_v19 }
 0x238   : > { %1261 = vmatmul.mubr.msk.bf16.vlgmr.msra.gmra.mrb[0].mxu1 %vm523_vm4, %v786_v35  ;;  %v663_v35 = vld [vmem:[#allocation3 + $0x20] sm:$0xff] }
 0x239   : > { %v1332_v37 = vpop.eup %1331  ;;  %v651_v24 = vmul.f32 1.442695, %v637_v20  ;;  %1264 = vmatprep.mubr.msk.bf16.mxu1 %vm1406_vm1, %v1405_v0 }
 0x23a   : > { %v620_v26 = vpop.permute.xlu1 %619  ;;  %v683_v45 = vsel %vm523_vm4, %v1332_v37, 0.0 }
 0x23b   : > { %1337 = vpow2.f32 %v651_v24  ;;  %v638_v30 = vsub.f32 %v1565_v56, %v620_v26  ;;  %684 = vadd.xlane.f32.xlu0 %v683_v45  ;;  %v664_v45 = vld [vmem:[#allocation3 + $0x28] sm:$0xff] }
 0x23d   : > { %v1334_v31 = vpop.eup %1333  ;;  %v653_v34 = vmul.f32 1.442695, %v638_v30 }
 0x23e   : > { %v625_v39 = vpop.permute.xlu1 %624  ;;  %v686_v48 = vsel %vm523_vm4, %v1334_v31, 0.0  ;;  %v787_v42 = vpack.c.bf16 %v1334_v31, %v1332_v37 }
 0x23f   : > { %1339 = vpow2.f32 %v653_v34  ;;  %v639_v49 = vsub.f32 %v1570_v58, %v625_v39  ;;  %687 = vadd.xlane.f32.xlu1 %v686_v48  ;;  %v665_v48 = vld [vmem:[#allocation3 + $0x30] sm:$0xff] }
 0x240   : > { %1265 = vmatmul.mubr.msk.bf16.gmra.mrb[4].mxu1 %vm523_vm4, %v787_v42 }
 0x241   : > { %v1336_v52 = vpop.eup %1335  ;;  %v655_v53 = vmul.f32 1.442695, %v639_v49  ;;  %1268 = vmatprep.mubr.msk.bf16.mxu1 %vm1406_vm1, %v1405_v0 }
 0x242   : > { %v630_v54 = vpop.permute.xlu1 %629  ;;  %v689_v56 = vsel %vm523_vm4, %v1336_v52, 0.0 }
 0x243   : > { %1341 = vpow2.f32 %v655_v53  ;;  %v640_v55 = vsub.f32 %v1575_v2, %v630_v54  ;;  %690 = vadd.xlane.f32.xlu0 %v689_v56  ;;  %v666_v56 = vld [vmem:[#allocation3 + $0x38] sm:$0xff] }
 0x245   : > { %v1338_v57 = vpop.eup %1337  ;;  %v657_v59 = vmul.f32 1.442695, %v640_v55 }
 0x246   : > { %v692_v60 = vsel %vm523_vm4, %v1338_v57, 0.0  ;;  %v788_v58 = vpack.c.bf16 %v1338_v57, %v1336_v52 }
 0x247   : > { %1343 = vpow2.f32 %v657_v59  ;;  %693 = vadd.xlane.f32.xlu1 %v692_v60 }
 0x248   : > { %1269 = vmatmul.mubr.msk.bf16.gmra.mrb[8].mxu1 %vm523_vm4, %v788_v58  ;;  %1345 = vpow2.f32 %v569_v5 }
 0x249   : > { %v1340_v61 = vpop.eup %1339  ;;  %1272 = vmatprep.mubr.msk.bf16.mxu1 %vm1406_vm1, %v1405_v0  ;;  %1347 = vpow2.f32 %v573_v25 }
 0x24a   : > { %v695_v62 = vsel %vm523_vm4, %v1340_v61, 0.0  ;;  %1349 = vpow2.f32 %v575_v4 }
 0x24b   : > { %696 = vadd.xlane.f32.xlu0 %v695_v62 }
 0x24d   : > { %v1342_v63 = vpop.eup %1341 }
 0x24e   : > { %v698_v2 = vsel %vm523_vm4, %v1342_v63, 0.0  ;;  %v789_v1 = vpack.c.bf16 %v1342_v63, %v1340_v61  ;;  %v667_v61 = vld [vmem:[#allocation3 + $0x40] sm:$0xff] }
 0x24f   : > { %699 = vadd.xlane.f32.xlu1 %v698_v2 }
 0x250   : > { %1273 = vmatmul.mubr.msk.bf16.gmra.mrb[12].mxu1 %vm523_vm4, %v789_v1 }
 0x251   : > { %v1344_v3 = vpop.eup %1343  ;;  %1276 = vmatprep.mubr.msk.bf16.mxu1 %vm1406_vm1, %v1405_v0  ;;  %v571_v0 = vmul.f32 1.442695, %v561_v13  ;;  %v585_v13 = vmul.f32 1.442695, %v568_v51  ;;  %v662_v51 = vld [vmem:[#allocation3 + $0x18] sm:$0xff] }
 0x252   : > { %v701_v9 = vsel %vm523_vm4, %v1344_v3, 0.0  ;;  %v790_v10 = vpack.c.bf16 %v1344_v3, %v1344_v3  ;;  %v1346_v12 = vpop.eup %1345 }
 0x253   : > { %702 = vadd.xlane.f32.xlu0 %v701_v9  ;;  %1351 = vpow2.f32 %v571_v0  ;;  %v1348_v11 = vpop.eup %1347  ;;  %v668_v33 = vmul.f32 %v1346_v12, %v659_v32 }
 0x254   : > { %1353 = vpow2.f32 %v579_v6  ;;  %v1350_v17 = vpop.eup %1349  ;;  %v670_v47 = vmul.f32 %v1348_v11, %v661_v44 }
 0x255   : > { %1355 = vpow2.f32 %v577_v8  ;;  %v671_v15 = vmul.f32 %v1350_v17, %v662_v51 }
 0x256   : > { %1357 = vpow2.f32 %v583_v16 }
 0x257   : > { %1359 = vpow2.f32 %v581_v7 }
 0x258   : > { %1277 = vmatmul.mubr.msk.bf16.gmra.mrb[16].mxu1 %vm523_vm4, %v790_v10  ;;  %1361 = vpow2.f32 %v585_v13  ;;  %v724_v13 = vld [vmem:[#allocation4 + $0x8] sm:$0xff] }
 0x25d   : > { %v1352_v18 = vpop.eup %1351 }
 0x25e   : > { %v1354_v21 = vpop.eup %1353  ;;  %v669_v41 = vmul.f32 %v1352_v18, %v660_v38  ;;  %v725_v38 = vld [vmem:[#allocation4 + $0x10] sm:$0xff] }
 0x25f   : > { %v1356_v22 = vpop.eup %1355  ;;  %v673_v34 = vmul.f32 %v1354_v21, %v664_v45 }
 0x260   : > { %734 = vperm.xlu1 %1310, %v1346_v12   ;;  %v1358_v23 = vpop.eup %1357  ;;  %v672_v24 = vmul.f32 %v1356_v22, %v663_v35  ;;  %v728_v35 = vld [vmem:[#allocation4 + $0x28] sm:$0xff] }
 0x261   : > { %v1360_v28 = vpop.eup %1359  ;;  %v675_v60 = vmul.f32 %v1358_v23, %v666_v56 }
 0x262   : > { %v1362_v29 = vpop.eup %1361  ;;  %v674_v53 = vmul.f32 %v1360_v28, %v665_v48  ;;  %v729_v48 = vld [vmem:[#allocation4 + $0x30] sm:$0xff] }
 0x263   : > { %v676_v1 = vmul.f32 %v1362_v29, %v667_v61  ;;  %v731_v61 = vld [vmem:[#allocation4 + $0x40] sm:$0xff] }
 0x264   : > { %744 = vperm.xlu1 %1310, %v1348_v11   ;;  %v723_v11 = vld [vmem:[#allocation4] sm:$0xff] }
 0x268   : > { %749 = vperm.xlu1 %1310, %v1350_v17  }
 0x269   : > { %739 = vperm.xlu0 %1311, %v1352_v18  }
 0x26c   : > { %759 = vperm.xlu1 %1310, %v1354_v21  }
 0x26d   : > { %754 = vperm.xlu0 %1311, %v1356_v22  }
 0x270   : > { %769 = vperm.xlu1 %1310, %v1358_v23  }
 0x271   : > { %764 = vperm.xlu0 %1311, %v1360_v28  }
 0x275   : > { %774 = vperm.xlu0 %1311, %v1362_v29  }
 0x2c0   : > { %v679_v36 = vpop.xlane.xlu1 %678 }
 0x2c1   : > { %v704_v40 = vadd.f32 %v679_v36, %v668_v33 }
 0x2c3   : > { %714 = vst.msk [vmem:[#allocation3] sm:$0xff] %vm294_vm2, %v704_v40  ;;  %v726_v40 = vld [vmem:[#allocation4 + $0x18] sm:$0xff] }
 0x2c4   : > { %v682_v43 = vpop.xlane.xlu0 %681 }
 0x2c5   : > { %v705_v46 = vadd.f32 %v682_v43, %v669_v41 }
 0x2c7   : > { %715 = vst.msk [vmem:[#allocation3 + $0x8] sm:$0xff] %vm294_vm2, %v705_v46 }
 0x2c8   : > { %v685_v50 = vpop.xlane.xlu0 %684 }
 0x2c9   : > { %v706_v27 = vadd.f32 %v685_v50, %v670_v47 }
 0x2ca   : > { %v957_v14 = vld [vmem:[#allocation3] sm:$0xff] }
 0x2cb   : > { %716 = vst.msk [vmem:[#allocation3 + $0x10] sm:$0xff] %vm294_vm2, %v706_v27  ;;  %1363 = vrcp.f32 %v957_v14 }
 0x2cc   : > { %v688_v19 = vpop.xlane.xlu1 %687 }
 0x2cd   : > { %v707_v20 = vadd.f32 %v688_v19, %v671_v15  ;;  %v727_v15 = vld [vmem:[#allocation4 + $0x20] sm:$0xff] }
 0x2ce   : > { %v958_v37 = vld [vmem:[#allocation3 + $0x8] sm:$0xff] }
 0x2cf   : > { %717 = vst.msk [vmem:[#allocation3 + $0x18] sm:$0xff] %vm294_vm2, %v707_v20  ;;  %1365 = vrcp.f32 %v958_v37 }
 0x2d0   : > { %v691_v26 = vpop.xlane.xlu0 %690 }
 0x2d1   : > { %v708_v30 = vadd.f32 %v691_v26, %v672_v24 }
 0x2d2   : > { %v959_v31 = vld [vmem:[#allocation3 + $0x10] sm:$0xff] }
 0x2d3   : > { %718 = vst.msk [vmem:[#allocation3 + $0x20] sm:$0xff] %vm294_vm2, %v708_v30  ;;  %1367 = vrcp.f32 %v959_v31 }
 0x2d4   : > { %v694_v39 = vpop.xlane.xlu1 %693 }
 0x2d5   : > { %v1364_v42 = vpop.eup %1363  ;;  %v709_v49 = vadd.f32 %v694_v39, %v673_v34 }
 0x2d6   : > { %977 = vperm.xlu1 %1310, %v1364_v42   ;;  %v960_v52 = vld [vmem:[#allocation3 + $0x18] sm:$0xff] }
 0x2d7   : > { %719 = vst.msk [vmem:[#allocation3 + $0x28] sm:$0xff] %vm294_vm2, %v709_v49  ;;  %1369 = vrcp.f32 %v960_v52  ;;  %v730_v49 = vld [vmem:[#allocation4 + $0x38] sm:$0xff] }
 0x2d8   : > { %v697_v54 = vpop.xlane.xlu0 %696 }
 0x2d9   : > { %v1366_v55 = vpop.eup %1365  ;;  %v710_v57 = vadd.f32 %v697_v54, %v674_v53 }
 0x2da   : > { %982 = vperm.xlu0 %1311, %v1366_v55   ;;  %v961_v59 = vld [vmem:[#allocation3 + $0x20] sm:$0xff] }
 0x2db   : > { %720 = vst.msk [vmem:[#allocation3 + $0x30] sm:$0xff] %vm294_vm2, %v710_v57  ;;  %1371 = vrcp.f32 %v961_v59 }
 0x2dc   : > { %v700_v58 = vpop.xlane.xlu1 %699 }
 0x2dd   : > { %v1368_v62 = vpop.eup %1367  ;;  %v711_v63 = vadd.f32 %v700_v58, %v675_v60 }
 0x2de   : > { %987 = vperm.xlu1 %1310, %v1368_v62   ;;  %v962_v2 = vld [vmem:[#allocation3 + $0x28] sm:$0xff] }
 0x2df   : > { %721 = vst.msk [vmem:[#allocation3 + $0x38] sm:$0xff] %vm294_vm2, %v711_v63  ;;  %1373 = vrcp.f32 %v962_v2 }
 0x2e0   : > { %v703_v3 = vpop.xlane.xlu0 %702  ;;  %v735_v7 = vpop.permute.xlu1 %734 }
 0x2e1   : > { %v1370_v5 = vpop.eup %1369  ;;  %v712_v9 = vadd.f32 %v703_v3, %v676_v1  ;;  %v777_v18 = vmul.f32 %v735_v7, %v723_v11 }
 0x2e2   : > { %992 = vperm.xlu0 %1311, %v1370_v5   ;;  %v963_v25 = vld [vmem:[#allocation3 + $0x30] sm:$0xff] }
 0x2e3   : > { %722 = vst.msk [vmem:[#allocation3 + $0x40] sm:$0xff] %vm294_vm2, %v712_v9  ;;  %1375 = vrcp.f32 %v963_v25 }
 0x2e4   : > { %v745_v21 = vpop.permute.xlu1 %744 }
 0x2e5   : > { %v1372_v10 = vpop.eup %1371  ;;  %v779_v43 = vmul.f32 %v745_v21, %v725_v38 }
 0x2e6   : > { %997 = vperm.xlu1 %1310, %v1372_v10   ;;  %v964_v4 = vld [vmem:[#allocation3 + $0x38] sm:$0xff] }
 0x2e7   : > { %1377 = vrcp.f32 %v964_v4 }
 0x2e8   : > { %v740_v17 = vpop.permute.xlu0 %739  ;;  %v750_v41 = vpop.permute.xlu1 %749 }
 0x2e9   : > { %v1374_v0 = vpop.eup %1373  ;;  %v778_v23 = vmul.f32 %v740_v17, %v724_v13  ;;  %v780_v46 = vmul.f32 %v750_v41, %v726_v40 }
 0x2ea   : > { %1002 = vperm.xlu0 %1311, %v1374_v0   ;;  %v965_v6 = vld [vmem:[#allocation3 + $0x40] sm:$0xff] }
 0x2eb   : > { %1379 = vrcp.f32 %v965_v6 }
 0x2ec   : > { %v755_v19 = vpop.permute.xlu0 %754  ;;  %v760_v20 = vpop.permute.xlu1 %759 }
 0x2ed   : > { %v1376_v8 = vpop.eup %1375  ;;  %v781_v37 = vmul.f32 %v755_v19, %v727_v15  ;;  %v782_v26 = vmul.f32 %v760_v20, %v728_v35 }
 0x2ee   : > { %1007 = vperm.xlu1 %1310, %v1376_v8  }
 0x2f0   : > { %v765_v42 = vpop.permute.xlu0 %764  ;;  %v770_v52 = vpop.permute.xlu1 %769 }
 0x2f1   : > { %v1378_v12 = vpop.eup %1377  ;;  %v783_v53 = vmul.f32 %v765_v42, %v729_v48  ;;  %v784_v56 = vmul.f32 %v770_v52, %v730_v49 }
 0x2f2   : > { %1012 = vperm.xlu0 %1311, %v1378_v12  }
 0x2f4   : > { %v775_v62 = vpop.permute.xlu0 %774 }
 0x2f5   : > { %v1380_v16 = vpop.eup %1379  ;;  %v785_v63 = vmul.f32 %v775_v62, %v731_v61 }
 0x2f6   : > { %1017 = vperm.xlu1 %1310, %v1380_v16  }
 0x30b   : > { %v880_v22 = vpop.f32.mrb[0].mxu1 }
 0x30c   : > { %v918_v28 = vadd.f32 %v880_v22, %v777_v18  ;;  %v1262_v29 = vpop.f32.mrb[1].mxu1 }
 0x30d   : > { %v883_v32 = vpop.f32.mrb[2].mxu1 }
 0x30e   : > { %927 = vst.msk [vmem:[#allocation4] sm:$0xff] %vm313_vm0, %v918_v28  ;;  %v919_v33 = vadd.f32 %v883_v32, %v778_v23  ;;  %v1263_v36 = vpop.f32.mrb[3].mxu1 }
 0x310   : > { %928 = vst.msk [vmem:[#allocation4 + $0x8] sm:$0xff] %vm313_vm0, %v919_v33 }
 0x313   : > { %v888_v44 = vpop.f32.mrb[4].mxu1 }
 0x314   : > { %v920_v47 = vadd.f32 %v888_v44, %v779_v43  ;;  %v1266_v50 = vpop.f32.mrb[5].mxu1 }
 0x315   : > { %v891_v51 = vpop.f32.mrb[6].mxu1  ;;  %v948_v10 = vld [vmem:[#allocation4] sm:$0xff] }
 0x316   : > { %929 = vst.msk [vmem:[#allocation4 + $0x10] sm:$0xff] %vm313_vm0, %v920_v47  ;;  %v921_v27 = vadd.f32 %v891_v51, %v780_v46  ;;  %v1267_v14 = vpop.f32.mrb[7].mxu1 }
 0x317   : > { %v949_v0 = vld [vmem:[#allocation4 + $0x8] sm:$0xff] }
 0x318   : > { %930 = vst.msk [vmem:[#allocation4 + $0x18] sm:$0xff] %vm313_vm0, %v921_v27 }
 0x31b   : > { %v896_v24 = vpop.f32.mrb[8].mxu1 }
 0x31c   : > { %v922_v45 = vadd.f32 %v896_v24, %v781_v37  ;;  %v1270_v30 = vpop.f32.mrb[9].mxu1 }
 0x31d   : > { %v899_v31 = vpop.f32.mrb[10].mxu1  ;;  %v950_v12 = vld [vmem:[#allocation4 + $0x10] sm:$0xff] }
 0x31e   : > { %931 = vst.msk [vmem:[#allocation4 + $0x20] sm:$0xff] %vm313_vm0, %v922_v45  ;;  %v923_v34 = vadd.f32 %v899_v31, %v782_v26  ;;  %v1271_v39 = vpop.f32.mrb[11].mxu1 }
 0x31f   : > { %v951_v11 = vld [vmem:[#allocation4 + $0x18] sm:$0xff] }
 0x320   : > { %932 = vst.msk [vmem:[#allocation4 + $0x28] sm:$0xff] %vm313_vm0, %v923_v34 }
 0x323   : > { %v904_v54 = vpop.f32.mrb[12].mxu1 }
 0x324   : > { %v924_v55 = vadd.f32 %v904_v54, %v783_v53  ;;  %v1274_v57 = vpop.f32.mrb[13].mxu1 }
 0x325   : > { %v907_v59 = vpop.f32.mrb[14].mxu1  ;;  %v952_v21 = vld [vmem:[#allocation4 + $0x20] sm:$0xff] }
 0x326   : > { %933 = vst.msk [vmem:[#allocation4 + $0x30] sm:$0xff] %vm313_vm0, %v924_v55  ;;  %v925_v60 = vadd.f32 %v907_v59, %v784_v56  ;;  %v1275_v58 = vpop.f32.mrb[15].mxu1 }
 0x327   : > { %v953_v23 = vld [vmem:[#allocation4 + $0x28] sm:$0xff] }
 0x328   : > { %934 = vst.msk [vmem:[#allocation4 + $0x38] sm:$0xff] %vm313_vm0, %v925_v60 }
 0x32b   : > { %v912_v2 = vpop.f32.mrb[16].mxu1 }
 0x32c   : > { %v926_v1 = vadd.f32 %v912_v2, %v785_v63  ;;  %v1278_v3 = vpop.f32.mrb[17].mxu1 }
 0x32d   : > { %v915_v5 = vpop.f32.mrb[18].mxu1  ;;  %v954_v33 = vld [vmem:[#allocation4 + $0x30] sm:$0xff] }
 0x32e   : > { %935 = vst.msk [vmem:[#allocation4 + $0x40] sm:$0xff] %vm313_vm0, %v926_v1  ;;  %v1279_v9 = vpop.f32.mrb[19].mxu1 }
 0x32f   : > { %v955_v38 = vld [vmem:[#allocation4 + $0x38] sm:$0xff] }
 0x335   : > { %v956_v44 = vld [vmem:[#allocation4 + $0x40] sm:$0xff] }
 0x355   : > { %v978_v25 = vpop.permute.xlu1 %977 }
 0x356   : > { %v1020_v4 = vmul.f32 %v978_v25, %v948_v10 }
 0x358   : > { %1029 = vst.msk [vmem:[%s1764_s29] sm:$0xff] %vm313_vm0, %v1020_v4 }
 0x359   : > { %v983_v6 = vpop.permute.xlu0 %982 }
 0x35a   : > { %v1021_v8 = vmul.f32 %v983_v6, %v949_v0 }
 0x35c   : > { %1030 = vst.msk [vmem:[%s1764_s29 + $0x8] sm:$0xff] %vm313_vm0, %v1021_v8 }
 0x35d   : > { %v988_v16 = vpop.permute.xlu1 %987 }
 0x35e   : > { %v1022_v7 = vmul.f32 %v988_v16, %v950_v12 }
 0x360   : > { %1031 = vst.msk [vmem:[%s1764_s29 + $0x10] sm:$0xff] %vm313_vm0, %v1022_v7 }
 0x361   : > { %v993_v13 = vpop.permute.xlu0 %992 }
 0x362   : > { %v1023_v17 = vmul.f32 %v993_v13, %v951_v11 }
 0x364   : > { %1032 = vst.msk [vmem:[%s1764_s29 + $0x18] sm:$0xff] %vm313_vm0, %v1023_v17 }
 0x365   : > { %v998_v18 = vpop.permute.xlu1 %997 }
 0x366   : > { %v1024_v22 = vmul.f32 %v998_v18, %v952_v21 }
 0x368   : > { %1033 = vst.msk [vmem:[%s1764_s29 + $0x20] sm:$0xff] %vm313_vm0, %v1024_v22 }
 0x369   : > { %v1003_v28 = vpop.permute.xlu0 %1002 }
 0x36a   : > { %v1025_v29 = vmul.f32 %v1003_v28, %v953_v23 }
 0x36c   : > { %1034 = vst.msk [vmem:[%s1764_s29 + $0x28] sm:$0xff] %vm313_vm0, %v1025_v29 }
 0x36d   : > { %v1008_v32 = vpop.permute.xlu1 %1007 }
 0x36e   : > { %v1026_v36 = vmul.f32 %v1008_v32, %v954_v33 }
 0x370   : > { %1035 = vst.msk [vmem:[%s1764_s29 + $0x30] sm:$0xff] %vm313_vm0, %v1026_v36 }
 0x371   : > { %v1013_v40 = vpop.permute.xlu0 %1012 }
 0x372   : > { %v1027_v41 = vmul.f32 %v1013_v40, %v955_v38 }
 0x374   : > { %1036 = vst.msk [vmem:[%s1764_s29 + $0x38] sm:$0xff] %vm313_vm0, %v1027_v41 }
 0x375   : > { %v1018_v43 = vpop.permute.xlu1 %1017 }
 0x376   : > { %v1028_v46 = vmul.f32 %v1018_v43, %v956_v44 }
 0x378   : > { %1037 = vst.msk [vmem:[%s1764_s29 + $0x40] sm:$0xff] %vm313_vm0, %v1028_v46 }
 0x379 PF: > { %s13_s14 = sadd.s32 1, %s1403_s14   ;;  %s1797_s12 = smov %s1399_s13 }
 0x37a   : > { %p10_p5 = scmp.ge.s32.totalorder %s13_s14, 6   ;;  %s1798_s13 = smov %s1800_s15 }
 0x37c   :  { %12 = sbr.rel (!%p10_p5) target bundleno = 2 (0x2), region = 76 }

// kernel: vit_for_clip_forward.39
= control target key start
LH: loop header
LB: loop body
LE: loop exit
PB: predicated region body
PF: predicated region fallthrough
CT: control target
= control target key end

     0   :  { %vm22_vm0 = vcmask 130048   ;;  %v472_v0 = vmov 0.0   ;;  %vm473_vm1 = vmmov 0   ;;  %s722_s1 = inlined_call_operand.vmem [shape: bf16[16,16], index: 1, kind: input, shape index: {}]   ;;  %s723_s0 = inlined_call_operand.vmem [shape: bf16[136,16], index: 0, kind: input, shape index: {}]   ;;  %s724_s2 = inlined_call_operand.vmem [shape: f32[1,16], index: 2, kind: input, shape index: {}]   ;;  %s725_s3 = inlined_call_operand.vmem [shape: f32[136,16], index: 3, kind: input, shape index: {}]   ;;  %s726_s4 = inlined_call_operand.vmem [shape: f32[136,16], index: 4, kind: output, shape index: {}]  }
   0x1   :  { %420 = vmatprep.subr.bf16.mxu0 %v472_v0  ;;  %v462_v1 = vld [vmem:[%s722_s1] sm:$0xff]   ;;  %422 = vmatprep.mubr.msk.bf16.mxu0 %vm473_vm1, %v472_v0  ;;  %23 = vst.msk [vmem:[#allocation2] sm:$0xff] %vm22_vm0, %v472_v0  ;;  %24 = vst.msk [vmem:[#allocation2 + $0x8] sm:$0xff] %vm22_vm0, %v472_v0  ;;  %v464_v3 = vld [vmem:[%s723_s0 + $0x28] sm:$0xff]  }
   0x2   :  { %25 = vst.msk [vmem:[#allocation2 + $0x10] sm:$0xff] %vm22_vm0, %v472_v0  ;;  %26 = vst.msk [vmem:[#allocation2 + $0x18] sm:$0xff] %vm22_vm0, %v472_v0  ;;  %v463_v2 = vld [vmem:[%s723_s0] sm:$0xff]   ;;  %458 = vmatprep.subr.bf16.mxu1 %v472_v0  ;;  %442 = vmatprep.mubr.msk.bf16.mxu1 %vm473_vm1, %v472_v0  ;;  %v465_v4 = vld [vmem:[%s723_s0 + $0x8] sm:$0xff]  }
   0x3   :  { %27 = vst.msk [vmem:[#allocation2 + $0x20] sm:$0xff] %vm22_vm0, %v472_v0  ;;  %28 = vst.msk [vmem:[#allocation2 + $0x28] sm:$0xff] %vm22_vm0, %v472_v0  ;;  %421 = vmatpush3.bf16.msra.mxu0 %v462_v1  ;;  %459 = vmatpush3.bf16.msra.mxu1 %v462_v1  ;;  %v466_v5 = vld [vmem:[%s723_s0 + $0x30] sm:$0xff]   ;;  %v468_v7 = vld [vmem:[%s723_s0 + $0x38] sm:$0xff]  }
   0x4   :  { %29 = vst.msk [vmem:[#allocation2 + $0x30] sm:$0xff] %vm22_vm0, %v472_v0  ;;  %30 = vst.msk [vmem:[#allocation2 + $0x38] sm:$0xff] %vm22_vm0, %v472_v0  ;;  %v467_v6 = vld [vmem:[%s723_s0 + $0x10] sm:$0xff]   ;;  %v469_v8 = vld [vmem:[%s723_s0 + $0x18] sm:$0xff]  }
   0x5   :  { %31 = vst.msk [vmem:[#allocation2 + $0x40] sm:$0xff] %vm22_vm0, %v472_v0  ;;  %32 = vst.msk [vmem:[#allocation2 + $0x48] sm:$0xff] %vm22_vm0, %v472_v0  ;;  %v470_v9 = vld [vmem:[%s723_s0 + $0x40] ss:$0 sps:$4 sm:$0xff]   ;;  %v345_v41 = vld [vmem:[%s725_s3 + $0x50] sm:$0xff] }
   0x6   :  { %33 = vst.msk [vmem:[#allocation2 + $0x50] sm:$0xff] %vm22_vm0, %v472_v0  ;;  %34 = vst.msk [vmem:[#allocation2 + $0x58] sm:$0xff] %vm22_vm0, %v472_v0  ;;  %423 = vmatmul.mubr.msk.bf16.vlgmr.msra.gmra.mrb[0].mxu0 %vm22_vm0, %v463_v2  ;;  %443 = vmatmul.mubr.msk.bf16.vlgmr.msra.gmra.mrb[0].mxu1 %vm22_vm0, %v464_v3  ;;  %v471_v10 = vld [vmem:[%s723_s0 + $0x20] sm:$0xff]   ;;  %v336_v45 = vld [vmem:[%s725_s3 + $0x8] sm:$0xff] }
   0x7   :  { %35 = vst.msk [vmem:[#allocation2 + $0x60] sm:$0xff] %vm22_vm0, %v472_v0  ;;  %36 = vst.msk [vmem:[#allocation2 + $0x68] sm:$0xff] %vm22_vm0, %v472_v0  ;;  %426 = vmatprep.mubr.msk.bf16.mxu0 %vm473_vm1, %v472_v0  ;;  %446 = vmatprep.mubr.msk.bf16.mxu1 %vm473_vm1, %v472_v0  ;;  %v571_v29 = vld [vmem:[%s724_s2] ss:$0 sm:$0xff]  ;;  %v346_v53 = vld [vmem:[%s725_s3 + $0x58] sm:$0xff] }
   0x8   :  { %37 = vst.msk [vmem:[#allocation2 + $0x70] sm:$0xff] %vm22_vm0, %v472_v0  ;;  %38 = vst.msk [vmem:[#allocation2 + $0x78] sm:$0xff] %vm22_vm0, %v472_v0  ;;  %v40_v11 = vld [vmem:[#allocation2] sm:$0xff]  ;;  %v41_v14 = vld [vmem:[#allocation2 + $0x8] sm:$0xff] }
   0x9   :  { %39 = vst.msk [vmem:[#allocation2 + $0x80] sm:$0xff] %vm22_vm0, %v472_v0  ;;  %v42_v27 = vld [vmem:[#allocation2 + $0x10] sm:$0xff]  ;;  %v43_v31 = vld [vmem:[#allocation2 + $0x18] sm:$0xff]  ;;  %v335_v34 = vld [vmem:[%s725_s3] sm:$0xff] }
   0xa   :  { %v44_v58 = vld [vmem:[#allocation2 + $0x20] sm:$0xff]  ;;  %v45_v63 = vld [vmem:[#allocation2 + $0x28] sm:$0xff]  ;;  %v337_v2 = vld [vmem:[%s725_s3 + $0x10] sm:$0xff] }
   0xd   :  { %v50_v12 = vld [vmem:[#allocation2 + $0x50] sm:$0xff]  ;;  %v51_v16 = vld [vmem:[#allocation2 + $0x58] sm:$0xff] }
   0xe   :  { %427 = vmatmul.mubr.msk.bf16.gmra.mrb[4].mxu0 %vm22_vm0, %v465_v4  ;;  %447 = vmatmul.mubr.msk.bf16.gmra.mrb[4].mxu1 %vm22_vm0, %v466_v5  ;;  %v52_v28 = vld [vmem:[#allocation2 + $0x60] sm:$0xff]  ;;  %v53_v33 = vld [vmem:[#allocation2 + $0x68] sm:$0xff] }
   0xf   :  { %430 = vmatprep.mubr.msk.bf16.mxu0 %vm473_vm1, %v472_v0  ;;  %450 = vmatprep.mubr.msk.bf16.mxu1 %vm473_vm1, %v472_v0  ;;  %v54_v59 = vld [vmem:[#allocation2 + $0x70] sm:$0xff]  ;;  %v55_v1 = vld [vmem:[#allocation2 + $0x78] sm:$0xff] }
  0x16   :  { %431 = vmatmul.mubr.msk.bf16.gmra.mrb[8].mxu0 %vm22_vm0, %v467_v6  ;;  %451 = vmatmul.mubr.msk.bf16.gmra.mrb[8].mxu1 %vm22_vm0, %v468_v7 }
  0x17   :  { %434 = vmatprep.mubr.msk.bf16.mxu0 %vm473_vm1, %v472_v0  ;;  %454 = vmatprep.mubr.msk.bf16.mxu1 %vm473_vm1, %v472_v0 }
  0x1e   :  { %435 = vmatmul.mubr.msk.bf16.gmra.mrb[12].mxu0 %vm22_vm0, %v469_v8  ;;  %455 = vmatmul.mubr.msk.bf16.gmra.mrb[12].mxu1 %vm22_vm0, %v470_v9  ;;  %v347_v9 = vld [vmem:[%s725_s3 + $0x60] sm:$0xff] }
  0x1f   :  { %438 = vmatprep.mubr.msk.bf16.mxu0 %vm473_vm1, %v472_v0 }
  0x26   :  { %439 = vmatmul.mubr.msk.bf16.gmra.mrb[16].mxu0 %vm22_vm0, %v471_v10 }
  0xd9   :  { %v187_v13 = vpop.f32.mrb[0].mxu0  ;;  %v227_v15 = vpop.f32.mrb[0].mxu1 }
  0xda   :  { %v257_v17 = vadd.f32 %v187_v13, %v40_v11  ;;  %v424_v18 = vpop.f32.mrb[1].mxu0  ;;  %v267_v19 = vadd.f32 %v227_v15, %v50_v12  ;;  %v444_v20 = vpop.f32.mrb[1].mxu1  ;;  %v338_v13 = vld [vmem:[%s725_s3 + $0x18] sm:$0xff] }
  0xdb   :  { %v190_v21 = vpop.f32.mrb[2].mxu0  ;;  %v230_v22 = vpop.f32.mrb[2].mxu1 }
  0xdc   :  { %274 = vst.msk [vmem:[#allocation2] sm:$0xff] %vm22_vm0, %v257_v17  ;;  %v258_v23 = vadd.f32 %v190_v21, %v41_v14  ;;  %v425_v24 = vpop.f32.mrb[3].mxu0  ;;  %284 = vst.msk [vmem:[#allocation2 + $0x50] sm:$0xff] %vm22_vm0, %v267_v19  ;;  %v268_v25 = vadd.f32 %v230_v22, %v51_v16  ;;  %v445_v26 = vpop.f32.mrb[3].mxu1  ;;  %v348_v21 = vld [vmem:[%s725_s3 + $0x68] sm:$0xff] }
  0xdd   :  { %v46_v26 = vld [vmem:[#allocation2 + $0x30] sm:$0xff] }
  0xde   :  { %275 = vst.msk [vmem:[#allocation2 + $0x8] sm:$0xff] %vm22_vm0, %v258_v23  ;;  %285 = vst.msk [vmem:[#allocation2 + $0x58] sm:$0xff] %vm22_vm0, %v268_v25 }
  0xe1   :  { %v195_v30 = vpop.f32.mrb[4].mxu0  ;;  %v235_v32 = vpop.f32.mrb[4].mxu1 }
  0xe2   :  { %v259_v35 = vadd.f32 %v195_v30, %v42_v27  ;;  %v428_v36 = vpop.f32.mrb[5].mxu0  ;;  %v269_v37 = vadd.f32 %v235_v32, %v52_v28  ;;  %v448_v38 = vpop.f32.mrb[5].mxu1  ;;  %v56_v27 = vld [vmem:[#allocation2 + $0x80] sm:$0xff]  ;;  %v47_v32 = vld [vmem:[#allocation2 + $0x38] sm:$0xff] }
  0xe3   :  { %v294_v39 = vld [vmem:[#allocation2] sm:$0xff]  ;;  %v304_v40 = vld [vmem:[#allocation2 + $0x50] sm:$0xff]  ;;  %v198_v42 = vpop.f32.mrb[6].mxu0  ;;  %v238_v43 = vpop.f32.mrb[6].mxu1 }
  0xe4   :  { %v318_v44 = vadd.f32 %v571_v29, %v294_v39  ;;  %v328_v46 = vadd.f32 %v571_v29, %v304_v40  ;;  %276 = vst.msk [vmem:[#allocation2 + $0x10] sm:$0xff] %vm22_vm0, %v259_v35  ;;  %v260_v47 = vadd.f32 %v198_v42, %v43_v31  ;;  %v429_v48 = vpop.f32.mrb[7].mxu0  ;;  %286 = vst.msk [vmem:[#allocation2 + $0x60] sm:$0xff] %vm22_vm0, %v269_v37  ;;  %v449_v50 = vpop.f32.mrb[7].mxu1 }
  0xe5   :  { %v270_v49 = vadd.f32 %v238_v43, %v53_v33  ;;  %v295_v51 = vld [vmem:[#allocation2 + $0x8] sm:$0xff]  ;;  %v305_v52 = vld [vmem:[#allocation2 + $0x58] sm:$0xff] }
  0xe6   :  { %v352_v54 = vadd.f32 %v335_v34, %v318_v44  ;;  %v319_v55 = vadd.f32 %v571_v29, %v295_v51  ;;  %v362_v56 = vadd.f32 %v345_v41, %v328_v46  ;;  %v329_v57 = vadd.f32 %v571_v29, %v305_v52  ;;  %277 = vst.msk [vmem:[#allocation2 + $0x18] sm:$0xff] %vm22_vm0, %v260_v47  ;;  %v339_v34 = vld [vmem:[%s725_s3 + $0x20] sm:$0xff]  ;;  %v349_v41 = vld [vmem:[%s725_s3 + $0x70] sm:$0xff]  ;;  %v350_v52 = vld [vmem:[%s725_s3 + $0x78] sm:$0xff] }
  0xe7   :  { %287 = vst.msk [vmem:[#allocation2 + $0x68] sm:$0xff] %vm22_vm0, %v270_v49 }
  0xe8   :  { %369 = vst.msk [vmem:[%s726_s4] sm:$0xff] %vm22_vm0, %v352_v54  ;;  %v353_v60 = vadd.f32 %v336_v45, %v319_v55  ;;  %379 = vst.msk [vmem:[%s726_s4 + $0x50] sm:$0xff] %vm22_vm0, %v362_v56  ;;  %v363_v61 = vadd.f32 %v346_v53, %v329_v57  ;;  %v340_v45 = vld [vmem:[%s725_s3 + $0x28] sm:$0xff]  ;;  %v48_v57 = vld [vmem:[#allocation2 + $0x40] sm:$0xff] }
  0xe9   :  { %v203_v62 = vpop.f32.mrb[8].mxu0  ;;  %v243_v0 = vpop.f32.mrb[8].mxu1 }
  0xea   :  { %370 = vst.msk [vmem:[%s726_s4 + $0x8] sm:$0xff] %vm22_vm0, %v353_v60  ;;  %380 = vst.msk [vmem:[%s726_s4 + $0x58] sm:$0xff] %vm22_vm0, %v363_v61  ;;  %v261_v3 = vadd.f32 %v203_v62, %v44_v58  ;;  %v432_v4 = vpop.f32.mrb[9].mxu0  ;;  %v271_v5 = vadd.f32 %v243_v0, %v54_v59  ;;  %v452_v6 = vpop.f32.mrb[9].mxu1  ;;  %v49_v61 = vld [vmem:[#allocation2 + $0x48] sm:$0xff]  ;;  %v341_v62 = vld [vmem:[%s725_s3 + $0x30] sm:$0xff] }
  0xeb   :  { %v296_v7 = vld [vmem:[#allocation2 + $0x10] sm:$0xff]  ;;  %v306_v8 = vld [vmem:[#allocation2 + $0x60] sm:$0xff]  ;;  %v206_v10 = vpop.f32.mrb[10].mxu0  ;;  %v246_v11 = vpop.f32.mrb[10].mxu1 }
  0xec   :  { %v320_v12 = vadd.f32 %v571_v29, %v296_v7  ;;  %v330_v14 = vadd.f32 %v571_v29, %v306_v8  ;;  %278 = vst.msk [vmem:[#allocation2 + $0x20] sm:$0xff] %vm22_vm0, %v261_v3  ;;  %v262_v15 = vadd.f32 %v206_v10, %v45_v63  ;;  %v433_v16 = vpop.f32.mrb[11].mxu0  ;;  %288 = vst.msk [vmem:[#allocation2 + $0x70] sm:$0xff] %vm22_vm0, %v271_v5  ;;  %v453_v18 = vpop.f32.mrb[11].mxu1  ;;  %v351_v3 = vld [vmem:[%s725_s3 + $0x80] sm:$0xff]  ;;  %v342_v10 = vld [vmem:[%s725_s3 + $0x38] sm:$0xff] }
  0xed   :  { %v272_v17 = vadd.f32 %v246_v11, %v55_v1  ;;  %v297_v19 = vld [vmem:[#allocation2 + $0x18] sm:$0xff]  ;;  %v343_v16 = vld [vmem:[%s725_s3 + $0x40] sm:$0xff] }
  0xee   :  { %v307_v20 = vld [vmem:[#allocation2 + $0x68] sm:$0xff]  ;;  %v354_v22 = vadd.f32 %v337_v2, %v320_v12  ;;  %v321_v23 = vadd.f32 %v571_v29, %v297_v19  ;;  %v364_v24 = vadd.f32 %v347_v9, %v330_v14  ;;  %279 = vst.msk [vmem:[#allocation2 + $0x28] sm:$0xff] %vm22_vm0, %v262_v15 }
  0xef   :  { %v331_v25 = vadd.f32 %v571_v29, %v307_v20  ;;  %289 = vst.msk [vmem:[#allocation2 + $0x78] sm:$0xff] %vm22_vm0, %v272_v17  ;;  %v344_v19 = vld [vmem:[%s725_s3 + $0x48] sm:$0xff] }
  0xf0   :  { %371 = vst.msk [vmem:[%s726_s4 + $0x10] sm:$0xff] %vm22_vm0, %v354_v22  ;;  %v355_v28 = vadd.f32 %v338_v13, %v321_v23  ;;  %381 = vst.msk [vmem:[%s726_s4 + $0x60] sm:$0xff] %vm22_vm0, %v364_v24 }
  0xf1   :  { %v365_v30 = vadd.f32 %v348_v21, %v331_v25  ;;  %v211_v31 = vpop.f32.mrb[12].mxu0  ;;  %v251_v33 = vpop.f32.mrb[12].mxu1 }
  0xf2   :  { %372 = vst.msk [vmem:[%s726_s4 + $0x18] sm:$0xff] %vm22_vm0, %v355_v28  ;;  %v263_v35 = vadd.f32 %v211_v31, %v46_v26  ;;  %v436_v36 = vpop.f32.mrb[13].mxu0  ;;  %v273_v37 = vadd.f32 %v251_v33, %v56_v27  ;;  %v456_v38 = vpop.f32.mrb[13].mxu1 }
  0xf3   :  { %382 = vst.msk [vmem:[%s726_s4 + $0x68] sm:$0xff] %vm22_vm0, %v365_v30  ;;  %v298_v39 = vld [vmem:[#allocation2 + $0x20] sm:$0xff]  ;;  %v308_v40 = vld [vmem:[#allocation2 + $0x70] sm:$0xff]  ;;  %v214_v42 = vpop.f32.mrb[14].mxu0  ;;  %v254_v43 = vpop.f32.mrb[14].mxu1 }
  0xf4   :  { %v322_v44 = vadd.f32 %v571_v29, %v298_v39  ;;  %v332_v46 = vadd.f32 %v571_v29, %v308_v40  ;;  %280 = vst.msk [vmem:[#allocation2 + $0x30] sm:$0xff] %vm22_vm0, %v263_v35  ;;  %v264_v47 = vadd.f32 %v214_v42, %v47_v32  ;;  %v437_v48 = vpop.f32.mrb[15].mxu0  ;;  %290 = vst.msk [vmem:[#allocation2 + $0x80] sm:$0xff] %vm22_vm0, %v273_v37  ;;  %v457_v49 = vpop.f32.mrb[15].mxu1 }
  0xf5   :  { %v299_v50 = vld [vmem:[#allocation2 + $0x28] sm:$0xff] }
  0xf6   :  { %v309_v51 = vld [vmem:[#allocation2 + $0x78] sm:$0xff]  ;;  %v356_v53 = vadd.f32 %v339_v34, %v322_v44  ;;  %v323_v54 = vadd.f32 %v571_v29, %v299_v50  ;;  %v366_v55 = vadd.f32 %v349_v41, %v332_v46  ;;  %281 = vst.msk [vmem:[#allocation2 + $0x38] sm:$0xff] %vm22_vm0, %v264_v47 }
  0xf7   :  { %v333_v56 = vadd.f32 %v571_v29, %v309_v51 }
  0xf8   :  { %373 = vst.msk [vmem:[%s726_s4 + $0x20] sm:$0xff] %vm22_vm0, %v356_v53  ;;  %v357_v58 = vadd.f32 %v340_v45, %v323_v54  ;;  %383 = vst.msk [vmem:[%s726_s4 + $0x70] sm:$0xff] %vm22_vm0, %v366_v55 }
  0xf9   :  { %v367_v59 = vadd.f32 %v350_v52, %v333_v56  ;;  %v219_v60 = vpop.f32.mrb[16].mxu0 }
  0xfa   :  { %374 = vst.msk [vmem:[%s726_s4 + $0x28] sm:$0xff] %vm22_vm0, %v357_v58  ;;  %v265_v63 = vadd.f32 %v219_v60, %v48_v57  ;;  %v440_v0 = vpop.f32.mrb[17].mxu0 }
  0xfb   :  { %384 = vst.msk [vmem:[%s726_s4 + $0x78] sm:$0xff] %vm22_vm0, %v367_v59  ;;  %v300_v1 = vld [vmem:[#allocation2 + $0x30] sm:$0xff]  ;;  %v310_v2 = vld [vmem:[#allocation2 + $0x80] sm:$0xff]  ;;  %v222_v4 = vpop.f32.mrb[18].mxu0 }
  0xfc   :  { %v324_v5 = vadd.f32 %v571_v29, %v300_v1  ;;  %v334_v6 = vadd.f32 %v571_v29, %v310_v2  ;;  %282 = vst.msk [vmem:[#allocation2 + $0x40] sm:$0xff] %vm22_vm0, %v265_v63  ;;  %v266_v7 = vadd.f32 %v222_v4, %v49_v61  ;;  %v441_v8 = vpop.f32.mrb[19].mxu0 }
  0xfd   :  { %v301_v9 = vld [vmem:[#allocation2 + $0x38] sm:$0xff] }
  0xfe   :  { %v358_v11 = vadd.f32 %v341_v62, %v324_v5  ;;  %v325_v12 = vadd.f32 %v571_v29, %v301_v9  ;;  %v368_v13 = vadd.f32 %v351_v3, %v334_v6  ;;  %283 = vst.msk [vmem:[#allocation2 + $0x48] sm:$0xff] %vm22_vm0, %v266_v7 }
 0x100   :  { %375 = vst.msk [vmem:[%s726_s4 + $0x30] sm:$0xff] %vm22_vm0, %v358_v11  ;;  %v359_v14 = vadd.f32 %v342_v10, %v325_v12  ;;  %385 = vst.msk [vmem:[%s726_s4 + $0x80] sm:$0xff] %vm22_vm0, %v368_v13 }
 0x102   :  { %376 = vst.msk [vmem:[%s726_s4 + $0x38] sm:$0xff] %vm22_vm0, %v359_v14 }
 0x103   :  { %v302_v15 = vld [vmem:[#allocation2 + $0x40] sm:$0xff] }
 0x104   :  { %v326_v17 = vadd.f32 %v571_v29, %v302_v15 }
 0x105   :  { %v303_v18 = vld [vmem:[#allocation2 + $0x48] sm:$0xff] }
 0x106   :  { %v360_v20 = vadd.f32 %v343_v16, %v326_v17  ;;  %v327_v21 = vadd.f32 %v571_v29, %v303_v18 }
 0x108   :  { %377 = vst.msk [vmem:[%s726_s4 + $0x40] sm:$0xff] %vm22_vm0, %v360_v20  ;;  %v361_v22 = vadd.f32 %v344_v19, %v327_v21 }
 0x10a   :  { %378 = vst.msk [vmem:[%s726_s4 + $0x48] sm:$0xff] %vm22_vm0, %v361_v22 }

// kernel: vit_for_clip_forward.40
= control target key start
LH: loop header
LB: loop body
LE: loop exit
PB: predicated region body
PF: predicated region fallthrough
CT: control target
= control target key end

     0   :  { %vm44_vm0 = vcmask 130048   ;;  %vm1117_vm1 = vmmov 0   ;;  %vm647_vm2 = vcmask 523264   ;;  %s1716_s0 = inlined_call_operand.vmem [shape: f32[136,16], index: 0, kind: input, shape index: {}]   ;;  %s1717_s3 = inlined_call_operand.vmem [shape: bf16[16,64], index: 3, kind: input, shape index: {}]   ;;  %s1718_s1 = inlined_call_operand.vmem [shape: f32[1,16], index: 1, kind: input, shape index: {}]   ;;  %s1719_s2 = inlined_call_operand.vmem [shape: f32[1,16], index: 2, kind: input, shape index: {}]   ;;  %s1720_s5 = inlined_call_operand.vmem [shape: bf16[64,16], index: 5, kind: input, shape index: {}]   ;;  %s1721_s4 = inlined_call_operand.vmem [shape: f32[1,64], index: 4, kind: input, shape index: {}]   ;;  %s1722_s6 = inlined_call_operand.vmem [shape: f32[1,16], index: 6, kind: input, shape index: {}]   ;;  %s1723_s7 = inlined_call_operand.vmem [shape: f32[136,16], index: 7, kind: output, shape index: {}]  }
   0x1   :  { %v27_v0 = vld [vmem:[%s1716_s0] sm:$0xff]  ;;  %v29_v1 = vld [vmem:[%s1716_s0 + $0x10] sm:$0xff]  ;;  %v28_v2 = vld [vmem:[%s1716_s0 + $0x8] sm:$0xff] }
   0x2   :  { %v45_v3 = vsel %vm44_vm0, %v27_v0, 0.0  ;;  %v51_v4 = vsel %vm44_vm0, %v29_v1, 0.0  ;;  %v30_v5 = vld [vmem:[%s1716_s0 + $0x18] sm:$0xff]  ;;  %v48_v6 = vsel %vm44_vm0, %v28_v2, 0.0  ;;  %v1177_v8 = vld [vmem:[%s1716_s0 + $0x20] sm:$0xff]  ;;  %v1182_v9 = vld [vmem:[%s1716_s0 + $0x28] sm:$0xff] }
   0x3   :  { %46 = vadd.xlane.f32.xlu0 %v45_v3  ;;  %52 = vadd.xlane.f32.xlu1 %v51_v4  ;;  %v54_v7 = vsel %vm44_vm0, %v30_v5, 0.0  ;;  %v57_v10 = vsel %vm44_vm0, %v1177_v8, 0.0  ;;  %v60_v11 = vsel %vm44_vm0, %v1182_v9, 0.0  ;;  %v1191_v12 = vld [vmem:[%s1716_s0 + $0x30] sm:$0xff]  ;;  %v1196_v13 = vld [vmem:[%s1716_s0 + $0x38] sm:$0xff]  ;;  %v1205_v16 = vld [vmem:[%s1716_s0 + $0x40] sm:$0xff] }
   0x4   :  { %v63_v14 = vsel %vm44_vm0, %v1191_v12, 0.0  ;;  %v66_v15 = vsel %vm44_vm0, %v1196_v13, 0.0  ;;  %v1210_v17 = vld [vmem:[%s1716_s0 + $0x48] sm:$0xff]  ;;  %v69_v18 = vsel %vm44_vm0, %v1205_v16, 0.0  ;;  %v1219_v20 = vld [vmem:[%s1716_s0 + $0x50] sm:$0xff]  ;;  %v1224_v21 = vld [vmem:[%s1716_s0 + $0x58] sm:$0xff] }
   0x5   :  { %v72_v19 = vsel %vm44_vm0, %v1210_v17, 0.0  ;;  %v75_v22 = vsel %vm44_vm0, %v1219_v20, 0.0  ;;  %v78_v23 = vsel %vm44_vm0, %v1224_v21, 0.0  ;;  %v1233_v24 = vld [vmem:[%s1716_s0 + $0x60] sm:$0xff]  ;;  %v1238_v25 = vld [vmem:[%s1716_s0 + $0x68] sm:$0xff]  ;;  %v1247_v28 = vld [vmem:[%s1716_s0 + $0x70] sm:$0xff] }
   0x6   :  { %v81_v26 = vsel %vm44_vm0, %v1233_v24, 0.0  ;;  %v84_v27 = vsel %vm44_vm0, %v1238_v25, 0.0  ;;  %v1252_v29 = vld [vmem:[%s1716_s0 + $0x78] sm:$0xff]  ;;  %v87_v30 = vsel %vm44_vm0, %v1247_v28, 0.0  ;;  %v1261_v32 = vld [vmem:[%s1716_s0 + $0x80] sm:$0xff] }
   0x7   :  { %49 = vadd.xlane.f32.xlu0 %v48_v6  ;;  %55 = vadd.xlane.f32.xlu1 %v54_v7  ;;  %v90_v31 = vsel %vm44_vm0, %v1252_v29, 0.0  ;;  %v93_v33 = vsel %vm44_vm0, %v1261_v32, 0.0 }
   0xb   :  { %58 = vadd.xlane.f32.xlu0 %v57_v10  ;;  %61 = vadd.xlane.f32.xlu1 %v60_v11 }
   0xf   :  { %64 = vadd.xlane.f32.xlu0 %v63_v14  ;;  %67 = vadd.xlane.f32.xlu1 %v66_v15 }
  0x13   :  { %70 = vadd.xlane.f32.xlu0 %v69_v18  ;;  %73 = vadd.xlane.f32.xlu1 %v72_v19 }
  0x17   :  { %76 = vadd.xlane.f32.xlu0 %v75_v22  ;;  %79 = vadd.xlane.f32.xlu1 %v78_v23 }
  0x1b   :  { %82 = vadd.xlane.f32.xlu0 %v81_v26  ;;  %85 = vadd.xlane.f32.xlu1 %v84_v27 }
  0x1f   :  { %88 = vadd.xlane.f32.xlu0 %v87_v30  ;;  %91 = vadd.xlane.f32.xlu1 %v90_v31 }
  0x23   :  { %94 = vadd.xlane.f32.xlu0 %v93_v33 }
  0x90   :  { %v47_v34 = vpop.xlane.xlu0 %46  ;;  %v53_v35 = vpop.xlane.xlu1 %52 }
  0x91   :  { %v97_v36 = vmul.f32 0.0625, %v47_v34  ;;  %v99_v37 = vmul.f32 0.0625, %v53_v35 }
  0x93   :  { %v1265_v38 = vsub.f32 %v27_v0, %v97_v36  ;;  %v1267_v39 = vsub.f32 %v29_v1, %v99_v37 }
  0x94   :  { %v50_v40 = vpop.xlane.xlu0 %49  ;;  %v56_v41 = vpop.xlane.xlu1 %55 }
  0x95   :  { %v98_v42 = vmul.f32 0.0625, %v50_v40  ;;  %v100_v43 = vmul.f32 0.0625, %v56_v41  ;;  %v131_v44 = vmul.f32 %v1265_v38, %v1265_v38  ;;  %v133_v45 = vmul.f32 %v1267_v39, %v1267_v39 }
  0x97   :  { %v1273_v46 = vsub.f32 %v28_v2, %v98_v42  ;;  %v1275_v47 = vsub.f32 %v30_v5, %v100_v43  ;;  %v148_v48 = vsel %vm44_vm0, %v131_v44, 0.0  ;;  %v154_v51 = vsel %vm44_vm0, %v133_v45, 0.0 }
  0x98   :  { %149 = vadd.xlane.f32.xlu1 %v148_v48  ;;  %v59_v49 = vpop.xlane.xlu0 %58  ;;  %v62_v50 = vpop.xlane.xlu1 %61 }
  0x99   :  { %v101_v52 = vmul.f32 0.0625, %v59_v49  ;;  %v102_v53 = vmul.f32 0.0625, %v62_v50  ;;  %v132_v54 = vmul.f32 %v1273_v46, %v1273_v46  ;;  %v134_v55 = vmul.f32 %v1275_v47, %v1275_v47 }
  0x9b   :  { %v1284_v56 = vsub.f32 %v1177_v8, %v101_v52  ;;  %v1287_v57 = vsub.f32 %v1182_v9, %v102_v53  ;;  %v151_v58 = vsel %vm44_vm0, %v132_v54, 0.0  ;;  %v157_v61 = vsel %vm44_vm0, %v134_v55, 0.0 }
  0x9c   :  { %155 = vadd.xlane.f32.xlu1 %v154_v51  ;;  %152 = vadd.xlane.f32.xlu0 %v151_v58  ;;  %v65_v59 = vpop.xlane.xlu0 %64  ;;  %v68_v60 = vpop.xlane.xlu1 %67 }
  0x9d   :  { %v103_v62 = vmul.f32 0.0625, %v65_v59  ;;  %v104_v63 = vmul.f32 0.0625, %v68_v60  ;;  %v135_v0 = vmul.f32 %v1284_v56, %v1284_v56  ;;  %v136_v1 = vmul.f32 %v1287_v57, %v1287_v57 }
  0x9f   :  { %v1296_v2 = vsub.f32 %v1191_v12, %v103_v62  ;;  %v1299_v3 = vsub.f32 %v1196_v13, %v104_v63  ;;  %v160_v4 = vsel %vm44_vm0, %v135_v0, 0.0  ;;  %v163_v7 = vsel %vm44_vm0, %v136_v1, 0.0  ;;  %v992_v62 = vld [vmem:[%s1717_s3] sm:$0xff]  }
  0xa0   :  { %158 = vadd.xlane.f32.xlu0 %v157_v61  ;;  %161 = vadd.xlane.f32.xlu1 %v160_v4  ;;  %v71_v5 = vpop.xlane.xlu0 %70  ;;  %v74_v6 = vpop.xlane.xlu1 %73  ;;  %v1116_v63 = vmov 0.0  }
  0xa1   :  { %v105_v8 = vmul.f32 0.0625, %v71_v5  ;;  %v106_v9 = vmul.f32 0.0625, %v74_v6  ;;  %v137_v10 = vmul.f32 %v1296_v2, %v1296_v2  ;;  %v138_v11 = vmul.f32 %v1299_v3, %v1299_v3  ;;  %908 = vmatprep.subr.bf16.mxu0 %v1116_v63  ;;  %946 = vmatprep.subr.bf16.mxu1 %v1116_v63 }
  0xa2   :  { %909 = vmatpush3.bf16.msra.mxu0 %v992_v62  ;;  %910 = vmatprep.mubr.msk.bf16.mxu0 %vm1117_vm1, %v1116_v63 }
  0xa3   :  { %v1308_v12 = vsub.f32 %v1205_v16, %v105_v8  ;;  %v1311_v13 = vsub.f32 %v1210_v17, %v106_v9  ;;  %v166_v14 = vsel %vm44_vm0, %v137_v10, 0.0  ;;  %v169_v19 = vsel %vm44_vm0, %v138_v11, 0.0  ;;  %954 = vmatprep.mubr.msk.bf16.mxu1 %vm1117_vm1, %v1116_v63 }
  0xa4   :  { %164 = vadd.xlane.f32.xlu0 %v163_v7  ;;  %167 = vadd.xlane.f32.xlu1 %v166_v14  ;;  %v77_v15 = vpop.xlane.xlu0 %76  ;;  %v80_v18 = vpop.xlane.xlu1 %79 }
  0xa5   :  { %v107_v22 = vmul.f32 0.0625, %v77_v15  ;;  %v108_v23 = vmul.f32 0.0625, %v80_v18  ;;  %v139_v26 = vmul.f32 %v1308_v12, %v1308_v12  ;;  %v140_v16 = vmul.f32 %v1311_v13, %v1311_v13 }
  0xa7   :  { %v1320_v27 = vsub.f32 %v1219_v20, %v107_v22  ;;  %v1323_v17 = vsub.f32 %v1224_v21, %v108_v23  ;;  %v172_v30 = vsel %vm44_vm0, %v139_v26, 0.0  ;;  %v175_v34 = vsel %vm44_vm0, %v140_v16, 0.0 }
  0xa8   :  { %170 = vadd.xlane.f32.xlu0 %v169_v19  ;;  %173 = vadd.xlane.f32.xlu1 %v172_v30  ;;  %v83_v31 = vpop.xlane.xlu0 %82  ;;  %v86_v33 = vpop.xlane.xlu1 %85 }
  0xa9   :  { %v109_v35 = vmul.f32 0.0625, %v83_v31  ;;  %v110_v36 = vmul.f32 0.0625, %v86_v33  ;;  %v141_v37 = vmul.f32 %v1320_v27, %v1320_v27  ;;  %v142_v20 = vmul.f32 %v1323_v17, %v1323_v17 }
  0xab   :  { %v1332_v40 = vsub.f32 %v1233_v24, %v109_v35  ;;  %v1335_v21 = vsub.f32 %v1238_v25, %v110_v36  ;;  %v178_v41 = vsel %vm44_vm0, %v141_v37, 0.0  ;;  %v181_v44 = vsel %vm44_vm0, %v142_v20, 0.0  ;;  %v1376_v36 = vld [vmem:[%s1718_s1] ss:$0 sm:$0xff] }
  0xac   :  { %176 = vadd.xlane.f32.xlu0 %v175_v34  ;;  %179 = vadd.xlane.f32.xlu1 %v178_v41  ;;  %v89_v42 = vpop.xlane.xlu0 %88  ;;  %v92_v43 = vpop.xlane.xlu1 %91 }
  0xad   :  { %v111_v45 = vmul.f32 0.0625, %v89_v42  ;;  %v112_v48 = vmul.f32 0.0625, %v92_v43  ;;  %v143_v49 = vmul.f32 %v1332_v40, %v1332_v40  ;;  %v144_v24 = vmul.f32 %v1335_v21, %v1335_v21 }
  0xaf   :  { %v1344_v50 = vsub.f32 %v1247_v28, %v111_v45  ;;  %v1347_v25 = vsub.f32 %v1252_v29, %v112_v48  ;;  %v184_v51 = vsel %vm44_vm0, %v143_v49, 0.0  ;;  %v187_v54 = vsel %vm44_vm0, %v144_v24, 0.0 }
  0xb0   :  { %182 = vadd.xlane.f32.xlu0 %v181_v44  ;;  %185 = vadd.xlane.f32.xlu1 %v184_v51  ;;  %v95_v52 = vpop.xlane.xlu0 %94 }
  0xb1   :  { %v113_v53 = vmul.f32 0.0625, %v95_v52  ;;  %v145_v55 = vmul.f32 %v1344_v50, %v1344_v50  ;;  %v146_v58 = vmul.f32 %v1347_v25, %v1347_v25 }
  0xb3   :  { %v1356_v28 = vsub.f32 %v1261_v32, %v113_v53  ;;  %v190_v29 = vsel %vm44_vm0, %v145_v55, 0.0  ;;  %v193_v59 = vsel %vm44_vm0, %v146_v58, 0.0 }
  0xb4   :  { %188 = vadd.xlane.f32.xlu0 %v187_v54  ;;  %191 = vadd.xlane.f32.xlu1 %v190_v29 }
  0xb5   :  { %v147_v60 = vmul.f32 %v1356_v28, %v1356_v28 }
  0xb7   :  { %v196_v61 = vsel %vm44_vm0, %v147_v60, 0.0 }
  0xb8   :  { %194 = vadd.xlane.f32.xlu0 %v193_v59  ;;  %197 = vadd.xlane.f32.xlu1 %v196_v61 }
 0x125   :  { %v150_v32 = vpop.xlane.xlu1 %149 }
 0x126   :  { %v199_v0 = vmul.f32 0.0625, %v150_v32 }
 0x128   :  { %v216_v1 = vadd.f32 1e-05, %v199_v0 }
 0x129   :  { %v156_v4 = vpop.xlane.xlu1 %155  ;;  %v153_v5 = vpop.xlane.xlu0 %152 }
 0x12a   :  { %997 = vrsqrt.f32 %v216_v1  ;;  %v201_v6 = vmul.f32 0.0625, %v156_v4  ;;  %v200_v7 = vmul.f32 0.0625, %v153_v5 }
 0x12c   :  { %v217_v8 = vadd.f32 1e-05, %v200_v7  ;;  %v218_v11 = vadd.f32 1e-05, %v201_v6 }
 0x12d   :  { %v162_v9 = vpop.xlane.xlu1 %161  ;;  %v159_v10 = vpop.xlane.xlu0 %158 }
 0x12e   :  { %v202_v14 = vmul.f32 0.0625, %v159_v10  ;;  %999 = vrsqrt.f32 %v217_v8  ;;  %v203_v22 = vmul.f32 0.0625, %v162_v9 }
 0x12f   :  { %1001 = vrsqrt.f32 %v218_v11 }
 0x130   :  { %v219_v15 = vadd.f32 1e-05, %v202_v14  ;;  %v220_v33 = vadd.f32 1e-05, %v203_v22 }
 0x131   :  { %v168_v18 = vpop.xlane.xlu1 %167  ;;  %v165_v19 = vpop.xlane.xlu0 %164 }
 0x132   :  { %v204_v23 = vmul.f32 0.0625, %v165_v19  ;;  %1003 = vrsqrt.f32 %v219_v15  ;;  %v205_v42 = vmul.f32 0.0625, %v168_v18 }
 0x134   :  { %v998_v26 = vpop.eup %997  ;;  %v221_v16 = vadd.f32 1e-05, %v204_v23  ;;  %v222_v53 = vadd.f32 1e-05, %v205_v42 }
 0x135   :  { %v174_v30 = vpop.xlane.xlu1 %173  ;;  %v171_v31 = vpop.xlane.xlu0 %170  ;;  %v250_v34 = vmul.f32 %v998_v26, %v1265_v38  ;;  %v1384_v38 = vld [vmem:[%s1719_s2] ss:$0 sm:$0xff] }
 0x136   :  { %1005 = vrsqrt.f32 %v221_v16  ;;  %v206_v35 = vmul.f32 0.0625, %v171_v31  ;;  %v207_v29 = vmul.f32 0.0625, %v174_v30 }
 0x137   :  { %1007 = vrsqrt.f32 %v220_v33  ;;  %v274_v43 = vmul.f32 %v1376_v36, %v250_v34 }
 0x138   :  { %v1000_v37 = vpop.eup %999  ;;  %v223_v45 = vadd.f32 1e-05, %v206_v35  ;;  %v224_v1 = vadd.f32 1e-05, %v207_v29 }
 0x139   :  { %v180_v20 = vpop.xlane.xlu1 %179  ;;  %v251_v41 = vmul.f32 %v1000_v37, %v1273_v46  ;;  %v1002_v44 = vpop.eup %1001  ;;  %v298_v54 = vadd.f32 %v1384_v38, %v274_v43 }
 0x13a   :  { %v177_v24 = vpop.xlane.xlu0 %176  ;;  %v252_v46 = vmul.f32 %v1002_v44, %v1267_v39  ;;  %1009 = vrsqrt.f32 %v223_v45  ;;  %v209_v19 = vmul.f32 0.0625, %v180_v20 }
 0x13b   :  { %v275_v48 = vmul.f32 %v1376_v36, %v251_v41  ;;  %v208_v58 = vmul.f32 0.0625, %v177_v24  ;;  %1011 = vrsqrt.f32 %v222_v53 }
 0x13c   :  { %v1004_v49 = vpop.eup %1003  ;;  %v226_v30 = vadd.f32 1e-05, %v209_v19 }
 0x13d   :  { %v186_v51 = vpop.xlane.xlu1 %185  ;;  %v253_v52 = vmul.f32 %v1004_v49, %v1275_v47  ;;  %v299_v55 = vadd.f32 %v1384_v38, %v275_v48  ;;  %v276_v47 = vmul.f32 %v1376_v36, %v252_v46  ;;  %v225_v39 = vadd.f32 1e-05, %v208_v58 }
 0x13e   :  { %v183_v4 = vpop.xlane.xlu0 %182  ;;  %v211_v41 = vmul.f32 0.0625, %v186_v51 }
 0x13f   :  { %v315_v60 = vpack.c.bf16 %v299_v55, %v298_v54  ;;  %v277_v61 = vmul.f32 %v1376_v36, %v253_v52  ;;  %v300_v9 = vadd.f32 %v1384_v38, %v276_v47  ;;  %1013 = vrsqrt.f32 %v225_v39 }
 0x140   :  { %v1006_v62 = vpop.eup %1005  ;;  %v210_v10 = vmul.f32 0.0625, %v183_v4  ;;  %1015 = vrsqrt.f32 %v224_v1  ;;  %v228_v24 = vadd.f32 1e-05, %v211_v41 }
 0x141   :  { %v1390_v59 = vpop.xlane.xlu1 %191  ;;  %911 = vmatmul.mubr.msk.bf16.vlgmr.msra.gmra.mrb[0].mxu0 %vm44_vm0, %v315_v60  ;;  %v1008_v32 = vpop.eup %1007  ;;  %v255_v0 = vmul.f32 %v1006_v62, %v1287_v57  ;;  %v301_v6 = vadd.f32 %v1384_v38, %v277_v61 }
 0x142   :  { %914 = vmatprep.mubr.msk.bf16.mxu0 %vm1117_vm1, %v1116_v63  ;;  %v254_v8 = vmul.f32 %v1008_v32, %v1284_v56  ;;  %v227_v23 = vadd.f32 1e-05, %v210_v10  ;;  %v189_v26 = vpop.xlane.xlu0 %188 }
 0x143   :  { %v316_v14 = vpack.c.bf16 %v301_v6, %v300_v9  ;;  %v279_v15 = vmul.f32 %v1376_v36, %v255_v0  ;;  %v212_v34 = vmul.f32 0.0625, %v189_v26  ;;  %v995_v26 = vld [vmem:[%s1720_s5 + $0x10] sm:$0xff]  }
 0x144   :  { %v1010_v18 = vpop.eup %1009  ;;  %v278_v57 = vmul.f32 %v1376_v36, %v254_v8 }
 0x145   :  { %v198_v5 = vpop.xlane.xlu1 %197  ;;  %v1012_v22 = vpop.eup %1011  ;;  %v257_v56 = vmul.f32 %v1010_v18, %v1299_v3  ;;  %v303_v16 = vadd.f32 %v1384_v38, %v279_v15  ;;  %v229_v44 = vadd.f32 1e-05, %v212_v34 }
 0x146   :  { %v215_v7 = vmul.f32 0.0625, %v198_v5  ;;  %v256_v31 = vmul.f32 %v1012_v22, %v1296_v2  ;;  %v302_v33 = vadd.f32 %v1384_v38, %v278_v57  ;;  %v195_v48 = vpop.xlane.xlu0 %194 }
 0x147   :  { %v281_v37 = vmul.f32 %v1376_v36, %v257_v56  ;;  %v214_v46 = vmul.f32 0.0625, %v195_v48 }
 0x148   :  { %v232_v11 = vadd.f32 1e-05, %v215_v7  ;;  %v317_v35 = vpack.c.bf16 %v303_v16, %v302_v33  ;;  %v280_v3 = vmul.f32 %v1376_v36, %v256_v31  ;;  %v996_v16 = vld [vmem:[%s1720_s5 + $0x18] sm:$0xff]  }
 0x149   :  { %915 = vmatmul.mubr.msk.bf16.gmra.mrb[4].mxu0 %vm44_vm0, %v316_v14  ;;  %v1014_v20 = vpop.eup %1013  ;;  %v305_v49 = vadd.f32 %v1384_v38, %v281_v37  ;;  %v231_v60 = vadd.f32 1e-05, %v214_v46 }
 0x14a   :  { %1017 = vrsqrt.f32 %v232_v11  ;;  %918 = vmatprep.mubr.msk.bf16.mxu0 %vm1117_vm1, %v1116_v63  ;;  %v1016_v42 = vpop.eup %1015  ;;  %v259_v2 = vmul.f32 %v1014_v20, %v1311_v13  ;;  %v304_v52 = vadd.f32 %v1384_v38, %v280_v3 }
 0x14b   :  { %1019 = vrsqrt.f32 %v227_v23  ;;  %v258_v51 = vmul.f32 %v1016_v42, %v1308_v12 }
 0x14c   :  { %1021 = vrsqrt.f32 %v226_v30  ;;  %v318_v54 = vpack.c.bf16 %v305_v49, %v304_v52  ;;  %v283_v55 = vmul.f32 %v1376_v36, %v259_v2  ;;  %v1479_v30 = vld [vmem:[%s1721_s4] ss:$0 sm:$0xff] }
 0x14d   :  { %1023 = vrsqrt.f32 %v229_v44  ;;  %v282_v29 = vmul.f32 %v1376_v36, %v258_v51 }
 0x14e   :  { %1025 = vrsqrt.f32 %v228_v24  ;;  %v307_v62 = vadd.f32 %v1384_v38, %v283_v55 }
 0x14f   :  { %v306_v39 = vadd.f32 %v1384_v38, %v282_v29  ;;  %1027 = vrsqrt.f32 %v231_v60 }
 0x151   :  { %919 = vmatmul.mubr.msk.bf16.gmra.mrb[8].mxu0 %vm44_vm0, %v317_v35 }
 0x152   :  { %922 = vmatprep.mubr.msk.bf16.mxu0 %vm1117_vm1, %v1116_v63 }
 0x154   :  { %v1018_v43 = vpop.eup %1017 }
 0x155   :  { %v266_v45 = vmul.f32 %v1018_v43, %v1356_v28  ;;  %v1020_v13 = vpop.eup %1019  ;;  %v213_v28 = vmul.f32 0.0625, %v1390_v59  ;;  %v319_v59 = vpack.c.bf16 %v307_v62, %v306_v39 }
 0x156   :  { %v1022_v12 = vpop.eup %1021  ;;  %v261_v61 = vmul.f32 %v1020_v13, %v1323_v17 }
 0x157   :  { %v290_v53 = vmul.f32 %v1376_v36, %v266_v45  ;;  %v230_v47 = vadd.f32 1e-05, %v213_v28  ;;  %v260_v32 = vmul.f32 %v1022_v12, %v1320_v27  ;;  %v1024_v1 = vpop.eup %1023 }
 0x158   :  { %v285_v0 = vmul.f32 %v1376_v36, %v261_v61  ;;  %v1026_v5 = vpop.eup %1025  ;;  %v263_v17 = vmul.f32 %v1024_v1, %v1335_v21 }
 0x159   :  { %v314_v58 = vadd.f32 %v1384_v38, %v290_v53  ;;  %923 = vmatmul.mubr.msk.bf16.gmra.mrb[12].mxu0 %vm44_vm0, %v318_v54  ;;  %1029 = vrsqrt.f32 %v230_v47  ;;  %v284_v4 = vmul.f32 %v1376_v36, %v260_v32  ;;  %v262_v6 = vmul.f32 %v1026_v5, %v1332_v40  ;;  %v1028_v10 = vpop.eup %1027 }
 0x15a   :  { %926 = vmatprep.mubr.msk.bf16.mxu0 %vm1117_vm1, %v1116_v63  ;;  %v309_v27 = vadd.f32 %v1384_v38, %v285_v0  ;;  %v287_v9 = vmul.f32 %v1376_v36, %v263_v17  ;;  %v265_v21 = vmul.f32 %v1028_v10, %v1347_v25 }
 0x15b   :  { %v308_v7 = vadd.f32 %v1384_v38, %v284_v4  ;;  %v286_v11 = vmul.f32 %v1376_v36, %v262_v6 }
 0x15c   :  { %v311_v15 = vadd.f32 %v1384_v38, %v287_v9  ;;  %v289_v57 = vmul.f32 %v1376_v36, %v265_v21 }
 0x15d   :  { %v320_v8 = vpack.c.bf16 %v309_v27, %v308_v7  ;;  %v310_v18 = vadd.f32 %v1384_v38, %v286_v11 }
 0x15e   :  { %v313_v23 = vadd.f32 %v1384_v38, %v289_v57 }
 0x15f   :  { %v321_v19 = vpack.c.bf16 %v311_v15, %v310_v18 }
 0x161   :  { %927 = vmatmul.mubr.msk.bf16.gmra.mrb[16].mxu0 %vm44_vm0, %v319_v59 }
 0x162   :  { %930 = vmatprep.mubr.msk.bf16.mxu0 %vm1117_vm1, %v1116_v63 }
 0x163   :  { %v1030_v14 = vpop.eup %1029 }
 0x164   :  { %v264_v40 = vmul.f32 %v1030_v14, %v1344_v50  ;;  %v323_v50 = vpack.c.bf16 %v314_v58, %v314_v58 }
 0x166   :  { %v288_v22 = vmul.f32 %v1376_v36, %v264_v40  ;;  %v993_v36 = vld [vmem:[%s1720_s5] sm:$0xff]  }
 0x167   :  { %947 = vmatpush3.bf16.msra.mxu1 %v993_v36 }
 0x168   :  { %v312_v25 = vadd.f32 %v1384_v38, %v288_v22  ;;  %948 = vmatprep.subr.bf16.mxu1 %v1116_v63  ;;  %v994_v38 = vld [vmem:[%s1720_s5 + $0x8] sm:$0xff]  }
 0x169   :  { %931 = vmatmul.mubr.msk.bf16.gmra.mrb[20].mxu0 %vm44_vm0, %v320_v8 }
 0x16a   :  { %934 = vmatprep.mubr.msk.bf16.mxu0 %vm1117_vm1, %v1116_v63  ;;  %v322_v56 = vpack.c.bf16 %v313_v23, %v312_v25 }
 0x16b   :  { %949 = vmatpush3.bf16.msra.mxu1 %v994_v38 }
 0x16c   :  { %950 = vmatprep.subr.bf16.mxu1 %v1116_v63 }
 0x16f   :  { %951 = vmatpush3.bf16.msra.mxu1 %v995_v26 }
 0x170   :  { %952 = vmatprep.subr.bf16.mxu1 %v1116_v63 }
 0x171   :  { %935 = vmatmul.mubr.msk.bf16.gmra.mrb[24].mxu0 %vm44_vm0, %v321_v19 }
 0x172   :  { %938 = vmatprep.mubr.msk.bf16.mxu0 %vm1117_vm1, %v1116_v63 }
 0x173   :  { %953 = vmatpush3.bf16.msra.mxu1 %v996_v16 }
 0x179   :  { %939 = vmatmul.mubr.msk.bf16.gmra.mrb[28].mxu0 %vm44_vm0, %v322_v56 }
 0x17a   :  { %942 = vmatprep.mubr.msk.bf16.mxu0 %vm1117_vm1, %v1116_v63 }
 0x181   :  { %943 = vmatmul.mubr.msk.bf16.gmra.mrb[32].mxu0 %vm44_vm0, %v323_v50 }
 0x214   :  { %v400_v31 = vpop.f32.mrb[0].mxu0 }
 0x215   :  { %v401_v33 = vadd.f32 %v1479_v30, %v400_v31  ;;  %v912_v34 = vpop.f32.mrb[1].mxu0 }
 0x216   :  { %v403_v35 = vpop.f32.mrb[2].mxu0 }
 0x217   :  { %v854_v37 = vmul.f32 -1.702, %v401_v33  ;;  %v404_v20 = vadd.f32 %v1479_v30, %v403_v35  ;;  %v913_v41 = vpop.f32.mrb[3].mxu0 }
 0x219   :  { %v504_v42 = vmul.f32 1.442695, %v854_v37  ;;  %v855_v3 = vmul.f32 -1.702, %v404_v20 }
 0x21b   :  { %1031 = vpow2.f32 %v504_v42  ;;  %v506_v43 = vmul.f32 1.442695, %v855_v3 }
 0x21c   :  { %v408_v44 = vpop.f32.mrb[4].mxu0 }
 0x21d   :  { %1033 = vpow2.f32 %v506_v43  ;;  %v1484_v2 = vadd.f32 %v1479_v30, %v408_v44  ;;  %v916_v45 = vpop.f32.mrb[5].mxu0 }
 0x21e   :  { %v411_v48 = vpop.f32.mrb[6].mxu0 }
 0x21f   :  { %v856_v49 = vmul.f32 -1.702, %v1484_v2  ;;  %v1488_v24 = vadd.f32 %v1479_v30, %v411_v48  ;;  %v917_v51 = vpop.f32.mrb[7].mxu0 }
 0x221   :  { %v508_v52 = vmul.f32 1.442695, %v856_v49  ;;  %v857_v53 = vmul.f32 -1.702, %v1488_v24 }
 0x223   :  { %1035 = vpow2.f32 %v508_v52  ;;  %v510_v46 = vmul.f32 1.442695, %v857_v53 }
 0x224   :  { %v416_v54 = vpop.f32.mrb[8].mxu0 }
 0x225   :  { %v1032_v55 = vpop.eup %1031  ;;  %1037 = vpow2.f32 %v510_v46  ;;  %v1492_v58 = vadd.f32 %v1479_v30, %v416_v54  ;;  %v920_v13 = vpop.f32.mrb[9].mxu0 }
 0x226   :  { %v538_v28 = vadd.f32 1.0, %v1032_v55  ;;  %v419_v29 = vpop.f32.mrb[10].mxu0 }
 0x227   :  { %v1034_v12 = vpop.eup %1033  ;;  %v858_v60 = vmul.f32 -1.702, %v1492_v58  ;;  %v1496_v61 = vadd.f32 %v1479_v30, %v419_v29  ;;  %v921_v62 = vpop.f32.mrb[11].mxu0 }
 0x228   :  { %1039 = vrcp.f32 %v538_v28  ;;  %v539_v47 = vadd.f32 1.0, %v1034_v12 }
 0x229   :  { %v512_v32 = vmul.f32 1.442695, %v858_v60  ;;  %v859_v39 = vmul.f32 -1.702, %v1496_v61 }
 0x22a   :  { %1041 = vrcp.f32 %v539_v47 }
 0x22b   :  { %1043 = vpow2.f32 %v512_v32  ;;  %v514_v59 = vmul.f32 1.442695, %v859_v39 }
 0x22c   :  { %v424_v0 = vpop.f32.mrb[12].mxu0 }
 0x22d   :  { %v1036_v1 = vpop.eup %1035  ;;  %1045 = vpow2.f32 %v514_v59  ;;  %v1500_v4 = vadd.f32 %v1479_v30, %v424_v0  ;;  %v924_v5 = vpop.f32.mrb[13].mxu0 }
 0x22e   :  { %v540_v17 = vadd.f32 1.0, %v1036_v1  ;;  %v427_v27 = vpop.f32.mrb[14].mxu0 }
 0x22f   :  { %v1038_v6 = vpop.eup %1037  ;;  %v860_v7 = vmul.f32 -1.702, %v1500_v4  ;;  %v1504_v8 = vadd.f32 %v1479_v30, %v427_v27  ;;  %v925_v9 = vpop.f32.mrb[15].mxu0 }
 0x230   :  { %1047 = vrcp.f32 %v540_v17  ;;  %v541_v10 = vadd.f32 1.0, %v1038_v6 }
 0x231   :  { %v516_v11 = vmul.f32 1.442695, %v860_v7  ;;  %v861_v14 = vmul.f32 -1.702, %v1504_v8 }
 0x232   :  { %v1040_v21 = vpop.eup %1039  ;;  %1049 = vrcp.f32 %v541_v10 }
 0x233   :  { %1051 = vpow2.f32 %v516_v11  ;;  %v518_v15 = vmul.f32 1.442695, %v861_v14  ;;  %v589_v57 = vmul.f32 %v1040_v21, %v401_v33 }
 0x234   :  { %v1042_v40 = vpop.eup %1041  ;;  %v432_v18 = vpop.f32.mrb[16].mxu0 }
 0x235   :  { %v1044_v19 = vpop.eup %1043  ;;  %v590_v22 = vmul.f32 %v1042_v40, %v404_v20  ;;  %1053 = vpow2.f32 %v518_v15  ;;  %v1508_v23 = vadd.f32 %v1479_v30, %v432_v18  ;;  %v928_v25 = vpop.f32.mrb[17].mxu0 }
 0x236   :  { %v542_v56 = vadd.f32 1.0, %v1044_v19  ;;  %v435_v50 = vpop.f32.mrb[18].mxu0 }
 0x237   :  { %v1046_v36 = vpop.eup %1045  ;;  %v606_v38 = vpack.c.bf16 %v590_v22, %v589_v57  ;;  %v862_v26 = vmul.f32 -1.702, %v1508_v23  ;;  %v1512_v16 = vadd.f32 %v1479_v30, %v435_v50  ;;  %v929_v31 = vpop.f32.mrb[19].mxu0 }
 0x238   :  { %1055 = vrcp.f32 %v542_v56  ;;  %v543_v34 = vadd.f32 1.0, %v1046_v36 }
 0x239   :  { %v520_v33 = vmul.f32 1.442695, %v862_v26  ;;  %v863_v35 = vmul.f32 -1.702, %v1512_v16  ;;  %955 = vmatmul.mubr.msk.bf16.vlgmr.msra.gmra.mrb[0].mxu1 %vm647_vm2, %v606_v38 }
 0x23a   :  { %v1048_v37 = vpop.eup %1047  ;;  %1057 = vrcp.f32 %v543_v34  ;;  %958 = vmatprep.mubr.msk.bf16.mxu1 %vm1117_vm1, %v1116_v63 }
 0x23b   :  { %1059 = vpow2.f32 %v520_v33  ;;  %v522_v20 = vmul.f32 1.442695, %v863_v35  ;;  %v591_v43 = vmul.f32 %v1048_v37, %v1484_v2 }
 0x23c   :  { %v1050_v41 = vpop.eup %1049  ;;  %v440_v42 = vpop.f32.mrb[20].mxu0 }
 0x23d   :  { %v1052_v3 = vpop.eup %1051  ;;  %v592_v44 = vmul.f32 %v1050_v41, %v1488_v24  ;;  %1061 = vpow2.f32 %v522_v20  ;;  %v1521_v45 = vadd.f32 %v1479_v30, %v440_v42  ;;  %v932_v48 = vpop.f32.mrb[21].mxu0 }
 0x23e   :  { %v544_v49 = vadd.f32 1.0, %v1052_v3  ;;  %v443_v51 = vpop.f32.mrb[22].mxu0 }
 0x23f   :  { %v1054_v52 = vpop.eup %1053  ;;  %v607_v53 = vpack.c.bf16 %v592_v44, %v591_v43  ;;  %v864_v46 = vmul.f32 -1.702, %v1521_v45  ;;  %v1525_v54 = vadd.f32 %v1479_v30, %v443_v51  ;;  %v933_v55 = vpop.f32.mrb[23].mxu0 }
 0x240   :  { %1063 = vrcp.f32 %v544_v49  ;;  %v545_v13 = vadd.f32 1.0, %v1054_v52 }
 0x241   :  { %v524_v2 = vmul.f32 1.442695, %v864_v46  ;;  %v865_v24 = vmul.f32 -1.702, %v1525_v54  ;;  %959 = vmatmul.mubr.msk.bf16.gmra.mrb[4].mxu1 %vm647_vm2, %v607_v53 }
 0x242   :  { %v1056_v28 = vpop.eup %1055  ;;  %1065 = vrcp.f32 %v545_v13  ;;  %962 = vmatprep.mubr.msk.bf16.mxu1 %vm1117_vm1, %v1116_v63 }
 0x243   :  { %1067 = vpow2.f32 %v524_v2  ;;  %v526_v29 = vmul.f32 1.442695, %v865_v24  ;;  %v593_v47 = vmul.f32 %v1056_v28, %v1492_v58 }
 0x244   :  { %v1058_v12 = vpop.eup %1057  ;;  %v448_v60 = vpop.f32.mrb[24].mxu0 }
 0x245   :  { %v1060_v62 = vpop.eup %1059  ;;  %v594_v32 = vmul.f32 %v1058_v12, %v1496_v61  ;;  %1069 = vpow2.f32 %v526_v29  ;;  %v1534_v39 = vadd.f32 %v1479_v30, %v448_v60  ;;  %v936_v59 = vpop.f32.mrb[25].mxu0 }
 0x246   :  { %v546_v0 = vadd.f32 1.0, %v1060_v62  ;;  %v451_v1 = vpop.f32.mrb[26].mxu0 }
 0x247   :  { %v1062_v5 = vpop.eup %1061  ;;  %v608_v17 = vpack.c.bf16 %v594_v32, %v593_v47  ;;  %v866_v27 = vmul.f32 -1.702, %v1534_v39  ;;  %v1538_v6 = vadd.f32 %v1479_v30, %v451_v1  ;;  %v937_v7 = vpop.f32.mrb[27].mxu0 }
 0x248   :  { %1071 = vrcp.f32 %v546_v0  ;;  %v547_v9 = vadd.f32 1.0, %v1062_v5 }
 0x249   :  { %v528_v58 = vmul.f32 1.442695, %v866_v27  ;;  %v867_v61 = vmul.f32 -1.702, %v1538_v6  ;;  %963 = vmatmul.mubr.msk.bf16.gmra.mrb[8].mxu1 %vm647_vm2, %v608_v17 }
 0x24a   :  { %v1064_v10 = vpop.eup %1063  ;;  %1073 = vrcp.f32 %v547_v9  ;;  %966 = vmatprep.mubr.msk.bf16.mxu1 %vm1117_vm1, %v1116_v63 }
 0x24b   :  { %1075 = vpow2.f32 %v528_v58  ;;  %v530_v11 = vmul.f32 1.442695, %v867_v61  ;;  %v595_v40 = vmul.f32 %v1064_v10, %v1500_v4  ;;  %v1578_v58 = vld [vmem:[%s1722_s6] ss:$0 sm:$0xff] }
 0x24c   :  { %v1066_v14 = vpop.eup %1065  ;;  %v456_v21 = vpop.f32.mrb[28].mxu0  ;;  %v1099_v61 = vld [vmem:[%s1716_s0] sm:$0xff] }
 0x24d   :  { %v1068_v15 = vpop.eup %1067  ;;  %v596_v18 = vmul.f32 %v1066_v14, %v1504_v8  ;;  %1077 = vpow2.f32 %v530_v11  ;;  %v1547_v19 = vadd.f32 %v1479_v30, %v456_v21  ;;  %v940_v57 = vpop.f32.mrb[29].mxu0 }
 0x24e   :  { %v548_v22 = vadd.f32 1.0, %v1068_v15  ;;  %v459_v25 = vpop.f32.mrb[30].mxu0  ;;  %v1101_v57 = vld [vmem:[%s1716_s0 + $0x10] sm:$0xff] }
 0x24f   :  { %v1070_v56 = vpop.eup %1069  ;;  %v609_v50 = vpack.c.bf16 %v596_v18, %v595_v40  ;;  %v868_v36 = vmul.f32 -1.702, %v1547_v19  ;;  %v460_v38 = vadd.f32 %v1479_v30, %v459_v25  ;;  %v941_v26 = vpop.f32.mrb[31].mxu0 }
 0x250   :  { %1079 = vrcp.f32 %v548_v22  ;;  %v549_v31 = vadd.f32 1.0, %v1070_v56 }
 0x251   :  { %v532_v34 = vmul.f32 1.442695, %v868_v36  ;;  %v869_v4 = vmul.f32 -1.702, %v460_v38  ;;  %967 = vmatmul.mubr.msk.bf16.gmra.mrb[12].mxu1 %vm647_vm2, %v609_v50  ;;  %v1102_v36 = vld [vmem:[%s1716_s0 + $0x18] sm:$0xff] }
 0x252   :  { %v1072_v8 = vpop.eup %1071  ;;  %1081 = vrcp.f32 %v549_v31  ;;  %970 = vmatprep.mubr.msk.bf16.mxu1 %vm1117_vm1, %v1116_v63 }
 0x253   :  { %1083 = vpow2.f32 %v532_v34  ;;  %v534_v33 = vmul.f32 1.442695, %v869_v4  ;;  %v597_v41 = vmul.f32 %v1072_v8, %v1508_v23  ;;  %v1103_v4 = vld [vmem:[%s1716_s0 + $0x20] sm:$0xff] }
 0x254   :  { %v1074_v35 = vpop.eup %1073  ;;  %v464_v37 = vpop.f32.mrb[32].mxu0 }
 0x255   :  { %v1076_v20 = vpop.eup %1075  ;;  %v598_v42 = vmul.f32 %v1074_v35, %v1512_v16  ;;  %1085 = vpow2.f32 %v534_v33  ;;  %v465_v3 = vadd.f32 %v1479_v30, %v464_v37  ;;  %v944_v43 = vpop.f32.mrb[33].mxu0 }
 0x256   :  { %v550_v44 = vadd.f32 1.0, %v1076_v20  ;;  %v467_v48 = vpop.f32.mrb[34].mxu0  ;;  %v1104_v20 = vld [vmem:[%s1716_s0 + $0x28] sm:$0xff] }
 0x257   :  { %v1078_v49 = vpop.eup %1077  ;;  %v610_v51 = vpack.c.bf16 %v598_v42, %v597_v41  ;;  %v870_v52 = vmul.f32 -1.702, %v465_v3  ;;  %v945_v53 = vpop.f32.mrb[35].mxu0 }
 0x258   :  { %1087 = vrcp.f32 %v550_v44  ;;  %v551_v46 = vadd.f32 1.0, %v1078_v49  ;;  %v1105_v44 = vld [vmem:[%s1716_s0 + $0x30] sm:$0xff]  ;;  %v1106_v53 = vld [vmem:[%s1716_s0 + $0x38] sm:$0xff] }
 0x259   :  { %v536_v55 = vmul.f32 1.442695, %v870_v52  ;;  %971 = vmatmul.mubr.msk.bf16.gmra.mrb[16].mxu1 %vm647_vm2, %v610_v51 }
 0x25a   :  { %v1080_v13 = vpop.eup %1079  ;;  %1089 = vrcp.f32 %v551_v46  ;;  %974 = vmatprep.mubr.msk.bf16.mxu1 %vm1117_vm1, %v1116_v63 }
 0x25b   :  { %1091 = vpow2.f32 %v536_v55  ;;  %v599_v16 = vmul.f32 %v1080_v13, %v1521_v45 }
 0x25c   :  { %v1082_v23 = vpop.eup %1081 }
 0x25d   :  { %v1084_v30 = vpop.eup %1083  ;;  %v600_v2 = vmul.f32 %v1082_v23, %v1525_v54 }
 0x25e   :  { %v552_v24 = vadd.f32 1.0, %v1084_v30  ;;  %v1107_v30 = vld [vmem:[%s1716_s0 + $0x40] sm:$0xff] }
 0x25f   :  { %v1086_v28 = vpop.eup %1085  ;;  %v611_v29 = vpack.c.bf16 %v600_v2, %v599_v16 }
 0x260   :  { %1093 = vrcp.f32 %v552_v24  ;;  %v553_v12 = vadd.f32 1.0, %v1086_v28 }
 0x261   :  { %975 = vmatmul.mubr.msk.bf16.gmra.mrb[20].mxu1 %vm647_vm2, %v611_v29  ;;  %v1108_v29 = vld [vmem:[%s1716_s0 + $0x48] sm:$0xff] }
 0x262   :  { %v1088_v60 = vpop.eup %1087  ;;  %1095 = vrcp.f32 %v553_v12  ;;  %978 = vmatprep.mubr.msk.bf16.mxu1 %vm1117_vm1, %v1116_v63 }
 0x263   :  { %v601_v32 = vmul.f32 %v1088_v60, %v1534_v39 }
 0x264   :  { %v1090_v62 = vpop.eup %1089 }
 0x265   :  { %v1092_v47 = vpop.eup %1091  ;;  %v602_v45 = vmul.f32 %v1090_v62, %v1538_v6 }
 0x266   :  { %v554_v59 = vadd.f32 1.0, %v1092_v47 }
 0x267   :  { %v612_v54 = vpack.c.bf16 %v602_v45, %v601_v32  ;;  %v1109_v32 = vld [vmem:[%s1716_s0 + $0x50] sm:$0xff] }
 0x268   :  { %1097 = vrcp.f32 %v554_v59 }
 0x269   :  { %979 = vmatmul.mubr.msk.bf16.gmra.mrb[24].mxu1 %vm647_vm2, %v612_v54 }
 0x26a   :  { %v1094_v0 = vpop.eup %1093  ;;  %982 = vmatprep.mubr.msk.bf16.mxu1 %vm1117_vm1, %v1116_v63 }
 0x26b   :  { %v603_v5 = vmul.f32 %v1094_v0, %v1547_v19 }
 0x26c   :  { %v1096_v1 = vpop.eup %1095 }
 0x26d   :  { %v604_v17 = vmul.f32 %v1096_v1, %v460_v38  ;;  %v1110_v1 = vld [vmem:[%s1716_s0 + $0x58] sm:$0xff] }
 0x26f   :  { %v613_v27 = vpack.c.bf16 %v604_v17, %v603_v5 }
 0x271   :  { %983 = vmatmul.mubr.msk.bf16.gmra.mrb[28].mxu1 %vm647_vm2, %v613_v27 }
 0x272   :  { %v1098_v7 = vpop.eup %1097  ;;  %986 = vmatprep.mubr.msk.bf16.mxu1 %vm1117_vm1, %v1116_v63  ;;  %v1100_v63 = vld [vmem:[%s1716_s0 + $0x8] sm:$0xff] }
 0x273   :  { %v605_v39 = vmul.f32 %v1098_v7, %v465_v3 }
 0x275   :  { %v614_v6 = vpack.c.bf16 %v605_v39, %v605_v39  ;;  %v1111_v39 = vld [vmem:[%s1716_s0 + $0x60] sm:$0xff] }
 0x279   :  { %987 = vmatmul.mubr.msk.bf16.gmra.mrb[32].mxu1 %vm647_vm2, %v614_v6 }
 0x30c   :  { %v709_v9 = vpop.f32.mrb[0].mxu1 }
 0x30d   :  { %v779_v10 = vadd.f32 %v1099_v61, %v709_v9  ;;  %v956_v11 = vpop.f32.mrb[1].mxu1 }
 0x30e   :  { %v712_v14 = vpop.f32.mrb[2].mxu1  ;;  %v1112_v11 = vld [vmem:[%s1716_s0 + $0x68] sm:$0xff] }
 0x30f   :  { %v803_v21 = vadd.f32 %v1578_v58, %v779_v10  ;;  %v780_v15 = vadd.f32 %v1100_v63, %v712_v14  ;;  %v957_v40 = vpop.f32.mrb[3].mxu1 }
 0x310   :  { %v1113_v40 = vld [vmem:[%s1716_s0 + $0x70] sm:$0xff] }
 0x311   :  { %820 = vst.msk [vmem:[%s1723_s7] sm:$0xff] %vm44_vm0, %v803_v21  ;;  %v804_v18 = vadd.f32 %v1578_v58, %v780_v15 }
 0x313   :  { %821 = vst.msk [vmem:[%s1723_s7 + $0x8] sm:$0xff] %vm44_vm0, %v804_v18 }
 0x314   :  { %v717_v19 = vpop.f32.mrb[4].mxu1 }
 0x315   :  { %v781_v22 = vadd.f32 %v1101_v57, %v717_v19  ;;  %v960_v25 = vpop.f32.mrb[5].mxu1 }
 0x316   :  { %v720_v56 = vpop.f32.mrb[6].mxu1  ;;  %v1114_v25 = vld [vmem:[%s1716_s0 + $0x78] sm:$0xff] }
 0x317   :  { %v805_v50 = vadd.f32 %v1578_v58, %v781_v22  ;;  %v782_v38 = vadd.f32 %v1102_v36, %v720_v56  ;;  %v961_v26 = vpop.f32.mrb[7].mxu1 }
 0x318   :  { %v1115_v26 = vld [vmem:[%s1716_s0 + $0x80] sm:$0xff] }
 0x319   :  { %822 = vst.msk [vmem:[%s1723_s7 + $0x10] sm:$0xff] %vm44_vm0, %v805_v50  ;;  %v806_v31 = vadd.f32 %v1578_v58, %v782_v38 }
 0x31b   :  { %823 = vst.msk [vmem:[%s1723_s7 + $0x18] sm:$0xff] %vm44_vm0, %v806_v31 }
 0x31c   :  { %v725_v34 = vpop.f32.mrb[8].mxu1 }
 0x31d   :  { %v783_v8 = vadd.f32 %v1103_v4, %v725_v34  ;;  %v964_v33 = vpop.f32.mrb[9].mxu1 }
 0x31e   :  { %v728_v35 = vpop.f32.mrb[10].mxu1 }
 0x31f   :  { %v807_v37 = vadd.f32 %v1578_v58, %v783_v8  ;;  %v784_v41 = vadd.f32 %v1104_v20, %v728_v35  ;;  %v965_v42 = vpop.f32.mrb[11].mxu1 }
 0x321   :  { %824 = vst.msk [vmem:[%s1723_s7 + $0x20] sm:$0xff] %vm44_vm0, %v807_v37  ;;  %v808_v3 = vadd.f32 %v1578_v58, %v784_v41 }
 0x323   :  { %825 = vst.msk [vmem:[%s1723_s7 + $0x28] sm:$0xff] %vm44_vm0, %v808_v3 }
 0x324   :  { %v733_v43 = vpop.f32.mrb[12].mxu1 }
 0x325   :  { %v785_v48 = vadd.f32 %v1105_v44, %v733_v43  ;;  %v968_v49 = vpop.f32.mrb[13].mxu1 }
 0x326   :  { %v736_v51 = vpop.f32.mrb[14].mxu1 }
 0x327   :  { %v809_v52 = vadd.f32 %v1578_v58, %v785_v48  ;;  %v786_v46 = vadd.f32 %v1106_v53, %v736_v51  ;;  %v969_v55 = vpop.f32.mrb[15].mxu1 }
 0x329   :  { %826 = vst.msk [vmem:[%s1723_s7 + $0x30] sm:$0xff] %vm44_vm0, %v809_v52  ;;  %v810_v13 = vadd.f32 %v1578_v58, %v786_v46 }
 0x32b   :  { %827 = vst.msk [vmem:[%s1723_s7 + $0x38] sm:$0xff] %vm44_vm0, %v810_v13 }
 0x32c   :  { %v741_v23 = vpop.f32.mrb[16].mxu1 }
 0x32d   :  { %v787_v16 = vadd.f32 %v1107_v30, %v741_v23  ;;  %v972_v2 = vpop.f32.mrb[17].mxu1 }
 0x32e   :  { %v744_v24 = vpop.f32.mrb[18].mxu1 }
 0x32f   :  { %v811_v28 = vadd.f32 %v1578_v58, %v787_v16  ;;  %v788_v12 = vadd.f32 %v1108_v29, %v744_v24  ;;  %v973_v60 = vpop.f32.mrb[19].mxu1 }
 0x331   :  { %828 = vst.msk [vmem:[%s1723_s7 + $0x40] sm:$0xff] %vm44_vm0, %v811_v28  ;;  %v812_v62 = vadd.f32 %v1578_v58, %v788_v12 }
 0x333   :  { %829 = vst.msk [vmem:[%s1723_s7 + $0x48] sm:$0xff] %vm44_vm0, %v812_v62 }
 0x334   :  { %v749_v47 = vpop.f32.mrb[20].mxu1 }
 0x335   :  { %v789_v45 = vadd.f32 %v1109_v32, %v749_v47  ;;  %v976_v59 = vpop.f32.mrb[21].mxu1 }
 0x336   :  { %v752_v54 = vpop.f32.mrb[22].mxu1 }
 0x337   :  { %v813_v0 = vadd.f32 %v1578_v58, %v789_v45  ;;  %v790_v5 = vadd.f32 %v1110_v1, %v752_v54  ;;  %v977_v17 = vpop.f32.mrb[23].mxu1 }
 0x339   :  { %830 = vst.msk [vmem:[%s1723_s7 + $0x50] sm:$0xff] %vm44_vm0, %v813_v0  ;;  %v814_v27 = vadd.f32 %v1578_v58, %v790_v5 }
 0x33b   :  { %831 = vst.msk [vmem:[%s1723_s7 + $0x58] sm:$0xff] %vm44_vm0, %v814_v27 }
 0x33c   :  { %v757_v7 = vpop.f32.mrb[24].mxu1 }
 0x33d   :  { %v791_v6 = vadd.f32 %v1111_v39, %v757_v7  ;;  %v980_v9 = vpop.f32.mrb[25].mxu1 }
 0x33e   :  { %v760_v61 = vpop.f32.mrb[26].mxu1 }
 0x33f   :  { %v815_v10 = vadd.f32 %v1578_v58, %v791_v6  ;;  %v792_v14 = vadd.f32 %v1112_v11, %v760_v61  ;;  %v981_v21 = vpop.f32.mrb[27].mxu1 }
 0x341   :  { %832 = vst.msk [vmem:[%s1723_s7 + $0x60] sm:$0xff] %vm44_vm0, %v815_v10  ;;  %v816_v63 = vadd.f32 %v1578_v58, %v792_v14 }
 0x343   :  { %833 = vst.msk [vmem:[%s1723_s7 + $0x68] sm:$0xff] %vm44_vm0, %v816_v63 }
 0x344   :  { %v765_v15 = vpop.f32.mrb[28].mxu1 }
 0x345   :  { %v793_v18 = vadd.f32 %v1113_v40, %v765_v15  ;;  %v984_v19 = vpop.f32.mrb[29].mxu1 }
 0x346   :  { %v768_v57 = vpop.f32.mrb[30].mxu1 }
 0x347   :  { %v817_v22 = vadd.f32 %v1578_v58, %v793_v18  ;;  %v794_v56 = vadd.f32 %v1114_v25, %v768_v57  ;;  %v985_v50 = vpop.f32.mrb[31].mxu1 }
 0x349   :  { %834 = vst.msk [vmem:[%s1723_s7 + $0x70] sm:$0xff] %vm44_vm0, %v817_v22  ;;  %v818_v36 = vadd.f32 %v1578_v58, %v794_v56 }
 0x34b   :  { %835 = vst.msk [vmem:[%s1723_s7 + $0x78] sm:$0xff] %vm44_vm0, %v818_v36 }
 0x34c   :  { %v773_v38 = vpop.f32.mrb[32].mxu1 }
 0x34d   :  { %v795_v31 = vadd.f32 %v1115_v26, %v773_v38  ;;  %v988_v34 = vpop.f32.mrb[33].mxu1 }
 0x34e   :  { %v776_v4 = vpop.f32.mrb[34].mxu1 }
 0x34f   :  { %v819_v8 = vadd.f32 %v1578_v58, %v795_v31  ;;  %v989_v33 = vpop.f32.mrb[35].mxu1 }
 0x351   :  { %836 = vst.msk [vmem:[%s1723_s7 + $0x80] sm:$0xff] %vm44_vm0, %v819_v8 }

// kernel: vit_for_clip_forward.45
= control target key start
LH: loop header
LB: loop body
LE: loop exit
PB: predicated region body
PF: predicated region fallthrough
CT: control target
= control target key end

     0   :  { %vm16_vm0 = vcmask 130048   ;;  %v407_v0 = vmov 0.0   ;;  %vm408_vm1 = vmmov 0   ;;  %s574_s1 = inlined_call_operand.vmem [shape: bf16[16,16], index: 1, kind: input, shape index: {}]   ;;  %s575_s0 = inlined_call_operand.vmem [shape: bf16[136,16], index: 0, kind: input, shape index: {}]   ;;  %s576_s2 = inlined_call_operand.vmem [shape: f32[136,16], index: 2, kind: output, shape index: {}]  }
   0x1   :  { %355 = vmatprep.subr.bf16.mxu0 %v407_v0  ;;  %v397_v1 = vld [vmem:[%s574_s1] sm:$0xff]   ;;  %357 = vmatprep.mubr.msk.bf16.mxu0 %vm408_vm1, %v407_v0  ;;  %17 = vst.msk [vmem:[#allocation2] sm:$0xff] %vm16_vm0, %v407_v0  ;;  %18 = vst.msk [vmem:[#allocation2 + $0x8] sm:$0xff] %vm16_vm0, %v407_v0  ;;  %v399_v3 = vld [vmem:[%s575_s0 + $0x28] sm:$0xff]  }
   0x2   :  { %19 = vst.msk [vmem:[#allocation2 + $0x10] sm:$0xff] %vm16_vm0, %v407_v0  ;;  %20 = vst.msk [vmem:[#allocation2 + $0x18] sm:$0xff] %vm16_vm0, %v407_v0  ;;  %v398_v2 = vld [vmem:[%s575_s0] sm:$0xff]   ;;  %393 = vmatprep.subr.bf16.mxu1 %v407_v0  ;;  %377 = vmatprep.mubr.msk.bf16.mxu1 %vm408_vm1, %v407_v0  ;;  %v400_v4 = vld [vmem:[%s575_s0 + $0x8] sm:$0xff]  }
   0x3   :  { %21 = vst.msk [vmem:[#allocation2 + $0x20] sm:$0xff] %vm16_vm0, %v407_v0  ;;  %22 = vst.msk [vmem:[#allocation2 + $0x28] sm:$0xff] %vm16_vm0, %v407_v0  ;;  %356 = vmatpush3.bf16.msra.mxu0 %v397_v1  ;;  %394 = vmatpush3.bf16.msra.mxu1 %v397_v1  ;;  %v401_v5 = vld [vmem:[%s575_s0 + $0x30] sm:$0xff]   ;;  %v403_v7 = vld [vmem:[%s575_s0 + $0x38] sm:$0xff]  }
   0x4   :  { %23 = vst.msk [vmem:[#allocation2 + $0x30] sm:$0xff] %vm16_vm0, %v407_v0  ;;  %24 = vst.msk [vmem:[#allocation2 + $0x38] sm:$0xff] %vm16_vm0, %v407_v0  ;;  %v402_v6 = vld [vmem:[%s575_s0 + $0x10] sm:$0xff]   ;;  %v404_v8 = vld [vmem:[%s575_s0 + $0x18] sm:$0xff]  }
   0x5   :  { %25 = vst.msk [vmem:[#allocation2 + $0x40] sm:$0xff] %vm16_vm0, %v407_v0  ;;  %26 = vst.msk [vmem:[#allocation2 + $0x48] sm:$0xff] %vm16_vm0, %v407_v0  ;;  %v405_v9 = vld [vmem:[%s575_s0 + $0x40] ss:$0 sps:$4 sm:$0xff]  }
   0x6   :  { %27 = vst.msk [vmem:[#allocation2 + $0x50] sm:$0xff] %vm16_vm0, %v407_v0  ;;  %28 = vst.msk [vmem:[#allocation2 + $0x58] sm:$0xff] %vm16_vm0, %v407_v0  ;;  %358 = vmatmul.mubr.msk.bf16.vlgmr.msra.gmra.mrb[0].mxu0 %vm16_vm0, %v398_v2  ;;  %378 = vmatmul.mubr.msk.bf16.vlgmr.msra.gmra.mrb[0].mxu1 %vm16_vm0, %v399_v3  ;;  %v406_v10 = vld [vmem:[%s575_s0 + $0x20] sm:$0xff]  }
   0x7   :  { %29 = vst.msk [vmem:[#allocation2 + $0x60] sm:$0xff] %vm16_vm0, %v407_v0  ;;  %30 = vst.msk [vmem:[#allocation2 + $0x68] sm:$0xff] %vm16_vm0, %v407_v0  ;;  %361 = vmatprep.mubr.msk.bf16.mxu0 %vm408_vm1, %v407_v0  ;;  %381 = vmatprep.mubr.msk.bf16.mxu1 %vm408_vm1, %v407_v0 }
   0x8   :  { %31 = vst.msk [vmem:[#allocation2 + $0x70] sm:$0xff] %vm16_vm0, %v407_v0  ;;  %32 = vst.msk [vmem:[#allocation2 + $0x78] sm:$0xff] %vm16_vm0, %v407_v0  ;;  %v34_v11 = vld [vmem:[#allocation2] sm:$0xff]  ;;  %v35_v14 = vld [vmem:[#allocation2 + $0x8] sm:$0xff] }
   0x9   :  { %33 = vst.msk [vmem:[#allocation2 + $0x80] sm:$0xff] %vm16_vm0, %v407_v0  ;;  %v36_v27 = vld [vmem:[#allocation2 + $0x10] sm:$0xff]  ;;  %v37_v30 = vld [vmem:[#allocation2 + $0x18] sm:$0xff] }
   0xa   :  { %v38_v47 = vld [vmem:[#allocation2 + $0x20] sm:$0xff]  ;;  %v39_v50 = vld [vmem:[#allocation2 + $0x28] sm:$0xff] }
   0xb   :  { %v40_v3 = vld [vmem:[#allocation2 + $0x30] sm:$0xff] }
   0xd   :  { %v44_v12 = vld [vmem:[#allocation2 + $0x50] sm:$0xff]  ;;  %v45_v16 = vld [vmem:[#allocation2 + $0x58] sm:$0xff] }
   0xe   :  { %362 = vmatmul.mubr.msk.bf16.gmra.mrb[4].mxu0 %vm16_vm0, %v400_v4  ;;  %382 = vmatmul.mubr.msk.bf16.gmra.mrb[4].mxu1 %vm16_vm0, %v401_v5  ;;  %v46_v28 = vld [vmem:[#allocation2 + $0x60] sm:$0xff]  ;;  %v47_v32 = vld [vmem:[#allocation2 + $0x68] sm:$0xff] }
   0xf   :  { %365 = vmatprep.mubr.msk.bf16.mxu0 %vm408_vm1, %v407_v0  ;;  %385 = vmatprep.mubr.msk.bf16.mxu1 %vm408_vm1, %v407_v0  ;;  %v48_v48 = vld [vmem:[#allocation2 + $0x70] sm:$0xff]  ;;  %v49_v52 = vld [vmem:[#allocation2 + $0x78] sm:$0xff] }
  0x10   :  { %v50_v4 = vld [vmem:[#allocation2 + $0x80] sm:$0xff] }
  0x16   :  { %366 = vmatmul.mubr.msk.bf16.gmra.mrb[8].mxu0 %vm16_vm0, %v402_v6  ;;  %386 = vmatmul.mubr.msk.bf16.gmra.mrb[8].mxu1 %vm16_vm0, %v403_v7  ;;  %v41_v6 = vld [vmem:[#allocation2 + $0x38] sm:$0xff] }
  0x17   :  { %369 = vmatprep.mubr.msk.bf16.mxu0 %vm408_vm1, %v407_v0  ;;  %389 = vmatprep.mubr.msk.bf16.mxu1 %vm408_vm1, %v407_v0 }
  0x1e   :  { %370 = vmatmul.mubr.msk.bf16.gmra.mrb[12].mxu0 %vm16_vm0, %v404_v8  ;;  %390 = vmatmul.mubr.msk.bf16.gmra.mrb[12].mxu1 %vm16_vm0, %v405_v9 }
  0x1f   :  { %373 = vmatprep.mubr.msk.bf16.mxu0 %vm408_vm1, %v407_v0 }
  0x26   :  { %374 = vmatmul.mubr.msk.bf16.gmra.mrb[16].mxu0 %vm16_vm0, %v406_v10 }
  0xd9   :  { %v181_v13 = vpop.f32.mrb[0].mxu0  ;;  %v221_v15 = vpop.f32.mrb[0].mxu1 }
  0xda   :  { %v251_v17 = vadd.f32 %v181_v13, %v34_v11  ;;  %v359_v18 = vpop.f32.mrb[1].mxu0  ;;  %v261_v19 = vadd.f32 %v221_v15, %v44_v12  ;;  %v379_v20 = vpop.f32.mrb[1].mxu1 }
  0xdb   :  { %v184_v21 = vpop.f32.mrb[2].mxu0  ;;  %v224_v22 = vpop.f32.mrb[2].mxu1 }
  0xdc   :  { %268 = vst.msk [vmem:[#allocation2] sm:$0xff] %vm16_vm0, %v251_v17  ;;  %v252_v23 = vadd.f32 %v184_v21, %v35_v14  ;;  %v360_v24 = vpop.f32.mrb[3].mxu0  ;;  %278 = vst.msk [vmem:[#allocation2 + $0x50] sm:$0xff] %vm16_vm0, %v261_v19  ;;  %v262_v25 = vadd.f32 %v224_v22, %v45_v16  ;;  %v380_v26 = vpop.f32.mrb[3].mxu1  ;;  %v42_v21 = vld [vmem:[#allocation2 + $0x40] sm:$0xff] }
  0xde   :  { %269 = vst.msk [vmem:[#allocation2 + $0x8] sm:$0xff] %vm16_vm0, %v252_v23  ;;  %279 = vst.msk [vmem:[#allocation2 + $0x58] sm:$0xff] %vm16_vm0, %v262_v25  ;;  %v43_v23 = vld [vmem:[#allocation2 + $0x48] sm:$0xff] }
  0xe1   :  { %v189_v29 = vpop.f32.mrb[4].mxu0  ;;  %v229_v31 = vpop.f32.mrb[4].mxu1 }
  0xe2   :  { %v253_v33 = vadd.f32 %v189_v29, %v36_v27  ;;  %v363_v34 = vpop.f32.mrb[5].mxu0  ;;  %v263_v35 = vadd.f32 %v229_v31, %v46_v28  ;;  %v383_v36 = vpop.f32.mrb[5].mxu1 }
  0xe3   :  { %v288_v37 = vld [vmem:[#allocation2] sm:$0xff]  ;;  %v298_v38 = vld [vmem:[#allocation2 + $0x50] sm:$0xff]  ;;  %v192_v39 = vpop.f32.mrb[6].mxu0  ;;  %v232_v40 = vpop.f32.mrb[6].mxu1 }
  0xe4   :  { %305 = vst.msk [vmem:[%s576_s2] sm:$0xff] %vm16_vm0, %v288_v37  ;;  %315 = vst.msk [vmem:[%s576_s2 + $0x50] sm:$0xff] %vm16_vm0, %v298_v38  ;;  %v254_v41 = vadd.f32 %v192_v39, %v37_v30  ;;  %v364_v42 = vpop.f32.mrb[7].mxu0  ;;  %v264_v43 = vadd.f32 %v232_v40, %v47_v32  ;;  %v384_v44 = vpop.f32.mrb[7].mxu1 }
  0xe5   :  { %270 = vst.msk [vmem:[#allocation2 + $0x10] sm:$0xff] %vm16_vm0, %v253_v33  ;;  %280 = vst.msk [vmem:[#allocation2 + $0x60] sm:$0xff] %vm16_vm0, %v263_v35  ;;  %v289_v45 = vld [vmem:[#allocation2 + $0x8] sm:$0xff]  ;;  %v299_v46 = vld [vmem:[#allocation2 + $0x58] sm:$0xff] }
  0xe6   :  { %306 = vst.msk [vmem:[%s576_s2 + $0x8] sm:$0xff] %vm16_vm0, %v289_v45  ;;  %316 = vst.msk [vmem:[%s576_s2 + $0x58] sm:$0xff] %vm16_vm0, %v299_v46 }
  0xe7   :  { %271 = vst.msk [vmem:[#allocation2 + $0x18] sm:$0xff] %vm16_vm0, %v254_v41  ;;  %281 = vst.msk [vmem:[#allocation2 + $0x68] sm:$0xff] %vm16_vm0, %v264_v43 }
  0xe9   :  { %v197_v49 = vpop.f32.mrb[8].mxu0  ;;  %v237_v51 = vpop.f32.mrb[8].mxu1 }
  0xea   :  { %v255_v53 = vadd.f32 %v197_v49, %v38_v47  ;;  %v367_v54 = vpop.f32.mrb[9].mxu0  ;;  %v265_v55 = vadd.f32 %v237_v51, %v48_v48  ;;  %v387_v56 = vpop.f32.mrb[9].mxu1 }
  0xeb   :  { %v200_v59 = vpop.f32.mrb[10].mxu0  ;;  %v240_v60 = vpop.f32.mrb[10].mxu1 }
  0xec   :  { %v290_v57 = vld [vmem:[#allocation2 + $0x10] sm:$0xff]  ;;  %v300_v58 = vld [vmem:[#allocation2 + $0x60] sm:$0xff]  ;;  %272 = vst.msk [vmem:[#allocation2 + $0x20] sm:$0xff] %vm16_vm0, %v255_v53  ;;  %v256_v61 = vadd.f32 %v200_v59, %v39_v50  ;;  %v368_v62 = vpop.f32.mrb[11].mxu0  ;;  %282 = vst.msk [vmem:[#allocation2 + $0x70] sm:$0xff] %vm16_vm0, %v265_v55  ;;  %v266_v63 = vadd.f32 %v240_v60, %v49_v52  ;;  %v388_v0 = vpop.f32.mrb[11].mxu1 }
  0xed   :  { %307 = vst.msk [vmem:[%s576_s2 + $0x10] sm:$0xff] %vm16_vm0, %v290_v57  ;;  %317 = vst.msk [vmem:[%s576_s2 + $0x60] sm:$0xff] %vm16_vm0, %v300_v58 }
  0xee   :  { %v291_v1 = vld [vmem:[#allocation2 + $0x18] sm:$0xff]  ;;  %v301_v2 = vld [vmem:[#allocation2 + $0x68] sm:$0xff]  ;;  %273 = vst.msk [vmem:[#allocation2 + $0x28] sm:$0xff] %vm16_vm0, %v256_v61  ;;  %283 = vst.msk [vmem:[#allocation2 + $0x78] sm:$0xff] %vm16_vm0, %v266_v63 }
  0xef   :  { %308 = vst.msk [vmem:[%s576_s2 + $0x18] sm:$0xff] %vm16_vm0, %v291_v1  ;;  %318 = vst.msk [vmem:[%s576_s2 + $0x68] sm:$0xff] %vm16_vm0, %v301_v2 }
  0xf1   :  { %v205_v5 = vpop.f32.mrb[12].mxu0  ;;  %v245_v7 = vpop.f32.mrb[12].mxu1 }
  0xf2   :  { %v257_v8 = vadd.f32 %v205_v5, %v40_v3  ;;  %v371_v9 = vpop.f32.mrb[13].mxu0  ;;  %v267_v10 = vadd.f32 %v245_v7, %v50_v4  ;;  %v391_v11 = vpop.f32.mrb[13].mxu1 }
  0xf3   :  { %v292_v12 = vld [vmem:[#allocation2 + $0x20] sm:$0xff]  ;;  %v302_v13 = vld [vmem:[#allocation2 + $0x70] sm:$0xff]  ;;  %v208_v14 = vpop.f32.mrb[14].mxu0  ;;  %v248_v15 = vpop.f32.mrb[14].mxu1 }
  0xf4   :  { %309 = vst.msk [vmem:[%s576_s2 + $0x20] sm:$0xff] %vm16_vm0, %v292_v12  ;;  %319 = vst.msk [vmem:[%s576_s2 + $0x70] sm:$0xff] %vm16_vm0, %v302_v13  ;;  %v258_v16 = vadd.f32 %v208_v14, %v41_v6  ;;  %v372_v17 = vpop.f32.mrb[15].mxu0  ;;  %v392_v18 = vpop.f32.mrb[15].mxu1 }
  0xf5   :  { %274 = vst.msk [vmem:[#allocation2 + $0x30] sm:$0xff] %vm16_vm0, %v257_v8  ;;  %284 = vst.msk [vmem:[#allocation2 + $0x80] sm:$0xff] %vm16_vm0, %v267_v10  ;;  %v293_v19 = vld [vmem:[#allocation2 + $0x28] sm:$0xff]  ;;  %v303_v20 = vld [vmem:[#allocation2 + $0x78] sm:$0xff] }
  0xf6   :  { %310 = vst.msk [vmem:[%s576_s2 + $0x28] sm:$0xff] %vm16_vm0, %v293_v19  ;;  %320 = vst.msk [vmem:[%s576_s2 + $0x78] sm:$0xff] %vm16_vm0, %v303_v20 }
  0xf7   :  { %275 = vst.msk [vmem:[#allocation2 + $0x38] sm:$0xff] %vm16_vm0, %v258_v16 }
  0xf9   :  { %v213_v22 = vpop.f32.mrb[16].mxu0 }
  0xfa   :  { %v259_v24 = vadd.f32 %v213_v22, %v42_v21  ;;  %v375_v25 = vpop.f32.mrb[17].mxu0 }
  0xfb   :  { %v216_v28 = vpop.f32.mrb[18].mxu0 }
  0xfc   :  { %v294_v26 = vld [vmem:[#allocation2 + $0x30] sm:$0xff]  ;;  %v304_v27 = vld [vmem:[#allocation2 + $0x80] sm:$0xff]  ;;  %276 = vst.msk [vmem:[#allocation2 + $0x40] sm:$0xff] %vm16_vm0, %v259_v24  ;;  %v260_v29 = vadd.f32 %v216_v28, %v43_v23  ;;  %v376_v30 = vpop.f32.mrb[19].mxu0 }
  0xfd   :  { %311 = vst.msk [vmem:[%s576_s2 + $0x30] sm:$0xff] %vm16_vm0, %v294_v26  ;;  %321 = vst.msk [vmem:[%s576_s2 + $0x80] sm:$0xff] %vm16_vm0, %v304_v27 }
  0xfe   :  { %v295_v31 = vld [vmem:[#allocation2 + $0x38] sm:$0xff]  ;;  %277 = vst.msk [vmem:[#allocation2 + $0x48] sm:$0xff] %vm16_vm0, %v260_v29 }
  0xff   :  { %312 = vst.msk [vmem:[%s576_s2 + $0x38] sm:$0xff] %vm16_vm0, %v295_v31 }
 0x103   :  { %v296_v32 = vld [vmem:[#allocation2 + $0x40] sm:$0xff] }
 0x104   :  { %313 = vst.msk [vmem:[%s576_s2 + $0x40] sm:$0xff] %vm16_vm0, %v296_v32 }
 0x105   :  { %v297_v33 = vld [vmem:[#allocation2 + $0x48] sm:$0xff] }
 0x106   :  { %314 = vst.msk [vmem:[%s576_s2 + $0x48] sm:$0xff] %vm16_vm0, %v297_v33 }

// kernel: vit_for_clip_forward.47
= control target key start
LH: loop header
LB: loop body
LE: loop exit
PB: predicated region body
PF: predicated region fallthrough
CT: control target
= control target key end

     0   :  { %vm19_vm0 = vcmask 261120   ;;  %s202_s0 = inlined_call_operand.vmem [shape: f32[40,32], index: 0, kind: input, shape index: {}]   ;;  %s203_s1 = inlined_call_operand.vmem [shape: f32[1,32], index: 1, kind: input, shape index: {}]   ;;  %s204_s2 = inlined_call_operand.vmem [shape: f32[1,32], index: 2, kind: input, shape index: {}]   ;;  %s205_s3 = inlined_call_operand.vmem [shape: f32[40,32], index: 3, kind: output, shape index: {}]  }
   0x1   :  { %v14_v0 = vld [vmem:[%s202_s0] sm:$0xff]  ;;  %v16_v1 = vld [vmem:[%s202_s0 + $0x10] sm:$0xff]  ;;  %v15_v2 = vld [vmem:[%s202_s0 + $0x8] sm:$0xff] }
   0x2   :  { %v20_v3 = vsel %vm19_vm0, %v14_v0, 0.0  ;;  %v26_v4 = vsel %vm19_vm0, %v16_v1, 0.0  ;;  %v17_v5 = vld [vmem:[%s202_s0 + $0x18] sm:$0xff]  ;;  %v23_v6 = vsel %vm19_vm0, %v15_v2, 0.0  ;;  %v18_v8 = vld [vmem:[%s202_s0 + $0x20] sm:$0xff] }
   0x3   :  { %21 = vadd.xlane.f32.xlu0 %v20_v3  ;;  %27 = vadd.xlane.f32.xlu1 %v26_v4  ;;  %v29_v7 = vsel %vm19_vm0, %v17_v5, 0.0  ;;  %v32_v9 = vsel %vm19_vm0, %v18_v8, 0.0  ;;  %v119_v51 = vld [vmem:[%s203_s1] ss:$0 sm:$0xff] }
   0x4   :  { %v120_v53 = vld [vmem:[%s204_s2] ss:$0 sm:$0xff] }
   0x7   :  { %24 = vadd.xlane.f32.xlu0 %v23_v6  ;;  %30 = vadd.xlane.f32.xlu1 %v29_v7 }
   0xb   :  { %33 = vadd.xlane.f32.xlu0 %v32_v9 }
  0x90   :  { %v22_v10 = vpop.xlane.xlu0 %21  ;;  %v28_v11 = vpop.xlane.xlu1 %27 }
  0x91   :  { %v36_v12 = vmul.f32 0.03125, %v22_v10  ;;  %v38_v13 = vmul.f32 0.03125, %v28_v11 }
  0x93   :  { %v41_v14 = vsub.f32 %v14_v0, %v36_v12  ;;  %v43_v15 = vsub.f32 %v16_v1, %v38_v13 }
  0x94   :  { %v25_v16 = vpop.xlane.xlu0 %24  ;;  %v31_v17 = vpop.xlane.xlu1 %30 }
  0x95   :  { %v37_v18 = vmul.f32 0.03125, %v25_v16  ;;  %v39_v19 = vmul.f32 0.03125, %v31_v17  ;;  %v46_v20 = vmul.f32 %v41_v14, %v41_v14  ;;  %v48_v21 = vmul.f32 %v43_v15, %v43_v15 }
  0x97   :  { %v42_v22 = vsub.f32 %v15_v2, %v37_v18  ;;  %v44_v23 = vsub.f32 %v17_v5, %v39_v19  ;;  %v51_v24 = vsel %vm19_vm0, %v46_v20, 0.0  ;;  %v57_v27 = vsel %vm19_vm0, %v48_v21, 0.0 }
  0x98   :  { %52 = vadd.xlane.f32.xlu1 %v51_v24  ;;  %v34_v25 = vpop.xlane.xlu0 %33 }
  0x99   :  { %v40_v26 = vmul.f32 0.03125, %v34_v25  ;;  %v47_v28 = vmul.f32 %v42_v22, %v42_v22  ;;  %v49_v29 = vmul.f32 %v44_v23, %v44_v23 }
  0x9b   :  { %v45_v30 = vsub.f32 %v18_v8, %v40_v26  ;;  %v54_v31 = vsel %vm19_vm0, %v47_v28, 0.0  ;;  %v60_v32 = vsel %vm19_vm0, %v49_v29, 0.0 }
  0x9c   :  { %58 = vadd.xlane.f32.xlu1 %v57_v27  ;;  %55 = vadd.xlane.f32.xlu0 %v54_v31 }
  0x9d   :  { %v50_v33 = vmul.f32 %v45_v30, %v45_v30 }
  0x9f   :  { %v63_v34 = vsel %vm19_vm0, %v50_v33, 0.0 }
  0xa0   :  { %61 = vadd.xlane.f32.xlu0 %v60_v32  ;;  %64 = vadd.xlane.f32.xlu1 %v63_v34 }
 0x125   :  { %v53_v35 = vpop.xlane.xlu1 %52 }
 0x126   :  { %v66_v36 = vmul.f32 0.03125, %v53_v35 }
 0x128   :  { %v71_v37 = vadd.f32 1e-05, %v66_v36 }
 0x129   :  { %v59_v38 = vpop.xlane.xlu1 %58  ;;  %v56_v39 = vpop.xlane.xlu0 %55 }
 0x12a   :  { %121 = vrsqrt.f32 %v71_v37  ;;  %v68_v40 = vmul.f32 0.03125, %v59_v38  ;;  %v67_v41 = vmul.f32 0.03125, %v56_v39 }
 0x12c   :  { %v73_v42 = vadd.f32 1e-05, %v68_v40  ;;  %v72_v43 = vadd.f32 1e-05, %v67_v41 }
 0x12d   :  { %v65_v44 = vpop.xlane.xlu1 %64  ;;  %v62_v45 = vpop.xlane.xlu0 %61 }
 0x12e   :  { %123 = vrsqrt.f32 %v73_v42  ;;  %v70_v46 = vmul.f32 0.03125, %v65_v44  ;;  %v69_v47 = vmul.f32 0.03125, %v62_v45 }
 0x12f   :  { %125 = vrsqrt.f32 %v72_v43 }
 0x130   :  { %v75_v48 = vadd.f32 1e-05, %v70_v46  ;;  %v74_v49 = vadd.f32 1e-05, %v69_v47 }
 0x132   :  { %127 = vrsqrt.f32 %v75_v48 }
 0x133   :  { %129 = vrsqrt.f32 %v74_v49 }
 0x134   :  { %v122_v50 = vpop.eup %121 }
 0x135   :  { %v81_v52 = vmul.f32 %v122_v50, %v41_v14 }
 0x137   :  { %v93_v54 = vmul.f32 %v119_v51, %v81_v52 }
 0x138   :  { %v124_v55 = vpop.eup %123 }
 0x139   :  { %v126_v56 = vpop.eup %125  ;;  %v105_v57 = vadd.f32 %v120_v53, %v93_v54  ;;  %v83_v58 = vmul.f32 %v124_v55, %v43_v15 }
 0x13a   :  { %v82_v59 = vmul.f32 %v126_v56, %v42_v22 }
 0x13b   :  { %110 = vst.msk [vmem:[%s205_s3] sm:$0xff] %vm19_vm0, %v105_v57  ;;  %v95_v60 = vmul.f32 %v119_v51, %v83_v58 }
 0x13c   :  { %v128_v61 = vpop.eup %127  ;;  %v94_v62 = vmul.f32 %v119_v51, %v82_v59 }
 0x13d   :  { %v130_v63 = vpop.eup %129  ;;  %v107_v0 = vadd.f32 %v120_v53, %v95_v60  ;;  %v85_v1 = vmul.f32 %v128_v61, %v45_v30 }
 0x13e   :  { %v106_v2 = vadd.f32 %v120_v53, %v94_v62  ;;  %v84_v3 = vmul.f32 %v130_v63, %v44_v23 }
 0x13f   :  { %112 = vst.msk [vmem:[%s205_s3 + $0x10] sm:$0xff] %vm19_vm0, %v107_v0  ;;  %v97_v4 = vmul.f32 %v119_v51, %v85_v1 }
 0x140   :  { %111 = vst.msk [vmem:[%s205_s3 + $0x8] sm:$0xff] %vm19_vm0, %v106_v2  ;;  %v96_v5 = vmul.f32 %v119_v51, %v84_v3 }
 0x141   :  { %v109_v6 = vadd.f32 %v120_v53, %v97_v4 }
 0x142   :  { %v108_v7 = vadd.f32 %v120_v53, %v96_v5 }
 0x143   :  { %114 = vst.msk [vmem:[%s205_s3 + $0x20] sm:$0xff] %vm19_vm0, %v109_v6 }
 0x144   :  { %113 = vst.msk [vmem:[%s205_s3 + $0x18] sm:$0xff] %vm19_vm0, %v108_v7 }

// kernel: vit_for_clip_forward.48
= control target key start
LH: loop header
LB: loop body
LE: loop exit
PB: predicated region body
PF: predicated region fallthrough
CT: control target
= control target key end

     0   :  { %vm26_vm0 = vcmask 261120   ;;  %v265_v36 = vmov 0.0   ;;  %vm266_vm1 = vmmov 0   ;;  %vm208_vm2 = vcmask 785408   ;;  %s378_s0 = inlined_call_operand.vmem [shape: f32[40,32], index: 0, kind: input, shape index: {}]   ;;  %s379_s3 = inlined_call_operand.vmem [shape: bf16[32,96], index: 3, kind: input, shape index: {}]   ;;  %s380_s1 = inlined_call_operand.vmem [shape: f32[1,32], index: 1, kind: input, shape index: {}]   ;;  %s381_s2 = inlined_call_operand.vmem [shape: f32[1,32], index: 2, kind: input, shape index: {}]   ;;  %s382_s4 = inlined_call_operand.vmem [shape: f32[1,96], index: 4, kind: input, shape index: {}]   ;;  %s383_s5 = inlined_call_operand.vmem [shape: f32[40,96], index: 5, kind: output, shape index: {}]  }
   0x1   :  { %v23_v0 = vld [vmem:[%s378_s0 + $0x10] sm:$0xff]  ;;  %v24_v1 = vld [vmem:[%s378_s0 + $0x18] sm:$0xff]  ;;  %v21_v2 = vld [vmem:[%s378_s0] sm:$0xff]  ;;  %247 = vmatprep.subr.bf16.mxu1 %v265_v36  ;;  %231 = vmatprep.subr.bf16.mxu0 %v265_v36 }
   0x2   :  { %v33_v3 = vsel %vm26_vm0, %v23_v0, 0.0  ;;  %v27_v4 = vsel %vm26_vm0, %v21_v2, 0.0  ;;  %v22_v5 = vld [vmem:[%s378_s0 + $0x8] sm:$0xff]  ;;  %v36_v6 = vsel %vm26_vm0, %v24_v1, 0.0  ;;  %v25_v8 = vld [vmem:[%s378_s0 + $0x20] sm:$0xff]  ;;  %239 = vmatprep.mubr.msk.bf16.mxu1 %vm266_vm1, %v265_v36  ;;  %235 = vmatprep.mubr.msk.bf16.mxu0 %vm266_vm1, %v265_v36 }
   0x3   :  { %34 = vadd.xlane.f32.xlu0 %v33_v3  ;;  %28 = vadd.xlane.f32.xlu1 %v27_v4  ;;  %v30_v7 = vsel %vm26_vm0, %v22_v5, 0.0  ;;  %v39_v9 = vsel %vm26_vm0, %v25_v8, 0.0  ;;  %v253_v35 = vld [vmem:[%s379_s3] sm:$0xff]   ;;  %v254_v37 = vld [vmem:[%s379_s3 + $0x8] sm:$0xff]  }
   0x4   :  { %249 = vmatpush3.bf16.msra.mxu1 %v253_v35  ;;  %232 = vmatpush3.bf16.msra.mxu0 %v253_v35  ;;  %v218_v55 = vld [vmem:[%s380_s1] ss:$0 sm:$0xff] }
   0x5   :  { %248 = vmatprep.subr.bf16.mxu1 %v265_v36  ;;  %233 = vmatprep.subr.bf16.mxu0 %v265_v36  ;;  %v219_v61 = vld [vmem:[%s381_s2] ss:$0 sm:$0xff] }
   0x7   :  { %37 = vadd.xlane.f32.xlu0 %v36_v6  ;;  %31 = vadd.xlane.f32.xlu1 %v30_v7 }
   0x8   :  { %250 = vmatpush3.bf16.msra.mxu1 %v254_v37  ;;  %234 = vmatpush3.bf16.msra.mxu0 %v254_v37 }
   0xb   :  { %40 = vadd.xlane.f32.xlu0 %v39_v9 }
  0x90   :  { %v35_v10 = vpop.xlane.xlu0 %34  ;;  %v29_v11 = vpop.xlane.xlu1 %28 }
  0x91   :  { %v45_v12 = vmul.f32 0.03125, %v35_v10  ;;  %v43_v13 = vmul.f32 0.03125, %v29_v11 }
  0x93   :  { %v317_v14 = vsub.f32 %v23_v0, %v45_v12  ;;  %v319_v15 = vsub.f32 %v21_v2, %v43_v13 }
  0x94   :  { %v38_v16 = vpop.xlane.xlu0 %37  ;;  %v32_v17 = vpop.xlane.xlu1 %31 }
  0x95   :  { %v46_v18 = vmul.f32 0.03125, %v38_v16  ;;  %v55_v19 = vmul.f32 %v317_v14, %v317_v14  ;;  %v44_v20 = vmul.f32 0.03125, %v32_v17  ;;  %v53_v21 = vmul.f32 %v319_v15, %v319_v15 }
  0x97   :  { %v51_v22 = vsub.f32 %v24_v1, %v46_v18  ;;  %v64_v23 = vsel %vm26_vm0, %v55_v19, 0.0  ;;  %v326_v24 = vsub.f32 %v22_v5, %v44_v20  ;;  %v58_v28 = vsel %vm26_vm0, %v53_v21, 0.0 }
  0x98   :  { %v41_v25 = vpop.xlane.xlu0 %40  ;;  %65 = vadd.xlane.f32.xlu1 %v64_v23 }
  0x99   :  { %v47_v26 = vmul.f32 0.03125, %v41_v25  ;;  %v56_v27 = vmul.f32 %v51_v22, %v51_v22  ;;  %v54_v29 = vmul.f32 %v326_v24, %v326_v24 }
  0x9b   :  { %v52_v30 = vsub.f32 %v25_v8, %v47_v26  ;;  %v67_v31 = vsel %vm26_vm0, %v56_v27, 0.0  ;;  %v61_v33 = vsel %vm26_vm0, %v54_v29, 0.0 }
  0x9c   :  { %68 = vadd.xlane.f32.xlu0 %v67_v31  ;;  %59 = vadd.xlane.f32.xlu1 %v58_v28 }
  0x9d   :  { %v57_v32 = vmul.f32 %v52_v30, %v52_v30 }
  0x9f   :  { %v70_v34 = vsel %vm26_vm0, %v57_v32, 0.0 }
  0xa0   :  { %71 = vadd.xlane.f32.xlu1 %v70_v34  ;;  %62 = vadd.xlane.f32.xlu0 %v61_v33 }
 0x125   :  { %v66_v38 = vpop.xlane.xlu1 %65 }
 0x126   :  { %v75_v39 = vmul.f32 0.03125, %v66_v38 }
 0x128   :  { %v80_v40 = vadd.f32 1e-05, %v75_v39 }
 0x129   :  { %v69_v41 = vpop.xlane.xlu0 %68  ;;  %v60_v42 = vpop.xlane.xlu1 %59 }
 0x12a   :  { %255 = vrsqrt.f32 %v80_v40  ;;  %v76_v43 = vmul.f32 0.03125, %v69_v41  ;;  %v73_v44 = vmul.f32 0.03125, %v60_v42 }
 0x12c   :  { %v81_v45 = vadd.f32 1e-05, %v76_v43  ;;  %v78_v46 = vadd.f32 1e-05, %v73_v44 }
 0x12d   :  { %v63_v47 = vpop.xlane.xlu0 %62  ;;  %v72_v48 = vpop.xlane.xlu1 %71 }
 0x12e   :  { %257 = vrsqrt.f32 %v81_v45  ;;  %v74_v49 = vmul.f32 0.03125, %v63_v47  ;;  %v77_v50 = vmul.f32 0.03125, %v72_v48 }
 0x12f   :  { %259 = vrsqrt.f32 %v78_v46 }
 0x130   :  { %v79_v51 = vadd.f32 1e-05, %v74_v49  ;;  %v82_v52 = vadd.f32 1e-05, %v77_v50 }
 0x132   :  { %261 = vrsqrt.f32 %v79_v51 }
 0x133   :  { %263 = vrsqrt.f32 %v82_v52 }
 0x134   :  { %v256_v53 = vpop.eup %255 }
 0x135   :  { %v90_v54 = vmul.f32 %v256_v53, %v317_v14  ;;  %v220_v14 = vld [vmem:[%s382_s4] ss:$0 sm:$0xff] }
 0x137   :  { %v102_v59 = vmul.f32 %v218_v55, %v90_v54 }
 0x138   :  { %v258_v56 = vpop.eup %257 }
 0x139   :  { %v260_v57 = vpop.eup %259  ;;  %v91_v58 = vmul.f32 %v258_v56, %v51_v22  ;;  %v114_v2 = vadd.f32 %v219_v61, %v102_v59 }
 0x13a   :  { %v88_v60 = vmul.f32 %v260_v57, %v319_v15 }
 0x13b   :  { %v103_v62 = vmul.f32 %v218_v55, %v91_v58 }
 0x13c   :  { %v262_v63 = vpop.eup %261  ;;  %v100_v4 = vmul.f32 %v218_v55, %v88_v60 }
 0x13d   :  { %v264_v0 = vpop.eup %263  ;;  %v89_v1 = vmul.f32 %v262_v63, %v326_v24  ;;  %v115_v3 = vadd.f32 %v219_v61, %v103_v62 }
 0x13e   :  { %v92_v5 = vmul.f32 %v264_v0, %v52_v30  ;;  %v112_v9 = vadd.f32 %v219_v61, %v100_v4 }
 0x13f   :  { %v118_v6 = vpack.c.bf16 %v115_v3, %v114_v2  ;;  %v101_v7 = vmul.f32 %v218_v55, %v89_v1 }
 0x140   :  { %v104_v8 = vmul.f32 %v218_v55, %v92_v5 }
 0x141   :  { %240 = vmatmul.mubr.msk.bf16.vlgmr.msra.gmra.mrb[0].mxu1 %vm26_vm0, %v118_v6  ;;  %v113_v10 = vadd.f32 %v219_v61, %v101_v7 }
 0x142   :  { %243 = vmatprep.mubr.msk.bf16.mxu1 %vm266_vm1, %v265_v36  ;;  %v116_v12 = vadd.f32 %v219_v61, %v104_v8 }
 0x143   :  { %v117_v11 = vpack.c.bf16 %v113_v10, %v112_v9 }
 0x144   :  { %v119_v13 = vpack.c.bf16 %v116_v12, %v116_v12 }
 0x145   :  { %236 = vmatmul.mubr.msk.bf16.vlgmr.msra.gmra.mrb[0].mxu0 %vm26_vm0, %v117_v11 }
 0x149   :  { %244 = vmatmul.mubr.msk.bf16.gmra.mrb[4].mxu1 %vm26_vm0, %v119_v13 }
 0x214   :  { %v194_v15 = vpop.f32.mrb[0].mxu1 }
 0x215   :  { %v195_v16 = vadd.f32 %v220_v14, %v194_v15  ;;  %v241_v17 = vpop.f32.mrb[1].mxu1 }
 0x216   :  { %v197_v18 = vpop.f32.mrb[2].mxu1 }
 0x217   :  { %211 = vst.msk [vmem:[%s383_s5 + $0x10] sm:$0xff] %vm208_vm2, %v195_v16  ;;  %v198_v19 = vadd.f32 %v220_v14, %v197_v18  ;;  %v242_v20 = vpop.f32.mrb[3].mxu1 }
 0x218   :  { %v186_v21 = vpop.f32.mrb[0].mxu0 }
 0x219   :  { %212 = vst.msk [vmem:[%s383_s5 + $0x18] sm:$0xff] %vm208_vm2, %v198_v19  ;;  %v187_v22 = vadd.f32 %v220_v14, %v186_v21  ;;  %v237_v23 = vpop.f32.mrb[1].mxu0 }
 0x21a   :  { %v189_v24 = vpop.f32.mrb[2].mxu0 }
 0x21b   :  { %209 = vst.msk [vmem:[%s383_s5] sm:$0xff] %vm208_vm2, %v187_v22  ;;  %v190_v25 = vadd.f32 %v220_v14, %v189_v24  ;;  %v238_v26 = vpop.f32.mrb[3].mxu0 }
 0x21c   :  { %v202_v27 = vpop.f32.mrb[4].mxu1 }
 0x21d   :  { %210 = vst.msk [vmem:[%s383_s5 + $0x8] sm:$0xff] %vm208_vm2, %v190_v25  ;;  %v203_v28 = vadd.f32 %v220_v14, %v202_v27  ;;  %v245_v29 = vpop.f32.mrb[5].mxu1 }
 0x21e   :  { %v205_v30 = vpop.f32.mrb[6].mxu1 }
 0x21f   :  { %213 = vst.msk [vmem:[%s383_s5 + $0x20] sm:$0xff] %vm208_vm2, %v203_v28  ;;  %v246_v31 = vpop.f32.mrb[7].mxu1 }

// kernel: vit_for_clip_forward.46
= control target key start
LH: loop header
LB: loop body
LE: loop exit
PB: predicated region body
PF: predicated region fallthrough
CT: control target
= control target key end

     0   :  { %vm19_vm0 = vcmask 261120   ;;  %vm50_vm1 = vcmask 130048   ;;  %v160_v1 = vmov 0.0   ;;  %s217_s1 = inlined_call_operand.vmem [shape: bf16[16,32], index: 1, kind: input, shape index: {}]   ;;  %s218_s0 = inlined_call_operand.vmem [shape: bf16[32,16], index: 0, kind: input, shape index: {}]   ;;  %s219_s2 = inlined_call_operand.vmem [shape: f32[1,32], index: 2, kind: input, shape index: {}]   ;;  %s220_s3 = inlined_call_operand.vmem [shape: f32[32,32], index: 3, kind: output, shape index: {}]  }
   0x1   :  { %v157_v0 = vld [vmem:[%s217_s1] sm:$0xff]   ;;  %22 = vst.msk [vmem:[#allocation2 + $0x10] sm:$0xff] %vm19_vm0, %v160_v1  ;;  %20 = vst.msk [vmem:[#allocation2] sm:$0xff] %vm19_vm0, %v160_v1  ;;  %v159_v3 = vld [vmem:[%s218_s0 + $0x8] sm:$0xff]  }
   0x2   :  { %21 = vst.msk [vmem:[#allocation2 + $0x8] sm:$0xff] %vm19_vm0, %v160_v1  ;;  %23 = vst.msk [vmem:[#allocation2 + $0x18] sm:$0xff] %vm19_vm0, %v160_v1  ;;  %v158_v2 = vld [vmem:[%s218_s0] sm:$0xff]   ;;  %150 = vmatprep.subr.bf16.mxu0 %v157_v0 }
   0x3   :  { %151 = vmatpush3.bf16.msra.mxu0 %v157_v0  ;;  %152 = vmatprep.mubr.msk.bf16.mxu0 %vm50_vm1, %v158_v2  ;;  %v146_v16 = vld [vmem:[%s219_s2] ss:$0 sm:$0xff] }
   0x6   :  { %153 = vmatmul.mubr.msk.bf16.vlgmr.msra.gmra.mrb[0].mxu0 %vm50_vm1, %v159_v3 }
   0x8   :  { %v26_v4 = vld [vmem:[#allocation2 + $0x10] sm:$0xff]  ;;  %v24_v5 = vld [vmem:[#allocation2] sm:$0xff] }
   0x9   :  { %v27_v7 = vld [vmem:[#allocation2 + $0x18] sm:$0xff]  ;;  %v25_v10 = vld [vmem:[#allocation2 + $0x8] sm:$0xff] }
  0xd9   :  { %v154_v6 = vpop.f32.mrb[0].mxu0 }
  0xda   :  { %v108_v8 = vadd.f32 %v154_v6, %v26_v4  ;;  %v91_v9 = vpop.f32.mrb[1].mxu0 }
  0xdb   :  { %v106_v11 = vadd.f32 %v91_v9, %v24_v5  ;;  %v155_v12 = vpop.f32.mrb[2].mxu0 }
  0xdc   :  { %113 = vst.msk [vmem:[#allocation2 + $0x10] sm:$0xff] %vm19_vm0, %v108_v8  ;;  %v109_v13 = vadd.f32 %v155_v12, %v27_v7  ;;  %v94_v14 = vpop.f32.mrb[3].mxu0 }
  0xdd   :  { %111 = vst.msk [vmem:[#allocation2] sm:$0xff] %vm19_vm0, %v106_v11  ;;  %v107_v15 = vadd.f32 %v94_v14, %v25_v10 }
  0xde   :  { %114 = vst.msk [vmem:[#allocation2 + $0x18] sm:$0xff] %vm19_vm0, %v109_v13 }
  0xdf   :  { %112 = vst.msk [vmem:[#allocation2 + $0x8] sm:$0xff] %vm19_vm0, %v107_v15 }
  0xe3   :  { %v120_v17 = vld [vmem:[#allocation2 + $0x10] sm:$0xff] }
  0xe4   :  { %v131_v18 = vadd.f32 %v146_v16, %v120_v17  ;;  %v118_v19 = vld [vmem:[#allocation2] sm:$0xff] }
  0xe5   :  { %v129_v20 = vadd.f32 %v146_v16, %v118_v19  ;;  %v121_v21 = vld [vmem:[#allocation2 + $0x18] sm:$0xff] }
  0xe6   :  { %135 = vst.msk [vmem:[%s220_s3 + $0x10] sm:$0xff] %vm19_vm0, %v131_v18  ;;  %v132_v22 = vadd.f32 %v146_v16, %v121_v21  ;;  %v119_v23 = vld [vmem:[#allocation2 + $0x8] sm:$0xff] }
  0xe7   :  { %133 = vst.msk [vmem:[%s220_s3] sm:$0xff] %vm19_vm0, %v129_v20  ;;  %v130_v24 = vadd.f32 %v146_v16, %v119_v23 }
  0xe8   :  { %136 = vst.msk [vmem:[%s220_s3 + $0x18] sm:$0xff] %vm19_vm0, %v132_v22 }
  0xe9   :  { %134 = vst.msk [vmem:[%s220_s3 + $0x8] sm:$0xff] %vm19_vm0, %v130_v24 }

// kernel: vit_for_clip_forward.49
= control target key start
LH: loop header
LB: loop body
LE: loop exit
PB: predicated region body
PF: predicated region fallthrough
CT: control target
= control target key end

     0   :  { %s882_s12 = smov 0   ;;  %s884_s13 = smov 0   ;;  %s965_s0 = inlined_call_operand.vmem [shape: bf16[4,24,16], index: 0, kind: input, shape index: {}]   ;;  %s966_s1 = inlined_call_operand.vmem [shape: bf16[4,24,16], index: 1, kind: input, shape index: {}]   ;;  %s967_s2 = inlined_call_operand.vmem [shape: bf16[4,24,16], index: 2, kind: input, shape index: {}]   ;;  %s968_s3 = inlined_call_operand.vmem [shape: f32[4,24,16], index: 3, kind: output, shape index: {}]  }
   0x1   :  { %s886_s14 = smov 0  }
   0x2 LB: > { %s32_s15 = sadd.s32 1, %s853_s13  ;;  %p736_p0 = scmp.ge.s32.totalorder %s857_s14, 1  ;;  %s857_s14 = sphi %s886_s14, %s13_s14   ;;  %s853_s13 = sphi %s884_s13, %s970_s13   ;;  %s849_s12 = sphi %s882_s12, %s969_s12  }
   0x3   : > { %p34_p1 = scmp.ge.s32.totalorder %s32_s15, 4  ;;  %p199_p2 = scmp.lt.s32.totalorder %s857_s14, 5 }
   0x5   : > { %s972_s15 = smov (%p34_p1, %s32_s15), 0  ;;  %p200_p3 = pnand %p736_p0, %p199_p2 }
   0x6   : > { %p250_p4 = scmp.lt.s32.totalorder (!%p200_p3), %s849_s12, 3  ;;  %vm301_vm0 = vcmask (!%p200_p3), 130048   ;;  %vm294_vm1 = vcmask (!%p200_p3), 7168   ;;  %v859_v6 = vmov (!%p200_p3), -inf   ;;  %v392_v7 = vlaneseq (!%p200_p3) }
   0x7   : > { %203 = sbr.rel (%p200_p3) target bundleno = 843 (0x34b), region = 32  ;;  %297 = vst.msk [vmem:[#allocation2 + $0x10] sm:$0xff] (!%p200_p3), %vm294_vm1, %v859_v6  ;;  %295 = vst.msk [vmem:[#allocation2] sm:$0xff] (!%p200_p3), %vm294_vm1, %v859_v6  ;;  %vm403_vm3 = vcmask (!%p200_p3), 195584   ;;  %v860_v22 = vmov (!%p200_p3), 0   ;;  %v861_v23 = vmov (!%p200_p3), 0.0  }
   0x8   : > { %296 = vst.msk [vmem:[#allocation2 + $0x8] sm:$0xff] (!%p200_p3), %vm294_vm1, %v859_v6  ;;  %v393_v8 = vand.u32 (!%p200_p3), 127, %v392_v7  ;;  %809 = vset.pattern.permute.xlu1 (!%p200_p3), %v860_v22  ;;  %810 = vset.pattern.permute.xlu0 (!%p200_p3), %v860_v22  ;;  %298 = vst.msk [vmem:[#allocation3] sm:$0xff] (!%p200_p3), %vm294_vm1, %v861_v23  ;;  %vm512_vm4 = vcmask (!%p200_p3), 1043456  }
   0x9   : > { %302 = vst.msk [vmem:[#allocation4] sm:$0xff] (!%p200_p3), %vm301_vm0, %v861_v23  ;;  %303 = vst.msk [vmem:[#allocation4 + $0x8] sm:$0xff] (!%p200_p3), %vm301_vm0, %v861_v23 }
   0xa   : > { %vm396_vm2 = vcmp.lt.s32.totalorder (!%p200_p3), %v393_v8, 17  ;;  %304 = vst.msk [vmem:[#allocation4 + $0x10] sm:$0xff] (!%p200_p3), %vm301_vm0, %v861_v23 }
   0xb   : > { %299 = vst.msk [vmem:[#allocation3 + $0x8] sm:$0xff] (!%p200_p3), %vm294_vm1, %v861_v23  ;;  %300 = vst.msk [vmem:[#allocation3 + $0x10] sm:$0xff] (!%p200_p3), %vm294_vm1, %v861_v23 }
   0xe   : > { %s974_s12 = smov (!%p250_p4, %s849_s12), 3  ;;  %v402_v24 = vld [vmem:[#allocation2 + $0x10] sm:$0xff]  ;;  %v400_v25 = vld [vmem:[#allocation2] sm:$0xff] }
   0xf   : > { %s903_s16 = smul.u32 12, %s974_s12  ;;  %v401_v31 = vld [vmem:[#allocation2 + $0x8] sm:$0xff]  ;;  %v449_v62 = vld [vmem:[#allocation3] sm:$0xff] }
  0x10   : > { %s781_s26 = smul.u32 24, %s974_s12 }
  0x11   : > { %s267_s19 = scalar_lea.vmem %s966_s1, %s903_s16  ;;  %s257_s22 = scalar_lea.vmem %s965_s0, %s903_s16 }
  0x12   : > { %v811_v0 = vld [vmem:[%s267_s19] sm:$0xff]   ;;  %v812_v1 = vld [vmem:[%s267_s19 + $0x8] ss:$0 sps:$4 sm:$0xff]   ;;  %s277_s25 = scalar_lea.vmem %s967_s2, %s903_s16  ;;  %s287_s29 = scalar_lea.vmem %s968_s3, %s781_s26 }
  0x13   : > { %v813_v2 = vld [vmem:[%s257_s22] sm:$0xff]   ;;  %777 = vmatprep.subr.msk.bf16.mxu0 %vm301_vm0, %v811_v0  ;;  %v335_v3 = vsel %vm301_vm0, %v811_v0, 0  ;;  %v338_v4 = vsel %vm301_vm0, %v812_v1, 0  ;;  %v814_v5 = vld [vmem:[%s257_s22 + $0x8] ss:$0 sps:$4 sm:$0xff]  }
  0x14   : > { %762 = vmatpush3.bf16.xpose.msra.mxu0 %v335_v3  ;;  %765 = vmatprep.mubr.msk.bf16.mxu0 %vm301_vm0, %v813_v2  ;;  %v815_v36 = vld [vmem:[%s277_s25] sm:$0xff]   ;;  %v816_v37 = vld [vmem:[%s277_s25 + $0x8] ss:$0 sps:$4 sm:$0xff]  }
  0x15   : > { %778 = vmatprep.subr.msk.bf16.mxu0 %vm301_vm0, %v812_v1  ;;  %769 = vmatprep.subr.bf16.mxu1 %v815_v36  ;;  %v514_v38 = vsel %vm512_vm4, %v816_v37, 0  ;;  %v451_v1 = vld [vmem:[#allocation3 + $0x10] sm:$0xff]  ;;  %v450_v3 = vld [vmem:[#allocation3 + $0x8] sm:$0xff] }
  0x16   : > { %770 = vmatpush3.bf16.msra.mxu1 %v815_v36 }
  0x17   : > { %779 = vmatprep.subr.msk.bf16.mxu1 %vm512_vm4, %v816_v37 }
  0x1a   : > { %772 = vmatpush3.bf16.msra.mxu1 %v514_v38 }
  0x1c   : > { %764 = vmatpush3.bf16.xpose.msra.mxu0 %v338_v4 }
  0x23   : > { %766 = vmatmul.mubr.msk.bf16.vlgmr.msra.gmra.mrb[0].mxu0 %vm301_vm0, %v814_v5 }
  0xf6   : > { %v767_v9 = vpop.f32.mrb[0].mxu0 }
  0xf7   : > { %v390_v10 = vmul.f32 0.25, %v767_v9  ;;  %v374_v11 = vpop.f32.mrb[1].mxu0 }
  0xf8   : > { %v388_v12 = vmul.f32 0.25, %v374_v11  ;;  %v768_v13 = vpop.f32.mrb[2].mxu0 }
  0xf9   : > { %v377_v14 = vpop.f32.mrb[3].mxu0  ;;  %v399_v15 = vsel %vm396_vm2, %v390_v10, -inf }
  0xfa   : > { %v389_v16 = vmul.f32 0.25, %v377_v14  ;;  %v410_v17 = vsel %vm403_vm3, %v399_v15, -inf  ;;  %v397_v18 = vsel %vm396_vm2, %v388_v12, -inf }
  0xfb   : > { %411 = vmax.xlane.f32.xlu1 %v410_v17  ;;  %v404_v19 = vsel %vm403_vm3, %v397_v18, -inf  ;;  %v473_v17 = vld [vmem:[#allocation4 + $0x10] sm:$0xff] }
  0xfc   : > { %405 = vmax.xlane.f32.xlu0 %v404_v19  ;;  %v398_v20 = vsel %vm396_vm2, %v389_v16, -inf  ;;  %v471_v19 = vld [vmem:[#allocation4] sm:$0xff] }
  0xfd   : > { %v407_v21 = vsel %vm403_vm3, %v398_v20, -inf }
 0x100   : > { %408 = vmax.xlane.f32.xlu0 %v407_v21  ;;  %v472_v21 = vld [vmem:[#allocation4 + $0x8] sm:$0xff] }
 0x188   : > { %v412_v26 = vpop.xlane.xlu1 %411 }
 0x189   : > { %v415_v27 = vmax.f32 %v402_v24, %v412_v26  ;;  %v406_v28 = vpop.xlane.xlu0 %405 }
 0x18a   : > { %v413_v29 = vmax.f32 %v400_v25, %v406_v28 }
 0x18b   : > { %v418_v30 = vsub.f32 %v402_v24, %v415_v27  ;;  %572 = vst.msk [vmem:[#allocation2 + $0x10] sm:$0xff] %vm294_vm1, %v415_v27 }
 0x18c   : > { %v416_v32 = vsub.f32 %v400_v25, %v413_v29  ;;  %570 = vst.msk [vmem:[#allocation2] sm:$0xff] %vm294_vm1, %v413_v29  ;;  %427 = vperm.xlu1 %809, %v413_v29  }
 0x18d   : > { %v409_v33 = vpop.xlane.xlu0 %408  ;;  %v423_v58 = vmul.f32 1.442695, %v418_v30 }
 0x18e   : > { %v414_v34 = vmax.f32 %v401_v31, %v409_v33  ;;  %v419_v56 = vmul.f32 1.442695, %v416_v32 }
 0x190   : > { %v417_v35 = vsub.f32 %v401_v31, %v414_v34  ;;  %571 = vst.msk [vmem:[#allocation2 + $0x8] sm:$0xff] %vm294_vm1, %v414_v34  ;;  %437 = vperm.xlu1 %809, %v415_v27   ;;  %432 = vperm.xlu0 %810, %v414_v34  }
 0x192   : > { %v421_v57 = vmul.f32 1.442695, %v417_v35 }
 0x20b   : > { %v428_v39 = vpop.permute.xlu1 %427 }
 0x20c   : > { %v440_v40 = vsub.f32 %v397_v18, %v428_v39 }
 0x20e   : > { %v443_v41 = vmul.f32 1.442695, %v440_v40 }
 0x20f   : > { %v438_v42 = vpop.permute.xlu1 %437  ;;  %v433_v43 = vpop.permute.xlu0 %432 }
 0x210   : > { %817 = vpow2.f32 %v443_v41  ;;  %v442_v44 = vsub.f32 %v399_v15, %v438_v42  ;;  %v441_v45 = vsub.f32 %v398_v20, %v433_v43 }
 0x212   : > { %v447_v46 = vmul.f32 1.442695, %v442_v44  ;;  %v445_v47 = vmul.f32 1.442695, %v441_v45 }
 0x214   : > { %819 = vpow2.f32 %v447_v46 }
 0x215   : > { %821 = vpow2.f32 %v445_v47 }
 0x216   : > { %823 = vpow2.f32 %v419_v56 }
 0x217   : > { %825 = vpow2.f32 %v421_v57 }
 0x218   : > { %827 = vpow2.f32 %v423_v58 }
 0x21a   : > { %v818_v48 = vpop.eup %817 }
 0x21b   : > { %v455_v49 = vsel %vm403_vm3, %v818_v48, 0.0 }
 0x21c   : > { %456 = vadd.xlane.f32.xlu1 %v455_v49 }
 0x21e   : > { %v820_v50 = vpop.eup %819 }
 0x21f   : > { %v822_v51 = vpop.eup %821  ;;  %v461_v52 = vsel %vm403_vm3, %v820_v50, 0.0  ;;  %v493_v53 = vpack.c.bf16 %v820_v50, %v820_v50 }
 0x220   : > { %462 = vadd.xlane.f32.xlu1 %v461_v52  ;;  %v458_v54 = vsel %vm403_vm3, %v822_v51, 0.0  ;;  %v492_v55 = vpack.c.bf16 %v822_v51, %v818_v48  ;;  %v824_v59 = vpop.eup %823 }
 0x221   : > { %459 = vadd.xlane.f32.xlu0 %v458_v54  ;;  %v826_v60 = vpop.eup %825  ;;  %v452_v63 = vmul.f32 %v824_v59, %v449_v62 }
 0x222   : > { %773 = vmatprep.mubr.msk.bf16.mxu1 %vm403_vm3, %v492_v55  ;;  %v828_v61 = vpop.eup %827  ;;  %v453_v6 = vmul.f32 %v826_v60, %v450_v3 }
 0x223   : > { %774 = vmatmul.mubr.msk.bf16.vlgmr.msra.gmra.mrb[0].mxu1 %vm403_vm3, %v493_v53  ;;  %v454_v4 = vmul.f32 %v828_v61, %v451_v1 }
 0x231   : > { %476 = vperm.xlu1 %809, %v824_v59  }
 0x235   : > { %481 = vperm.xlu1 %809, %v826_v60  }
 0x237   : > { %486 = vperm.xlu0 %810, %v828_v61  }
 0x2a9   : > { %v457_v0 = vpop.xlane.xlu1 %456 }
 0x2aa   : > { %v464_v2 = vadd.f32 %v457_v0, %v452_v63 }
 0x2ac   : > { %468 = vst.msk [vmem:[#allocation3] sm:$0xff] %vm294_vm1, %v464_v2 }
 0x2ad   : > { %v463_v5 = vpop.xlane.xlu1 %462 }
 0x2ae   : > { %v466_v7 = vadd.f32 %v463_v5, %v454_v4  ;;  %v460_v8 = vpop.xlane.xlu0 %459 }
 0x2af   : > { %v465_v9 = vadd.f32 %v460_v8, %v453_v6 }
 0x2b0   : > { %470 = vst.msk [vmem:[#allocation3 + $0x10] sm:$0xff] %vm294_vm1, %v466_v7 }
 0x2b1   : > { %469 = vst.msk [vmem:[#allocation3 + $0x8] sm:$0xff] %vm294_vm1, %v465_v9  ;;  %v477_v16 = vpop.permute.xlu1 %476 }
 0x2b2   : > { %v489_v23 = vmul.f32 %v477_v16, %v471_v19 }
 0x2b3   : > { %v579_v10 = vld [vmem:[#allocation3] sm:$0xff] }
 0x2b4   : > { %829 = vrcp.f32 %v579_v10 }
 0x2b5   : > { %v482_v22 = vpop.permute.xlu1 %481 }
 0x2b6   : > { %v487_v18 = vpop.permute.xlu0 %486  ;;  %v490_v27 = vmul.f32 %v482_v22, %v472_v21 }
 0x2b7   : > { %v581_v12 = vld [vmem:[#allocation3 + $0x10] sm:$0xff]  ;;  %v491_v20 = vmul.f32 %v487_v18, %v473_v17 }
 0x2b8   : > { %v580_v11 = vld [vmem:[#allocation3 + $0x8] sm:$0xff] }
 0x2b9   : > { %831 = vrcp.f32 %v580_v11 }
 0x2ba   : > { %833 = vrcp.f32 %v581_v12 }
 0x2be   : > { %v830_v13 = vpop.eup %829 }
 0x2bf   : > { %587 = vperm.xlu1 %809, %v830_v13  }
 0x2c3   : > { %v832_v14 = vpop.eup %831 }
 0x2c4   : > { %592 = vperm.xlu1 %809, %v832_v14   ;;  %v834_v15 = vpop.eup %833 }
 0x2c8   : > { %597 = vperm.xlu1 %809, %v834_v15  }
 0x2f6   : > { %v775_v24 = vpop.f32.mrb[0].mxu1 }
 0x2f7   : > { %v566_v25 = vadd.f32 %v775_v24, %v491_v20  ;;  %v550_v26 = vpop.f32.mrb[1].mxu1 }
 0x2f8   : > { %v564_v28 = vadd.f32 %v550_v26, %v489_v23  ;;  %v776_v29 = vpop.f32.mrb[2].mxu1 }
 0x2f9   : > { %569 = vst.msk [vmem:[#allocation4 + $0x10] sm:$0xff] %vm301_vm0, %v566_v25  ;;  %v553_v30 = vpop.f32.mrb[3].mxu1 }
 0x2fa   : > { %567 = vst.msk [vmem:[#allocation4] sm:$0xff] %vm301_vm0, %v564_v28  ;;  %v565_v31 = vadd.f32 %v553_v30, %v490_v27 }
 0x2fc   : > { %568 = vst.msk [vmem:[#allocation4 + $0x8] sm:$0xff] %vm301_vm0, %v565_v31 }
 0x300   : > { %v578_v38 = vld [vmem:[#allocation4 + $0x10] sm:$0xff] }
 0x301   : > { %v576_v32 = vld [vmem:[#allocation4] sm:$0xff] }
 0x303   : > { %v577_v35 = vld [vmem:[#allocation4 + $0x8] sm:$0xff] }
 0x33e   : > { %v588_v33 = vpop.permute.xlu1 %587 }
 0x33f   : > { %v600_v34 = vmul.f32 %v588_v33, %v576_v32 }
 0x341   : > { %603 = vst.msk [vmem:[%s287_s29] sm:$0xff] %vm301_vm0, %v600_v34 }
 0x343   : > { %v593_v36 = vpop.permute.xlu1 %592 }
 0x344   : > { %v601_v37 = vmul.f32 %v593_v36, %v577_v35 }
 0x346   : > { %604 = vst.msk [vmem:[%s287_s29 + $0x8] sm:$0xff] %vm301_vm0, %v601_v37 }
 0x347   : > { %v598_v39 = vpop.permute.xlu1 %597 }
 0x348   : > { %v602_v40 = vmul.f32 %v598_v39, %v578_v38 }
 0x34a   : > { %605 = vst.msk [vmem:[%s287_s29 + $0x10] sm:$0xff] %vm301_vm0, %v602_v40 }
 0x34b PF: > { %s13_s14 = sadd.s32 1, %s857_s14   ;;  %s969_s12 = smov %s853_s13 }
 0x34c   : > { %p10_p5 = scmp.ge.s32.totalorder %s13_s14, 6   ;;  %s970_s13 = smov %s972_s15 }
 0x34e   :  { %12 = sbr.rel (!%p10_p5) target bundleno = 2 (0x2), region = 76 }

// kernel: vit_for_clip_forward.50
= control target key start
LH: loop header
LB: loop body
LE: loop exit
PB: predicated region body
PF: predicated region fallthrough
CT: control target
= control target key end

     0   :  { %vm22_vm0 = vcmask 261120   ;;  %v223_v0 = vmov 0.0   ;;  %vm224_vm1 = vmmov 0   ;;  %s316_s1 = inlined_call_operand.vmem [shape: bf16[32,32], index: 1, kind: input, shape index: {}]   ;;  %s317_s0 = inlined_call_operand.vmem [shape: bf16[40,32], index: 0, kind: input, shape index: {}]   ;;  %s318_s2 = inlined_call_operand.vmem [shape: f32[1,32], index: 2, kind: input, shape index: {}]   ;;  %s319_s3 = inlined_call_operand.vmem [shape: f32[40,32], index: 3, kind: input, shape index: {}]   ;;  %s320_s4 = inlined_call_operand.vmem [shape: f32[40,32], index: 4, kind: output, shape index: {}]  }
   0x1   :  { %212 = vmatprep.subr.bf16.mxu1 %v223_v0  ;;  %v218_v1 = vld [vmem:[%s316_s1] sm:$0xff]   ;;  %196 = vmatprep.subr.bf16.mxu0 %v223_v0  ;;  %23 = vst.msk [vmem:[#allocation2] sm:$0xff] %vm22_vm0, %v223_v0  ;;  %24 = vst.msk [vmem:[#allocation2 + $0x8] sm:$0xff] %vm22_vm0, %v223_v0  ;;  %v219_v2 = vld [vmem:[%s316_s1 + $0x8] sm:$0xff]  }
   0x2   :  { %25 = vst.msk [vmem:[#allocation2 + $0x10] sm:$0xff] %vm22_vm0, %v223_v0  ;;  %26 = vst.msk [vmem:[#allocation2 + $0x18] sm:$0xff] %vm22_vm0, %v223_v0  ;;  %204 = vmatprep.mubr.msk.bf16.mxu1 %vm224_vm1, %v223_v0  ;;  %200 = vmatprep.mubr.msk.bf16.mxu0 %vm224_vm1, %v223_v0  ;;  %v220_v3 = vld [vmem:[%s317_s0 + $0x8] sm:$0xff]   ;;  %v221_v4 = vld [vmem:[%s317_s0] sm:$0xff]  }
   0x3   :  { %27 = vst.msk [vmem:[#allocation2 + $0x20] sm:$0xff] %vm22_vm0, %v223_v0  ;;  %214 = vmatpush3.bf16.msra.mxu1 %v218_v1  ;;  %197 = vmatpush3.bf16.msra.mxu0 %v218_v1  ;;  %v222_v5 = vld [vmem:[%s317_s0 + $0x10] ss:$0 sps:$4 sm:$0xff]   ;;  %v190_v23 = vld [vmem:[%s318_s2] ss:$0 sm:$0xff]  ;;  %v166_v33 = vld [vmem:[%s319_s3 + $0x18] sm:$0xff] }
   0x4   :  { %213 = vmatprep.subr.bf16.mxu1 %v223_v0  ;;  %198 = vmatprep.subr.bf16.mxu0 %v223_v0  ;;  %v165_v25 = vld [vmem:[%s319_s3 + $0x10] sm:$0xff]  ;;  %v163_v30 = vld [vmem:[%s319_s3] sm:$0xff]  ;;  %v164_v38 = vld [vmem:[%s319_s3 + $0x8] sm:$0xff] }
   0x5   :  { %v167_v46 = vld [vmem:[%s319_s3 + $0x20] sm:$0xff] }
   0x7   :  { %215 = vmatpush3.bf16.msra.mxu1 %v219_v2  ;;  %199 = vmatpush3.bf16.msra.mxu0 %v219_v2 }
   0x8   :  { %v28_v7 = vld [vmem:[#allocation2] sm:$0xff]  ;;  %v29_v11 = vld [vmem:[#allocation2 + $0x8] sm:$0xff] }
   0x9   :  { %v30_v6 = vld [vmem:[#allocation2 + $0x10] sm:$0xff]  ;;  %v31_v9 = vld [vmem:[#allocation2 + $0x18] sm:$0xff] }
   0xa   :  { %205 = vmatmul.mubr.msk.bf16.vlgmr.msra.gmra.mrb[0].mxu1 %vm22_vm0, %v220_v3  ;;  %201 = vmatmul.mubr.msk.bf16.vlgmr.msra.gmra.mrb[0].mxu0 %vm22_vm0, %v221_v4  ;;  %v32_v22 = vld [vmem:[#allocation2 + $0x20] sm:$0xff] }
   0xb   :  { %208 = vmatprep.mubr.msk.bf16.mxu1 %vm224_vm1, %v223_v0 }
  0x12   :  { %209 = vmatmul.mubr.msk.bf16.gmra.mrb[4].mxu1 %vm22_vm0, %v222_v5 }
  0xdd   :  { %v119_v8 = vpop.f32.mrb[0].mxu1  ;;  %v111_v10 = vpop.f32.mrb[0].mxu0 }
  0xde   :  { %v135_v12 = vadd.f32 %v119_v8, %v30_v6  ;;  %v206_v13 = vpop.f32.mrb[1].mxu1  ;;  %v133_v14 = vadd.f32 %v111_v10, %v28_v7  ;;  %v202_v15 = vpop.f32.mrb[1].mxu0 }
  0xdf   :  { %v122_v16 = vpop.f32.mrb[2].mxu1  ;;  %v114_v17 = vpop.f32.mrb[2].mxu0 }
  0xe0   :  { %140 = vst.msk [vmem:[#allocation2 + $0x10] sm:$0xff] %vm22_vm0, %v135_v12  ;;  %v136_v18 = vadd.f32 %v122_v16, %v31_v9  ;;  %138 = vst.msk [vmem:[#allocation2] sm:$0xff] %vm22_vm0, %v133_v14  ;;  %v207_v19 = vpop.f32.mrb[3].mxu1  ;;  %v134_v20 = vadd.f32 %v114_v17, %v29_v11  ;;  %v203_v21 = vpop.f32.mrb[3].mxu0 }
  0xe2   :  { %141 = vst.msk [vmem:[#allocation2 + $0x18] sm:$0xff] %vm22_vm0, %v136_v18  ;;  %139 = vst.msk [vmem:[#allocation2 + $0x8] sm:$0xff] %vm22_vm0, %v134_v20 }
  0xe5   :  { %v127_v24 = vpop.f32.mrb[4].mxu1 }
  0xe6   :  { %v137_v26 = vadd.f32 %v127_v24, %v32_v22  ;;  %v210_v27 = vpop.f32.mrb[5].mxu1 }
  0xe7   :  { %v148_v28 = vld [vmem:[#allocation2 + $0x10] sm:$0xff]  ;;  %v146_v29 = vld [vmem:[#allocation2] sm:$0xff]  ;;  %v130_v31 = vpop.f32.mrb[6].mxu1 }
  0xe8   :  { %v160_v32 = vadd.f32 %v190_v23, %v148_v28  ;;  %v158_v34 = vadd.f32 %v190_v23, %v146_v29  ;;  %142 = vst.msk [vmem:[#allocation2 + $0x20] sm:$0xff] %vm22_vm0, %v137_v26  ;;  %v211_v35 = vpop.f32.mrb[7].mxu1 }
  0xe9   :  { %v149_v36 = vld [vmem:[#allocation2 + $0x18] sm:$0xff]  ;;  %v147_v37 = vld [vmem:[#allocation2 + $0x8] sm:$0xff] }
  0xea   :  { %v170_v39 = vadd.f32 %v165_v25, %v160_v32  ;;  %v161_v40 = vadd.f32 %v190_v23, %v149_v36  ;;  %v168_v41 = vadd.f32 %v163_v30, %v158_v34  ;;  %v159_v42 = vadd.f32 %v190_v23, %v147_v37 }
  0xec   :  { %175 = vst.msk [vmem:[%s320_s4 + $0x10] sm:$0xff] %vm22_vm0, %v170_v39  ;;  %v171_v43 = vadd.f32 %v166_v33, %v161_v40  ;;  %173 = vst.msk [vmem:[%s320_s4] sm:$0xff] %vm22_vm0, %v168_v41  ;;  %v169_v44 = vadd.f32 %v164_v38, %v159_v42 }
  0xee   :  { %176 = vst.msk [vmem:[%s320_s4 + $0x18] sm:$0xff] %vm22_vm0, %v171_v43  ;;  %174 = vst.msk [vmem:[%s320_s4 + $0x8] sm:$0xff] %vm22_vm0, %v169_v44 }
  0xef   :  { %v150_v45 = vld [vmem:[#allocation2 + $0x20] sm:$0xff] }
  0xf0   :  { %v162_v47 = vadd.f32 %v190_v23, %v150_v45 }
  0xf2   :  { %v172_v48 = vadd.f32 %v167_v46, %v162_v47 }
  0xf4   :  { %177 = vst.msk [vmem:[%s320_s4 + $0x20] sm:$0xff] %vm22_vm0, %v172_v48 }

// kernel: vit_for_clip_forward.56
= control target key start
LH: loop header
LB: loop body
LE: loop exit
PB: predicated region body
PF: predicated region fallthrough
CT: control target
= control target key end

     0   :  { %vm16_vm0 = vcmask 261120   ;;  %v194_v0 = vmov 0.0   ;;  %vm195_vm1 = vmmov 0   ;;  %s259_s1 = inlined_call_operand.vmem [shape: bf16[32,32], index: 1, kind: input, shape index: {}]   ;;  %s260_s0 = inlined_call_operand.vmem [shape: bf16[40,32], index: 0, kind: input, shape index: {}]   ;;  %s261_s2 = inlined_call_operand.vmem [shape: f32[40,32], index: 2, kind: output, shape index: {}]  }
   0x1   :  { %183 = vmatprep.subr.bf16.mxu1 %v194_v0  ;;  %v189_v1 = vld [vmem:[%s259_s1] sm:$0xff]   ;;  %167 = vmatprep.subr.bf16.mxu0 %v194_v0  ;;  %17 = vst.msk [vmem:[#allocation2] sm:$0xff] %vm16_vm0, %v194_v0  ;;  %18 = vst.msk [vmem:[#allocation2 + $0x8] sm:$0xff] %vm16_vm0, %v194_v0  ;;  %v190_v2 = vld [vmem:[%s259_s1 + $0x8] sm:$0xff]  }
   0x2   :  { %19 = vst.msk [vmem:[#allocation2 + $0x10] sm:$0xff] %vm16_vm0, %v194_v0  ;;  %20 = vst.msk [vmem:[#allocation2 + $0x18] sm:$0xff] %vm16_vm0, %v194_v0  ;;  %175 = vmatprep.mubr.msk.bf16.mxu1 %vm195_vm1, %v194_v0  ;;  %171 = vmatprep.mubr.msk.bf16.mxu0 %vm195_vm1, %v194_v0  ;;  %v191_v3 = vld [vmem:[%s260_s0 + $0x8] sm:$0xff]   ;;  %v192_v4 = vld [vmem:[%s260_s0] sm:$0xff]  }
   0x3   :  { %21 = vst.msk [vmem:[#allocation2 + $0x20] sm:$0xff] %vm16_vm0, %v194_v0  ;;  %185 = vmatpush3.bf16.msra.mxu1 %v189_v1  ;;  %168 = vmatpush3.bf16.msra.mxu0 %v189_v1  ;;  %v193_v5 = vld [vmem:[%s260_s0 + $0x10] ss:$0 sps:$4 sm:$0xff]  }
   0x4   :  { %184 = vmatprep.subr.bf16.mxu1 %v194_v0  ;;  %169 = vmatprep.subr.bf16.mxu0 %v194_v0 }
   0x7   :  { %186 = vmatpush3.bf16.msra.mxu1 %v190_v2  ;;  %170 = vmatpush3.bf16.msra.mxu0 %v190_v2 }
   0x8   :  { %v22_v7 = vld [vmem:[#allocation2] sm:$0xff]  ;;  %v23_v11 = vld [vmem:[#allocation2 + $0x8] sm:$0xff] }
   0x9   :  { %v24_v6 = vld [vmem:[#allocation2 + $0x10] sm:$0xff]  ;;  %v25_v9 = vld [vmem:[#allocation2 + $0x18] sm:$0xff] }
   0xa   :  { %176 = vmatmul.mubr.msk.bf16.vlgmr.msra.gmra.mrb[0].mxu1 %vm16_vm0, %v191_v3  ;;  %172 = vmatmul.mubr.msk.bf16.vlgmr.msra.gmra.mrb[0].mxu0 %vm16_vm0, %v192_v4  ;;  %v26_v22 = vld [vmem:[#allocation2 + $0x20] sm:$0xff] }
   0xb   :  { %179 = vmatprep.mubr.msk.bf16.mxu1 %vm195_vm1, %v194_v0 }
  0x12   :  { %180 = vmatmul.mubr.msk.bf16.gmra.mrb[4].mxu1 %vm16_vm0, %v193_v5 }
  0xdd   :  { %v113_v8 = vpop.f32.mrb[0].mxu1  ;;  %v105_v10 = vpop.f32.mrb[0].mxu0 }
  0xde   :  { %v129_v12 = vadd.f32 %v113_v8, %v24_v6  ;;  %v177_v13 = vpop.f32.mrb[1].mxu1  ;;  %v127_v14 = vadd.f32 %v105_v10, %v22_v7  ;;  %v173_v15 = vpop.f32.mrb[1].mxu0 }
  0xdf   :  { %v116_v16 = vpop.f32.mrb[2].mxu1  ;;  %v108_v17 = vpop.f32.mrb[2].mxu0 }
  0xe0   :  { %134 = vst.msk [vmem:[#allocation2 + $0x10] sm:$0xff] %vm16_vm0, %v129_v12  ;;  %v130_v18 = vadd.f32 %v116_v16, %v25_v9  ;;  %132 = vst.msk [vmem:[#allocation2] sm:$0xff] %vm16_vm0, %v127_v14  ;;  %v178_v19 = vpop.f32.mrb[3].mxu1  ;;  %v128_v20 = vadd.f32 %v108_v17, %v23_v11  ;;  %v174_v21 = vpop.f32.mrb[3].mxu0 }
  0xe2   :  { %135 = vst.msk [vmem:[#allocation2 + $0x18] sm:$0xff] %vm16_vm0, %v130_v18  ;;  %133 = vst.msk [vmem:[#allocation2 + $0x8] sm:$0xff] %vm16_vm0, %v128_v20 }
  0xe5   :  { %v121_v23 = vpop.f32.mrb[4].mxu1 }
  0xe6   :  { %v131_v24 = vadd.f32 %v121_v23, %v26_v22  ;;  %v181_v25 = vpop.f32.mrb[5].mxu1 }
  0xe7   :  { %v142_v26 = vld [vmem:[#allocation2 + $0x10] sm:$0xff]  ;;  %v140_v27 = vld [vmem:[#allocation2] sm:$0xff]  ;;  %v124_v28 = vpop.f32.mrb[6].mxu1 }
  0xe8   :  { %147 = vst.msk [vmem:[%s261_s2 + $0x10] sm:$0xff] %vm16_vm0, %v142_v26  ;;  %145 = vst.msk [vmem:[%s261_s2] sm:$0xff] %vm16_vm0, %v140_v27  ;;  %v182_v29 = vpop.f32.mrb[7].mxu1 }
  0xe9   :  { %136 = vst.msk [vmem:[#allocation2 + $0x20] sm:$0xff] %vm16_vm0, %v131_v24  ;;  %v143_v30 = vld [vmem:[#allocation2 + $0x18] sm:$0xff]  ;;  %v141_v31 = vld [vmem:[#allocation2 + $0x8] sm:$0xff] }
  0xea   :  { %148 = vst.msk [vmem:[%s261_s2 + $0x18] sm:$0xff] %vm16_vm0, %v143_v30  ;;  %146 = vst.msk [vmem:[%s261_s2 + $0x8] sm:$0xff] %vm16_vm0, %v141_v31 }
  0xf0   :  { %v144_v32 = vld [vmem:[#allocation2 + $0x20] sm:$0xff] }
  0xf1   :  { %149 = vst.msk [vmem:[%s261_s2 + $0x20] sm:$0xff] %vm16_vm0, %v144_v32 }

// kernel: vit_for_clip_forward.51
= control target key start
LH: loop header
LB: loop body
LE: loop exit
PB: predicated region body
PF: predicated region fallthrough
CT: control target
= control target key end

     0   :  { %vm32_vm0 = vcmask 261120   ;;  %v543_v36 = vmov 0.0   ;;  %vm544_vm1 = vmmov 0   ;;  %s745_s0 = inlined_call_operand.vmem [shape: f32[40,32], index: 0, kind: input, shape index: {}]   ;;  %s746_s3 = inlined_call_operand.vmem [shape: bf16[32,128], index: 3, kind: input, shape index: {}]   ;;  %s747_s1 = inlined_call_operand.vmem [shape: f32[1,32], index: 1, kind: input, shape index: {}]   ;;  %s748_s2 = inlined_call_operand.vmem [shape: f32[1,32], index: 2, kind: input, shape index: {}]   ;;  %s749_s5 = inlined_call_operand.vmem [shape: bf16[128,32], index: 5, kind: input, shape index: {}]   ;;  %s750_s4 = inlined_call_operand.vmem [shape: f32[1,128], index: 4, kind: input, shape index: {}]   ;;  %s751_s6 = inlined_call_operand.vmem [shape: f32[1,32], index: 6, kind: input, shape index: {}]   ;;  %s752_s7 = inlined_call_operand.vmem [shape: f32[40,32], index: 7, kind: output, shape index: {}]  }
   0x1   :  { %v588_v0 = vld [vmem:[%s745_s0] sm:$0xff]  ;;  %v593_v1 = vld [vmem:[%s745_s0 + $0x10] sm:$0xff]  ;;  %v598_v2 = vld [vmem:[%s745_s0 + $0x8] sm:$0xff]  ;;  %441 = vmatprep.subr.bf16.mxu0 %v543_v36  ;;  %485 = vmatprep.subr.bf16.mxu1 %v543_v36 }
   0x2   :  { %v33_v3 = vsel %vm32_vm0, %v588_v0, 0.0  ;;  %v39_v4 = vsel %vm32_vm0, %v593_v1, 0.0  ;;  %v607_v5 = vld [vmem:[%s745_s0 + $0x18] sm:$0xff]  ;;  %v36_v6 = vsel %vm32_vm0, %v598_v2, 0.0  ;;  %v616_v8 = vld [vmem:[%s745_s0 + $0x20] sm:$0xff]  ;;  %v504_v37 = vld [vmem:[%s746_s3 + $0x8] sm:$0xff]   ;;  %445 = vmatprep.mubr.msk.bf16.mxu0 %vm544_vm1, %v543_v36  ;;  %477 = vmatprep.mubr.msk.bf16.mxu1 %vm544_vm1, %v543_v36 }
   0x3   :  { %34 = vadd.xlane.f32.xlu0 %v33_v3  ;;  %40 = vadd.xlane.f32.xlu1 %v39_v4  ;;  %v42_v7 = vsel %vm32_vm0, %v607_v5, 0.0  ;;  %v45_v9 = vsel %vm32_vm0, %v616_v8, 0.0  ;;  %v503_v35 = vld [vmem:[%s746_s3] sm:$0xff]  }
   0x4   :  { %442 = vmatpush3.bf16.msra.mxu0 %v503_v35  ;;  %v403_v55 = vld [vmem:[%s747_s1] ss:$0 sm:$0xff] }
   0x5   :  { %443 = vmatprep.subr.bf16.mxu0 %v543_v36  ;;  %v404_v60 = vld [vmem:[%s748_s2] ss:$0 sm:$0xff] }
   0x7   :  { %37 = vadd.xlane.f32.xlu0 %v36_v6  ;;  %43 = vadd.xlane.f32.xlu1 %v42_v7 }
   0x8   :  { %444 = vmatpush3.bf16.msra.mxu0 %v504_v37 }
   0x9   :  { %457 = vmatprep.subr.bf16.mxu0 %v543_v36 }
   0xb   :  { %46 = vadd.xlane.f32.xlu0 %v45_v9 }
  0x90   :  { %v35_v10 = vpop.xlane.xlu0 %34  ;;  %v41_v11 = vpop.xlane.xlu1 %40 }
  0x91   :  { %v49_v12 = vmul.f32 0.03125, %v35_v10  ;;  %v51_v13 = vmul.f32 0.03125, %v41_v11 }
  0x93   :  { %v54_v14 = vsub.f32 %v588_v0, %v49_v12  ;;  %v622_v15 = vsub.f32 %v593_v1, %v51_v13 }
  0x94   :  { %v38_v16 = vpop.xlane.xlu0 %37  ;;  %v44_v17 = vpop.xlane.xlu1 %43 }
  0x95   :  { %v50_v18 = vmul.f32 0.03125, %v38_v16  ;;  %v52_v19 = vmul.f32 0.03125, %v44_v17  ;;  %v59_v20 = vmul.f32 %v54_v14, %v54_v14  ;;  %v61_v21 = vmul.f32 %v622_v15, %v622_v15 }
  0x97   :  { %v55_v22 = vsub.f32 %v598_v2, %v50_v18  ;;  %v628_v23 = vsub.f32 %v607_v5, %v52_v19  ;;  %v64_v24 = vsel %vm32_vm0, %v59_v20, 0.0  ;;  %v70_v27 = vsel %vm32_vm0, %v61_v21, 0.0  ;;  %v505_v19 = vld [vmem:[%s749_s5] sm:$0xff]   ;;  %v506_v20 = vld [vmem:[%s749_s5 + $0x8] sm:$0xff]   ;;  %v507_v21 = vld [vmem:[%s749_s5 + $0x10] sm:$0xff]  }
  0x98   :  { %65 = vadd.xlane.f32.xlu1 %v64_v24  ;;  %v47_v25 = vpop.xlane.xlu0 %46  ;;  %493 = vmatpush3.bf16.msra.mxu1 %v505_v19  ;;  %v510_v24 = vld [vmem:[%s749_s5 + $0x28] sm:$0xff]  }
  0x99   :  { %v53_v26 = vmul.f32 0.03125, %v47_v25  ;;  %v60_v28 = vmul.f32 %v55_v22, %v55_v22  ;;  %v62_v29 = vmul.f32 %v628_v23, %v628_v23  ;;  %486 = vmatprep.subr.bf16.mxu1 %v543_v36  ;;  %v511_v25 = vld [vmem:[%s749_s5 + $0x30] sm:$0xff]  }
  0x9b   :  { %v635_v30 = vsub.f32 %v616_v8, %v53_v26  ;;  %v67_v31 = vsel %vm32_vm0, %v60_v28, 0.0  ;;  %v73_v32 = vsel %vm32_vm0, %v62_v29, 0.0  ;;  %v512_v26 = vld [vmem:[%s749_s5 + $0x38] sm:$0xff]  }
  0x9c   :  { %71 = vadd.xlane.f32.xlu1 %v70_v27  ;;  %68 = vadd.xlane.f32.xlu0 %v67_v31  ;;  %v405_v27 = vld [vmem:[%s750_s4] ss:$0 sm:$0xff] }
  0x9d   :  { %v63_v33 = vmul.f32 %v635_v30, %v635_v30  ;;  %494 = vmatpush3.bf16.msra.mxu1 %v506_v20 }
  0x9e   :  { %487 = vmatprep.subr.bf16.mxu1 %v543_v36 }
  0x9f   :  { %v76_v34 = vsel %vm32_vm0, %v63_v33, 0.0 }
  0xa0   :  { %74 = vadd.xlane.f32.xlu0 %v73_v32  ;;  %77 = vadd.xlane.f32.xlu1 %v76_v34 }
  0xa1   :  { %495 = vmatpush3.bf16.msra.mxu1 %v507_v21 }
  0xa2   :  { %488 = vmatprep.subr.bf16.mxu1 %v543_v36 }
 0x125   :  { %v66_v38 = vpop.xlane.xlu1 %65 }
 0x126   :  { %v79_v39 = vmul.f32 0.03125, %v66_v38 }
 0x128   :  { %v84_v40 = vadd.f32 1e-05, %v79_v39 }
 0x129   :  { %v72_v41 = vpop.xlane.xlu1 %71  ;;  %v69_v42 = vpop.xlane.xlu0 %68 }
 0x12a   :  { %513 = vrsqrt.f32 %v84_v40  ;;  %v81_v43 = vmul.f32 0.03125, %v72_v41  ;;  %v80_v44 = vmul.f32 0.03125, %v69_v42 }
 0x12c   :  { %v85_v45 = vadd.f32 1e-05, %v80_v44  ;;  %v86_v46 = vadd.f32 1e-05, %v81_v43 }
 0x12d   :  { %v78_v47 = vpop.xlane.xlu1 %77  ;;  %v75_v48 = vpop.xlane.xlu0 %74 }
 0x12e   :  { %v82_v49 = vmul.f32 0.03125, %v75_v48  ;;  %515 = vrsqrt.f32 %v85_v45  ;;  %v83_v50 = vmul.f32 0.03125, %v78_v47 }
 0x12f   :  { %517 = vrsqrt.f32 %v86_v46 }
 0x130   :  { %v87_v51 = vadd.f32 1e-05, %v82_v49  ;;  %v88_v52 = vadd.f32 1e-05, %v83_v50 }
 0x132   :  { %519 = vrsqrt.f32 %v87_v51 }
 0x133   :  { %521 = vrsqrt.f32 %v88_v52 }
 0x134   :  { %v514_v53 = vpop.eup %513 }
 0x135   :  { %v94_v54 = vmul.f32 %v514_v53, %v54_v14 }
 0x137   :  { %v106_v58 = vmul.f32 %v403_v55, %v94_v54 }
 0x138   :  { %v516_v56 = vpop.eup %515 }
 0x139   :  { %v95_v57 = vmul.f32 %v516_v56, %v55_v22  ;;  %v518_v59 = vpop.eup %517  ;;  %v118_v4 = vadd.f32 %v404_v60, %v106_v58  ;;  %v508_v22 = vld [vmem:[%s749_s5 + $0x18] sm:$0xff]  }
 0x13a   :  { %v96_v63 = vmul.f32 %v518_v59, %v622_v15  ;;  %496 = vmatpush3.bf16.msra.mxu1 %v508_v22 }
 0x13b   :  { %v107_v61 = vmul.f32 %v403_v55, %v95_v57  ;;  %489 = vmatprep.subr.bf16.mxu1 %v543_v36 }
 0x13c   :  { %v520_v62 = vpop.eup %519  ;;  %v108_v11 = vmul.f32 %v403_v55, %v96_v63 }
 0x13d   :  { %v97_v3 = vmul.f32 %v520_v62, %v628_v23  ;;  %v119_v6 = vadd.f32 %v404_v60, %v107_v61  ;;  %v522_v10 = vpop.eup %521  ;;  %v509_v23 = vld [vmem:[%s749_s5 + $0x20] sm:$0xff]  }
 0x13e   :  { %v98_v12 = vmul.f32 %v522_v10, %v635_v30  ;;  %v120_v14 = vadd.f32 %v404_v60, %v108_v11  ;;  %497 = vmatpush3.bf16.msra.mxu1 %v509_v23 }
 0x13f   :  { %v123_v7 = vpack.c.bf16 %v119_v6, %v118_v4  ;;  %v109_v9 = vmul.f32 %v403_v55, %v97_v3  ;;  %490 = vmatprep.subr.bf16.mxu1 %v543_v36 }
 0x140   :  { %v110_v17 = vmul.f32 %v403_v55, %v98_v12 }
 0x141   :  { %446 = vmatmul.mubr.msk.bf16.vlgmr.msra.gmra.mrb[0].mxu0 %vm32_vm0, %v123_v7  ;;  %v121_v13 = vadd.f32 %v404_v60, %v109_v9 }
 0x142   :  { %449 = vmatprep.mubr.msk.bf16.mxu0 %vm544_vm1, %v543_v36  ;;  %v122_v15 = vadd.f32 %v404_v60, %v110_v17  ;;  %458 = vmatpush3.bf16.msra.mxu0 %v505_v19 }
 0x143   :  { %v124_v16 = vpack.c.bf16 %v121_v13, %v120_v14  ;;  %459 = vmatprep.subr.bf16.mxu0 %v543_v36  ;;  %498 = vmatpush3.bf16.msra.mxu1 %v510_v24 }
 0x144   :  { %v125_v18 = vpack.c.bf16 %v122_v15, %v122_v15  ;;  %491 = vmatprep.subr.bf16.mxu1 %v543_v36 }
 0x146   :  { %460 = vmatpush3.bf16.msra.mxu0 %v506_v20 }
 0x147   :  { %461 = vmatprep.subr.bf16.mxu0 %v543_v36  ;;  %499 = vmatpush3.bf16.msra.mxu1 %v511_v25 }
 0x148   :  { %492 = vmatprep.subr.bf16.mxu1 %v543_v36 }
 0x149   :  { %450 = vmatmul.mubr.msk.bf16.gmra.mrb[4].mxu0 %vm32_vm0, %v124_v16 }
 0x14a   :  { %453 = vmatprep.mubr.msk.bf16.mxu0 %vm544_vm1, %v543_v36  ;;  %462 = vmatpush3.bf16.msra.mxu0 %v507_v21  ;;  %v424_v21 = vld [vmem:[%s751_s6] ss:$0 sm:$0xff] }
 0x14b   :  { %463 = vmatprep.subr.bf16.mxu0 %v543_v36  ;;  %500 = vmatpush3.bf16.msra.mxu1 %v512_v26 }
 0x14e   :  { %464 = vmatpush3.bf16.msra.mxu0 %v508_v22 }
 0x14f   :  { %465 = vmatprep.subr.bf16.mxu0 %v543_v36 }
 0x151   :  { %454 = vmatmul.mubr.msk.bf16.gmra.mrb[8].mxu0 %vm32_vm0, %v125_v18 }
 0x152   :  { %473 = vmatprep.mubr.msk.bf16.mxu0 %vm544_vm1, %v543_v36  ;;  %466 = vmatpush3.bf16.msra.mxu0 %v509_v23 }
 0x153   :  { %467 = vmatprep.subr.bf16.mxu0 %v543_v36 }
 0x156   :  { %468 = vmatpush3.bf16.msra.mxu0 %v510_v24 }
 0x157   :  { %469 = vmatprep.subr.bf16.mxu0 %v543_v36 }
 0x15a   :  { %470 = vmatpush3.bf16.msra.mxu0 %v511_v25 }
 0x15b   :  { %471 = vmatprep.subr.bf16.mxu0 %v543_v36 }
 0x15e   :  { %472 = vmatpush3.bf16.msra.mxu0 %v512_v26 }
 0x214   :  { %v192_v28 = vpop.f32.mrb[0].mxu0 }
 0x215   :  { %v193_v29 = vadd.f32 %v405_v27, %v192_v28  ;;  %v447_v30 = vpop.f32.mrb[1].mxu0 }
 0x216   :  { %v195_v31 = vpop.f32.mrb[2].mxu0 }
 0x217   :  { %v411_v32 = vmul.f32 -1.702, %v193_v29  ;;  %v196_v33 = vadd.f32 %v405_v27, %v195_v31  ;;  %v448_v34 = vpop.f32.mrb[3].mxu0 }
 0x219   :  { %v224_v35 = vmul.f32 1.442695, %v411_v32  ;;  %v412_v37 = vmul.f32 -1.702, %v196_v33 }
 0x21b   :  { %523 = vpow2.f32 %v224_v35  ;;  %v226_v38 = vmul.f32 1.442695, %v412_v37 }
 0x21c   :  { %v200_v39 = vpop.f32.mrb[4].mxu0 }
 0x21d   :  { %525 = vpow2.f32 %v226_v38  ;;  %v201_v40 = vadd.f32 %v405_v27, %v200_v39  ;;  %v451_v41 = vpop.f32.mrb[5].mxu0 }
 0x21e   :  { %v203_v42 = vpop.f32.mrb[6].mxu0 }
 0x21f   :  { %v413_v43 = vmul.f32 -1.702, %v201_v40  ;;  %v204_v44 = vadd.f32 %v405_v27, %v203_v42  ;;  %v452_v45 = vpop.f32.mrb[7].mxu0 }
 0x221   :  { %v228_v46 = vmul.f32 1.442695, %v413_v43  ;;  %v414_v47 = vmul.f32 -1.702, %v204_v44 }
 0x223   :  { %527 = vpow2.f32 %v228_v46  ;;  %v230_v48 = vmul.f32 1.442695, %v414_v47 }
 0x224   :  { %v208_v49 = vpop.f32.mrb[8].mxu0 }
 0x225   :  { %v524_v50 = vpop.eup %523  ;;  %529 = vpow2.f32 %v230_v48  ;;  %v209_v51 = vadd.f32 %v405_v27, %v208_v49  ;;  %v455_v52 = vpop.f32.mrb[9].mxu0 }
 0x226   :  { %v234_v53 = vadd.f32 1.0, %v524_v50  ;;  %v211_v54 = vpop.f32.mrb[10].mxu0 }
 0x227   :  { %v526_v55 = vpop.eup %525  ;;  %v415_v56 = vmul.f32 -1.702, %v209_v51  ;;  %v456_v57 = vpop.f32.mrb[11].mxu0 }
 0x228   :  { %531 = vrcp.f32 %v234_v53  ;;  %v235_v58 = vadd.f32 1.0, %v526_v55 }
 0x229   :  { %v232_v59 = vmul.f32 1.442695, %v415_v56 }
 0x22a   :  { %533 = vrcp.f32 %v235_v58 }
 0x22b   :  { %535 = vpow2.f32 %v232_v59 }
 0x22d   :  { %v528_v60 = vpop.eup %527 }
 0x22e   :  { %v236_v61 = vadd.f32 1.0, %v528_v60 }
 0x22f   :  { %v530_v62 = vpop.eup %529 }
 0x230   :  { %537 = vrcp.f32 %v236_v61  ;;  %v237_v63 = vadd.f32 1.0, %v530_v62 }
 0x232   :  { %v532_v3 = vpop.eup %531  ;;  %539 = vrcp.f32 %v237_v63 }
 0x233   :  { %v249_v7 = vmul.f32 %v532_v3, %v193_v29 }
 0x234   :  { %v534_v4 = vpop.eup %533 }
 0x235   :  { %v536_v6 = vpop.eup %535  ;;  %v250_v9 = vmul.f32 %v534_v4, %v196_v33 }
 0x236   :  { %v238_v10 = vadd.f32 1.0, %v536_v6 }
 0x237   :  { %v254_v11 = vpack.c.bf16 %v250_v9, %v249_v7 }
 0x238   :  { %541 = vrcp.f32 %v238_v10 }
 0x239   :  { %474 = vmatmul.mubr.bf16.vlgmr.msra.gmra.mrb[12].mxu0 %v254_v11 }
 0x23a   :  { %v538_v12 = vpop.eup %537 }
 0x23b   :  { %v251_v14 = vmul.f32 %v538_v12, %v201_v40 }
 0x23c   :  { %v540_v13 = vpop.eup %539 }
 0x23d   :  { %v252_v16 = vmul.f32 %v540_v13, %v204_v44 }
 0x23f   :  { %v255_v17 = vpack.c.bf16 %v252_v16, %v251_v14 }
 0x241   :  { %478 = vmatmul.mubr.bf16.vlgmr.msra.gmra.mrb[0].mxu1 %v255_v17 }
 0x242   :  { %v542_v15 = vpop.eup %541  ;;  %481 = vmatprep.mubr.msk.bf16.mxu1 %vm544_vm1, %v543_v36 }
 0x243   :  { %v253_v18 = vmul.f32 %v542_v15, %v209_v51 }
 0x245   :  { %v256_v19 = vpack.c.bf16 %v253_v18, %v253_v18 }
 0x249   :  { %482 = vmatmul.mubr.bf16.gmra.mrb[4].mxu1 %v256_v19 }
 0x30c   :  { %v355_v20 = vpop.f32.mrb[12].mxu0 }
 0x30d   :  { %v377_v22 = vadd.f32 %v355_v20, %v588_v0  ;;  %v475_v23 = vpop.f32.mrb[13].mxu0 }
 0x30e   :  { %v358_v24 = vpop.f32.mrb[14].mxu0 }
 0x30f   :  { %v389_v25 = vadd.f32 %v424_v21, %v377_v22  ;;  %v378_v26 = vadd.f32 %v358_v24, %v598_v2  ;;  %v476_v27 = vpop.f32.mrb[15].mxu0 }
 0x311   :  { %394 = vst.msk [vmem:[%s752_s7] sm:$0xff] %vm32_vm0, %v389_v25  ;;  %v390_v36 = vadd.f32 %v424_v21, %v378_v26 }
 0x313   :  { %395 = vst.msk [vmem:[%s752_s7 + $0x8] sm:$0xff] %vm32_vm0, %v390_v36 }
 0x314   :  { %v363_v28 = vpop.f32.mrb[0].mxu1 }
 0x315   :  { %v379_v0 = vadd.f32 %v363_v28, %v593_v1  ;;  %v479_v29 = vpop.f32.mrb[1].mxu1 }
 0x316   :  { %v366_v30 = vpop.f32.mrb[2].mxu1 }
 0x317   :  { %v391_v31 = vadd.f32 %v424_v21, %v379_v0  ;;  %v380_v2 = vadd.f32 %v366_v30, %v607_v5  ;;  %v480_v32 = vpop.f32.mrb[3].mxu1 }
 0x319   :  { %396 = vst.msk [vmem:[%s752_s7 + $0x10] sm:$0xff] %vm32_vm0, %v391_v31  ;;  %v392_v33 = vadd.f32 %v424_v21, %v380_v2 }
 0x31b   :  { %397 = vst.msk [vmem:[%s752_s7 + $0x18] sm:$0xff] %vm32_vm0, %v392_v33 }
 0x31c   :  { %v371_v34 = vpop.f32.mrb[4].mxu1 }
 0x31d   :  { %v381_v1 = vadd.f32 %v371_v34, %v616_v8  ;;  %v483_v35 = vpop.f32.mrb[5].mxu1 }
 0x31e   :  { %v374_v37 = vpop.f32.mrb[6].mxu1 }
 0x31f   :  { %v393_v38 = vadd.f32 %v424_v21, %v381_v1  ;;  %v484_v39 = vpop.f32.mrb[7].mxu1 }
 0x321   :  { %398 = vst.msk [vmem:[%s752_s7 + $0x20] sm:$0xff] %vm32_vm0, %v393_v38 }

// kernel: vit_for_clip_forward.57
= control target key start
LH: loop header
LB: loop body
LE: loop exit
PB: predicated region body
PF: predicated region fallthrough
CT: control target
= control target key end

     0   :  { %vm19_vm0 = vcmask 523264   ;;  %v122_v0 = vmov 0.0   ;;  %vm123_vm1 = vmmov 0   ;;  %vm39_vm2 = vcmask 261120   ;;  %s162_s1 = inlined_call_operand.vmem [shape: bf16[32,64], index: 1, kind: input, shape index: {}]   ;;  %s163_s0 = inlined_call_operand.vmem [shape: bf16[8,32], index: 0, kind: input, shape index: {}]   ;;  %s164_s2 = inlined_call_operand.vmem [shape: f32[1,64], index: 2, kind: input, shape index: {}]   ;;  %s165_s3 = inlined_call_operand.vmem [shape: f32[8,64], index: 3, kind: output, shape index: {}]  }
   0x1   :  { %20 = vst.msk [vmem:[#allocation2] sm:$0xff] %vm19_vm0, %v122_v0  ;;  %110 = vmatprep.subr.bf16.mxu0 %v122_v0  ;;  %v120_v1 = vld [vmem:[%s162_s1] sm:$0xff]   ;;  %114 = vmatprep.mubr.msk.bf16.mxu0 %vm123_vm1, %v122_v0  ;;  %v121_v2 = vld [vmem:[%s162_s1 + $0x8] sm:$0xff]  }
   0x2   :  { %111 = vmatpush3.bf16.msra.mxu0 %v120_v1  ;;  %v22_v3 = vld [vmem:[%s163_s0] sm:$0xf] }
   0x3   :  { %112 = vmatprep.subr.bf16.mxu0 %v122_v0  ;;  %v106_v10 = vld [vmem:[%s164_s2] ss:$0 sm:$0xff] }
   0x6   :  { %113 = vmatpush3.bf16.msra.mxu0 %v121_v2 }
   0x8   :  { %v21_v4 = vld [vmem:[#allocation2] sm:$0xff] }
   0x9   :  { %115 = vmatmul.mubr.msk.bf16.vlgmr.msra.gmra.mrb[0].mxu0 %vm39_vm2, %v22_v3 }
  0xdc   :  { %v77_v5 = vpop.f32.mrb[0].mxu0 }
  0xdd   :  { %v83_v6 = vadd.f32 %v77_v5, %v21_v4  ;;  %v116_v7 = vpop.f32.mrb[1].mxu0 }
  0xde   :  { %v80_v8 = vpop.f32.mrb[2].mxu0 }
  0xdf   :  { %85 = vst.msk [vmem:[#allocation2] sm:$0xff] %vm19_vm0, %v83_v6  ;;  %v117_v9 = vpop.f32.mrb[3].mxu0 }
  0xe6   :  { %v89_v11 = vld [vmem:[#allocation2] sm:$0xff] }
  0xe7   :  { %v97_v12 = vadd.f32 %v106_v10, %v89_v11 }
  0xe9   :  { %98 = vst.msk [vmem:[%s165_s3] sm:$0xff] %vm19_vm0, %v97_v12 }

// kernel: vit_for_clip_forward.58
= control target key start
LH: loop header
LB: loop body
LE: loop exit
PB: predicated region body
PF: predicated region fallthrough
CT: control target
= control target key end

     0   :  { %vm16_vm0 = vcmask 523264   ;;  %s118_s0 = inlined_call_operand.vmem [shape: f32[16,64], index: 0, kind: input, shape index: {}]   ;;  %s119_s1 = inlined_call_operand.vmem [shape: f32[1,64], index: 1, kind: input, shape index: {}]   ;;  %s120_s2 = inlined_call_operand.vmem [shape: f32[1,64], index: 2, kind: input, shape index: {}]   ;;  %s121_s3 = inlined_call_operand.vmem [shape: f32[16,64], index: 3, kind: output, shape index: {}]  }
   0x1   :  { %v14_v0 = vld [vmem:[%s118_s0] sm:$0xff]  ;;  %v15_v1 = vld [vmem:[%s118_s0 + $0x8] sm:$0xff] }
   0x2   :  { %v17_v2 = vsel %vm16_vm0, %v14_v0, 0.0  ;;  %v20_v3 = vsel %vm16_vm0, %v15_v1, 0.0  ;;  %v68_v21 = vld [vmem:[%s119_s1] ss:$0 sm:$0xff] }
   0x3   :  { %18 = vadd.xlane.f32.xlu0 %v17_v2  ;;  %v69_v23 = vld [vmem:[%s120_s2] ss:$0 sm:$0xff] }
   0x7   :  { %21 = vadd.xlane.f32.xlu0 %v20_v3 }
  0x90   :  { %v19_v4 = vpop.xlane.xlu0 %18 }
  0x91   :  { %v24_v5 = vmul.f32 0.015625, %v19_v4 }
  0x93   :  { %v26_v6 = vsub.f32 %v14_v0, %v24_v5 }
  0x94   :  { %v22_v7 = vpop.xlane.xlu0 %21 }
  0x95   :  { %v25_v8 = vmul.f32 0.015625, %v22_v7  ;;  %v28_v9 = vmul.f32 %v26_v6, %v26_v6 }
  0x97   :  { %v27_v10 = vsub.f32 %v15_v1, %v25_v8  ;;  %v30_v11 = vsel %vm16_vm0, %v28_v9, 0.0 }
  0x98   :  { %31 = vadd.xlane.f32.xlu1 %v30_v11 }
  0x99   :  { %v29_v12 = vmul.f32 %v27_v10, %v27_v10 }
  0x9b   :  { %v33_v13 = vsel %vm16_vm0, %v29_v12, 0.0 }
  0x9c   :  { %34 = vadd.xlane.f32.xlu1 %v33_v13 }
 0x125   :  { %v32_v14 = vpop.xlane.xlu1 %31 }
 0x126   :  { %v36_v15 = vmul.f32 0.015625, %v32_v14 }
 0x128   :  { %v38_v16 = vadd.f32 1e-05, %v36_v15 }
 0x129   :  { %v35_v17 = vpop.xlane.xlu1 %34 }
 0x12a   :  { %70 = vrsqrt.f32 %v38_v16  ;;  %v37_v18 = vmul.f32 0.015625, %v35_v17 }
 0x12c   :  { %v39_v19 = vadd.f32 1e-05, %v37_v18 }
 0x12e   :  { %72 = vrsqrt.f32 %v39_v19 }
 0x134   :  { %v71_v20 = vpop.eup %70 }
 0x135   :  { %v42_v22 = vmul.f32 %v71_v20, %v26_v6 }
 0x137   :  { %v51_v24 = vmul.f32 %v68_v21, %v42_v22 }
 0x138   :  { %v73_v25 = vpop.eup %72 }
 0x139   :  { %v60_v26 = vadd.f32 %v69_v23, %v51_v24  ;;  %v43_v27 = vmul.f32 %v73_v25, %v27_v10 }
 0x13b   :  { %62 = vst.msk [vmem:[%s121_s3] sm:$0xff] %vm16_vm0, %v60_v26  ;;  %v52_v28 = vmul.f32 %v68_v21, %v43_v27 }
 0x13d   :  { %v61_v29 = vadd.f32 %v69_v23, %v52_v28 }
 0x13f   :  { %63 = vst.msk [vmem:[%s121_s3 + $0x8] sm:$0xff] %vm16_vm0, %v61_v29 }

// kernel: vit_for_clip_forward.59
= control target key start
LH: loop header
LB: loop body
LE: loop exit
PB: predicated region body
PF: predicated region fallthrough
CT: control target
= control target key end

     0   :  { %vm23_vm0 = vcmask 523264   ;;  %v212_v22 = vmov 0   ;;  %v80_v40 = vlaneseq  ;;  %s301_s0 = inlined_call_operand.vmem [shape: f32[16,64], index: 0, kind: input, shape index: {}]   ;;  %s302_s3 = inlined_call_operand.vmem [shape: bf16[64,192], index: 3, kind: input, shape index: {}]   ;;  %s303_s1 = inlined_call_operand.vmem [shape: f32[1,64], index: 1, kind: input, shape index: {}]   ;;  %s304_s2 = inlined_call_operand.vmem [shape: f32[1,64], index: 2, kind: input, shape index: {}]   ;;  %s305_s4 = inlined_call_operand.vmem [shape: f32[1,192], index: 4, kind: input, shape index: {}]   ;;  %s306_s5 = inlined_call_operand.vmem [shape: f32[16,192], index: 5, kind: output, shape index: {}]  }
   0x1   :  { %v21_v0 = vld [vmem:[%s301_s0] sm:$0xff]  ;;  %v22_v1 = vld [vmem:[%s301_s0 + $0x8] sm:$0xff]  ;;  %v199_v16 = vld [vmem:[%s302_s3 + $0x14] ss:$8 sps:$4 sm:$0xff]   ;;  %165 = vmatprep.mubr.bf16.mxu0 %v212_v22 }
   0x2   :  { %v24_v2 = vsel %vm23_vm0, %v21_v0, 0.0  ;;  %v27_v3 = vsel %vm23_vm0, %v22_v1, 0.0  ;;  %v196_v14 = vld [vmem:[%s302_s3 + $0x4] ss:$8 sps:$4 sm:$0xff]   ;;  %v198_v15 = vld [vmem:[%s302_s3] ss:$8 sps:$4 sm:$0xff]  }
   0x3   :  { %25 = vadd.xlane.f32.xlu0 %v24_v2  ;;  %133 = vmatprep.subr.bf16.mxu0 %v196_v14  ;;  %v201_v17 = vld [vmem:[%s302_s3 + $0x10] ss:$8 sps:$4 sm:$0xff]   ;;  %v202_v18 = vld [vmem:[%s302_s3 + $0x24] ss:$8 sps:$4 sm:$0xff]   ;;  %v204_v19 = vld [vmem:[%s302_s3 + $0x20] ss:$8 sps:$4 sm:$0xff]  }
   0x4   :  { %134 = vmatpush1.bf16.msra.mxu0 %v198_v15  ;;  %v205_v20 = vld [vmem:[%s302_s3 + $0x34] ss:$8 sps:$4 sm:$0xff]   ;;  %v207_v21 = vld [vmem:[%s302_s3 + $0x30] ss:$8 sps:$4 sm:$0xff]   ;;  %v184_v31 = vld [vmem:[%s303_s1] ss:$0 sm:$0xff] }
   0x5   :  { %135 = vmatprep.subr.bf16.mxu0 %v199_v16  ;;  %v185_v35 = vld [vmem:[%s304_s2] ss:$0 sm:$0xff]  ;;  %v81_v41 = vshrl.u32 %v80_v40, 7 }
   0x6   :  { %v78_v43 = vld [vmem:[%s305_s4] sm:$0x3] }
   0x7   :  { %28 = vadd.xlane.f32.xlu0 %v27_v3  ;;  %v82_v42 = vsub.s32 0, %v81_v41  ;;  %v86_v44 = vsub.s32 1, %v81_v41 }
   0x8   :  { %136 = vmatpush1.bf16.msra.mxu0 %v201_v17 }
   0x9   :  { %137 = vmatprep.subr.bf16.mxu0 %v202_v18  ;;  %v83_v45 = vrot.slane %v78_v43, %v82_v42  ;;  %v87_v46 = vrot.slane %v78_v43, %v86_v44 }
   0xc   :  { %138 = vmatpush1.bf16.msra.mxu0 %v204_v19 }
   0xd   :  { %139 = vmatprep.subr.bf16.mxu0 %v205_v20 }
  0x10   :  { %140 = vmatpush1.bf16.msra.mxu0 %v207_v21 }
  0x90   :  { %v26_v4 = vpop.xlane.xlu0 %25 }
  0x91   :  { %v31_v5 = vmul.f32 0.015625, %v26_v4 }
  0x93   :  { %v33_v6 = vsub.f32 %v21_v0, %v31_v5 }
  0x94   :  { %v29_v7 = vpop.xlane.xlu0 %28 }
  0x95   :  { %v32_v8 = vmul.f32 0.015625, %v29_v7  ;;  %v35_v9 = vmul.f32 %v33_v6, %v33_v6 }
  0x97   :  { %v34_v10 = vsub.f32 %v22_v1, %v32_v8  ;;  %v37_v11 = vsel %vm23_vm0, %v35_v9, 0.0 }
  0x98   :  { %38 = vadd.xlane.f32.xlu1 %v37_v11 }
  0x99   :  { %v36_v12 = vmul.f32 %v34_v10, %v34_v10 }
  0x9b   :  { %v40_v13 = vsel %vm23_vm0, %v36_v12, 0.0 }
  0x9c   :  { %41 = vadd.xlane.f32.xlu1 %v40_v13 }
 0x125   :  { %v39_v23 = vpop.xlane.xlu1 %38 }
 0x126   :  { %v43_v24 = vmul.f32 0.015625, %v39_v23 }
 0x128   :  { %v45_v25 = vadd.f32 1e-05, %v43_v24 }
 0x129   :  { %v42_v26 = vpop.xlane.xlu1 %41 }
 0x12a   :  { %208 = vrsqrt.f32 %v45_v25  ;;  %v44_v27 = vmul.f32 0.015625, %v42_v26 }
 0x12c   :  { %v46_v28 = vadd.f32 1e-05, %v44_v27 }
 0x12e   :  { %210 = vrsqrt.f32 %v46_v28 }
 0x134   :  { %v209_v29 = vpop.eup %208 }
 0x135   :  { %v49_v30 = vmul.f32 %v209_v29, %v33_v6 }
 0x137   :  { %v58_v34 = vmul.f32 %v184_v31, %v49_v30 }
 0x138   :  { %v211_v32 = vpop.eup %210 }
 0x139   :  { %v50_v33 = vmul.f32 %v211_v32, %v34_v10  ;;  %v67_v37 = vadd.f32 %v185_v35, %v58_v34 }
 0x13b   :  { %v59_v36 = vmul.f32 %v184_v31, %v50_v33 }
 0x13d   :  { %v68_v38 = vadd.f32 %v185_v35, %v59_v36 }
 0x13f   :  { %v69_v39 = vpack.c.bf16 %v68_v38, %v67_v37 }
 0x141   :  { %194 = vmatmul.mubr.msk.bf16.vlgmr.msra.gmra.mrb[0].mxu0 %vm23_vm0, %v69_v39 }
 0x214   :  { %v167_v47 = vpop.f32.mrb[0].mxu0 }
 0x215   :  { %v168_v48 = vadd.f32 %v167_v47, %v83_v45  ;;  %v169_v49 = vpop.f32.mrb[1].mxu0 }
 0x216   :  { %v170_v50 = vadd.f32 %v169_v49, %v87_v46  ;;  %v171_v51 = vpop.f32.mrb[2].mxu0 }
 0x217   :  { %176 = vst [vmem:[%s306_s5] sm:$0xff] %v168_v48  ;;  %v172_v52 = vadd.f32 %v171_v51, %v83_v45  ;;  %v173_v53 = vpop.f32.mrb[3].mxu0 }
 0x218   :  { %177 = vst.msk [vmem:[%s306_s5 + $0x8] sm:$0xff] %vm23_vm0, %v170_v50  ;;  %v174_v54 = vadd.f32 %v173_v53, %v87_v46 }
 0x219   :  { %178 = vst [vmem:[%s306_s5 + $0x10] sm:$0xff] %v172_v52 }
 0x21a   :  { %179 = vst.msk [vmem:[%s306_s5 + $0x18] sm:$0xff] %vm23_vm0, %v174_v54 }

// kernel: vit_for_clip_forward.60
= control target key start
LH: loop header
LB: loop body
LE: loop exit
PB: predicated region body
PF: predicated region fallthrough
CT: control target
= control target key end

     0   :  { %s644_s12 = smov 0   ;;  %s646_s13 = smov 0   ;;  %s704_s0 = inlined_call_operand.vmem [shape: bf16[4,8,32], index: 0, kind: input, shape index: {}]   ;;  %s705_s1 = inlined_call_operand.vmem [shape: bf16[4,8,32], index: 1, kind: input, shape index: {}]   ;;  %s706_s2 = inlined_call_operand.vmem [shape: bf16[4,8,32], index: 2, kind: input, shape index: {}]   ;;  %s707_s3 = inlined_call_operand.vmem [shape: f32[4,8,32], index: 3, kind: output, shape index: {}]  }
   0x1   :  { %s648_s14 = smov 0  }
   0x2 LB: > { %s32_s15 = sadd.s32 1, %s614_s13  ;;  %p535_p0 = scmp.ge.s32.totalorder %s618_s14, 1  ;;  %s618_s14 = sphi %s648_s14, %s13_s14   ;;  %s614_s13 = sphi %s646_s13, %s709_s13   ;;  %s610_s12 = sphi %s644_s12, %s708_s12  }
   0x3   : > { %p34_p1 = scmp.ge.s32.totalorder %s32_s15, 4  ;;  %p190_p2 = scmp.lt.s32.totalorder %s618_s14, 5 }
   0x5   : > { %s711_s15 = smov (%p34_p1, %s32_s15), 0  ;;  %p191_p3 = pnand %p535_p0, %p190_p2 }
   0x6   : > { %p232_p4 = scmp.lt.s32.totalorder (!%p191_p3), %s610_s12, 3  ;;  %vm268_vm0 = vcmask (!%p191_p3), 261120   ;;  %v620_v0 = vmov (!%p191_p3), 0.0   ;;  %vm621_vm1 = vmmov (!%p191_p3), 0   ;;  %vm265_vm2 = vcmask (!%p191_p3), 7168  }
   0x7   : > { %194 = sbr.rel (%p191_p3) target bundleno = 824 (0x338), region = 32  ;;  %548 = vmatprep.subr.bf16.mxu0 (!%p191_p3), %v620_v0  ;;  %269 = vst.msk [vmem:[#allocation4] sm:$0xff] (!%p191_p3), %vm268_vm0, %v620_v0  ;;  %550 = vmatprep.mubr.msk.bf16.mxu0 (!%p191_p3), %vm621_vm1, %v620_v0  ;;  %v622_v4 = vmov (!%p191_p3), -inf   ;;  %v321_v5 = vlaneseq (!%p191_p3)  ;;  %vm328_vm4 = vcmask (!%p191_p3), 64512   ;;  %v623_v14 = vmov (!%p191_p3), 0  }
   0x8   : > { %554 = vmatprep.subr.bf16.mxu1 (!%p191_p3), %v620_v0  ;;  %556 = vmatprep.mubr.msk.bf16.mxu1 (!%p191_p3), %vm621_vm1, %v620_v0  ;;  %266 = vst.msk [vmem:[#allocation2] sm:$0xff] (!%p191_p3), %vm265_vm2, %v622_v4  ;;  %267 = vst.msk [vmem:[#allocation3] sm:$0xff] (!%p191_p3), %vm265_vm2, %v620_v0  ;;  %vm364_vm5 = vcmask (!%p191_p3), 1043456  }
   0x9   : > { %v322_v6 = vand.u32 (!%p191_p3), 127, %v321_v5  ;;  %588 = vset.pattern.permute.xlu0 (!%p191_p3), %v623_v14  ;;  %589 = vset.pattern.permute.xlu1 (!%p191_p3), %v623_v14 }
   0xb   : > { %vm325_vm3 = vcmp.lt.s32.totalorder (!%p191_p3), %v322_v6, 5 }
   0xe   : > { %s713_s12 = smov (!%p232_p4, %s610_s12), 3  ;;  %v352_v35 = vld [vmem:[#allocation4] sm:$0xff] }
   0xf   : > { %s666_s16 = sshll.u32 %s713_s12, 2  ;;  %v327_v15 = vld [vmem:[#allocation2] sm:$0xff]  ;;  %v344_v29 = vld [vmem:[#allocation3] sm:$0xff]  ;;  %s539_s26 = sshll.u32 %s713_s12, 3 }
  0x10   : > { %s245_s19 = scalar_lea.vmem %s705_s1, %s666_s16  ;;  %s238_s22 = scalar_lea.vmem %s704_s0, %s666_s16 }
  0x11   : > { %v271_v1 = vld [vmem:[%s245_s19] sm:$0xf]  ;;  %s252_s25 = scalar_lea.vmem %s706_s2, %s666_s16  ;;  %s259_s29 = scalar_lea.vmem %s707_s3, %s539_s26 }
  0x12   : > { %v277_v2 = vsel %vm268_vm0, %v271_v1, 0  ;;  %v270_v3 = vld [vmem:[%s238_s22] sm:$0xf] }
  0x13   : > { %549 = vmatpush3.bf16.xpose.msra.mxu0 %v277_v2  ;;  %v360_v19 = vld [vmem:[%s252_s25] sm:$0xf] }
  0x14   : > { %v366_v20 = vsel %vm364_vm5, %v360_v19, 0 }
  0x15   : > { %555 = vmatpush3.bf16.msra.mxu1 %v366_v20 }
  0x1a   : > { %551 = vmatmul.mubr.msk.bf16.vlgmr.msra.gmra.mrb[0].mxu0 %vm268_vm0, %v270_v3 }
  0xed   : > { %v313_v7 = vpop.f32.mrb[0].mxu0 }
  0xee   : > { %v319_v8 = vmul.f32 0.17677669, %v313_v7  ;;  %v552_v9 = vpop.f32.mrb[1].mxu0 }
  0xef   : > { %v316_v10 = vpop.f32.mrb[2].mxu0 }
  0xf0   : > { %v553_v11 = vpop.f32.mrb[3].mxu0  ;;  %v326_v12 = vsel %vm325_vm3, %v319_v8, -inf }
  0xf1   : > { %v329_v13 = vsel %vm328_vm4, %v326_v12, -inf }
  0xf2   : > { %330 = vmax.xlane.f32.xlu0 %v329_v13 }
 0x17f   : > { %v331_v16 = vpop.xlane.xlu0 %330 }
 0x180   : > { %v332_v17 = vmax.f32 %v327_v15, %v331_v16 }
 0x182   : > { %v333_v18 = vsub.f32 %v327_v15, %v332_v17  ;;  %410 = vst.msk [vmem:[#allocation2] sm:$0xff] %vm265_vm2, %v332_v17  ;;  %338 = vperm.xlu0 %588, %v332_v17  }
 0x184   : > { %v334_v27 = vmul.f32 1.442695, %v333_v18 }
 0x201   : > { %v339_v21 = vpop.permute.xlu0 %338 }
 0x202   : > { %v341_v22 = vsub.f32 %v326_v12, %v339_v21 }
 0x204   : > { %v342_v23 = vmul.f32 1.442695, %v341_v22 }
 0x206   : > { %590 = vpow2.f32 %v342_v23 }
 0x207   : > { %592 = vpow2.f32 %v334_v27 }
 0x210   : > { %v591_v24 = vpop.eup %590 }
 0x211   : > { %v346_v25 = vsel %vm328_vm4, %v591_v24, 0.0  ;;  %v359_v26 = vpack.c.bf16 %v591_v24, %v591_v24  ;;  %v593_v28 = vpop.eup %592 }
 0x212   : > { %347 = vadd.xlane.f32.xlu1 %v346_v25  ;;  %v345_v30 = vmul.f32 %v593_v28, %v344_v29 }
 0x213   : > { %557 = vmatmul.mubr.msk.bf16.vlgmr.msra.gmra.mrb[0].mxu1 %vm328_vm4, %v359_v26 }
 0x223   : > { %355 = vperm.xlu1 %589, %v593_v28  }
 0x29f   : > { %v348_v31 = vpop.xlane.xlu1 %347 }
 0x2a0   : > { %v349_v32 = vadd.f32 %v348_v31, %v345_v30 }
 0x2a2   : > { %351 = vst.msk [vmem:[#allocation3] sm:$0xff] %vm265_vm2, %v349_v32 }
 0x2a3   : > { %v356_v36 = vpop.permute.xlu1 %355 }
 0x2a4   : > { %v358_v37 = vmul.f32 %v356_v36, %v352_v35 }
 0x2a9   : > { %v415_v33 = vld [vmem:[#allocation3] sm:$0xff] }
 0x2aa   : > { %594 = vrcp.f32 %v415_v33 }
 0x2b4   : > { %v595_v34 = vpop.eup %594 }
 0x2b5   : > { %419 = vperm.xlu1 %589, %v595_v34  }
 0x2e6   : > { %v402_v38 = vpop.f32.mrb[0].mxu1 }
 0x2e7   : > { %v408_v39 = vadd.f32 %v402_v38, %v358_v37  ;;  %v558_v40 = vpop.f32.mrb[1].mxu1 }
 0x2e8   : > { %v405_v41 = vpop.f32.mrb[2].mxu1 }
 0x2e9   : > { %409 = vst.msk [vmem:[#allocation4] sm:$0xff] %vm268_vm0, %v408_v39  ;;  %v559_v42 = vpop.f32.mrb[3].mxu1 }
 0x2f0   : > { %v414_v43 = vld [vmem:[#allocation4] sm:$0xff] }
 0x334   : > { %v420_v44 = vpop.permute.xlu1 %419 }
 0x335   : > { %v422_v45 = vmul.f32 %v420_v44, %v414_v43 }
 0x337   : > { %423 = vst.msk [vmem:[%s259_s29] sm:$0xff] %vm268_vm0, %v422_v45 }
 0x338 PF: > { %s13_s14 = sadd.s32 1, %s618_s14   ;;  %s708_s12 = smov %s614_s13 }
 0x339   : > { %p10_p5 = scmp.ge.s32.totalorder %s13_s14, 6   ;;  %s709_s13 = smov %s711_s15 }
 0x33b   :  { %12 = sbr.rel (!%p10_p5) target bundleno = 2 (0x2), region = 76 }

// kernel: vit_for_clip_forward.61
= control target key start
LH: loop header
LB: loop body
LE: loop exit
PB: predicated region body
PF: predicated region fallthrough
CT: control target
= control target key end

     0   :  { %vm22_vm0 = vcmask 523264   ;;  %v170_v0 = vmov 0.0   ;;  %vm171_vm1 = vmmov 0   ;;  %s234_s1 = inlined_call_operand.vmem [shape: bf16[64,64], index: 1, kind: input, shape index: {}]   ;;  %s235_s0 = inlined_call_operand.vmem [shape: bf16[16,64], index: 0, kind: input, shape index: {}]   ;;  %s236_s2 = inlined_call_operand.vmem [shape: f32[1,64], index: 2, kind: input, shape index: {}]   ;;  %s237_s3 = inlined_call_operand.vmem [shape: f32[16,64], index: 3, kind: input, shape index: {}]   ;;  %s238_s4 = inlined_call_operand.vmem [shape: f32[16,64], index: 4, kind: output, shape index: {}]  }
   0x1   :  { %151 = vmatprep.subr.bf16.mxu0 %v170_v0  ;;  %v165_v1 = vld [vmem:[%s234_s1] sm:$0xff]   ;;  %159 = vmatprep.mubr.msk.bf16.mxu0 %vm171_vm1, %v170_v0  ;;  %23 = vst.msk [vmem:[#allocation2] sm:$0xff] %vm22_vm0, %v170_v0  ;;  %24 = vst.msk [vmem:[#allocation2 + $0x8] sm:$0xff] %vm22_vm0, %v170_v0  ;;  %v166_v2 = vld [vmem:[%s234_s1 + $0x8] sm:$0xff]  }
   0x2   :  { %152 = vmatpush3.bf16.msra.mxu0 %v165_v1  ;;  %v167_v3 = vld [vmem:[%s234_s1 + $0x10] sm:$0xff]   ;;  %v168_v4 = vld [vmem:[%s234_s1 + $0x18] sm:$0xff]   ;;  %v169_v5 = vld [vmem:[%s235_s0] sm:$0xff]  }
   0x3   :  { %153 = vmatprep.subr.bf16.mxu0 %v170_v0  ;;  %v145_v14 = vld [vmem:[%s236_s2] ss:$0 sm:$0xff]  ;;  %v130_v19 = vld [vmem:[%s237_s3 + $0x8] sm:$0xff] }
   0x4   :  { %v129_v16 = vld [vmem:[%s237_s3] sm:$0xff] }
   0x6   :  { %154 = vmatpush3.bf16.msra.mxu0 %v166_v2 }
   0x7   :  { %155 = vmatprep.subr.bf16.mxu0 %v170_v0 }
   0x8   :  { %v25_v6 = vld [vmem:[#allocation2] sm:$0xff]  ;;  %v26_v8 = vld [vmem:[#allocation2 + $0x8] sm:$0xff] }
   0xa   :  { %156 = vmatpush3.bf16.msra.mxu0 %v167_v3 }
   0xb   :  { %157 = vmatprep.subr.bf16.mxu0 %v170_v0 }
   0xe   :  { %158 = vmatpush3.bf16.msra.mxu0 %v168_v4 }
  0x11   :  { %160 = vmatmul.mubr.msk.bf16.vlgmr.msra.gmra.mrb[0].mxu0 %vm22_vm0, %v169_v5 }
  0xe4   :  { %v104_v7 = vpop.f32.mrb[0].mxu0 }
  0xe5   :  { %v111_v9 = vadd.f32 %v104_v7, %v25_v6  ;;  %v161_v10 = vpop.f32.mrb[1].mxu0 }
  0xe6   :  { %v107_v11 = vpop.f32.mrb[2].mxu0 }
  0xe7   :  { %113 = vst.msk [vmem:[#allocation2] sm:$0xff] %vm22_vm0, %v111_v9  ;;  %v112_v12 = vadd.f32 %v107_v11, %v26_v8  ;;  %v162_v13 = vpop.f32.mrb[3].mxu0 }
  0xe9   :  { %114 = vst.msk [vmem:[#allocation2 + $0x8] sm:$0xff] %vm22_vm0, %v112_v12 }
  0xee   :  { %v118_v15 = vld [vmem:[#allocation2] sm:$0xff] }
  0xef   :  { %v127_v17 = vadd.f32 %v145_v14, %v118_v15 }
  0xf0   :  { %v119_v18 = vld [vmem:[#allocation2 + $0x8] sm:$0xff] }
  0xf1   :  { %v131_v20 = vadd.f32 %v129_v16, %v127_v17  ;;  %v128_v21 = vadd.f32 %v145_v14, %v119_v18 }
  0xf3   :  { %133 = vst.msk [vmem:[%s238_s4] sm:$0xff] %vm22_vm0, %v131_v20  ;;  %v132_v22 = vadd.f32 %v130_v19, %v128_v21 }
  0xf5   :  { %134 = vst.msk [vmem:[%s238_s4 + $0x8] sm:$0xff] %vm22_vm0, %v132_v22 }

// kernel: vit_for_clip_forward.67
= control target key start
LH: loop header
LB: loop body
LE: loop exit
PB: predicated region body
PF: predicated region fallthrough
CT: control target
= control target key end

     0   :  { %vm16_vm0 = vcmask 523264   ;;  %v150_v0 = vmov 0.0   ;;  %vm151_vm1 = vmmov 0   ;;  %s195_s1 = inlined_call_operand.vmem [shape: bf16[64,64], index: 1, kind: input, shape index: {}]   ;;  %s196_s0 = inlined_call_operand.vmem [shape: bf16[16,64], index: 0, kind: input, shape index: {}]   ;;  %s197_s2 = inlined_call_operand.vmem [shape: f32[16,64], index: 2, kind: output, shape index: {}]  }
   0x1   :  { %131 = vmatprep.subr.bf16.mxu0 %v150_v0  ;;  %v145_v1 = vld [vmem:[%s195_s1] sm:$0xff]   ;;  %139 = vmatprep.mubr.msk.bf16.mxu0 %vm151_vm1, %v150_v0  ;;  %17 = vst.msk [vmem:[#allocation2] sm:$0xff] %vm16_vm0, %v150_v0  ;;  %18 = vst.msk [vmem:[#allocation2 + $0x8] sm:$0xff] %vm16_vm0, %v150_v0  ;;  %v146_v2 = vld [vmem:[%s195_s1 + $0x8] sm:$0xff]  }
   0x2   :  { %132 = vmatpush3.bf16.msra.mxu0 %v145_v1  ;;  %v147_v3 = vld [vmem:[%s195_s1 + $0x10] sm:$0xff]   ;;  %v148_v4 = vld [vmem:[%s195_s1 + $0x18] sm:$0xff]   ;;  %v149_v5 = vld [vmem:[%s196_s0] sm:$0xff]  }
   0x3   :  { %133 = vmatprep.subr.bf16.mxu0 %v150_v0 }
   0x6   :  { %134 = vmatpush3.bf16.msra.mxu0 %v146_v2 }
   0x7   :  { %135 = vmatprep.subr.bf16.mxu0 %v150_v0 }
   0x8   :  { %v19_v6 = vld [vmem:[#allocation2] sm:$0xff]  ;;  %v20_v8 = vld [vmem:[#allocation2 + $0x8] sm:$0xff] }
   0xa   :  { %136 = vmatpush3.bf16.msra.mxu0 %v147_v3 }
   0xb   :  { %137 = vmatprep.subr.bf16.mxu0 %v150_v0 }
   0xe   :  { %138 = vmatpush3.bf16.msra.mxu0 %v148_v4 }
  0x11   :  { %140 = vmatmul.mubr.msk.bf16.vlgmr.msra.gmra.mrb[0].mxu0 %vm16_vm0, %v149_v5 }
  0xe4   :  { %v98_v7 = vpop.f32.mrb[0].mxu0 }
  0xe5   :  { %v105_v9 = vadd.f32 %v98_v7, %v19_v6  ;;  %v141_v10 = vpop.f32.mrb[1].mxu0 }
  0xe6   :  { %v101_v11 = vpop.f32.mrb[2].mxu0 }
  0xe7   :  { %107 = vst.msk [vmem:[#allocation2] sm:$0xff] %vm16_vm0, %v105_v9  ;;  %v106_v12 = vadd.f32 %v101_v11, %v20_v8  ;;  %v142_v13 = vpop.f32.mrb[3].mxu0 }
  0xe9   :  { %108 = vst.msk [vmem:[#allocation2 + $0x8] sm:$0xff] %vm16_vm0, %v106_v12 }
  0xee   :  { %v112_v14 = vld [vmem:[#allocation2] sm:$0xff] }
  0xef   :  { %114 = vst.msk [vmem:[%s197_s2] sm:$0xff] %vm16_vm0, %v112_v14 }
  0xf0   :  { %v113_v15 = vld [vmem:[#allocation2 + $0x8] sm:$0xff] }
  0xf1   :  { %115 = vst.msk [vmem:[%s197_s2 + $0x8] sm:$0xff] %vm16_vm0, %v113_v15 }

// kernel: vit_for_clip_forward.62
= control target key start
LH: loop header
LB: loop body
LE: loop exit
PB: predicated region body
PF: predicated region fallthrough
CT: control target
= control target key end

     0   :  { %vm29_vm0 = vcmask 523264   ;;  %v505_v22 = vmov 0   ;;  %v86_v56 = vlaneseq  ;;  %s659_s0 = inlined_call_operand.vmem [shape: f32[16,64], index: 0, kind: input, shape index: {}]   ;;  %s660_s3 = inlined_call_operand.vmem [shape: bf16[64,256], index: 3, kind: input, shape index: {}]   ;;  %s661_s1 = inlined_call_operand.vmem [shape: f32[1,64], index: 1, kind: input, shape index: {}]   ;;  %s662_s2 = inlined_call_operand.vmem [shape: f32[1,64], index: 2, kind: input, shape index: {}]   ;;  %s663_s5 = inlined_call_operand.vmem [shape: bf16[256,64], index: 5, kind: input, shape index: {}]   ;;  %s664_s4 = inlined_call_operand.vmem [shape: f32[1,256], index: 4, kind: input, shape index: {}]   ;;  %s665_s6 = inlined_call_operand.vmem [shape: f32[1,64], index: 6, kind: input, shape index: {}]   ;;  %s666_s7 = inlined_call_operand.vmem [shape: f32[16,64], index: 7, kind: output, shape index: {}]  }
   0x1   :  { %v549_v0 = vld [vmem:[%s659_s0] sm:$0xff]  ;;  %v554_v1 = vld [vmem:[%s659_s0 + $0x8] sm:$0xff]  ;;  %v460_v16 = vld [vmem:[%s660_s3 + $0x14] ss:$8 sps:$4 sm:$0xff]   ;;  %171 = vmatprep.mubr.bf16.mxu0 %v505_v22 }
   0x2   :  { %v30_v2 = vsel %vm29_vm0, %v549_v0, 0.0  ;;  %v33_v3 = vsel %vm29_vm0, %v554_v1, 0.0  ;;  %v457_v14 = vld [vmem:[%s660_s3 + $0x4] ss:$8 sps:$4 sm:$0xff]   ;;  %v459_v15 = vld [vmem:[%s660_s3] ss:$8 sps:$4 sm:$0xff]  }
   0x3   :  { %31 = vadd.xlane.f32.xlu0 %v30_v2  ;;  %139 = vmatprep.subr.bf16.mxu0 %v457_v14  ;;  %v462_v17 = vld [vmem:[%s660_s3 + $0x10] ss:$8 sps:$4 sm:$0xff]   ;;  %v463_v18 = vld [vmem:[%s660_s3 + $0x24] ss:$8 sps:$4 sm:$0xff]   ;;  %v465_v19 = vld [vmem:[%s660_s3 + $0x20] ss:$8 sps:$4 sm:$0xff]  }
   0x4   :  { %140 = vmatpush1.bf16.msra.mxu0 %v459_v15  ;;  %v466_v20 = vld [vmem:[%s660_s3 + $0x34] ss:$8 sps:$4 sm:$0xff]   ;;  %v468_v21 = vld [vmem:[%s660_s3 + $0x30] ss:$8 sps:$4 sm:$0xff]   ;;  %v402_v31 = vld [vmem:[%s661_s1] ss:$0 sm:$0xff] }
   0x5   :  { %141 = vmatprep.subr.bf16.mxu0 %v460_v16  ;;  %v403_v35 = vld [vmem:[%s662_s2] ss:$0 sm:$0xff]  ;;  %v471_v42 = vld [vmem:[%s663_s5 + $0x48] sm:$0xff]   ;;  %v473_v44 = vld [vmem:[%s663_s5 + $0x50] sm:$0xff]   ;;  %v87_v57 = vshrl.u32 %v86_v56, 7 }
   0x6   :  { %v469_v40 = vld [vmem:[%s663_s5 + $0x40] sm:$0xff]   ;;  %v472_v43 = vld [vmem:[%s663_s5 + $0x8] sm:$0xff]   ;;  %v474_v45 = vld [vmem:[%s663_s5 + $0x10] sm:$0xff]  }
   0x7   :  { %34 = vadd.xlane.f32.xlu0 %v33_v3  ;;  %v470_v41 = vld [vmem:[%s663_s5] sm:$0xff]   ;;  %434 = vmatprep.subr.bf16.mxu1 %v469_v40  ;;  %v475_v46 = vld [vmem:[%s663_s5 + $0x58] sm:$0xff]   ;;  %v479_v50 = vld [vmem:[%s663_s5 + $0x68] sm:$0xff]   ;;  %v88_v58 = vsub.s32 0, %v87_v57  ;;  %v92_v60 = vsub.s32 1, %v87_v57 }
   0x8   :  { %142 = vmatpush1.bf16.msra.mxu0 %v462_v17  ;;  %435 = vmatpush3.bf16.msra.mxu1 %v470_v41  ;;  %v476_v47 = vld [vmem:[%s663_s5 + $0x18] sm:$0xff]   ;;  %v477_v48 = vld [vmem:[%s663_s5 + $0x60] sm:$0xff]   ;;  %v480_v51 = vld [vmem:[%s663_s5 + $0x28] sm:$0xff]  }
   0x9   :  { %143 = vmatprep.subr.bf16.mxu0 %v463_v18  ;;  %436 = vmatprep.subr.bf16.mxu1 %v471_v42  ;;  %v478_v49 = vld [vmem:[%s663_s5 + $0x20] sm:$0xff]   ;;  %v481_v52 = vld [vmem:[%s663_s5 + $0x70] sm:$0xff]   ;;  %v483_v54 = vld [vmem:[%s663_s5 + $0x78] sm:$0xff]  }
   0xa   :  { %v482_v53 = vld [vmem:[%s663_s5 + $0x30] sm:$0xff]   ;;  %v484_v55 = vld [vmem:[%s663_s5 + $0x38] sm:$0xff]   ;;  %v84_v59 = vld [vmem:[%s664_s4] sm:$0x3] }
   0xb   :  { %v89_v61 = vrot.slane %v84_v59, %v88_v58  ;;  %v93_v62 = vrot.slane %v84_v59, %v92_v60 }
   0xc   :  { %144 = vmatpush1.bf16.msra.mxu0 %v465_v19  ;;  %437 = vmatpush3.bf16.msra.mxu1 %v472_v43 }
   0xd   :  { %145 = vmatprep.subr.bf16.mxu0 %v466_v20  ;;  %438 = vmatprep.subr.bf16.mxu1 %v473_v44 }
  0x10   :  { %146 = vmatpush1.bf16.msra.mxu0 %v468_v21  ;;  %439 = vmatpush3.bf16.msra.mxu1 %v474_v45 }
  0x11   :  { %440 = vmatprep.subr.bf16.mxu1 %v475_v46 }
  0x14   :  { %441 = vmatpush3.bf16.msra.mxu1 %v476_v47 }
  0x15   :  { %442 = vmatprep.subr.bf16.mxu1 %v477_v48 }
  0x18   :  { %443 = vmatpush3.bf16.msra.mxu1 %v478_v49 }
  0x19   :  { %444 = vmatprep.subr.bf16.mxu1 %v479_v50 }
  0x1c   :  { %445 = vmatpush3.bf16.msra.mxu1 %v480_v51 }
  0x1d   :  { %446 = vmatprep.subr.bf16.mxu1 %v481_v52 }
  0x20   :  { %447 = vmatpush3.bf16.msra.mxu1 %v482_v53 }
  0x21   :  { %448 = vmatprep.subr.bf16.mxu1 %v483_v54 }
  0x24   :  { %449 = vmatpush3.bf16.msra.mxu1 %v484_v55 }
  0x90   :  { %v32_v4 = vpop.xlane.xlu0 %31 }
  0x91   :  { %v37_v5 = vmul.f32 0.015625, %v32_v4 }
  0x93   :  { %v39_v6 = vsub.f32 %v549_v0, %v37_v5 }
  0x94   :  { %v35_v7 = vpop.xlane.xlu0 %34 }
  0x95   :  { %v38_v8 = vmul.f32 0.015625, %v35_v7  ;;  %v41_v9 = vmul.f32 %v39_v6, %v39_v6 }
  0x97   :  { %v40_v10 = vsub.f32 %v554_v1, %v38_v8  ;;  %v43_v11 = vsel %vm29_vm0, %v41_v9, 0.0 }
  0x98   :  { %44 = vadd.xlane.f32.xlu1 %v43_v11 }
  0x99   :  { %v42_v12 = vmul.f32 %v40_v10, %v40_v10 }
  0x9b   :  { %v46_v13 = vsel %vm29_vm0, %v42_v12, 0.0 }
  0x9c   :  { %47 = vadd.xlane.f32.xlu1 %v46_v13 }
 0x125   :  { %v45_v23 = vpop.xlane.xlu1 %44 }
 0x126   :  { %v49_v24 = vmul.f32 0.015625, %v45_v23 }
 0x128   :  { %v51_v25 = vadd.f32 1e-05, %v49_v24 }
 0x129   :  { %v48_v26 = vpop.xlane.xlu1 %47 }
 0x12a   :  { %485 = vrsqrt.f32 %v51_v25  ;;  %v50_v27 = vmul.f32 0.015625, %v48_v26 }
 0x12c   :  { %v52_v28 = vadd.f32 1e-05, %v50_v27 }
 0x12e   :  { %487 = vrsqrt.f32 %v52_v28 }
 0x134   :  { %v486_v29 = vpop.eup %485 }
 0x135   :  { %v55_v30 = vmul.f32 %v486_v29, %v39_v6 }
 0x137   :  { %v64_v34 = vmul.f32 %v402_v31, %v55_v30 }
 0x138   :  { %v488_v32 = vpop.eup %487 }
 0x139   :  { %v56_v33 = vmul.f32 %v488_v32, %v40_v10  ;;  %v73_v37 = vadd.f32 %v403_v35, %v64_v34 }
 0x13b   :  { %v65_v36 = vmul.f32 %v402_v31, %v56_v33 }
 0x13d   :  { %v74_v38 = vadd.f32 %v403_v35, %v65_v36 }
 0x13f   :  { %v75_v39 = vpack.c.bf16 %v74_v38, %v73_v37 }
 0x141   :  { %412 = vmatmul.mubr.msk.bf16.vlgmr.msra.gmra.mrb[0].mxu0 %vm29_vm0, %v75_v39  ;;  %v433_v39 = vld [vmem:[%s665_s6] ss:$0 sm:$0xff] }
 0x214   :  { %v173_v63 = vpop.f32.mrb[0].mxu0 }
 0x215   :  { %v174_v2 = vadd.f32 %v173_v63, %v89_v61  ;;  %v175_v3 = vpop.f32.mrb[1].mxu0 }
 0x216   :  { %v176_v4 = vadd.f32 %v175_v3, %v93_v62  ;;  %v177_v5 = vpop.f32.mrb[2].mxu0 }
 0x217   :  { %v413_v6 = vmul.f32 -1.702, %v174_v2  ;;  %v178_v7 = vadd.f32 %v177_v5, %v89_v61  ;;  %v179_v8 = vpop.f32.mrb[3].mxu0 }
 0x218   :  { %v414_v9 = vmul.f32 -1.702, %v176_v4  ;;  %v180_v10 = vadd.f32 %v179_v8, %v93_v62 }
 0x219   :  { %v190_v11 = vmul.f32 1.442695, %v413_v6  ;;  %v415_v12 = vmul.f32 -1.702, %v178_v7 }
 0x21a   :  { %v192_v13 = vmul.f32 1.442695, %v414_v9  ;;  %v416_v14 = vmul.f32 -1.702, %v180_v10 }
 0x21b   :  { %489 = vpow2.f32 %v190_v11  ;;  %v194_v15 = vmul.f32 1.442695, %v415_v12 }
 0x21c   :  { %491 = vpow2.f32 %v192_v13  ;;  %v196_v16 = vmul.f32 1.442695, %v416_v14 }
 0x21d   :  { %493 = vpow2.f32 %v194_v15 }
 0x21e   :  { %495 = vpow2.f32 %v196_v16 }
 0x225   :  { %v490_v17 = vpop.eup %489 }
 0x226   :  { %v492_v18 = vpop.eup %491  ;;  %v198_v19 = vadd.f32 1.0, %v490_v17 }
 0x227   :  { %v494_v20 = vpop.eup %493  ;;  %v199_v21 = vadd.f32 1.0, %v492_v18 }
 0x228   :  { %v496_v22 = vpop.eup %495  ;;  %497 = vrcp.f32 %v198_v19  ;;  %v200_v23 = vadd.f32 1.0, %v494_v20 }
 0x229   :  { %499 = vrcp.f32 %v199_v21  ;;  %v201_v24 = vadd.f32 1.0, %v496_v22 }
 0x22a   :  { %501 = vrcp.f32 %v200_v23 }
 0x22b   :  { %503 = vrcp.f32 %v201_v24 }
 0x232   :  { %v498_v25 = vpop.eup %497 }
 0x233   :  { %v500_v26 = vpop.eup %499  ;;  %v210_v29 = vmul.f32 %v498_v25, %v174_v2 }
 0x234   :  { %v502_v27 = vpop.eup %501  ;;  %v211_v31 = vmul.f32 %v500_v26, %v176_v4 }
 0x235   :  { %v504_v28 = vpop.eup %503  ;;  %v212_v30 = vmul.f32 %v502_v27, %v178_v7 }
 0x236   :  { %v213_v32 = vmul.f32 %v504_v28, %v180_v10 }
 0x237   :  { %v214_v33 = vpack.c.bf16 %v212_v30, %v210_v29 }
 0x238   :  { %v215_v34 = vpack.c.bf16 %v213_v32, %v211_v31 }
 0x23a   :  { %376 = vmatprep.mubr.bf16.mxu1 %v215_v34 }
 0x23b   :  { %377 = vmatmul.mubr.bf16.vlgmr.msra.gmra.mrb[0].mxu1 %v214_v33 }
 0x30e   :  { %v450_v35 = vpop.f32.mrb[0].mxu1 }
 0x30f   :  { %v451_v36 = vpop.f32.mrb[1].mxu1 }
 0x310   :  { %v452_v37 = vadd.f32 %v451_v36, %v450_v35  ;;  %v453_v38 = vpop.f32.mrb[2].mxu1 }
 0x311   :  { %v454_v40 = vpop.f32.mrb[3].mxu1 }
 0x312   :  { %v385_v41 = vadd.f32 %v452_v37, %v549_v0  ;;  %v455_v42 = vadd.f32 %v454_v40, %v453_v38 }
 0x314   :  { %v394_v43 = vadd.f32 %v433_v39, %v385_v41  ;;  %v386_v44 = vadd.f32 %v455_v42, %v554_v1 }
 0x316   :  { %396 = vst.msk [vmem:[%s666_s7] sm:$0xff] %vm29_vm0, %v394_v43  ;;  %v395_v45 = vadd.f32 %v433_v39, %v386_v44 }
 0x318   :  { %397 = vst.msk [vmem:[%s666_s7 + $0x8] sm:$0xff] %vm29_vm0, %v395_v45 }

</bundles_post_ra>
